<compile_context>
chip_gen: v6e
topology: v6e:2x2x1
jax: 0.10.0
libtpu: 0.0.40
codegen_flags: <defaults>
</compile_context>

<pallas_src>
from functools import partial

import numpy as np

import jax
import jax.numpy as jnp
from jax.experimental import pallas as pl
from jax.experimental.pallas import tpu as pltpu


# t = (oh + 1) * 3 + (ow + 1)  <->  PyTorch weight index [co, ci, oh + 1, ow + 1]
_TAPS = tuple((oh, ow) for oh in (-1, 0, 1) for ow in (-1, 0, 1))


# ---------------------------------------------------------------------------
# Kernel
# ---------------------------------------------------------------------------
def _dense_kernel(x_ref, masks_ref, w1_ref, b1_ref, w2_ref, b2_ref,
                  w3_ref, b3_ref, w4_ref, b4_ref, out_ref, pad_ref,
                  *, C, W, LANES, PAD):
    f32 = jnp.float32

    # Zero the halo margins (cheap: two tiny aligned stores).  The centre
    # region is rewritten before every conv stage; the margins stay zero.
    pad_ref[:, :PAD] = jnp.zeros((C, PAD), f32)
    pad_ref[:, PAD + LANES:PAD + 2 * PAD + LANES - PAD] = jnp.zeros((C, PAD), f32)

    x = x_ref[...].astype(f32)                                  # (C, LANES)

    def conv3x3(v, w_ref, b_ref):
        # Stage the input in the zero-padded scratch; each 3x3 tap is then a
        # statically-offset (C, LANES) window (shift semantics unambiguous).
        pad_ref[:, PAD:PAD + LANES] = v
        acc = jnp.broadcast_to(b_ref[...], (C, LANES))          # bias init
        for t, (oh, ow) in enumerate(_TAPS):
            d = oh * W + ow
            if d == 0:
                tap = v                                          # centre tap
            else:
                tap = pad_ref[:, PAD + d:PAD + d + LANES]        # tap[q] = v[q+d]
                tap = tap * masks_ref[t:t + 1, :]                # zero out-of-image
            for ci in range(C):
                col = ci * 9 + t
                w_col = w_ref[:, col:col + 1]                    # (C, 1) VMEM column
                acc = acc + w_col * tap[ci:ci + 1, :]            # rank-1 FMA
        return jnp.maximum(acc, 0.2 * acc)                       # LeakyReLU(0.2)

    # 1x1 fusion conv folded into the pipeline: accumulate each stage's rows
    # into `fuse` as soon as they are produced (no concat ever materialises).
    fuse = jnp.broadcast_to(b4_ref[...], (C, LANES))

    def fold(fuse, stage, v):
        for ci in range(C):
            col = stage * C + ci
            fuse = fuse + w4_ref[:, col:col + 1] * v[ci:ci + 1, :]
        return fuse

    fuse = fold(fuse, 0, x)
    x1 = conv3x3(x, w1_ref, b1_ref)
    fuse = fold(fuse, 1, x1)
    x2 = conv3x3(x1, w2_ref, b2_ref)
    fuse = fold(fuse, 2, x2)
    x3 = conv3x3(x2, w3_ref, b3_ref)
    fuse = fold(fuse, 3, x3)

    out_ref[...] = fuse.astype(out_ref.dtype)                    # one lane-dense store


# ---------------------------------------------------------------------------
# Wrapper
# ---------------------------------------------------------------------------
def _tap_masks(H, W, reps):
    hh, ww = np.meshgrid(np.arange(H), np.arange(W), indexing="ij")
    rows = []
    for oh, ow in _TAPS:
        valid = ((hh + oh >= 0) & (hh + oh < H) &
                 (ww + ow >= 0) & (ww + ow < W))
        rows.append(np.tile(valid.reshape(-1), reps).astype(np.float32))
    return jnp.asarray(np.stack(rows))                           # (9, reps*H*W)


def _pick_batch_per_block(B, HW, max_lanes=1024):
    # Prefer wide lane blocks, but keep >= 2 grid blocks when B >= 2 so both
    # v7x TensorCores get work.  v5e/v6e users can pass batch_per_block=B.
    best = 1
    for g in range(1, B + 1):
        if B % g or g * HW > max_lanes:
            continue
        if g < B and (g * HW) % 128 != 0:
            continue
        if B // g >= 2 or B == 1:
            best = g
    return best


def dense_module(x_nchw, params, *, batch_per_block=None):
    """Forward pass. x_nchw: (B, C, H, W) float32 -> (B, C, H, W)."""
    w1, b1, w2, b2, w3, b3, w4, b4 = params          # OIHW / (C,) / (C, 4C) / (C,)
    B, C, H, W = x_nchw.shape
    HW = H * W

    G = batch_per_block if batch_per_block is not None else _pick_batch_per_block(B, HW)
    assert B % G == 0, "batch_per_block must divide the batch"
    LANES = G * HW
    PAD = 128 * ((W + 1 + 127) // 128)               # halo >= W+1, lane-aligned

    masks = _tap_masks(H, W, G)                      # (9, LANES)

    # Kernel-side weight layouts (all small VMEM tensors).
    w1k = w1.reshape(C, C * 9)                       # column index = ci*9 + t
    w2k = w2.reshape(C, C * 9)
    w3k = w3.reshape(C, C * 9)
    w4k = w4                                         # (C, 4C), column = stage*C + ci
    b1k, b2k, b3k, b4k = (b.reshape(C, 1) for b in (b1, b2, b3, b4))

    kernel = partial(_dense_kernel, C=C, W=W, LANES=LANES, PAD=PAD)

    const_specs = [
        pl.BlockSpec((9, LANES), lambda i: (0, 0)),              # border masks
        pl.BlockSpec((C, C * 9), lambda i: (0, 0)),              # w1
        pl.BlockSpec((C, 1), lambda i: (0, 0)),                  # b1
        pl.BlockSpec((C, C * 9), lambda i: (0, 0)),              # w2
        pl.BlockSpec((C, 1), lambda i: (0, 0)),                  # b2
        pl.BlockSpec((C, C * 9), lambda i: (0, 0)),              # w3
        pl.BlockSpec((C, 1), lambda i: (0, 0)),                  # b3
        pl.BlockSpec((C, 4 * C), lambda i: (0, 0)),              # w4
        pl.BlockSpec((C, 1), lambda i: (0, 0)),                  # b4
    ]
    scratch = [pltpu.VMEM((C, LANES + 2 * PAD), jnp.float32)]    # padded stage buffer

    if G == 1:
        # Natural (B, C, HW) layout; grid over images (parallel -> 2 TCs on v7x).
        x_in = x_nchw.reshape(B, C, HW)
        grid = (B,)
        x_spec = pl.BlockSpec((None, C, HW), lambda b: (b, 0, 0))
        out_spec = pl.BlockSpec((None, C, HW), lambda b: (b, 0, 0))
        out_shape = jax.ShapeDtypeStruct((B, C, HW), jnp.float32)
    else:
        # Layout plumbing: fold G images onto the lane axis (wider blocks,
        # fewer grid steps -- preferred on single-TC v5e/v6e).
        x_in = x_nchw.reshape(B, C, HW).transpose(1, 0, 2).reshape(C, B * HW)
        grid = (B // G,)
        x_spec = pl.BlockSpec((C, LANES), lambda i: (0, i))
        out_spec = pl.BlockSpec((C, LANES), lambda i: (0, i))
        out_shape = jax.ShapeDtypeStruct((C, B * HW), jnp.float32)

    out = pl.pallas_call(
        kernel,
        out_shape=out_shape,
        grid_spec=pltpu.PrefetchScalarGridSpec(
            num_scalar_prefetch=0,
            grid=grid,
            in_specs=[x_spec] + const_specs,
            out_specs=out_spec,
            scratch_shapes=scratch,
        ),
        compiler_params=pltpu.CompilerParams(
            dimension_semantics=("parallel",)),
    )(x_in, masks, w1k, b1k, w2k, b2k, w3k, b3k, w4k, b4k)

    if G == 1:
        return out.reshape(B, C, H, W)
    return out.reshape(C, B, HW).transpose(1, 0, 2).reshape(B, C, H, W)


# ---------------------------------------------------------------------------
# Params (PyTorch-style layout + init) and pure-JAX reference
# ---------------------------------------------------------------------------
def _lrelu(v):
    return jnp.where(v >= 0, v, 0.2 * v)


def init_params(key, C):
    ks = jax.random.split(key, 8)

    def u(k, shape, fan_in):
        bound = 1.0 / float(fan_in) ** 0.5
        return jax.random.uniform(k, shape, jnp.float32, -bound, bound)

    w1 = u(ks[0], (C, C, 3, 3), 9 * C)      # OIHW
    b1 = u(ks[1], (C,), 9 * C)
    w2 = u(ks[2], (C, C, 3, 3), 9 * C)
    b2 = u(ks[3], (C,), 9 * C)
    w3 = u(ks[4], (C, C, 3, 3), 9 * C)
    b3 = u(ks[5], (C,), 9 * C)
    w4 = u(ks[6], (C, 4 * C), 4 * C)        # 1x1 conv: (C_out, C_in)
    b4 = u(ks[7], (C,), 4 * C)
    return (w1, b1, w2, b2, w3, b3, w4, b4)


def reference(x_nchw, params):
    """Pure-JAX reference (matches the PyTorch forward)."""
    w1, b1, w2, b2, w3, b3, w4, b4 = params
    C = x_nchw.shape[1]
    x = jnp.transpose(x_nchw, (0, 2, 3, 1))
    dn = ("NHWC", "HWIO", "NHWC")

    def conv3(v, w_oihw, b):
        w = jnp.transpose(w_oihw, (2, 3, 1, 0))
        y = jax.lax.conv_general_dilated(v, w, (1, 1), "SAME",
                                         dimension_numbers=dn)
        return y + b.reshape(1, 1, 1, -1)

    x1 = _lrelu(conv3(x, w1, b1))
    x2 = _lrelu(conv3(x1, w2, b2))
    x3 = _lrelu(conv3(x2, w3, b3))
    cat = jnp.concatenate([x, x1, x2, x3], axis=-1)
    w4h = jnp.transpose(w4, (1, 0)).reshape(1, 1, 4 * C, C)
    out = jax.lax.conv_general_dilated(cat, w4h, (1, 1), "VALID",
                                       dimension_numbers=dn)
    out = out + b4.reshape(1, 1, 1, -1)
    return jnp.transpose(out, (0, 3, 1, 2))


if __name__ == "__main__":
    B, C, H, W = 2, 4, 16, 16
    key = jax.random.PRNGKey(0)
    k_x, k_p = jax.random.split(key)

    x = jax.random.normal(k_x, (B, C, H, W), jnp.float32)
    params = init_params(k_p, C)

    ref = jax.block_until_ready(reference(x, params))

    # Default path: grid over batch (v7x: both TensorCores busy).
    out = jax.block_until_ready(dense_module(x, params))
    assert out.shape == (B, C, H, W)
    assert jnp.allclose(out, ref, atol=1e-4, rtol=1e-4), "mismatch (grid-over-batch)"

    # Lane-folded path (v5e/v6e preference): whole batch in one 512-lane block.
    out_folded = jax.block_until_ready(dense_module(x, params, batch_per_block=B))
    assert jnp.allclose(out_folded, ref, atol=1e-4, rtol=1e-4), "mismatch (lane-folded)"

    print("KERNEL_OK")
</pallas_src>

<mosaic_0001>
module attributes {stable_mosaic.version = 11 : i64} {
  func.func @_dense_kernel(%arg0: i32, %arg1: memref<1x4x256xf32, #tpu.memory_space<vmem>>, %arg2: memref<9x256xf32, #tpu.memory_space<vmem>>, %arg3: memref<4x36xf32, #tpu.memory_space<vmem>>, %arg4: memref<4x1xf32, #tpu.memory_space<vmem>>, %arg5: memref<4x36xf32, #tpu.memory_space<vmem>>, %arg6: memref<4x1xf32, #tpu.memory_space<vmem>>, %arg7: memref<4x36xf32, #tpu.memory_space<vmem>>, %arg8: memref<4x1xf32, #tpu.memory_space<vmem>>, %arg9: memref<4x16xf32, #tpu.memory_space<vmem>>, %arg10: memref<4x1xf32, #tpu.memory_space<vmem>>, %arg11: memref<1x4x256xf32, #tpu.memory_space<vmem>>, %arg12: memref<4x512xf32, #tpu.memory_space<vmem>>) attributes {dimension_semantics = [#tpu.dimension_semantics<parallel>], iteration_bounds = array<i64: 2>, scalar_prefetch = 0 : i64, scratch_operands = 1 : i64, tpu.core_type = #tpu.core_type<tc>, window_params = [{transform_indices = @transform_0, window_bounds = array<i64: 1, 4, 256>}, {pipeline_mode = #tpu.pipeline_mode<synchronous>, transform_indices = @transform_1, window_bounds = array<i64: 9, 256>}, {pipeline_mode = #tpu.pipeline_mode<synchronous>, transform_indices = @transform_2, window_bounds = array<i64: 4, 36>}, {pipeline_mode = #tpu.pipeline_mode<synchronous>, transform_indices = @transform_3, window_bounds = array<i64: 4, 1>}, {pipeline_mode = #tpu.pipeline_mode<synchronous>, transform_indices = @transform_4, window_bounds = array<i64: 4, 36>}, {pipeline_mode = #tpu.pipeline_mode<synchronous>, transform_indices = @transform_5, window_bounds = array<i64: 4, 1>}, {pipeline_mode = #tpu.pipeline_mode<synchronous>, transform_indices = @transform_6, window_bounds = array<i64: 4, 36>}, {pipeline_mode = #tpu.pipeline_mode<synchronous>, transform_indices = @transform_7, window_bounds = array<i64: 4, 1>}, {pipeline_mode = #tpu.pipeline_mode<synchronous>, transform_indices = @transform_8, window_bounds = array<i64: 4, 16>}, {pipeline_mode = #tpu.pipeline_mode<synchronous>, transform_indices = @transform_9, window_bounds = array<i64: 4, 1>}, {transform_indices = @transform_10, window_bounds = array<i64: 1, 4, 256>}]} {
    %cst = arith.constant 0.000000e+00 : f32
    %0 = vector.broadcast %cst : f32 to vector<4x128xf32>
    %c0 = arith.constant 0 : index
    %c0_0 = arith.constant 0 : index
    %1 = vector.load %arg12[%c0, %c0_0] : memref<4x512xf32, #tpu.memory_space<vmem>>, vector<4x128xf32>
    tpu.vector_store %arg12[%c0, %c0_0], %0 {strides = array<i32>} : memref<4x512xf32, #tpu.memory_space<vmem>>, vector<4x128xf32>,
    %cst_1 = arith.constant 0.000000e+00 : f32
    %2 = vector.broadcast %cst_1 : f32 to vector<4x128xf32>
    %c0_2 = arith.constant 0 : index
    %c384 = arith.constant 384 : index
    %3 = vector.load %arg12[%c0_2, %c384] : memref<4x512xf32, #tpu.memory_space<vmem>>, vector<4x128xf32>
    tpu.vector_store %arg12[%c0_2, %c384], %2 {strides = array<i32>} : memref<4x512xf32, #tpu.memory_space<vmem>>, vector<4x128xf32>,
    %c0_3 = arith.constant 0 : index
    %c0_4 = arith.constant 0 : index
    %c0_5 = arith.constant 0 : index
    %4 = vector.load %arg1[%c0_3, %c0_4, %c0_5] : memref<1x4x256xf32, #tpu.memory_space<vmem>>, vector<1x4x256xf32>
    %5 = vector.shape_cast %4 : vector<1x4x256xf32> to vector<4x256xf32>
    %c0_6 = arith.constant 0 : index
    %c0_7 = arith.constant 0 : index
    %6 = vector.load %arg10[%c0_6, %c0_7] : memref<4x1xf32, #tpu.memory_space<vmem>>, vector<4x1xf32>
    %7 = vector.shape_cast %6 : vector<4x1xf32> to vector<4x1xf32>
    %8 = vector.broadcast %7 : vector<4x1xf32> to vector<4x256xf32>
    %c0_8 = arith.constant 0 : index
    %c0_9 = arith.constant 0 : index
    %9 = vector.load %arg9[%c0_8, %c0_9] : memref<4x16xf32, #tpu.memory_space<vmem>>, vector<4x1xf32>
    %10 = vector.extract_strided_slice %5 {offsets = [0, 0], sizes = [1, 256], strides = [1, 1]} : vector<4x256xf32> to vector<1x256xf32>
    %11 = vector.broadcast %9 : vector<4x1xf32> to vector<4x256xf32>
    %12 = vector.broadcast %10 : vector<1x256xf32> to vector<4x256xf32>
    %13 = arith.mulf %11, %12 : vector<4x256xf32>
    %14 = arith.addf %8, %13 : vector<4x256xf32>
    %c0_10 = arith.constant 0 : index
    %c1 = arith.constant 1 : index
    %15 = vector.load %arg9[%c0_10, %c1] : memref<4x16xf32, #tpu.memory_space<vmem>>, vector<4x1xf32>
    %16 = vector.extract_strided_slice %5 {offsets = [1, 0], sizes = [1, 256], strides = [1, 1]} : vector<4x256xf32> to vector<1x256xf32>
    %17 = vector.broadcast %15 : vector<4x1xf32> to vector<4x256xf32>
    %18 = vector.broadcast %16 : vector<1x256xf32> to vector<4x256xf32>
    %19 = arith.mulf %17, %18 : vector<4x256xf32>
    %20 = arith.addf %14, %19 : vector<4x256xf32>
    %c0_11 = arith.constant 0 : index
    %c2 = arith.constant 2 : index
    %21 = vector.load %arg9[%c0_11, %c2] : memref<4x16xf32, #tpu.memory_space<vmem>>, vector<4x1xf32>
    %22 = vector.extract_strided_slice %5 {offsets = [2, 0], sizes = [1, 256], strides = [1, 1]} : vector<4x256xf32> to vector<1x256xf32>
    %23 = vector.broadcast %21 : vector<4x1xf32> to vector<4x256xf32>
    %24 = vector.broadcast %22 : vector<1x256xf32> to vector<4x256xf32>
    %25 = arith.mulf %23, %24 : vector<4x256xf32>
    %26 = arith.addf %20, %25 : vector<4x256xf32>
    %c0_12 = arith.constant 0 : index
    %c3 = arith.constant 3 : index
    %27 = vector.load %arg9[%c0_12, %c3] : memref<4x16xf32, #tpu.memory_space<vmem>>, vector<4x1xf32>
    %28 = vector.extract_strided_slice %5 {offsets = [3, 0], sizes = [1, 256], strides = [1, 1]} : vector<4x256xf32> to vector<1x256xf32>
    %29 = vector.broadcast %27 : vector<4x1xf32> to vector<4x256xf32>
    %30 = vector.broadcast %28 : vector<1x256xf32> to vector<4x256xf32>
    %31 = arith.mulf %29, %30 : vector<4x256xf32>
    %32 = arith.addf %26, %31 : vector<4x256xf32>
    %c0_13 = arith.constant 0 : index
    %c128 = arith.constant 128 : index
    %33 = vector.load %arg12[%c0_13, %c128] : memref<4x512xf32, #tpu.memory_space<vmem>>, vector<4x256xf32>
    tpu.vector_store %arg12[%c0_13, %c128], %5 {strides = array<i32>} : memref<4x512xf32, #tpu.memory_space<vmem>>, vector<4x256xf32>,
    %c0_14 = arith.constant 0 : index
    %c0_15 = arith.constant 0 : index
    %34 = vector.load %arg4[%c0_14, %c0_15] : memref<4x1xf32, #tpu.memory_space<vmem>>, vector<4x1xf32>
    %35 = vector.shape_cast %34 : vector<4x1xf32> to vector<4x1xf32>
    %36 = vector.broadcast %35 : vector<4x1xf32> to vector<4x256xf32>
    %c0_16 = arith.constant 0 : index
    %c111 = arith.constant 111 : index
    %37 = vector.load %arg12[%c0_16, %c111] : memref<4x512xf32, #tpu.memory_space<vmem>>, vector<4x256xf32>
    %c0_17 = arith.constant 0 : index
    %c0_18 = arith.constant 0 : index
    %38 = vector.load %arg2[%c0_17, %c0_18] : memref<9x256xf32, #tpu.memory_space<vmem>>, vector<1x256xf32>
    %39 = vector.broadcast %38 : vector<1x256xf32> to vector<4x256xf32>
    %40 = arith.mulf %37, %39 : vector<4x256xf32>
    %c0_19 = arith.constant 0 : index
    %c0_20 = arith.constant 0 : index
    %41 = vector.load %arg3[%c0_19, %c0_20] : memref<4x36xf32, #tpu.memory_space<vmem>>, vector<4x1xf32>
    %42 = vector.extract_strided_slice %40 {offsets = [0, 0], sizes = [1, 256], strides = [1, 1]} : vector<4x256xf32> to vector<1x256xf32>
    %43 = vector.broadcast %41 : vector<4x1xf32> to vector<4x256xf32>
    %44 = vector.broadcast %42 : vector<1x256xf32> to vector<4x256xf32>
    %45 = arith.mulf %43, %44 : vector<4x256xf32>
    %46 = arith.addf %36, %45 : vector<4x256xf32>
    %c0_21 = arith.constant 0 : index
    %c9 = arith.constant 9 : index
    %47 = vector.load %arg3[%c0_21, %c9] : memref<4x36xf32, #tpu.memory_space<vmem>>, vector<4x1xf32>
    %48 = vector.extract_strided_slice %40 {offsets = [1, 0], sizes = [1, 256], strides = [1, 1]} : vector<4x256xf32> to vector<1x256xf32>
    %49 = vector.broadcast %47 : vector<4x1xf32> to vector<4x256xf32>
    %50 = vector.broadcast %48 : vector<1x256xf32> to vector<4x256xf32>
    %51 = arith.mulf %49, %50 : vector<4x256xf32>
    %52 = arith.addf %46, %51 : vector<4x256xf32>
    %c0_22 = arith.constant 0 : index
    %c18 = arith.constant 18 : index
    %53 = vector.load %arg3[%c0_22, %c18] : memref<4x36xf32, #tpu.memory_space<vmem>>, vector<4x1xf32>
    %54 = vector.extract_strided_slice %40 {offsets = [2, 0], sizes = [1, 256], strides = [1, 1]} : vector<4x256xf32> to vector<1x256xf32>
    %55 = vector.broadcast %53 : vector<4x1xf32> to vector<4x256xf32>
    %56 = vector.broadcast %54 : vector<1x256xf32> to vector<4x256xf32>
    %57 = arith.mulf %55, %56 : vector<4x256xf32>
    %58 = arith.addf %52, %57 : vector<4x256xf32>
    %c0_23 = arith.constant 0 : index
    %c27 = arith.constant 27 : index
    %59 = vector.load %arg3[%c0_23, %c27] : memref<4x36xf32, #tpu.memory_space<vmem>>, vector<4x1xf32>
    %60 = vector.extract_strided_slice %40 {offsets = [3, 0], sizes = [1, 256], strides = [1, 1]} : vector<4x256xf32> to vector<1x256xf32>
    %61 = vector.broadcast %59 : vector<4x1xf32> to vector<4x256xf32>
    %62 = vector.broadcast %60 : vector<1x256xf32> to vector<4x256xf32>
    %63 = arith.mulf %61, %62 : vector<4x256xf32>
    %64 = arith.addf %58, %63 : vector<4x256xf32>
    %c0_24 = arith.constant 0 : index
    %c112 = arith.constant 112 : index
    %65 = vector.load %arg12[%c0_24, %c112] : memref<4x512xf32, #tpu.memory_space<vmem>>, vector<4x256xf32>
    %c1_25 = arith.constant 1 : index
    %c0_26 = arith.constant 0 : index
    %66 = vector.load %arg2[%c1_25, %c0_26] : memref<9x256xf32, #tpu.memory_space<vmem>>, vector<1x256xf32>
    %67 = vector.broadcast %66 : vector<1x256xf32> to vector<4x256xf32>
    %68 = arith.mulf %65, %67 : vector<4x256xf32>
    %c0_27 = arith.constant 0 : index
    %c1_28 = arith.constant 1 : index
    %69 = vector.load %arg3[%c0_27, %c1_28] : memref<4x36xf32, #tpu.memory_space<vmem>>, vector<4x1xf32>
    %70 = vector.extract_strided_slice %68 {offsets = [0, 0], sizes = [1, 256], strides = [1, 1]} : vector<4x256xf32> to vector<1x256xf32>
    %71 = vector.broadcast %69 : vector<4x1xf32> to vector<4x256xf32>
    %72 = vector.broadcast %70 : vector<1x256xf32> to vector<4x256xf32>
    %73 = arith.mulf %71, %72 : vector<4x256xf32>
    %74 = arith.addf %64, %73 : vector<4x256xf32>
    %c0_29 = arith.constant 0 : index
    %c10 = arith.constant 10 : index
    %75 = vector.load %arg3[%c0_29, %c10] : memref<4x36xf32, #tpu.memory_space<vmem>>, vector<4x1xf32>
    %76 = vector.extract_strided_slice %68 {offsets = [1, 0], sizes = [1, 256], strides = [1, 1]} : vector<4x256xf32> to vector<1x256xf32>
    %77 = vector.broadcast %75 : vector<4x1xf32> to vector<4x256xf32>
    %78 = vector.broadcast %76 : vector<1x256xf32> to vector<4x256xf32>
    %79 = arith.mulf %77, %78 : vector<4x256xf32>
    %80 = arith.addf %74, %79 : vector<4x256xf32>
    %c0_30 = arith.constant 0 : index
    %c19 = arith.constant 19 : index
    %81 = vector.load %arg3[%c0_30, %c19] : memref<4x36xf32, #tpu.memory_space<vmem>>, vector<4x1xf32>
    %82 = vector.extract_strided_slice %68 {offsets = [2, 0], sizes = [1, 256], strides = [1, 1]} : vector<4x256xf32> to vector<1x256xf32>
    %83 = vector.broadcast %81 : vector<4x1xf32> to vector<4x256xf32>
    %84 = vector.broadcast %82 : vector<1x256xf32> to vector<4x256xf32>
    %85 = arith.mulf %83, %84 : vector<4x256xf32>
    %86 = arith.addf %80, %85 : vector<4x256xf32>
    %c0_31 = arith.constant 0 : index
    %c28 = arith.constant 28 : index
    %87 = vector.load %arg3[%c0_31, %c28] : memref<4x36xf32, #tpu.memory_space<vmem>>, vector<4x1xf32>
    %88 = vector.extract_strided_slice %68 {offsets = [3, 0], sizes = [1, 256], strides = [1, 1]} : vector<4x256xf32> to vector<1x256xf32>
    %89 = vector.broadcast %87 : vector<4x1xf32> to vector<4x256xf32>
    %90 = vector.broadcast %88 : vector<1x256xf32> to vector<4x256xf32>
    %91 = arith.mulf %89, %90 : vector<4x256xf32>
    %92 = arith.addf %86, %91 : vector<4x256xf32>
    %c0_32 = arith.constant 0 : index
    %c113 = arith.constant 113 : index
    %93 = vector.load %arg12[%c0_32, %c113] : memref<4x512xf32, #tpu.memory_space<vmem>>, vector<4x256xf32>
    %c2_33 = arith.constant 2 : index
    %c0_34 = arith.constant 0 : index
    %94 = vector.load %arg2[%c2_33, %c0_34] : memref<9x256xf32, #tpu.memory_space<vmem>>, vector<1x256xf32>
    %95 = vector.broadcast %94 : vector<1x256xf32> to vector<4x256xf32>
    %96 = arith.mulf %93, %95 : vector<4x256xf32>
    %c0_35 = arith.constant 0 : index
    %c2_36 = arith.constant 2 : index
    %97 = vector.load %arg3[%c0_35, %c2_36] : memref<4x36xf32, #tpu.memory_space<vmem>>, vector<4x1xf32>
    %98 = vector.extract_strided_slice %96 {offsets = [0, 0], sizes = [1, 256], strides = [1, 1]} : vector<4x256xf32> to vector<1x256xf32>
    %99 = vector.broadcast %97 : vector<4x1xf32> to vector<4x256xf32>
    %100 = vector.broadcast %98 : vector<1x256xf32> to vector<4x256xf32>
    %101 = arith.mulf %99, %100 : vector<4x256xf32>
    %102 = arith.addf %92, %101 : vector<4x256xf32>
    %c0_37 = arith.constant 0 : index
    %c11 = arith.constant 11 : index
    %103 = vector.load %arg3[%c0_37, %c11] : memref<4x36xf32, #tpu.memory_space<vmem>>, vector<4x1xf32>
    %104 = vector.extract_strided_slice %96 {offsets = [1, 0], sizes = [1, 256], strides = [1, 1]} : vector<4x256xf32> to vector<1x256xf32>
    %105 = vector.broadcast %103 : vector<4x1xf32> to vector<4x256xf32>
    %106 = vector.broadcast %104 : vector<1x256xf32> to vector<4x256xf32>
    %107 = arith.mulf %105, %106 : vector<4x256xf32>
    %108 = arith.addf %102, %107 : vector<4x256xf32>
    %c0_38 = arith.constant 0 : index
    %c20 = arith.constant 20 : index
    %109 = vector.load %arg3[%c0_38, %c20] : memref<4x36xf32, #tpu.memory_space<vmem>>, vector<4x1xf32>
    %110 = vector.extract_strided_slice %96 {offsets = [2, 0], sizes = [1, 256], strides = [1, 1]} : vector<4x256xf32> to vector<1x256xf32>
    %111 = vector.broadcast %109 : vector<4x1xf32> to vector<4x256xf32>
    %112 = vector.broadcast %110 : vector<1x256xf32> to vector<4x256xf32>
    %113 = arith.mulf %111, %112 : vector<4x256xf32>
    %114 = arith.addf %108, %113 : vector<4x256xf32>
    %c0_39 = arith.constant 0 : index
    %c29 = arith.constant 29 : index
    %115 = vector.load %arg3[%c0_39, %c29] : memref<4x36xf32, #tpu.memory_space<vmem>>, vector<4x1xf32>
    %116 = vector.extract_strided_slice %96 {offsets = [3, 0], sizes = [1, 256], strides = [1, 1]} : vector<4x256xf32> to vector<1x256xf32>
    %117 = vector.broadcast %115 : vector<4x1xf32> to vector<4x256xf32>
    %118 = vector.broadcast %116 : vector<1x256xf32> to vector<4x256xf32>
    %119 = arith.mulf %117, %118 : vector<4x256xf32>
    %120 = arith.addf %114, %119 : vector<4x256xf32>
    %c0_40 = arith.constant 0 : index
    %c127 = arith.constant 127 : index
    %121 = vector.load %arg12[%c0_40, %c127] : memref<4x512xf32, #tpu.memory_space<vmem>>, vector<4x256xf32>
    %c3_41 = arith.constant 3 : index
    %c0_42 = arith.constant 0 : index
    %122 = vector.load %arg2[%c3_41, %c0_42] : memref<9x256xf32, #tpu.memory_space<vmem>>, vector<1x256xf32>
    %123 = vector.broadcast %122 : vector<1x256xf32> to vector<4x256xf32>
    %124 = arith.mulf %121, %123 : vector<4x256xf32>
    %c0_43 = arith.constant 0 : index
    %c3_44 = arith.constant 3 : index
    %125 = vector.load %arg3[%c0_43, %c3_44] : memref<4x36xf32, #tpu.memory_space<vmem>>, vector<4x1xf32>
    %126 = vector.extract_strided_slice %124 {offsets = [0, 0], sizes = [1, 256], strides = [1, 1]} : vector<4x256xf32> to vector<1x256xf32>
    %127 = vector.broadcast %125 : vector<4x1xf32> to vector<4x256xf32>
    %128 = vector.broadcast %126 : vector<1x256xf32> to vector<4x256xf32>
    %129 = arith.mulf %127, %128 : vector<4x256xf32>
    %130 = arith.addf %120, %129 : vector<4x256xf32>
    %c0_45 = arith.constant 0 : index
    %c12 = arith.constant 12 : index
    %131 = vector.load %arg3[%c0_45, %c12] : memref<4x36xf32, #tpu.memory_space<vmem>>, vector<4x1xf32>
    %132 = vector.extract_strided_slice %124 {offsets = [1, 0], sizes = [1, 256], strides = [1, 1]} : vector<4x256xf32> to vector<1x256xf32>
    %133 = vector.broadcast %131 : vector<4x1xf32> to vector<4x256xf32>
    %134 = vector.broadcast %132 : vector<1x256xf32> to vector<4x256xf32>
    %135 = arith.mulf %133, %134 : vector<4x256xf32>
    %136 = arith.addf %130, %135 : vector<4x256xf32>
    %c0_46 = arith.constant 0 : index
    %c21 = arith.constant 21 : index
    %137 = vector.load %arg3[%c0_46, %c21] : memref<4x36xf32, #tpu.memory_space<vmem>>, vector<4x1xf32>
    %138 = vector.extract_strided_slice %124 {offsets = [2, 0], sizes = [1, 256], strides = [1, 1]} : vector<4x256xf32> to vector<1x256xf32>
    %139 = vector.broadcast %137 : vector<4x1xf32> to vector<4x256xf32>
    %140 = vector.broadcast %138 : vector<1x256xf32> to vector<4x256xf32>
    %141 = arith.mulf %139, %140 : vector<4x256xf32>
    %142 = arith.addf %136, %141 : vector<4x256xf32>
    %c0_47 = arith.constant 0 : index
    %c30 = arith.constant 30 : index
    %143 = vector.load %arg3[%c0_47, %c30] : memref<4x36xf32, #tpu.memory_space<vmem>>, vector<4x1xf32>
    %144 = vector.extract_strided_slice %124 {offsets = [3, 0], sizes = [1, 256], strides = [1, 1]} : vector<4x256xf32> to vector<1x256xf32>
    %145 = vector.broadcast %143 : vector<4x1xf32> to vector<4x256xf32>
    %146 = vector.broadcast %144 : vector<1x256xf32> to vector<4x256xf32>
    %147 = arith.mulf %145, %146 : vector<4x256xf32>
    %148 = arith.addf %142, %147 : vector<4x256xf32>
    %c0_48 = arith.constant 0 : index
    %c4 = arith.constant 4 : index
    %149 = vector.load %arg3[%c0_48, %c4] : memref<4x36xf32, #tpu.memory_space<vmem>>, vector<4x1xf32>
    %150 = vector.extract_strided_slice %5 {offsets = [0, 0], sizes = [1, 256], strides = [1, 1]} : vector<4x256xf32> to vector<1x256xf32>
    %151 = vector.broadcast %149 : vector<4x1xf32> to vector<4x256xf32>
    %152 = vector.broadcast %150 : vector<1x256xf32> to vector<4x256xf32>
    %153 = arith.mulf %151, %152 : vector<4x256xf32>
    %154 = arith.addf %148, %153 : vector<4x256xf32>
    %c0_49 = arith.constant 0 : index
    %c13 = arith.constant 13 : index
    %155 = vector.load %arg3[%c0_49, %c13] : memref<4x36xf32, #tpu.memory_space<vmem>>, vector<4x1xf32>
    %156 = vector.extract_strided_slice %5 {offsets = [1, 0], sizes = [1, 256], strides = [1, 1]} : vector<4x256xf32> to vector<1x256xf32>
    %157 = vector.broadcast %155 : vector<4x1xf32> to vector<4x256xf32>
    %158 = vector.broadcast %156 : vector<1x256xf32> to vector<4x256xf32>
    %159 = arith.mulf %157, %158 : vector<4x256xf32>
    %160 = arith.addf %154, %159 : vector<4x256xf32>
    %c0_50 = arith.constant 0 : index
    %c22 = arith.constant 22 : index
    %161 = vector.load %arg3[%c0_50, %c22] : memref<4x36xf32, #tpu.memory_space<vmem>>, vector<4x1xf32>
    %162 = vector.extract_strided_slice %5 {offsets = [2, 0], sizes = [1, 256], strides = [1, 1]} : vector<4x256xf32> to vector<1x256xf32>
    %163 = vector.broadcast %161 : vector<4x1xf32> to vector<4x256xf32>
    %164 = vector.broadcast %162 : vector<1x256xf32> to vector<4x256xf32>
    %165 = arith.mulf %163, %164 : vector<4x256xf32>
    %166 = arith.addf %160, %165 : vector<4x256xf32>
    %c0_51 = arith.constant 0 : index
    %c31 = arith.constant 31 : index
    %167 = vector.load %arg3[%c0_51, %c31] : memref<4x36xf32, #tpu.memory_space<vmem>>, vector<4x1xf32>
    %168 = vector.extract_strided_slice %5 {offsets = [3, 0], sizes = [1, 256], strides = [1, 1]} : vector<4x256xf32> to vector<1x256xf32>
    %169 = vector.broadcast %167 : vector<4x1xf32> to vector<4x256xf32>
    %170 = vector.broadcast %168 : vector<1x256xf32> to vector<4x256xf32>
    %171 = arith.mulf %169, %170 : vector<4x256xf32>
    %172 = arith.addf %166, %171 : vector<4x256xf32>
    %c0_52 = arith.constant 0 : index
    %c129 = arith.constant 129 : index
    %173 = vector.load %arg12[%c0_52, %c129] : memref<4x512xf32, #tpu.memory_space<vmem>>, vector<4x256xf32>
    %c5 = arith.constant 5 : index
    %c0_53 = arith.constant 0 : index
    %174 = vector.load %arg2[%c5, %c0_53] : memref<9x256xf32, #tpu.memory_space<vmem>>, vector<1x256xf32>
    %175 = vector.broadcast %174 : vector<1x256xf32> to vector<4x256xf32>
    %176 = arith.mulf %173, %175 : vector<4x256xf32>
    %c0_54 = arith.constant 0 : index
    %c5_55 = arith.constant 5 : index
    %177 = vector.load %arg3[%c0_54, %c5_55] : memref<4x36xf32, #tpu.memory_space<vmem>>, vector<4x1xf32>
    %178 = vector.extract_strided_slice %176 {offsets = [0, 0], sizes = [1, 256], strides = [1, 1]} : vector<4x256xf32> to vector<1x256xf32>
    %179 = vector.broadcast %177 : vector<4x1xf32> to vector<4x256xf32>
    %180 = vector.broadcast %178 : vector<1x256xf32> to vector<4x256xf32>
    %181 = arith.mulf %179, %180 : vector<4x256xf32>
    %182 = arith.addf %172, %181 : vector<4x256xf32>
    %c0_56 = arith.constant 0 : index
    %c14 = arith.constant 14 : index
    %183 = vector.load %arg3[%c0_56, %c14] : memref<4x36xf32, #tpu.memory_space<vmem>>, vector<4x1xf32>
    %184 = vector.extract_strided_slice %176 {offsets = [1, 0], sizes = [1, 256], strides = [1, 1]} : vector<4x256xf32> to vector<1x256xf32>
    %185 = vector.broadcast %183 : vector<4x1xf32> to vector<4x256xf32>
    %186 = vector.broadcast %184 : vector<1x256xf32> to vector<4x256xf32>
    %187 = arith.mulf %185, %186 : vector<4x256xf32>
    %188 = arith.addf %182, %187 : vector<4x256xf32>
    %c0_57 = arith.constant 0 : index
    %c23 = arith.constant 23 : index
    %189 = vector.load %arg3[%c0_57, %c23] : memref<4x36xf32, #tpu.memory_space<vmem>>, vector<4x1xf32>
    %190 = vector.extract_strided_slice %176 {offsets = [2, 0], sizes = [1, 256], strides = [1, 1]} : vector<4x256xf32> to vector<1x256xf32>
    %191 = vector.broadcast %189 : vector<4x1xf32> to vector<4x256xf32>
    %192 = vector.broadcast %190 : vector<1x256xf32> to vector<4x256xf32>
    %193 = arith.mulf %191, %192 : vector<4x256xf32>
    %194 = arith.addf %188, %193 : vector<4x256xf32>
    %c0_58 = arith.constant 0 : index
    %c32 = arith.constant 32 : index
    %195 = vector.load %arg3[%c0_58, %c32] : memref<4x36xf32, #tpu.memory_space<vmem>>, vector<4x1xf32>
    %196 = vector.extract_strided_slice %176 {offsets = [3, 0], sizes = [1, 256], strides = [1, 1]} : vector<4x256xf32> to vector<1x256xf32>
    %197 = vector.broadcast %195 : vector<4x1xf32> to vector<4x256xf32>
    %198 = vector.broadcast %196 : vector<1x256xf32> to vector<4x256xf32>
    %199 = arith.mulf %197, %198 : vector<4x256xf32>
    %200 = arith.addf %194, %199 : vector<4x256xf32>
    %c0_59 = arith.constant 0 : index
    %c143 = arith.constant 143 : index
    %201 = vector.load %arg12[%c0_59, %c143] : memref<4x512xf32, #tpu.memory_space<vmem>>, vector<4x256xf32>
    %c6 = arith.constant 6 : index
    %c0_60 = arith.constant 0 : index
    %202 = vector.load %arg2[%c6, %c0_60] : memref<9x256xf32, #tpu.memory_space<vmem>>, vector<1x256xf32>
    %203 = vector.broadcast %202 : vector<1x256xf32> to vector<4x256xf32>
    %204 = arith.mulf %201, %203 : vector<4x256xf32>
    %c0_61 = arith.constant 0 : index
    %c6_62 = arith.constant 6 : index
    %205 = vector.load %arg3[%c0_61, %c6_62] : memref<4x36xf32, #tpu.memory_space<vmem>>, vector<4x1xf32>
    %206 = vector.extract_strided_slice %204 {offsets = [0, 0], sizes = [1, 256], strides = [1, 1]} : vector<4x256xf32> to vector<1x256xf32>
    %207 = vector.broadcast %205 : vector<4x1xf32> to vector<4x256xf32>
    %208 = vector.broadcast %206 : vector<1x256xf32> to vector<4x256xf32>
    %209 = arith.mulf %207, %208 : vector<4x256xf32>
    %210 = arith.addf %200, %209 : vector<4x256xf32>
    %c0_63 = arith.constant 0 : index
    %c15 = arith.constant 15 : index
    %211 = vector.load %arg3[%c0_63, %c15] : memref<4x36xf32, #tpu.memory_space<vmem>>, vector<4x1xf32>
    %212 = vector.extract_strided_slice %204 {offsets = [1, 0], sizes = [1, 256], strides = [1, 1]} : vector<4x256xf32> to vector<1x256xf32>
    %213 = vector.broadcast %211 : vector<4x1xf32> to vector<4x256xf32>
    %214 = vector.broadcast %212 : vector<1x256xf32> to vector<4x256xf32>
    %215 = arith.mulf %213, %214 : vector<4x256xf32>
    %216 = arith.addf %210, %215 : vector<4x256xf32>
    %c0_64 = arith.constant 0 : index
    %c24 = arith.constant 24 : index
    %217 = vector.load %arg3[%c0_64, %c24] : memref<4x36xf32, #tpu.memory_space<vmem>>, vector<4x1xf32>
    %218 = vector.extract_strided_slice %204 {offsets = [2, 0], sizes = [1, 256], strides = [1, 1]} : vector<4x256xf32> to vector<1x256xf32>
    %219 = vector.broadcast %217 : vector<4x1xf32> to vector<4x256xf32>
    %220 = vector.broadcast %218 : vector<1x256xf32> to vector<4x256xf32>
    %221 = arith.mulf %219, %220 : vector<4x256xf32>
    %222 = arith.addf %216, %221 : vector<4x256xf32>
    %c0_65 = arith.constant 0 : index
    %c33 = arith.constant 33 : index
    %223 = vector.load %arg3[%c0_65, %c33] : memref<4x36xf32, #tpu.memory_space<vmem>>, vector<4x1xf32>
    %224 = vector.extract_strided_slice %204 {offsets = [3, 0], sizes = [1, 256], strides = [1, 1]} : vector<4x256xf32> to vector<1x256xf32>
    %225 = vector.broadcast %223 : vector<4x1xf32> to vector<4x256xf32>
    %226 = vector.broadcast %224 : vector<1x256xf32> to vector<4x256xf32>
    %227 = arith.mulf %225, %226 : vector<4x256xf32>
    %228 = arith.addf %222, %227 : vector<4x256xf32>
    %c0_66 = arith.constant 0 : index
    %c144 = arith.constant 144 : index
    %229 = vector.load %arg12[%c0_66, %c144] : memref<4x512xf32, #tpu.memory_space<vmem>>, vector<4x256xf32>
    %c7 = arith.constant 7 : index
    %c0_67 = arith.constant 0 : index
    %230 = vector.load %arg2[%c7, %c0_67] : memref<9x256xf32, #tpu.memory_space<vmem>>, vector<1x256xf32>
    %231 = vector.broadcast %230 : vector<1x256xf32> to vector<4x256xf32>
    %232 = arith.mulf %229, %231 : vector<4x256xf32>
    %c0_68 = arith.constant 0 : index
    %c7_69 = arith.constant 7 : index
    %233 = vector.load %arg3[%c0_68, %c7_69] : memref<4x36xf32, #tpu.memory_space<vmem>>, vector<4x1xf32>
    %234 = vector.extract_strided_slice %232 {offsets = [0, 0], sizes = [1, 256], strides = [1, 1]} : vector<4x256xf32> to vector<1x256xf32>
    %235 = vector.broadcast %233 : vector<4x1xf32> to vector<4x256xf32>
    %236 = vector.broadcast %234 : vector<1x256xf32> to vector<4x256xf32>
    %237 = arith.mulf %235, %236 : vector<4x256xf32>
    %238 = arith.addf %228, %237 : vector<4x256xf32>
    %c0_70 = arith.constant 0 : index
    %c16 = arith.constant 16 : index
    %239 = vector.load %arg3[%c0_70, %c16] : memref<4x36xf32, #tpu.memory_space<vmem>>, vector<4x1xf32>
    %240 = vector.extract_strided_slice %232 {offsets = [1, 0], sizes = [1, 256], strides = [1, 1]} : vector<4x256xf32> to vector<1x256xf32>
    %241 = vector.broadcast %239 : vector<4x1xf32> to vector<4x256xf32>
    %242 = vector.broadcast %240 : vector<1x256xf32> to vector<4x256xf32>
    %243 = arith.mulf %241, %242 : vector<4x256xf32>
    %244 = arith.addf %238, %243 : vector<4x256xf32>
    %c0_71 = arith.constant 0 : index
    %c25 = arith.constant 25 : index
    %245 = vector.load %arg3[%c0_71, %c25] : memref<4x36xf32, #tpu.memory_space<vmem>>, vector<4x1xf32>
    %246 = vector.extract_strided_slice %232 {offsets = [2, 0], sizes = [1, 256], strides = [1, 1]} : vector<4x256xf32> to vector<1x256xf32>
    %247 = vector.broadcast %245 : vector<4x1xf32> to vector<4x256xf32>
    %248 = vector.broadcast %246 : vector<1x256xf32> to vector<4x256xf32>
    %249 = arith.mulf %247, %248 : vector<4x256xf32>
    %250 = arith.addf %244, %249 : vector<4x256xf32>
    %c0_72 = arith.constant 0 : index
    %c34 = arith.constant 34 : index
    %251 = vector.load %arg3[%c0_72, %c34] : memref<4x36xf32, #tpu.memory_space<vmem>>, vector<4x1xf32>
    %252 = vector.extract_strided_slice %232 {offsets = [3, 0], sizes = [1, 256], strides = [1, 1]} : vector<4x256xf32> to vector<1x256xf32>
    %253 = vector.broadcast %251 : vector<4x1xf32> to vector<4x256xf32>
    %254 = vector.broadcast %252 : vector<1x256xf32> to vector<4x256xf32>
    %255 = arith.mulf %253, %254 : vector<4x256xf32>
    %256 = arith.addf %250, %255 : vector<4x256xf32>
    %c0_73 = arith.constant 0 : index
    %c145 = arith.constant 145 : index
    %257 = vector.load %arg12[%c0_73, %c145] : memref<4x512xf32, #tpu.memory_space<vmem>>, vector<4x256xf32>
    %c8 = arith.constant 8 : index
    %c0_74 = arith.constant 0 : index
    %258 = vector.load %arg2[%c8, %c0_74] : memref<9x256xf32, #tpu.memory_space<vmem>>, vector<1x256xf32>
    %259 = vector.broadcast %258 : vector<1x256xf32> to vector<4x256xf32>
    %260 = arith.mulf %257, %259 : vector<4x256xf32>
    %c0_75 = arith.constant 0 : index
    %c8_76 = arith.constant 8 : index
    %261 = vector.load %arg3[%c0_75, %c8_76] : memref<4x36xf32, #tpu.memory_space<vmem>>, vector<4x1xf32>
    %262 = vector.extract_strided_slice %260 {offsets = [0, 0], sizes = [1, 256], strides = [1, 1]} : vector<4x256xf32> to vector<1x256xf32>
    %263 = vector.broadcast %261 : vector<4x1xf32> to vector<4x256xf32>
    %264 = vector.broadcast %262 : vector<1x256xf32> to vector<4x256xf32>
    %265 = arith.mulf %263, %264 : vector<4x256xf32>
    %266 = arith.addf %256, %265 : vector<4x256xf32>
    %c0_77 = arith.constant 0 : index
    %c17 = arith.constant 17 : index
    %267 = vector.load %arg3[%c0_77, %c17] : memref<4x36xf32, #tpu.memory_space<vmem>>, vector<4x1xf32>
    %268 = vector.extract_strided_slice %260 {offsets = [1, 0], sizes = [1, 256], strides = [1, 1]} : vector<4x256xf32> to vector<1x256xf32>
    %269 = vector.broadcast %267 : vector<4x1xf32> to vector<4x256xf32>
    %270 = vector.broadcast %268 : vector<1x256xf32> to vector<4x256xf32>
    %271 = arith.mulf %269, %270 : vector<4x256xf32>
    %272 = arith.addf %266, %271 : vector<4x256xf32>
    %c0_78 = arith.constant 0 : index
    %c26 = arith.constant 26 : index
    %273 = vector.load %arg3[%c0_78, %c26] : memref<4x36xf32, #tpu.memory_space<vmem>>, vector<4x1xf32>
    %274 = vector.extract_strided_slice %260 {offsets = [2, 0], sizes = [1, 256], strides = [1, 1]} : vector<4x256xf32> to vector<1x256xf32>
    %275 = vector.broadcast %273 : vector<4x1xf32> to vector<4x256xf32>
    %276 = vector.broadcast %274 : vector<1x256xf32> to vector<4x256xf32>
    %277 = arith.mulf %275, %276 : vector<4x256xf32>
    %278 = arith.addf %272, %277 : vector<4x256xf32>
    %c0_79 = arith.constant 0 : index
    %c35 = arith.constant 35 : index
    %279 = vector.load %arg3[%c0_79, %c35] : memref<4x36xf32, #tpu.memory_space<vmem>>, vector<4x1xf32>
    %280 = vector.extract_strided_slice %260 {offsets = [3, 0], sizes = [1, 256], strides = [1, 1]} : vector<4x256xf32> to vector<1x256xf32>
    %281 = vector.broadcast %279 : vector<4x1xf32> to vector<4x256xf32>
    %282 = vector.broadcast %280 : vector<1x256xf32> to vector<4x256xf32>
    %283 = arith.mulf %281, %282 : vector<4x256xf32>
    %284 = arith.addf %278, %283 : vector<4x256xf32>
    %cst_80 = arith.constant 2.000000e-01 : f32
    %285 = vector.broadcast %cst_80 : f32 to vector<4x256xf32>
    %286 = arith.mulf %285, %284 : vector<4x256xf32>
    %287 = arith.maximumf %284, %286 : vector<4x256xf32>
    %c0_81 = arith.constant 0 : index
    %c4_82 = arith.constant 4 : index
    %288 = vector.load %arg9[%c0_81, %c4_82] : memref<4x16xf32, #tpu.memory_space<vmem>>, vector<4x1xf32>
    %289 = vector.extract_strided_slice %287 {offsets = [0, 0], sizes = [1, 256], strides = [1, 1]} : vector<4x256xf32> to vector<1x256xf32>
    %290 = vector.broadcast %288 : vector<4x1xf32> to vector<4x256xf32>
    %291 = vector.broadcast %289 : vector<1x256xf32> to vector<4x256xf32>
    %292 = arith.mulf %290, %291 : vector<4x256xf32>
    %293 = arith.addf %32, %292 : vector<4x256xf32>
    %c0_83 = arith.constant 0 : index
    %c5_84 = arith.constant 5 : index
    %294 = vector.load %arg9[%c0_83, %c5_84] : memref<4x16xf32, #tpu.memory_space<vmem>>, vector<4x1xf32>
    %295 = vector.extract_strided_slice %287 {offsets = [1, 0], sizes = [1, 256], strides = [1, 1]} : vector<4x256xf32> to vector<1x256xf32>
    %296 = vector.broadcast %294 : vector<4x1xf32> to vector<4x256xf32>
    %297 = vector.broadcast %295 : vector<1x256xf32> to vector<4x256xf32>
    %298 = arith.mulf %296, %297 : vector<4x256xf32>
    %299 = arith.addf %293, %298 : vector<4x256xf32>
    %c0_85 = arith.constant 0 : index
    %c6_86 = arith.constant 6 : index
    %300 = vector.load %arg9[%c0_85, %c6_86] : memref<4x16xf32, #tpu.memory_space<vmem>>, vector<4x1xf32>
    %301 = vector.extract_strided_slice %287 {offsets = [2, 0], sizes = [1, 256], strides = [1, 1]} : vector<4x256xf32> to vector<1x256xf32>
    %302 = vector.broadcast %300 : vector<4x1xf32> to vector<4x256xf32>
    %303 = vector.broadcast %301 : vector<1x256xf32> to vector<4x256xf32>
    %304 = arith.mulf %302, %303 : vector<4x256xf32>
    %305 = arith.addf %299, %304 : vector<4x256xf32>
    %c0_87 = arith.constant 0 : index
    %c7_88 = arith.constant 7 : index
    %306 = vector.load %arg9[%c0_87, %c7_88] : memref<4x16xf32, #tpu.memory_space<vmem>>, vector<4x1xf32>
    %307 = vector.extract_strided_slice %287 {offsets = [3, 0], sizes = [1, 256], strides = [1, 1]} : vector<4x256xf32> to vector<1x256xf32>
    %308 = vector.broadcast %306 : vector<4x1xf32> to vector<4x256xf32>
    %309 = vector.broadcast %307 : vector<1x256xf32> to vector<4x256xf32>
    %310 = arith.mulf %308, %309 : vector<4x256xf32>
    %311 = arith.addf %305, %310 : vector<4x256xf32>
    %c0_89 = arith.constant 0 : index
    %c128_90 = arith.constant 128 : index
    %312 = vector.load %arg12[%c0_89, %c128_90] : memref<4x512xf32, #tpu.memory_space<vmem>>, vector<4x256xf32>
    tpu.vector_store %arg12[%c0_89, %c128_90], %287 {strides = array<i32>} : memref<4x512xf32, #tpu.memory_space<vmem>>, vector<4x256xf32>,
    %c0_91 = arith.constant 0 : index
    %c0_92 = arith.constant 0 : index
    %313 = vector.load %arg6[%c0_91, %c0_92] : memref<4x1xf32, #tpu.memory_space<vmem>>, vector<4x1xf32>
    %314 = vector.shape_cast %313 : vector<4x1xf32> to vector<4x1xf32>
    %315 = vector.broadcast %314 : vector<4x1xf32> to vector<4x256xf32>
    %c0_93 = arith.constant 0 : index
    %c111_94 = arith.constant 111 : index
    %316 = vector.load %arg12[%c0_93, %c111_94] : memref<4x512xf32, #tpu.memory_space<vmem>>, vector<4x256xf32>
    %c0_95 = arith.constant 0 : index
    %c0_96 = arith.constant 0 : index
    %317 = vector.load %arg2[%c0_95, %c0_96] : memref<9x256xf32, #tpu.memory_space<vmem>>, vector<1x256xf32>
    %318 = vector.broadcast %317 : vector<1x256xf32> to vector<4x256xf32>
    %319 = arith.mulf %316, %318 : vector<4x256xf32>
    %c0_97 = arith.constant 0 : index
    %c0_98 = arith.constant 0 : index
    %320 = vector.load %arg5[%c0_97, %c0_98] : memref<4x36xf32, #tpu.memory_space<vmem>>, vector<4x1xf32>
    %321 = vector.extract_strided_slice %319 {offsets = [0, 0], sizes = [1, 256], strides = [1, 1]} : vector<4x256xf32> to vector<1x256xf32>
    %322 = vector.broadcast %320 : vector<4x1xf32> to vector<4x256xf32>
    %323 = vector.broadcast %321 : vector<1x256xf32> to vector<4x256xf32>
    %324 = arith.mulf %322, %323 : vector<4x256xf32>
    %325 = arith.addf %315, %324 : vector<4x256xf32>
    %c0_99 = arith.constant 0 : index
    %c9_100 = arith.constant 9 : index
    %326 = vector.load %arg5[%c0_99, %c9_100] : memref<4x36xf32, #tpu.memory_space<vmem>>, vector<4x1xf32>
    %327 = vector.extract_strided_slice %319 {offsets = [1, 0], sizes = [1, 256], strides = [1, 1]} : vector<4x256xf32> to vector<1x256xf32>
    %328 = vector.broadcast %326 : vector<4x1xf32> to vector<4x256xf32>
    %329 = vector.broadcast %327 : vector<1x256xf32> to vector<4x256xf32>
    %330 = arith.mulf %328, %329 : vector<4x256xf32>
    %331 = arith.addf %325, %330 : vector<4x256xf32>
    %c0_101 = arith.constant 0 : index
    %c18_102 = arith.constant 18 : index
    %332 = vector.load %arg5[%c0_101, %c18_102] : memref<4x36xf32, #tpu.memory_space<vmem>>, vector<4x1xf32>
    %333 = vector.extract_strided_slice %319 {offsets = [2, 0], sizes = [1, 256], strides = [1, 1]} : vector<4x256xf32> to vector<1x256xf32>
    %334 = vector.broadcast %332 : vector<4x1xf32> to vector<4x256xf32>
    %335 = vector.broadcast %333 : vector<1x256xf32> to vector<4x256xf32>
    %336 = arith.mulf %334, %335 : vector<4x256xf32>
    %337 = arith.addf %331, %336 : vector<4x256xf32>
    %c0_103 = arith.constant 0 : index
    %c27_104 = arith.constant 27 : index
    %338 = vector.load %arg5[%c0_103, %c27_104] : memref<4x36xf32, #tpu.memory_space<vmem>>, vector<4x1xf32>
    %339 = vector.extract_strided_slice %319 {offsets = [3, 0], sizes = [1, 256], strides = [1, 1]} : vector<4x256xf32> to vector<1x256xf32>
    %340 = vector.broadcast %338 : vector<4x1xf32> to vector<4x256xf32>
    %341 = vector.broadcast %339 : vector<1x256xf32> to vector<4x256xf32>
    %342 = arith.mulf %340, %341 : vector<4x256xf32>
    %343 = arith.addf %337, %342 : vector<4x256xf32>
    %c0_105 = arith.constant 0 : index
    %c112_106 = arith.constant 112 : index
    %344 = vector.load %arg12[%c0_105, %c112_106] : memref<4x512xf32, #tpu.memory_space<vmem>>, vector<4x256xf32>
    %c1_107 = arith.constant 1 : index
    %c0_108 = arith.constant 0 : index
    %345 = vector.load %arg2[%c1_107, %c0_108] : memref<9x256xf32, #tpu.memory_space<vmem>>, vector<1x256xf32>
    %346 = vector.broadcast %345 : vector<1x256xf32> to vector<4x256xf32>
    %347 = arith.mulf %344, %346 : vector<4x256xf32>
    %c0_109 = arith.constant 0 : index
    %c1_110 = arith.constant 1 : index
    %348 = vector.load %arg5[%c0_109, %c1_110] : memref<4x36xf32, #tpu.memory_space<vmem>>, vector<4x1xf32>
    %349 = vector.extract_strided_slice %347 {offsets = [0, 0], sizes = [1, 256], strides = [1, 1]} : vector<4x256xf32> to vector<1x256xf32>
    %350 = vector.broadcast %348 : vector<4x1xf32> to vector<4x256xf32>
    %351 = vector.broadcast %349 : vector<1x256xf32> to vector<4x256xf32>
    %352 = arith.mulf %350, %351 : vector<4x256xf32>
    %353 = arith.addf %343, %352 : vector<4x256xf32>
    %c0_111 = arith.constant 0 : index
    %c10_112 = arith.constant 10 : index
    %354 = vector.load %arg5[%c0_111, %c10_112] : memref<4x36xf32, #tpu.memory_space<vmem>>, vector<4x1xf32>
    %355 = vector.extract_strided_slice %347 {offsets = [1, 0], sizes = [1, 256], strides = [1, 1]} : vector<4x256xf32> to vector<1x256xf32>
    %356 = vector.broadcast %354 : vector<4x1xf32> to vector<4x256xf32>
    %357 = vector.broadcast %355 : vector<1x256xf32> to vector<4x256xf32>
    %358 = arith.mulf %356, %357 : vector<4x256xf32>
    %359 = arith.addf %353, %358 : vector<4x256xf32>
    %c0_113 = arith.constant 0 : index
    %c19_114 = arith.constant 19 : index
    %360 = vector.load %arg5[%c0_113, %c19_114] : memref<4x36xf32, #tpu.memory_space<vmem>>, vector<4x1xf32>
    %361 = vector.extract_strided_slice %347 {offsets = [2, 0], sizes = [1, 256], strides = [1, 1]} : vector<4x256xf32> to vector<1x256xf32>
    %362 = vector.broadcast %360 : vector<4x1xf32> to vector<4x256xf32>
    %363 = vector.broadcast %361 : vector<1x256xf32> to vector<4x256xf32>
    %364 = arith.mulf %362, %363 : vector<4x256xf32>
    %365 = arith.addf %359, %364 : vector<4x256xf32>
    %c0_115 = arith.constant 0 : index
    %c28_116 = arith.constant 28 : index
    %366 = vector.load %arg5[%c0_115, %c28_116] : memref<4x36xf32, #tpu.memory_space<vmem>>, vector<4x1xf32>
    %367 = vector.extract_strided_slice %347 {offsets = [3, 0], sizes = [1, 256], strides = [1, 1]} : vector<4x256xf32> to vector<1x256xf32>
    %368 = vector.broadcast %366 : vector<4x1xf32> to vector<4x256xf32>
    %369 = vector.broadcast %367 : vector<1x256xf32> to vector<4x256xf32>
    %370 = arith.mulf %368, %369 : vector<4x256xf32>
    %371 = arith.addf %365, %370 : vector<4x256xf32>
    %c0_117 = arith.constant 0 : index
    %c113_118 = arith.constant 113 : index
    %372 = vector.load %arg12[%c0_117, %c113_118] : memref<4x512xf32, #tpu.memory_space<vmem>>, vector<4x256xf32>
    %c2_119 = arith.constant 2 : index
    %c0_120 = arith.constant 0 : index
    %373 = vector.load %arg2[%c2_119, %c0_120] : memref<9x256xf32, #tpu.memory_space<vmem>>, vector<1x256xf32>
    %374 = vector.broadcast %373 : vector<1x256xf32> to vector<4x256xf32>
    %375 = arith.mulf %372, %374 : vector<4x256xf32>
    %c0_121 = arith.constant 0 : index
    %c2_122 = arith.constant 2 : index
    %376 = vector.load %arg5[%c0_121, %c2_122] : memref<4x36xf32, #tpu.memory_space<vmem>>, vector<4x1xf32>
    %377 = vector.extract_strided_slice %375 {offsets = [0, 0], sizes = [1, 256], strides = [1, 1]} : vector<4x256xf32> to vector<1x256xf32>
    %378 = vector.broadcast %376 : vector<4x1xf32> to vector<4x256xf32>
    %379 = vector.broadcast %377 : vector<1x256xf32> to vector<4x256xf32>
    %380 = arith.mulf %378, %379 : vector<4x256xf32>
    %381 = arith.addf %371, %380 : vector<4x256xf32>
    %c0_123 = arith.constant 0 : index
    %c11_124 = arith.constant 11 : index
    %382 = vector.load %arg5[%c0_123, %c11_124] : memref<4x36xf32, #tpu.memory_space<vmem>>, vector<4x1xf32>
    %383 = vector.extract_strided_slice %375 {offsets = [1, 0], sizes = [1, 256], strides = [1, 1]} : vector<4x256xf32> to vector<1x256xf32>
    %384 = vector.broadcast %382 : vector<4x1xf32> to vector<4x256xf32>
    %385 = vector.broadcast %383 : vector<1x256xf32> to vector<4x256xf32>
    %386 = arith.mulf %384, %385 : vector<4x256xf32>
    %387 = arith.addf %381, %386 : vector<4x256xf32>
    %c0_125 = arith.constant 0 : index
    %c20_126 = arith.constant 20 : index
    %388 = vector.load %arg5[%c0_125, %c20_126] : memref<4x36xf32, #tpu.memory_space<vmem>>, vector<4x1xf32>
    %389 = vector.extract_strided_slice %375 {offsets = [2, 0], sizes = [1, 256], strides = [1, 1]} : vector<4x256xf32> to vector<1x256xf32>
    %390 = vector.broadcast %388 : vector<4x1xf32> to vector<4x256xf32>
    %391 = vector.broadcast %389 : vector<1x256xf32> to vector<4x256xf32>
    %392 = arith.mulf %390, %391 : vector<4x256xf32>
    %393 = arith.addf %387, %392 : vector<4x256xf32>
    %c0_127 = arith.constant 0 : index
    %c29_128 = arith.constant 29 : index
    %394 = vector.load %arg5[%c0_127, %c29_128] : memref<4x36xf32, #tpu.memory_space<vmem>>, vector<4x1xf32>
    %395 = vector.extract_strided_slice %375 {offsets = [3, 0], sizes = [1, 256], strides = [1, 1]} : vector<4x256xf32> to vector<1x256xf32>
    %396 = vector.broadcast %394 : vector<4x1xf32> to vector<4x256xf32>
    %397 = vector.broadcast %395 : vector<1x256xf32> to vector<4x256xf32>
    %398 = arith.mulf %396, %397 : vector<4x256xf32>
    %399 = arith.addf %393, %398 : vector<4x256xf32>
    %c0_129 = arith.constant 0 : index
    %c127_130 = arith.constant 127 : index
    %400 = vector.load %arg12[%c0_129, %c127_130] : memref<4x512xf32, #tpu.memory_space<vmem>>, vector<4x256xf32>
    %c3_131 = arith.constant 3 : index
    %c0_132 = arith.constant 0 : index
    %401 = vector.load %arg2[%c3_131, %c0_132] : memref<9x256xf32, #tpu.memory_space<vmem>>, vector<1x256xf32>
    %402 = vector.broadcast %401 : vector<1x256xf32> to vector<4x256xf32>
    %403 = arith.mulf %400, %402 : vector<4x256xf32>
    %c0_133 = arith.constant 0 : index
    %c3_134 = arith.constant 3 : index
    %404 = vector.load %arg5[%c0_133, %c3_134] : memref<4x36xf32, #tpu.memory_space<vmem>>, vector<4x1xf32>
    %405 = vector.extract_strided_slice %403 {offsets = [0, 0], sizes = [1, 256], strides = [1, 1]} : vector<4x256xf32> to vector<1x256xf32>
    %406 = vector.broadcast %404 : vector<4x1xf32> to vector<4x256xf32>
    %407 = vector.broadcast %405 : vector<1x256xf32> to vector<4x256xf32>
    %408 = arith.mulf %406, %407 : vector<4x256xf32>
    %409 = arith.addf %399, %408 : vector<4x256xf32>
    %c0_135 = arith.constant 0 : index
    %c12_136 = arith.constant 12 : index
    %410 = vector.load %arg5[%c0_135, %c12_136] : memref<4x36xf32, #tpu.memory_space<vmem>>, vector<4x1xf32>
    %411 = vector.extract_strided_slice %403 {offsets = [1, 0], sizes = [1, 256], strides = [1, 1]} : vector<4x256xf32> to vector<1x256xf32>
    %412 = vector.broadcast %410 : vector<4x1xf32> to vector<4x256xf32>
    %413 = vector.broadcast %411 : vector<1x256xf32> to vector<4x256xf32>
    %414 = arith.mulf %412, %413 : vector<4x256xf32>
    %415 = arith.addf %409, %414 : vector<4x256xf32>
    %c0_137 = arith.constant 0 : index
    %c21_138 = arith.constant 21 : index
    %416 = vector.load %arg5[%c0_137, %c21_138] : memref<4x36xf32, #tpu.memory_space<vmem>>, vector<4x1xf32>
    %417 = vector.extract_strided_slice %403 {offsets = [2, 0], sizes = [1, 256], strides = [1, 1]} : vector<4x256xf32> to vector<1x256xf32>
    %418 = vector.broadcast %416 : vector<4x1xf32> to vector<4x256xf32>
    %419 = vector.broadcast %417 : vector<1x256xf32> to vector<4x256xf32>
    %420 = arith.mulf %418, %419 : vector<4x256xf32>
    %421 = arith.addf %415, %420 : vector<4x256xf32>
    %c0_139 = arith.constant 0 : index
    %c30_140 = arith.constant 30 : index
    %422 = vector.load %arg5[%c0_139, %c30_140] : memref<4x36xf32, #tpu.memory_space<vmem>>, vector<4x1xf32>
    %423 = vector.extract_strided_slice %403 {offsets = [3, 0], sizes = [1, 256], strides = [1, 1]} : vector<4x256xf32> to vector<1x256xf32>
    %424 = vector.broadcast %422 : vector<4x1xf32> to vector<4x256xf32>
    %425 = vector.broadcast %423 : vector<1x256xf32> to vector<4x256xf32>
    %426 = arith.mulf %424, %425 : vector<4x256xf32>
    %427 = arith.addf %421, %426 : vector<4x256xf32>
    %c0_141 = arith.constant 0 : index
    %c4_142 = arith.constant 4 : index
    %428 = vector.load %arg5[%c0_141, %c4_142] : memref<4x36xf32, #tpu.memory_space<vmem>>, vector<4x1xf32>
    %429 = vector.extract_strided_slice %287 {offsets = [0, 0], sizes = [1, 256], strides = [1, 1]} : vector<4x256xf32> to vector<1x256xf32>
    %430 = vector.broadcast %428 : vector<4x1xf32> to vector<4x256xf32>
    %431 = vector.broadcast %429 : vector<1x256xf32> to vector<4x256xf32>
    %432 = arith.mulf %430, %431 : vector<4x256xf32>
    %433 = arith.addf %427, %432 : vector<4x256xf32>
    %c0_143 = arith.constant 0 : index
    %c13_144 = arith.constant 13 : index
    %434 = vector.load %arg5[%c0_143, %c13_144] : memref<4x36xf32, #tpu.memory_space<vmem>>, vector<4x1xf32>
    %435 = vector.extract_strided_slice %287 {offsets = [1, 0], sizes = [1, 256], strides = [1, 1]} : vector<4x256xf32> to vector<1x256xf32>
    %436 = vector.broadcast %434 : vector<4x1xf32> to vector<4x256xf32>
    %437 = vector.broadcast %435 : vector<1x256xf32> to vector<4x256xf32>
    %438 = arith.mulf %436, %437 : vector<4x256xf32>
    %439 = arith.addf %433, %438 : vector<4x256xf32>
    %c0_145 = arith.constant 0 : index
    %c22_146 = arith.constant 22 : index
    %440 = vector.load %arg5[%c0_145, %c22_146] : memref<4x36xf32, #tpu.memory_space<vmem>>, vector<4x1xf32>
    %441 = vector.extract_strided_slice %287 {offsets = [2, 0], sizes = [1, 256], strides = [1, 1]} : vector<4x256xf32> to vector<1x256xf32>
    %442 = vector.broadcast %440 : vector<4x1xf32> to vector<4x256xf32>
    %443 = vector.broadcast %441 : vector<1x256xf32> to vector<4x256xf32>
    %444 = arith.mulf %442, %443 : vector<4x256xf32>
    %445 = arith.addf %439, %444 : vector<4x256xf32>
    %c0_147 = arith.constant 0 : index
    %c31_148 = arith.constant 31 : index
    %446 = vector.load %arg5[%c0_147, %c31_148] : memref<4x36xf32, #tpu.memory_space<vmem>>, vector<4x1xf32>
    %447 = vector.extract_strided_slice %287 {offsets = [3, 0], sizes = [1, 256], strides = [1, 1]} : vector<4x256xf32> to vector<1x256xf32>
    %448 = vector.broadcast %446 : vector<4x1xf32> to vector<4x256xf32>
    %449 = vector.broadcast %447 : vector<1x256xf32> to vector<4x256xf32>
    %450 = arith.mulf %448, %449 : vector<4x256xf32>
    %451 = arith.addf %445, %450 : vector<4x256xf32>
    %c0_149 = arith.constant 0 : index
    %c129_150 = arith.constant 129 : index
    %452 = vector.load %arg12[%c0_149, %c129_150] : memref<4x512xf32, #tpu.memory_space<vmem>>, vector<4x256xf32>
    %c5_151 = arith.constant 5 : index
    %c0_152 = arith.constant 0 : index
    %453 = vector.load %arg2[%c5_151, %c0_152] : memref<9x256xf32, #tpu.memory_space<vmem>>, vector<1x256xf32>
    %454 = vector.broadcast %453 : vector<1x256xf32> to vector<4x256xf32>
    %455 = arith.mulf %452, %454 : vector<4x256xf32>
    %c0_153 = arith.constant 0 : index
    %c5_154 = arith.constant 5 : index
    %456 = vector.load %arg5[%c0_153, %c5_154] : memref<4x36xf32, #tpu.memory_space<vmem>>, vector<4x1xf32>
    %457 = vector.extract_strided_slice %455 {offsets = [0, 0], sizes = [1, 256], strides = [1, 1]} : vector<4x256xf32> to vector<1x256xf32>
    %458 = vector.broadcast %456 : vector<4x1xf32> to vector<4x256xf32>
    %459 = vector.broadcast %457 : vector<1x256xf32> to vector<4x256xf32>
    %460 = arith.mulf %458, %459 : vector<4x256xf32>
    %461 = arith.addf %451, %460 : vector<4x256xf32>
    %c0_155 = arith.constant 0 : index
    %c14_156 = arith.constant 14 : index
    %462 = vector.load %arg5[%c0_155, %c14_156] : memref<4x36xf32, #tpu.memory_space<vmem>>, vector<4x1xf32>
    %463 = vector.extract_strided_slice %455 {offsets = [1, 0], sizes = [1, 256], strides = [1, 1]} : vector<4x256xf32> to vector<1x256xf32>
    %464 = vector.broadcast %462 : vector<4x1xf32> to vector<4x256xf32>
    %465 = vector.broadcast %463 : vector<1x256xf32> to vector<4x256xf32>
    %466 = arith.mulf %464, %465 : vector<4x256xf32>
    %467 = arith.addf %461, %466 : vector<4x256xf32>
    %c0_157 = arith.constant 0 : index
    %c23_158 = arith.constant 23 : index
    %468 = vector.load %arg5[%c0_157, %c23_158] : memref<4x36xf32, #tpu.memory_space<vmem>>, vector<4x1xf32>
    %469 = vector.extract_strided_slice %455 {offsets = [2, 0], sizes = [1, 256], strides = [1, 1]} : vector<4x256xf32> to vector<1x256xf32>
    %470 = vector.broadcast %468 : vector<4x1xf32> to vector<4x256xf32>
    %471 = vector.broadcast %469 : vector<1x256xf32> to vector<4x256xf32>
    %472 = arith.mulf %470, %471 : vector<4x256xf32>
    %473 = arith.addf %467, %472 : vector<4x256xf32>
    %c0_159 = arith.constant 0 : index
    %c32_160 = arith.constant 32 : index
    %474 = vector.load %arg5[%c0_159, %c32_160] : memref<4x36xf32, #tpu.memory_space<vmem>>, vector<4x1xf32>
    %475 = vector.extract_strided_slice %455 {offsets = [3, 0], sizes = [1, 256], strides = [1, 1]} : vector<4x256xf32> to vector<1x256xf32>
    %476 = vector.broadcast %474 : vector<4x1xf32> to vector<4x256xf32>
    %477 = vector.broadcast %475 : vector<1x256xf32> to vector<4x256xf32>
    %478 = arith.mulf %476, %477 : vector<4x256xf32>
    %479 = arith.addf %473, %478 : vector<4x256xf32>
    %c0_161 = arith.constant 0 : index
    %c143_162 = arith.constant 143 : index
    %480 = vector.load %arg12[%c0_161, %c143_162] : memref<4x512xf32, #tpu.memory_space<vmem>>, vector<4x256xf32>
    %c6_163 = arith.constant 6 : index
    %c0_164 = arith.constant 0 : index
    %481 = vector.load %arg2[%c6_163, %c0_164] : memref<9x256xf32, #tpu.memory_space<vmem>>, vector<1x256xf32>
    %482 = vector.broadcast %481 : vector<1x256xf32> to vector<4x256xf32>
    %483 = arith.mulf %480, %482 : vector<4x256xf32>
    %c0_165 = arith.constant 0 : index
    %c6_166 = arith.constant 6 : index
    %484 = vector.load %arg5[%c0_165, %c6_166] : memref<4x36xf32, #tpu.memory_space<vmem>>, vector<4x1xf32>
    %485 = vector.extract_strided_slice %483 {offsets = [0, 0], sizes = [1, 256], strides = [1, 1]} : vector<4x256xf32> to vector<1x256xf32>
    %486 = vector.broadcast %484 : vector<4x1xf32> to vector<4x256xf32>
    %487 = vector.broadcast %485 : vector<1x256xf32> to vector<4x256xf32>
    %488 = arith.mulf %486, %487 : vector<4x256xf32>
    %489 = arith.addf %479, %488 : vector<4x256xf32>
    %c0_167 = arith.constant 0 : index
    %c15_168 = arith.constant 15 : index
    %490 = vector.load %arg5[%c0_167, %c15_168] : memref<4x36xf32, #tpu.memory_space<vmem>>, vector<4x1xf32>
    %491 = vector.extract_strided_slice %483 {offsets = [1, 0], sizes = [1, 256], strides = [1, 1]} : vector<4x256xf32> to vector<1x256xf32>
    %492 = vector.broadcast %490 : vector<4x1xf32> to vector<4x256xf32>
    %493 = vector.broadcast %491 : vector<1x256xf32> to vector<4x256xf32>
    %494 = arith.mulf %492, %493 : vector<4x256xf32>
    %495 = arith.addf %489, %494 : vector<4x256xf32>
    %c0_169 = arith.constant 0 : index
    %c24_170 = arith.constant 24 : index
    %496 = vector.load %arg5[%c0_169, %c24_170] : memref<4x36xf32, #tpu.memory_space<vmem>>, vector<4x1xf32>
    %497 = vector.extract_strided_slice %483 {offsets = [2, 0], sizes = [1, 256], strides = [1, 1]} : vector<4x256xf32> to vector<1x256xf32>
    %498 = vector.broadcast %496 : vector<4x1xf32> to vector<4x256xf32>
    %499 = vector.broadcast %497 : vector<1x256xf32> to vector<4x256xf32>
    %500 = arith.mulf %498, %499 : vector<4x256xf32>
    %501 = arith.addf %495, %500 : vector<4x256xf32>
    %c0_171 = arith.constant 0 : index
    %c33_172 = arith.constant 33 : index
    %502 = vector.load %arg5[%c0_171, %c33_172] : memref<4x36xf32, #tpu.memory_space<vmem>>, vector<4x1xf32>
    %503 = vector.extract_strided_slice %483 {offsets = [3, 0], sizes = [1, 256], strides = [1, 1]} : vector<4x256xf32> to vector<1x256xf32>
    %504 = vector.broadcast %502 : vector<4x1xf32> to vector<4x256xf32>
    %505 = vector.broadcast %503 : vector<1x256xf32> to vector<4x256xf32>
    %506 = arith.mulf %504, %505 : vector<4x256xf32>
    %507 = arith.addf %501, %506 : vector<4x256xf32>
    %c0_173 = arith.constant 0 : index
    %c144_174 = arith.constant 144 : index
    %508 = vector.load %arg12[%c0_173, %c144_174] : memref<4x512xf32, #tpu.memory_space<vmem>>, vector<4x256xf32>
    %c7_175 = arith.constant 7 : index
    %c0_176 = arith.constant 0 : index
    %509 = vector.load %arg2[%c7_175, %c0_176] : memref<9x256xf32, #tpu.memory_space<vmem>>, vector<1x256xf32>
    %510 = vector.broadcast %509 : vector<1x256xf32> to vector<4x256xf32>
    %511 = arith.mulf %508, %510 : vector<4x256xf32>
    %c0_177 = arith.constant 0 : index
    %c7_178 = arith.constant 7 : index
    %512 = vector.load %arg5[%c0_177, %c7_178] : memref<4x36xf32, #tpu.memory_space<vmem>>, vector<4x1xf32>
    %513 = vector.extract_strided_slice %511 {offsets = [0, 0], sizes = [1, 256], strides = [1, 1]} : vector<4x256xf32> to vector<1x256xf32>
    %514 = vector.broadcast %512 : vector<4x1xf32> to vector<4x256xf32>
    %515 = vector.broadcast %513 : vector<1x256xf32> to vector<4x256xf32>
    %516 = arith.mulf %514, %515 : vector<4x256xf32>
    %517 = arith.addf %507, %516 : vector<4x256xf32>
    %c0_179 = arith.constant 0 : index
    %c16_180 = arith.constant 16 : index
    %518 = vector.load %arg5[%c0_179, %c16_180] : memref<4x36xf32, #tpu.memory_space<vmem>>, vector<4x1xf32>
    %519 = vector.extract_strided_slice %511 {offsets = [1, 0], sizes = [1, 256], strides = [1, 1]} : vector<4x256xf32> to vector<1x256xf32>
    %520 = vector.broadcast %518 : vector<4x1xf32> to vector<4x256xf32>
    %521 = vector.broadcast %519 : vector<1x256xf32> to vector<4x256xf32>
    %522 = arith.mulf %520, %521 : vector<4x256xf32>
    %523 = arith.addf %517, %522 : vector<4x256xf32>
    %c0_181 = arith.constant 0 : index
    %c25_182 = arith.constant 25 : index
    %524 = vector.load %arg5[%c0_181, %c25_182] : memref<4x36xf32, #tpu.memory_space<vmem>>, vector<4x1xf32>
    %525 = vector.extract_strided_slice %511 {offsets = [2, 0], sizes = [1, 256], strides = [1, 1]} : vector<4x256xf32> to vector<1x256xf32>
    %526 = vector.broadcast %524 : vector<4x1xf32> to vector<4x256xf32>
    %527 = vector.broadcast %525 : vector<1x256xf32> to vector<4x256xf32>
    %528 = arith.mulf %526, %527 : vector<4x256xf32>
    %529 = arith.addf %523, %528 : vector<4x256xf32>
    %c0_183 = arith.constant 0 : index
    %c34_184 = arith.constant 34 : index
    %530 = vector.load %arg5[%c0_183, %c34_184] : memref<4x36xf32, #tpu.memory_space<vmem>>, vector<4x1xf32>
    %531 = vector.extract_strided_slice %511 {offsets = [3, 0], sizes = [1, 256], strides = [1, 1]} : vector<4x256xf32> to vector<1x256xf32>
    %532 = vector.broadcast %530 : vector<4x1xf32> to vector<4x256xf32>
    %533 = vector.broadcast %531 : vector<1x256xf32> to vector<4x256xf32>
    %534 = arith.mulf %532, %533 : vector<4x256xf32>
    %535 = arith.addf %529, %534 : vector<4x256xf32>
    %c0_185 = arith.constant 0 : index
    %c145_186 = arith.constant 145 : index
    %536 = vector.load %arg12[%c0_185, %c145_186] : memref<4x512xf32, #tpu.memory_space<vmem>>, vector<4x256xf32>
    %c8_187 = arith.constant 8 : index
    %c0_188 = arith.constant 0 : index
    %537 = vector.load %arg2[%c8_187, %c0_188] : memref<9x256xf32, #tpu.memory_space<vmem>>, vector<1x256xf32>
    %538 = vector.broadcast %537 : vector<1x256xf32> to vector<4x256xf32>
    %539 = arith.mulf %536, %538 : vector<4x256xf32>
    %c0_189 = arith.constant 0 : index
    %c8_190 = arith.constant 8 : index
    %540 = vector.load %arg5[%c0_189, %c8_190] : memref<4x36xf32, #tpu.memory_space<vmem>>, vector<4x1xf32>
    %541 = vector.extract_strided_slice %539 {offsets = [0, 0], sizes = [1, 256], strides = [1, 1]} : vector<4x256xf32> to vector<1x256xf32>
    %542 = vector.broadcast %540 : vector<4x1xf32> to vector<4x256xf32>
    %543 = vector.broadcast %541 : vector<1x256xf32> to vector<4x256xf32>
    %544 = arith.mulf %542, %543 : vector<4x256xf32>
    %545 = arith.addf %535, %544 : vector<4x256xf32>
    %c0_191 = arith.constant 0 : index
    %c17_192 = arith.constant 17 : index
    %546 = vector.load %arg5[%c0_191, %c17_192] : memref<4x36xf32, #tpu.memory_space<vmem>>, vector<4x1xf32>
    %547 = vector.extract_strided_slice %539 {offsets = [1, 0], sizes = [1, 256], strides = [1, 1]} : vector<4x256xf32> to vector<1x256xf32>
    %548 = vector.broadcast %546 : vector<4x1xf32> to vector<4x256xf32>
    %549 = vector.broadcast %547 : vector<1x256xf32> to vector<4x256xf32>
    %550 = arith.mulf %548, %549 : vector<4x256xf32>
    %551 = arith.addf %545, %550 : vector<4x256xf32>
    %c0_193 = arith.constant 0 : index
    %c26_194 = arith.constant 26 : index
    %552 = vector.load %arg5[%c0_193, %c26_194] : memref<4x36xf32, #tpu.memory_space<vmem>>, vector<4x1xf32>
    %553 = vector.extract_strided_slice %539 {offsets = [2, 0], sizes = [1, 256], strides = [1, 1]} : vector<4x256xf32> to vector<1x256xf32>
    %554 = vector.broadcast %552 : vector<4x1xf32> to vector<4x256xf32>
    %555 = vector.broadcast %553 : vector<1x256xf32> to vector<4x256xf32>
    %556 = arith.mulf %554, %555 : vector<4x256xf32>
    %557 = arith.addf %551, %556 : vector<4x256xf32>
    %c0_195 = arith.constant 0 : index
    %c35_196 = arith.constant 35 : index
    %558 = vector.load %arg5[%c0_195, %c35_196] : memref<4x36xf32, #tpu.memory_space<vmem>>, vector<4x1xf32>
    %559 = vector.extract_strided_slice %539 {offsets = [3, 0], sizes = [1, 256], strides = [1, 1]} : vector<4x256xf32> to vector<1x256xf32>
    %560 = vector.broadcast %558 : vector<4x1xf32> to vector<4x256xf32>
    %561 = vector.broadcast %559 : vector<1x256xf32> to vector<4x256xf32>
    %562 = arith.mulf %560, %561 : vector<4x256xf32>
    %563 = arith.addf %557, %562 : vector<4x256xf32>
    %cst_197 = arith.constant 2.000000e-01 : f32
    %564 = vector.broadcast %cst_197 : f32 to vector<4x256xf32>
    %565 = arith.mulf %564, %563 : vector<4x256xf32>
    %566 = arith.maximumf %563, %565 : vector<4x256xf32>
    %c0_198 = arith.constant 0 : index
    %c8_199 = arith.constant 8 : index
    %567 = vector.load %arg9[%c0_198, %c8_199] : memref<4x16xf32, #tpu.memory_space<vmem>>, vector<4x1xf32>
    %568 = vector.extract_strided_slice %566 {offsets = [0, 0], sizes = [1, 256], strides = [1, 1]} : vector<4x256xf32> to vector<1x256xf32>
    %569 = vector.broadcast %567 : vector<4x1xf32> to vector<4x256xf32>
    %570 = vector.broadcast %568 : vector<1x256xf32> to vector<4x256xf32>
    %571 = arith.mulf %569, %570 : vector<4x256xf32>
    %572 = arith.addf %311, %571 : vector<4x256xf32>
    %c0_200 = arith.constant 0 : index
    %c9_201 = arith.constant 9 : index
    %573 = vector.load %arg9[%c0_200, %c9_201] : memref<4x16xf32, #tpu.memory_space<vmem>>, vector<4x1xf32>
    %574 = vector.extract_strided_slice %566 {offsets = [1, 0], sizes = [1, 256], strides = [1, 1]} : vector<4x256xf32> to vector<1x256xf32>
    %575 = vector.broadcast %573 : vector<4x1xf32> to vector<4x256xf32>
    %576 = vector.broadcast %574 : vector<1x256xf32> to vector<4x256xf32>
    %577 = arith.mulf %575, %576 : vector<4x256xf32>
    %578 = arith.addf %572, %577 : vector<4x256xf32>
    %c0_202 = arith.constant 0 : index
    %c10_203 = arith.constant 10 : index
    %579 = vector.load %arg9[%c0_202, %c10_203] : memref<4x16xf32, #tpu.memory_space<vmem>>, vector<4x1xf32>
    %580 = vector.extract_strided_slice %566 {offsets = [2, 0], sizes = [1, 256], strides = [1, 1]} : vector<4x256xf32> to vector<1x256xf32>
    %581 = vector.broadcast %579 : vector<4x1xf32> to vector<4x256xf32>
    %582 = vector.broadcast %580 : vector<1x256xf32> to vector<4x256xf32>
    %583 = arith.mulf %581, %582 : vector<4x256xf32>
    %584 = arith.addf %578, %583 : vector<4x256xf32>
    %c0_204 = arith.constant 0 : index
    %c11_205 = arith.constant 11 : index
    %585 = vector.load %arg9[%c0_204, %c11_205] : memref<4x16xf32, #tpu.memory_space<vmem>>, vector<4x1xf32>
    %586 = vector.extract_strided_slice %566 {offsets = [3, 0], sizes = [1, 256], strides = [1, 1]} : vector<4x256xf32> to vector<1x256xf32>
    %587 = vector.broadcast %585 : vector<4x1xf32> to vector<4x256xf32>
    %588 = vector.broadcast %586 : vector<1x256xf32> to vector<4x256xf32>
    %589 = arith.mulf %587, %588 : vector<4x256xf32>
    %590 = arith.addf %584, %589 : vector<4x256xf32>
    %c0_206 = arith.constant 0 : index
    %c128_207 = arith.constant 128 : index
    %591 = vector.load %arg12[%c0_206, %c128_207] : memref<4x512xf32, #tpu.memory_space<vmem>>, vector<4x256xf32>
    tpu.vector_store %arg12[%c0_206, %c128_207], %566 {strides = array<i32>} : memref<4x512xf32, #tpu.memory_space<vmem>>, vector<4x256xf32>,
    %c0_208 = arith.constant 0 : index
    %c0_209 = arith.constant 0 : index
    %592 = vector.load %arg8[%c0_208, %c0_209] : memref<4x1xf32, #tpu.memory_space<vmem>>, vector<4x1xf32>
    %593 = vector.shape_cast %592 : vector<4x1xf32> to vector<4x1xf32>
    %594 = vector.broadcast %593 : vector<4x1xf32> to vector<4x256xf32>
    %c0_210 = arith.constant 0 : index
    %c111_211 = arith.constant 111 : index
    %595 = vector.load %arg12[%c0_210, %c111_211] : memref<4x512xf32, #tpu.memory_space<vmem>>, vector<4x256xf32>
    %c0_212 = arith.constant 0 : index
    %c0_213 = arith.constant 0 : index
    %596 = vector.load %arg2[%c0_212, %c0_213] : memref<9x256xf32, #tpu.memory_space<vmem>>, vector<1x256xf32>
    %597 = vector.broadcast %596 : vector<1x256xf32> to vector<4x256xf32>
    %598 = arith.mulf %595, %597 : vector<4x256xf32>
    %c0_214 = arith.constant 0 : index
    %c0_215 = arith.constant 0 : index
    %599 = vector.load %arg7[%c0_214, %c0_215] : memref<4x36xf32, #tpu.memory_space<vmem>>, vector<4x1xf32>
    %600 = vector.extract_strided_slice %598 {offsets = [0, 0], sizes = [1, 256], strides = [1, 1]} : vector<4x256xf32> to vector<1x256xf32>
    %601 = vector.broadcast %599 : vector<4x1xf32> to vector<4x256xf32>
    %602 = vector.broadcast %600 : vector<1x256xf32> to vector<4x256xf32>
    %603 = arith.mulf %601, %602 : vector<4x256xf32>
    %604 = arith.addf %594, %603 : vector<4x256xf32>
    %c0_216 = arith.constant 0 : index
    %c9_217 = arith.constant 9 : index
    %605 = vector.load %arg7[%c0_216, %c9_217] : memref<4x36xf32, #tpu.memory_space<vmem>>, vector<4x1xf32>
    %606 = vector.extract_strided_slice %598 {offsets = [1, 0], sizes = [1, 256], strides = [1, 1]} : vector<4x256xf32> to vector<1x256xf32>
    %607 = vector.broadcast %605 : vector<4x1xf32> to vector<4x256xf32>
    %608 = vector.broadcast %606 : vector<1x256xf32> to vector<4x256xf32>
    %609 = arith.mulf %607, %608 : vector<4x256xf32>
    %610 = arith.addf %604, %609 : vector<4x256xf32>
    %c0_218 = arith.constant 0 : index
    %c18_219 = arith.constant 18 : index
    %611 = vector.load %arg7[%c0_218, %c18_219] : memref<4x36xf32, #tpu.memory_space<vmem>>, vector<4x1xf32>
    %612 = vector.extract_strided_slice %598 {offsets = [2, 0], sizes = [1, 256], strides = [1, 1]} : vector<4x256xf32> to vector<1x256xf32>
    %613 = vector.broadcast %611 : vector<4x1xf32> to vector<4x256xf32>
    %614 = vector.broadcast %612 : vector<1x256xf32> to vector<4x256xf32>
    %615 = arith.mulf %613, %614 : vector<4x256xf32>
    %616 = arith.addf %610, %615 : vector<4x256xf32>
    %c0_220 = arith.constant 0 : index
    %c27_221 = arith.constant 27 : index
    %617 = vector.load %arg7[%c0_220, %c27_221] : memref<4x36xf32, #tpu.memory_space<vmem>>, vector<4x1xf32>
    %618 = vector.extract_strided_slice %598 {offsets = [3, 0], sizes = [1, 256], strides = [1, 1]} : vector<4x256xf32> to vector<1x256xf32>
    %619 = vector.broadcast %617 : vector<4x1xf32> to vector<4x256xf32>
    %620 = vector.broadcast %618 : vector<1x256xf32> to vector<4x256xf32>
    %621 = arith.mulf %619, %620 : vector<4x256xf32>
    %622 = arith.addf %616, %621 : vector<4x256xf32>
    %c0_222 = arith.constant 0 : index
    %c112_223 = arith.constant 112 : index
    %623 = vector.load %arg12[%c0_222, %c112_223] : memref<4x512xf32, #tpu.memory_space<vmem>>, vector<4x256xf32>
    %c1_224 = arith.constant 1 : index
    %c0_225 = arith.constant 0 : index
    %624 = vector.load %arg2[%c1_224, %c0_225] : memref<9x256xf32, #tpu.memory_space<vmem>>, vector<1x256xf32>
    %625 = vector.broadcast %624 : vector<1x256xf32> to vector<4x256xf32>
    %626 = arith.mulf %623, %625 : vector<4x256xf32>
    %c0_226 = arith.constant 0 : index
    %c1_227 = arith.constant 1 : index
    %627 = vector.load %arg7[%c0_226, %c1_227] : memref<4x36xf32, #tpu.memory_space<vmem>>, vector<4x1xf32>
    %628 = vector.extract_strided_slice %626 {offsets = [0, 0], sizes = [1, 256], strides = [1, 1]} : vector<4x256xf32> to vector<1x256xf32>
    %629 = vector.broadcast %627 : vector<4x1xf32> to vector<4x256xf32>
    %630 = vector.broadcast %628 : vector<1x256xf32> to vector<4x256xf32>
    %631 = arith.mulf %629, %630 : vector<4x256xf32>
    %632 = arith.addf %622, %631 : vector<4x256xf32>
    %c0_228 = arith.constant 0 : index
    %c10_229 = arith.constant 10 : index
    %633 = vector.load %arg7[%c0_228, %c10_229] : memref<4x36xf32, #tpu.memory_space<vmem>>, vector<4x1xf32>
    %634 = vector.extract_strided_slice %626 {offsets = [1, 0], sizes = [1, 256], strides = [1, 1]} : vector<4x256xf32> to vector<1x256xf32>
    %635 = vector.broadcast %633 : vector<4x1xf32> to vector<4x256xf32>
    %636 = vector.broadcast %634 : vector<1x256xf32> to vector<4x256xf32>
    %637 = arith.mulf %635, %636 : vector<4x256xf32>
    %638 = arith.addf %632, %637 : vector<4x256xf32>
    %c0_230 = arith.constant 0 : index
    %c19_231 = arith.constant 19 : index
    %639 = vector.load %arg7[%c0_230, %c19_231] : memref<4x36xf32, #tpu.memory_space<vmem>>, vector<4x1xf32>
    %640 = vector.extract_strided_slice %626 {offsets = [2, 0], sizes = [1, 256], strides = [1, 1]} : vector<4x256xf32> to vector<1x256xf32>
    %641 = vector.broadcast %639 : vector<4x1xf32> to vector<4x256xf32>
    %642 = vector.broadcast %640 : vector<1x256xf32> to vector<4x256xf32>
    %643 = arith.mulf %641, %642 : vector<4x256xf32>
    %644 = arith.addf %638, %643 : vector<4x256xf32>
    %c0_232 = arith.constant 0 : index
    %c28_233 = arith.constant 28 : index
    %645 = vector.load %arg7[%c0_232, %c28_233] : memref<4x36xf32, #tpu.memory_space<vmem>>, vector<4x1xf32>
    %646 = vector.extract_strided_slice %626 {offsets = [3, 0], sizes = [1, 256], strides = [1, 1]} : vector<4x256xf32> to vector<1x256xf32>
    %647 = vector.broadcast %645 : vector<4x1xf32> to vector<4x256xf32>
    %648 = vector.broadcast %646 : vector<1x256xf32> to vector<4x256xf32>
    %649 = arith.mulf %647, %648 : vector<4x256xf32>
    %650 = arith.addf %644, %649 : vector<4x256xf32>
    %c0_234 = arith.constant 0 : index
    %c113_235 = arith.constant 113 : index
    %651 = vector.load %arg12[%c0_234, %c113_235] : memref<4x512xf32, #tpu.memory_space<vmem>>, vector<4x256xf32>
    %c2_236 = arith.constant 2 : index
    %c0_237 = arith.constant 0 : index
    %652 = vector.load %arg2[%c2_236, %c0_237] : memref<9x256xf32, #tpu.memory_space<vmem>>, vector<1x256xf32>
    %653 = vector.broadcast %652 : vector<1x256xf32> to vector<4x256xf32>
    %654 = arith.mulf %651, %653 : vector<4x256xf32>
    %c0_238 = arith.constant 0 : index
    %c2_239 = arith.constant 2 : index
    %655 = vector.load %arg7[%c0_238, %c2_239] : memref<4x36xf32, #tpu.memory_space<vmem>>, vector<4x1xf32>
    %656 = vector.extract_strided_slice %654 {offsets = [0, 0], sizes = [1, 256], strides = [1, 1]} : vector<4x256xf32> to vector<1x256xf32>
    %657 = vector.broadcast %655 : vector<4x1xf32> to vector<4x256xf32>
    %658 = vector.broadcast %656 : vector<1x256xf32> to vector<4x256xf32>
    %659 = arith.mulf %657, %658 : vector<4x256xf32>
    %660 = arith.addf %650, %659 : vector<4x256xf32>
    %c0_240 = arith.constant 0 : index
    %c11_241 = arith.constant 11 : index
    %661 = vector.load %arg7[%c0_240, %c11_241] : memref<4x36xf32, #tpu.memory_space<vmem>>, vector<4x1xf32>
    %662 = vector.extract_strided_slice %654 {offsets = [1, 0], sizes = [1, 256], strides = [1, 1]} : vector<4x256xf32> to vector<1x256xf32>
    %663 = vector.broadcast %661 : vector<4x1xf32> to vector<4x256xf32>
    %664 = vector.broadcast %662 : vector<1x256xf32> to vector<4x256xf32>
    %665 = arith.mulf %663, %664 : vector<4x256xf32>
    %666 = arith.addf %660, %665 : vector<4x256xf32>
    %c0_242 = arith.constant 0 : index
    %c20_243 = arith.constant 20 : index
    %667 = vector.load %arg7[%c0_242, %c20_243] : memref<4x36xf32, #tpu.memory_space<vmem>>, vector<4x1xf32>
    %668 = vector.extract_strided_slice %654 {offsets = [2, 0], sizes = [1, 256], strides = [1, 1]} : vector<4x256xf32> to vector<1x256xf32>
    %669 = vector.broadcast %667 : vector<4x1xf32> to vector<4x256xf32>
    %670 = vector.broadcast %668 : vector<1x256xf32> to vector<4x256xf32>
    %671 = arith.mulf %669, %670 : vector<4x256xf32>
    %672 = arith.addf %666, %671 : vector<4x256xf32>
    %c0_244 = arith.constant 0 : index
    %c29_245 = arith.constant 29 : index
    %673 = vector.load %arg7[%c0_244, %c29_245] : memref<4x36xf32, #tpu.memory_space<vmem>>, vector<4x1xf32>
    %674 = vector.extract_strided_slice %654 {offsets = [3, 0], sizes = [1, 256], strides = [1, 1]} : vector<4x256xf32> to vector<1x256xf32>
    %675 = vector.broadcast %673 : vector<4x1xf32> to vector<4x256xf32>
    %676 = vector.broadcast %674 : vector<1x256xf32> to vector<4x256xf32>
    %677 = arith.mulf %675, %676 : vector<4x256xf32>
    %678 = arith.addf %672, %677 : vector<4x256xf32>
    %c0_246 = arith.constant 0 : index
    %c127_247 = arith.constant 127 : index
    %679 = vector.load %arg12[%c0_246, %c127_247] : memref<4x512xf32, #tpu.memory_space<vmem>>, vector<4x256xf32>
    %c3_248 = arith.constant 3 : index
    %c0_249 = arith.constant 0 : index
    %680 = vector.load %arg2[%c3_248, %c0_249] : memref<9x256xf32, #tpu.memory_space<vmem>>, vector<1x256xf32>
    %681 = vector.broadcast %680 : vector<1x256xf32> to vector<4x256xf32>
    %682 = arith.mulf %679, %681 : vector<4x256xf32>
    %c0_250 = arith.constant 0 : index
    %c3_251 = arith.constant 3 : index
    %683 = vector.load %arg7[%c0_250, %c3_251] : memref<4x36xf32, #tpu.memory_space<vmem>>, vector<4x1xf32>
    %684 = vector.extract_strided_slice %682 {offsets = [0, 0], sizes = [1, 256], strides = [1, 1]} : vector<4x256xf32> to vector<1x256xf32>
    %685 = vector.broadcast %683 : vector<4x1xf32> to vector<4x256xf32>
    %686 = vector.broadcast %684 : vector<1x256xf32> to vector<4x256xf32>
    %687 = arith.mulf %685, %686 : vector<4x256xf32>
    %688 = arith.addf %678, %687 : vector<4x256xf32>
    %c0_252 = arith.constant 0 : index
    %c12_253 = arith.constant 12 : index
    %689 = vector.load %arg7[%c0_252, %c12_253] : memref<4x36xf32, #tpu.memory_space<vmem>>, vector<4x1xf32>
    %690 = vector.extract_strided_slice %682 {offsets = [1, 0], sizes = [1, 256], strides = [1, 1]} : vector<4x256xf32> to vector<1x256xf32>
    %691 = vector.broadcast %689 : vector<4x1xf32> to vector<4x256xf32>
    %692 = vector.broadcast %690 : vector<1x256xf32> to vector<4x256xf32>
    %693 = arith.mulf %691, %692 : vector<4x256xf32>
    %694 = arith.addf %688, %693 : vector<4x256xf32>
    %c0_254 = arith.constant 0 : index
    %c21_255 = arith.constant 21 : index
    %695 = vector.load %arg7[%c0_254, %c21_255] : memref<4x36xf32, #tpu.memory_space<vmem>>, vector<4x1xf32>
    %696 = vector.extract_strided_slice %682 {offsets = [2, 0], sizes = [1, 256], strides = [1, 1]} : vector<4x256xf32> to vector<1x256xf32>
    %697 = vector.broadcast %695 : vector<4x1xf32> to vector<4x256xf32>
    %698 = vector.broadcast %696 : vector<1x256xf32> to vector<4x256xf32>
    %699 = arith.mulf %697, %698 : vector<4x256xf32>
    %700 = arith.addf %694, %699 : vector<4x256xf32>
    %c0_256 = arith.constant 0 : index
    %c30_257 = arith.constant 30 : index
    %701 = vector.load %arg7[%c0_256, %c30_257] : memref<4x36xf32, #tpu.memory_space<vmem>>, vector<4x1xf32>
    %702 = vector.extract_strided_slice %682 {offsets = [3, 0], sizes = [1, 256], strides = [1, 1]} : vector<4x256xf32> to vector<1x256xf32>
    %703 = vector.broadcast %701 : vector<4x1xf32> to vector<4x256xf32>
    %704 = vector.broadcast %702 : vector<1x256xf32> to vector<4x256xf32>
    %705 = arith.mulf %703, %704 : vector<4x256xf32>
    %706 = arith.addf %700, %705 : vector<4x256xf32>
    %c0_258 = arith.constant 0 : index
    %c4_259 = arith.constant 4 : index
    %707 = vector.load %arg7[%c0_258, %c4_259] : memref<4x36xf32, #tpu.memory_space<vmem>>, vector<4x1xf32>
    %708 = vector.extract_strided_slice %566 {offsets = [0, 0], sizes = [1, 256], strides = [1, 1]} : vector<4x256xf32> to vector<1x256xf32>
    %709 = vector.broadcast %707 : vector<4x1xf32> to vector<4x256xf32>
    %710 = vector.broadcast %708 : vector<1x256xf32> to vector<4x256xf32>
    %711 = arith.mulf %709, %710 : vector<4x256xf32>
    %712 = arith.addf %706, %711 : vector<4x256xf32>
    %c0_260 = arith.constant 0 : index
    %c13_261 = arith.constant 13 : index
    %713 = vector.load %arg7[%c0_260, %c13_261] : memref<4x36xf32, #tpu.memory_space<vmem>>, vector<4x1xf32>
    %714 = vector.extract_strided_slice %566 {offsets = [1, 0], sizes = [1, 256], strides = [1, 1]} : vector<4x256xf32> to vector<1x256xf32>
    %715 = vector.broadcast %713 : vector<4x1xf32> to vector<4x256xf32>
    %716 = vector.broadcast %714 : vector<1x256xf32> to vector<4x256xf32>
    %717 = arith.mulf %715, %716 : vector<4x256xf32>
    %718 = arith.addf %712, %717 : vector<4x256xf32>
    %c0_262 = arith.constant 0 : index
    %c22_263 = arith.constant 22 : index
    %719 = vector.load %arg7[%c0_262, %c22_263] : memref<4x36xf32, #tpu.memory_space<vmem>>, vector<4x1xf32>
    %720 = vector.extract_strided_slice %566 {offsets = [2, 0], sizes = [1, 256], strides = [1, 1]} : vector<4x256xf32> to vector<1x256xf32>
    %721 = vector.broadcast %719 : vector<4x1xf32> to vector<4x256xf32>
    %722 = vector.broadcast %720 : vector<1x256xf32> to vector<4x256xf32>
    %723 = arith.mulf %721, %722 : vector<4x256xf32>
    %724 = arith.addf %718, %723 : vector<4x256xf32>
    %c0_264 = arith.constant 0 : index
    %c31_265 = arith.constant 31 : index
    %725 = vector.load %arg7[%c0_264, %c31_265] : memref<4x36xf32, #tpu.memory_space<vmem>>, vector<4x1xf32>
    %726 = vector.extract_strided_slice %566 {offsets = [3, 0], sizes = [1, 256], strides = [1, 1]} : vector<4x256xf32> to vector<1x256xf32>
    %727 = vector.broadcast %725 : vector<4x1xf32> to vector<4x256xf32>
    %728 = vector.broadcast %726 : vector<1x256xf32> to vector<4x256xf32>
    %729 = arith.mulf %727, %728 : vector<4x256xf32>
    %730 = arith.addf %724, %729 : vector<4x256xf32>
    %c0_266 = arith.constant 0 : index
    %c129_267 = arith.constant 129 : index
    %731 = vector.load %arg12[%c0_266, %c129_267] : memref<4x512xf32, #tpu.memory_space<vmem>>, vector<4x256xf32>
    %c5_268 = arith.constant 5 : index
    %c0_269 = arith.constant 0 : index
    %732 = vector.load %arg2[%c5_268, %c0_269] : memref<9x256xf32, #tpu.memory_space<vmem>>, vector<1x256xf32>
    %733 = vector.broadcast %732 : vector<1x256xf32> to vector<4x256xf32>
    %734 = arith.mulf %731, %733 : vector<4x256xf32>
    %c0_270 = arith.constant 0 : index
    %c5_271 = arith.constant 5 : index
    %735 = vector.load %arg7[%c0_270, %c5_271] : memref<4x36xf32, #tpu.memory_space<vmem>>, vector<4x1xf32>
    %736 = vector.extract_strided_slice %734 {offsets = [0, 0], sizes = [1, 256], strides = [1, 1]} : vector<4x256xf32> to vector<1x256xf32>
    %737 = vector.broadcast %735 : vector<4x1xf32> to vector<4x256xf32>
    %738 = vector.broadcast %736 : vector<1x256xf32> to vector<4x256xf32>
    %739 = arith.mulf %737, %738 : vector<4x256xf32>
    %740 = arith.addf %730, %739 : vector<4x256xf32>
    %c0_272 = arith.constant 0 : index
    %c14_273 = arith.constant 14 : index
    %741 = vector.load %arg7[%c0_272, %c14_273] : memref<4x36xf32, #tpu.memory_space<vmem>>, vector<4x1xf32>
    %742 = vector.extract_strided_slice %734 {offsets = [1, 0], sizes = [1, 256], strides = [1, 1]} : vector<4x256xf32> to vector<1x256xf32>
    %743 = vector.broadcast %741 : vector<4x1xf32> to vector<4x256xf32>
    %744 = vector.broadcast %742 : vector<1x256xf32> to vector<4x256xf32>
    %745 = arith.mulf %743, %744 : vector<4x256xf32>
    %746 = arith.addf %740, %745 : vector<4x256xf32>
    %c0_274 = arith.constant 0 : index
    %c23_275 = arith.constant 23 : index
    %747 = vector.load %arg7[%c0_274, %c23_275] : memref<4x36xf32, #tpu.memory_space<vmem>>, vector<4x1xf32>
    %748 = vector.extract_strided_slice %734 {offsets = [2, 0], sizes = [1, 256], strides = [1, 1]} : vector<4x256xf32> to vector<1x256xf32>
    %749 = vector.broadcast %747 : vector<4x1xf32> to vector<4x256xf32>
    %750 = vector.broadcast %748 : vector<1x256xf32> to vector<4x256xf32>
    %751 = arith.mulf %749, %750 : vector<4x256xf32>
    %752 = arith.addf %746, %751 : vector<4x256xf32>
    %c0_276 = arith.constant 0 : index
    %c32_277 = arith.constant 32 : index
    %753 = vector.load %arg7[%c0_276, %c32_277] : memref<4x36xf32, #tpu.memory_space<vmem>>, vector<4x1xf32>
    %754 = vector.extract_strided_slice %734 {offsets = [3, 0], sizes = [1, 256], strides = [1, 1]} : vector<4x256xf32> to vector<1x256xf32>
    %755 = vector.broadcast %753 : vector<4x1xf32> to vector<4x256xf32>
    %756 = vector.broadcast %754 : vector<1x256xf32> to vector<4x256xf32>
    %757 = arith.mulf %755, %756 : vector<4x256xf32>
    %758 = arith.addf %752, %757 : vector<4x256xf32>
    %c0_278 = arith.constant 0 : index
    %c143_279 = arith.constant 143 : index
    %759 = vector.load %arg12[%c0_278, %c143_279] : memref<4x512xf32, #tpu.memory_space<vmem>>, vector<4x256xf32>
    %c6_280 = arith.constant 6 : index
    %c0_281 = arith.constant 0 : index
    %760 = vector.load %arg2[%c6_280, %c0_281] : memref<9x256xf32, #tpu.memory_space<vmem>>, vector<1x256xf32>
    %761 = vector.broadcast %760 : vector<1x256xf32> to vector<4x256xf32>
    %762 = arith.mulf %759, %761 : vector<4x256xf32>
    %c0_282 = arith.constant 0 : index
    %c6_283 = arith.constant 6 : index
    %763 = vector.load %arg7[%c0_282, %c6_283] : memref<4x36xf32, #tpu.memory_space<vmem>>, vector<4x1xf32>
    %764 = vector.extract_strided_slice %762 {offsets = [0, 0], sizes = [1, 256], strides = [1, 1]} : vector<4x256xf32> to vector<1x256xf32>
    %765 = vector.broadcast %763 : vector<4x1xf32> to vector<4x256xf32>
    %766 = vector.broadcast %764 : vector<1x256xf32> to vector<4x256xf32>
    %767 = arith.mulf %765, %766 : vector<4x256xf32>
    %768 = arith.addf %758, %767 : vector<4x256xf32>
    %c0_284 = arith.constant 0 : index
    %c15_285 = arith.constant 15 : index
    %769 = vector.load %arg7[%c0_284, %c15_285] : memref<4x36xf32, #tpu.memory_space<vmem>>, vector<4x1xf32>
    %770 = vector.extract_strided_slice %762 {offsets = [1, 0], sizes = [1, 256], strides = [1, 1]} : vector<4x256xf32> to vector<1x256xf32>
    %771 = vector.broadcast %769 : vector<4x1xf32> to vector<4x256xf32>
    %772 = vector.broadcast %770 : vector<1x256xf32> to vector<4x256xf32>
    %773 = arith.mulf %771, %772 : vector<4x256xf32>
    %774 = arith.addf %768, %773 : vector<4x256xf32>
    %c0_286 = arith.constant 0 : index
    %c24_287 = arith.constant 24 : index
    %775 = vector.load %arg7[%c0_286, %c24_287] : memref<4x36xf32, #tpu.memory_space<vmem>>, vector<4x1xf32>
    %776 = vector.extract_strided_slice %762 {offsets = [2, 0], sizes = [1, 256], strides = [1, 1]} : vector<4x256xf32> to vector<1x256xf32>
    %777 = vector.broadcast %775 : vector<4x1xf32> to vector<4x256xf32>
    %778 = vector.broadcast %776 : vector<1x256xf32> to vector<4x256xf32>
    %779 = arith.mulf %777, %778 : vector<4x256xf32>
    %780 = arith.addf %774, %779 : vector<4x256xf32>
    %c0_288 = arith.constant 0 : index
    %c33_289 = arith.constant 33 : index
    %781 = vector.load %arg7[%c0_288, %c33_289] : memref<4x36xf32, #tpu.memory_space<vmem>>, vector<4x1xf32>
    %782 = vector.extract_strided_slice %762 {offsets = [3, 0], sizes = [1, 256], strides = [1, 1]} : vector<4x256xf32> to vector<1x256xf32>
    %783 = vector.broadcast %781 : vector<4x1xf32> to vector<4x256xf32>
    %784 = vector.broadcast %782 : vector<1x256xf32> to vector<4x256xf32>
    %785 = arith.mulf %783, %784 : vector<4x256xf32>
    %786 = arith.addf %780, %785 : vector<4x256xf32>
    %c0_290 = arith.constant 0 : index
    %c144_291 = arith.constant 144 : index
    %787 = vector.load %arg12[%c0_290, %c144_291] : memref<4x512xf32, #tpu.memory_space<vmem>>, vector<4x256xf32>
    %c7_292 = arith.constant 7 : index
    %c0_293 = arith.constant 0 : index
    %788 = vector.load %arg2[%c7_292, %c0_293] : memref<9x256xf32, #tpu.memory_space<vmem>>, vector<1x256xf32>
    %789 = vector.broadcast %788 : vector<1x256xf32> to vector<4x256xf32>
    %790 = arith.mulf %787, %789 : vector<4x256xf32>
    %c0_294 = arith.constant 0 : index
    %c7_295 = arith.constant 7 : index
    %791 = vector.load %arg7[%c0_294, %c7_295] : memref<4x36xf32, #tpu.memory_space<vmem>>, vector<4x1xf32>
    %792 = vector.extract_strided_slice %790 {offsets = [0, 0], sizes = [1, 256], strides = [1, 1]} : vector<4x256xf32> to vector<1x256xf32>
    %793 = vector.broadcast %791 : vector<4x1xf32> to vector<4x256xf32>
    %794 = vector.broadcast %792 : vector<1x256xf32> to vector<4x256xf32>
    %795 = arith.mulf %793, %794 : vector<4x256xf32>
    %796 = arith.addf %786, %795 : vector<4x256xf32>
    %c0_296 = arith.constant 0 : index
    %c16_297 = arith.constant 16 : index
    %797 = vector.load %arg7[%c0_296, %c16_297] : memref<4x36xf32, #tpu.memory_space<vmem>>, vector<4x1xf32>
    %798 = vector.extract_strided_slice %790 {offsets = [1, 0], sizes = [1, 256], strides = [1, 1]} : vector<4x256xf32> to vector<1x256xf32>
    %799 = vector.broadcast %797 : vector<4x1xf32> to vector<4x256xf32>
    %800 = vector.broadcast %798 : vector<1x256xf32> to vector<4x256xf32>
    %801 = arith.mulf %799, %800 : vector<4x256xf32>
    %802 = arith.addf %796, %801 : vector<4x256xf32>
    %c0_298 = arith.constant 0 : index
    %c25_299 = arith.constant 25 : index
    %803 = vector.load %arg7[%c0_298, %c25_299] : memref<4x36xf32, #tpu.memory_space<vmem>>, vector<4x1xf32>
    %804 = vector.extract_strided_slice %790 {offsets = [2, 0], sizes = [1, 256], strides = [1, 1]} : vector<4x256xf32> to vector<1x256xf32>
    %805 = vector.broadcast %803 : vector<4x1xf32> to vector<4x256xf32>
    %806 = vector.broadcast %804 : vector<1x256xf32> to vector<4x256xf32>
    %807 = arith.mulf %805, %806 : vector<4x256xf32>
    %808 = arith.addf %802, %807 : vector<4x256xf32>
    %c0_300 = arith.constant 0 : index
    %c34_301 = arith.constant 34 : index
    %809 = vector.load %arg7[%c0_300, %c34_301] : memref<4x36xf32, #tpu.memory_space<vmem>>, vector<4x1xf32>
    %810 = vector.extract_strided_slice %790 {offsets = [3, 0], sizes = [1, 256], strides = [1, 1]} : vector<4x256xf32> to vector<1x256xf32>
    %811 = vector.broadcast %809 : vector<4x1xf32> to vector<4x256xf32>
    %812 = vector.broadcast %810 : vector<1x256xf32> to vector<4x256xf32>
    %813 = arith.mulf %811, %812 : vector<4x256xf32>
    %814 = arith.addf %808, %813 : vector<4x256xf32>
    %c0_302 = arith.constant 0 : index
    %c145_303 = arith.constant 145 : index
    %815 = vector.load %arg12[%c0_302, %c145_303] : memref<4x512xf32, #tpu.memory_space<vmem>>, vector<4x256xf32>
    %c8_304 = arith.constant 8 : index
    %c0_305 = arith.constant 0 : index
    %816 = vector.load %arg2[%c8_304, %c0_305] : memref<9x256xf32, #tpu.memory_space<vmem>>, vector<1x256xf32>
    %817 = vector.broadcast %816 : vector<1x256xf32> to vector<4x256xf32>
    %818 = arith.mulf %815, %817 : vector<4x256xf32>
    %c0_306 = arith.constant 0 : index
    %c8_307 = arith.constant 8 : index
    %819 = vector.load %arg7[%c0_306, %c8_307] : memref<4x36xf32, #tpu.memory_space<vmem>>, vector<4x1xf32>
    %820 = vector.extract_strided_slice %818 {offsets = [0, 0], sizes = [1, 256], strides = [1, 1]} : vector<4x256xf32> to vector<1x256xf32>
    %821 = vector.broadcast %819 : vector<4x1xf32> to vector<4x256xf32>
    %822 = vector.broadcast %820 : vector<1x256xf32> to vector<4x256xf32>
    %823 = arith.mulf %821, %822 : vector<4x256xf32>
    %824 = arith.addf %814, %823 : vector<4x256xf32>
    %c0_308 = arith.constant 0 : index
    %c17_309 = arith.constant 17 : index
    %825 = vector.load %arg7[%c0_308, %c17_309] : memref<4x36xf32, #tpu.memory_space<vmem>>, vector<4x1xf32>
    %826 = vector.extract_strided_slice %818 {offsets = [1, 0], sizes = [1, 256], strides = [1, 1]} : vector<4x256xf32> to vector<1x256xf32>
    %827 = vector.broadcast %825 : vector<4x1xf32> to vector<4x256xf32>
    %828 = vector.broadcast %826 : vector<1x256xf32> to vector<4x256xf32>
    %829 = arith.mulf %827, %828 : vector<4x256xf32>
    %830 = arith.addf %824, %829 : vector<4x256xf32>
    %c0_310 = arith.constant 0 : index
    %c26_311 = arith.constant 26 : index
    %831 = vector.load %arg7[%c0_310, %c26_311] : memref<4x36xf32, #tpu.memory_space<vmem>>, vector<4x1xf32>
    %832 = vector.extract_strided_slice %818 {offsets = [2, 0], sizes = [1, 256], strides = [1, 1]} : vector<4x256xf32> to vector<1x256xf32>
    %833 = vector.broadcast %831 : vector<4x1xf32> to vector<4x256xf32>
    %834 = vector.broadcast %832 : vector<1x256xf32> to vector<4x256xf32>
    %835 = arith.mulf %833, %834 : vector<4x256xf32>
    %836 = arith.addf %830, %835 : vector<4x256xf32>
    %c0_312 = arith.constant 0 : index
    %c35_313 = arith.constant 35 : index
    %837 = vector.load %arg7[%c0_312, %c35_313] : memref<4x36xf32, #tpu.memory_space<vmem>>, vector<4x1xf32>
    %838 = vector.extract_strided_slice %818 {offsets = [3, 0], sizes = [1, 256], strides = [1, 1]} : vector<4x256xf32> to vector<1x256xf32>
    %839 = vector.broadcast %837 : vector<4x1xf32> to vector<4x256xf32>
    %840 = vector.broadcast %838 : vector<1x256xf32> to vector<4x256xf32>
    %841 = arith.mulf %839, %840 : vector<4x256xf32>
    %842 = arith.addf %836, %841 : vector<4x256xf32>
    %cst_314 = arith.constant 2.000000e-01 : f32
    %843 = vector.broadcast %cst_314 : f32 to vector<4x256xf32>
    %844 = arith.mulf %843, %842 : vector<4x256xf32>
    %845 = arith.maximumf %842, %844 : vector<4x256xf32>
    %c0_315 = arith.constant 0 : index
    %c12_316 = arith.constant 12 : index
    %846 = vector.load %arg9[%c0_315, %c12_316] : memref<4x16xf32, #tpu.memory_space<vmem>>, vector<4x1xf32>
    %847 = vector.extract_strided_slice %845 {offsets = [0, 0], sizes = [1, 256], strides = [1, 1]} : vector<4x256xf32> to vector<1x256xf32>
    %848 = vector.broadcast %846 : vector<4x1xf32> to vector<4x256xf32>
    %849 = vector.broadcast %847 : vector<1x256xf32> to vector<4x256xf32>
    %850 = arith.mulf %848, %849 : vector<4x256xf32>
    %851 = arith.addf %590, %850 : vector<4x256xf32>
    %c0_317 = arith.constant 0 : index
    %c13_318 = arith.constant 13 : index
    %852 = vector.load %arg9[%c0_317, %c13_318] : memref<4x16xf32, #tpu.memory_space<vmem>>, vector<4x1xf32>
    %853 = vector.extract_strided_slice %845 {offsets = [1, 0], sizes = [1, 256], strides = [1, 1]} : vector<4x256xf32> to vector<1x256xf32>
    %854 = vector.broadcast %852 : vector<4x1xf32> to vector<4x256xf32>
    %855 = vector.broadcast %853 : vector<1x256xf32> to vector<4x256xf32>
    %856 = arith.mulf %854, %855 : vector<4x256xf32>
    %857 = arith.addf %851, %856 : vector<4x256xf32>
    %c0_319 = arith.constant 0 : index
    %c14_320 = arith.constant 14 : index
    %858 = vector.load %arg9[%c0_319, %c14_320] : memref<4x16xf32, #tpu.memory_space<vmem>>, vector<4x1xf32>
    %859 = vector.extract_strided_slice %845 {offsets = [2, 0], sizes = [1, 256], strides = [1, 1]} : vector<4x256xf32> to vector<1x256xf32>
    %860 = vector.broadcast %858 : vector<4x1xf32> to vector<4x256xf32>
    %861 = vector.broadcast %859 : vector<1x256xf32> to vector<4x256xf32>
    %862 = arith.mulf %860, %861 : vector<4x256xf32>
    %863 = arith.addf %857, %862 : vector<4x256xf32>
    %c0_321 = arith.constant 0 : index
    %c15_322 = arith.constant 15 : index
    %864 = vector.load %arg9[%c0_321, %c15_322] : memref<4x16xf32, #tpu.memory_space<vmem>>, vector<4x1xf32>
    %865 = vector.extract_strided_slice %845 {offsets = [3, 0], sizes = [1, 256], strides = [1, 1]} : vector<4x256xf32> to vector<1x256xf32>
    %866 = vector.broadcast %864 : vector<4x1xf32> to vector<4x256xf32>
    %867 = vector.broadcast %865 : vector<1x256xf32> to vector<4x256xf32>
    %868 = arith.mulf %866, %867 : vector<4x256xf32>
    %869 = arith.addf %863, %868 : vector<4x256xf32>
    %c0_323 = arith.constant 0 : index
    %c0_324 = arith.constant 0 : index
    %c0_325 = arith.constant 0 : index
    %870 = vector.load %arg11[%c0_323, %c0_324, %c0_325] : memref<1x4x256xf32, #tpu.memory_space<vmem>>, vector<1x4x256xf32>
    %871 = vector.shape_cast %870 : vector<1x4x256xf32> to vector<4x256xf32>
    %872 = vector.shape_cast %869 : vector<4x256xf32> to vector<1x4x256xf32>
    tpu.vector_store %arg11[%c0_323, %c0_324, %c0_325], %872 {strides = array<i32>} : memref<1x4x256xf32, #tpu.memory_space<vmem>>, vector<1x4x256xf32>,
    return
  }
  func.func @transform_0(%arg0: i32) -> (i32, i32, i32) {
    %c0_i32 = arith.constant 0 : i32
    %c0_i32_0 = arith.constant 0 : i32
    %c0_i32_1 = arith.constant 0 : i32
    return %arg0, %c0_i32, %c0_i32_0 : i32, i32, i32
  }
  func.func @transform_1(%arg0: i32) -> (i32, i32) {
    %c0_i32 = arith.constant 0 : i32
    %c0_i32_0 = arith.constant 0 : i32
    %c0_i32_1 = arith.constant 0 : i32
    return %c0_i32, %c0_i32_0 : i32, i32
  }
  func.func @transform_2(%arg0: i32) -> (i32, i32) {
    %c0_i32 = arith.constant 0 : i32
    %c0_i32_0 = arith.constant 0 : i32
    %c0_i32_1 = arith.constant 0 : i32
    return %c0_i32, %c0_i32_0 : i32, i32
  }
  func.func @transform_3(%arg0: i32) -> (i32, i32) {
    %c0_i32 = arith.constant 0 : i32
    %c0_i32_0 = arith.constant 0 : i32
    %c0_i32_1 = arith.constant 0 : i32
    return %c0_i32, %c0_i32_0 : i32, i32
  }
  func.func @transform_4(%arg0: i32) -> (i32, i32) {
    %c0_i32 = arith.constant 0 : i32
    %c0_i32_0 = arith.constant 0 : i32
    %c0_i32_1 = arith.constant 0 : i32
    return %c0_i32, %c0_i32_0 : i32, i32
  }
  func.func @transform_5(%arg0: i32) -> (i32, i32) {
    %c0_i32 = arith.constant 0 : i32
    %c0_i32_0 = arith.constant 0 : i32
    %c0_i32_1 = arith.constant 0 : i32
    return %c0_i32, %c0_i32_0 : i32, i32
  }
  func.func @transform_6(%arg0: i32) -> (i32, i32) {
    %c0_i32 = arith.constant 0 : i32
    %c0_i32_0 = arith.constant 0 : i32
    %c0_i32_1 = arith.constant 0 : i32
    return %c0_i32, %c0_i32_0 : i32, i32
  }
  func.func @transform_7(%arg0: i32) -> (i32, i32) {
    %c0_i32 = arith.constant 0 : i32
    %c0_i32_0 = arith.constant 0 : i32
    %c0_i32_1 = arith.constant 0 : i32
    return %c0_i32, %c0_i32_0 : i32, i32
  }
  func.func @transform_8(%arg0: i32) -> (i32, i32) {
    %c0_i32 = arith.constant 0 : i32
    %c0_i32_0 = arith.constant 0 : i32
    %c0_i32_1 = arith.constant 0 : i32
    return %c0_i32, %c0_i32_0 : i32, i32
  }
  func.func @transform_9(%arg0: i32) -> (i32, i32) {
    %c0_i32 = arith.constant 0 : i32
    %c0_i32_0 = arith.constant 0 : i32
    %c0_i32_1 = arith.constant 0 : i32
    return %c0_i32, %c0_i32_0 : i32, i32
  }
  func.func @transform_10(%arg0: i32) -> (i32, i32, i32) {
    %c0_i32 = arith.constant 0 : i32
    %c0_i32_0 = arith.constant 0 : i32
    %c0_i32_1 = arith.constant 0 : i32
    return %arg0, %c0_i32, %c0_i32_0 : i32, i32, i32
  }
}

</mosaic_0001>

<bundles_post_ra>
// kernel: tpu_custom_call.1
= control target key start
LH: loop header
LB: loop body
LE: loop exit
PB: predicated region body
PF: predicated region fallthrough
CT: control target
= control target key end

     0   :  { %s10096_s0 = inlined_call_operand.vmem [shape: f32[2,4,256], index: 0, kind: input, shape index: {}]   ;;  %s10097_s1 = inlined_call_operand.hbm [shape: f32[9,256], index: 1, kind: input, shape index: {}]   ;;  %s10098_s2 = inlined_call_operand.vmem [shape: f32[4,36], index: 2, kind: input, shape index: {}]   ;;  %s10099_s3 = inlined_call_operand.vmem [shape: f32[4,1], index: 3, kind: input, shape index: {}]   ;;  %s10100_s4 = inlined_call_operand.vmem [shape: f32[4,36], index: 4, kind: input, shape index: {}]   ;;  %s10101_s5 = inlined_call_operand.vmem [shape: f32[4,1], index: 5, kind: input, shape index: {}]   ;;  %s10102_s6 = inlined_call_operand.vmem [shape: f32[4,36], index: 6, kind: input, shape index: {}]   ;;  %s10103_s7 = inlined_call_operand.vmem [shape: f32[4,1], index: 7, kind: input, shape index: {}]   ;;  %s10104_s8 = inlined_call_operand.vmem [shape: f32[4,16], index: 8, kind: input, shape index: {}]   ;;  %s10105_s9 = inlined_call_operand.vmem [shape: f32[4,1], index: 9, kind: input, shape index: {}]   ;;  %s10106_s10 = inlined_call_operand.hbm [shape: f32[2,4,256], index: 10, kind: output, shape index: {}]  }
   0x1   :  { %10326 = sst [smem:[#allocation104_spill]] %s10096_s0 }
   0x2   :  { %10327 = sst [smem:[#allocation105_spill]] %s10097_s1 }
   0x3   :  { %15 = vsyncpa [#allocation4], 0 }
   0x4   :  { %16 = vsyncpa [#allocation5], 0 }
   0x5   :  { %18 = vsyncpa [#allocation5 + $0x1], 0  ;;  %s7008_s13 = smov 0   ;;  %s7010_s14 = smov 0  }
   0x6   :  { %s7012_s15 = smov 0   ;;  %s7014_s16 = smov 0  }
   0x7 LB: > { %s7029_s17 = sadd.s32 4294967295, %s6897_s16   ;;  %s6564_s18 = sadd.s32 4294967294, %s6897_s16   ;;  %s6897_s16 = sphi %s7014_s16, %s10746_s16   ;;  %s6893_s15 = sphi %s7012_s15, %s10745_s15   ;;  %s6889_s14 = sphi %s7010_s14, %s10744_s14   ;;  %s6885_s13 = sphi %s7008_s13, %s10743_s13  }
   0x8   : > { %s7033_s19 = sadd.s32 1, %s6897_s16   ;;  %s246_s20 = sadd.s32 1, %s6893_s15 }
   0x9   : > { %s243_s21 = ssub.s32 %s6897_s16, %s7033_s19  ;;  %p256_p0 = scmp.ne.s32.totalorder %s6893_s15, %s6889_s14 }
   0xa   : > { %p244_p1 = scmp.eq.s32.totalorder %s243_s21, 0  ;;  %p257_p2 = scmp.eq.s32.totalorder %s7029_s17, 1 }
   0xb   : > { %p262_p3 = scmp.ne.s32.totalorder %s6889_s14, %s6885_s13  ;;  %p263_p4 = scmp.eq.s32.totalorder %s6564_s18, 1 }
   0xc   : > { %s7044_s22 = scalar_select %p244_p1, %s6893_s15, %s246_s20  }
   0xd   : > { %p7046_p5 = por %p257_p2, %p256_p0  ;;  %p7050_p6 = por %p263_p4, %p262_p3 }
   0xe   : > { %p6565_p7 = scmp.ge.s32.totalorder %s6897_s16, 1  ;;  %p270_p8 = scmp.lt.s32.totalorder %s6897_s16, 3 }
   0xf   : > { %s10329_s24 = scalar_select %p7050_p6, 1, 0 }
  0x10   : > { %p6594_p9 = scmp.eq.s32.totalorder %s7029_s17, 0  ;;  %p7057_p10 = pnand %p6565_p7, %p270_p8 }
  0x11   : > { %s6899_s26 = smov [#allocation3]  }
  0x12   : > { %s282_s27 = sshll.u32 %s6899_s26, 4  ;;  %p6586_p11 = pneg %p7057_p10  ;;  %s283_s27 = int_to_ptr.vmem [resolvable:$true] %s282_s27 }
  0x13   : > { %s6818_s28 = scalar_lea.vmem %s283_s27, 512  ;;  %p6826_p3 = scmp.lt.s32.totalorder %s283_s27, %s283_s27 }
  0x14   : > { %p6587_p12 = pnand %p6594_p9, %p6586_p11  ;;  %p6819_p0 = scmp.ne.s32.totalorder %s283_s27, %s6818_s28 }
  0x15   : > { %p6827_p4 = scmp.lt.s32.totalorder %s6818_s28, %s6818_s28 }
  0x16   : > { %p6809_p13 = pneg %p6587_p12 }
  0x17   : > { %p6828_p6 = por %p6827_p4, %p6826_p3 }
  0x18   : > { %p6821_p1 = pnand %p6819_p0, %p6809_p13 }
  0x1a   : > { %p6822_p2 = pneg %p6821_p1 }
  0x1c   : > { %p6829_p7 = pnand %p6828_p6, %p6822_p2 }
  0x1e   : > { %6832 = shalt.err (!%p6829_p7)
}
  0x1f   : > { %s6900_s29 = smov 256   ;;  %s6901_s30 = smov 16  }
  0x20   : > { %s10331_s1 = sld [smem:[#allocation105_spill]] }
  0x22   : > { %330 = sbr.rel (%p7057_p10) target bundleno = 6074 (0x17ba), region = 60 }
  0x26   : > { %6589 = dma.hbm_to_vmem [thread:$0]  (!%p6587_p12), %s10331_s1, 512, %s283_s27, [#allocation4], %s6900_s29, %s6900_s29, %s6901_s30  }
  0x27   : > { %6876 = dma.done.wait (%p6594_p9), [#allocation4], 512  }
  0x28   : > { %6878 = vsyncadd (%p6594_p9), [#allocation4], 4294966784  ;;  %v10133_v0 = vmov 1   ;;  %v10141_v1 = vmov 0   ;;  %v389_v2 = vlaneseq  ;;  %p368_p6 = scmp.lt.s32.totalorder %s7029_s17, 1  ;;  %s10332_s0 = sld [smem:[#allocation104_spill]] }
  0x29   : > { %6683 = vset.pattern.permute.xlu1 %v10133_v0  ;;  %6682 = vset.pattern.permute.xlu0 %v10141_v1  ;;  %v382_v4 = vld [vmem:[%s10104_s8] sm:$0xf]  ;;  %v498_v9 = vld [vmem:[#allocation3] ss:$8 sm:$0x3]  ;;  %v10147_v10 = vmov 2  }
  0x2a   : > { %s369_s18 = scalar_select %p368_p6, %s7029_s17, 1  ;;  %v7078_v3 = vshrl.u32 %v389_v2, 7  ;;  %v376_v5 = vld [vmem:[%s10105_s9] sm:$0xf]  ;;  %412 = vperm.xlu1 %6683, %v382_v4   ;;  %v6905_v12 = vmov 0.0   ;;  %v10137_v17 = vmov 27  }
  0x2b   : > { %379 = vperm.xlu0 %6682, %v376_v5   ;;  %v518_v11 = vld [vmem:[%s10098_s2] sm:$0xf]  ;;  %373 = vst [vmem:[#allocation2] sm:$0xf] %v6905_v12  ;;  %374 = vst [vmem:[#allocation2 + $0xc] sm:$0xf] %v6905_v12 }
  0x2c   : > { %s6578_s27 = sshll.u32 %s369_s18, 3  ;;  %v7090_v6 = vsub.s32 0, %v7078_v3  ;;  %v7093_v7 = vsub.s32 1, %v7078_v3  ;;  %v490_v15 = vld [vmem:[%s10099_s3] sm:$0xf]  ;;  %s10249_s21 = smov 111  }
  0x2d   : > { %v10107_v18 = vmov 9   ;;  %v925_v19 = vld [vmem:[%s10098_s2] sm:$0xf]  ;;  %v673_v20 = vld [vmem:[#allocation3 + $0x1] ss:$8 sm:$0x3] }
  0x2e   : > { %s372_s30 = scalar_lea.vmem %s10332_s0, %s6578_s27  ;;  %10333 = vst [vmem:[#allocation9_spill] sm:$0xff] %v7090_v6  ;;  %10334 = vst [vmem:[#allocation10_spill] sm:$0xff] %v7093_v7  ;;  %6684 = vset.pattern.permute.xlu1 %v10147_v10  ;;  %v503_v13 = vrot.slane %v498_v9, %v7090_v6  ;;  %v507_v14 = vrot.slane %v498_v9, %v7093_v7  ;;  %v678_v21 = vrot.slane %v673_v20, %v7090_v6  ;;  %v10139_v23 = vmov 18   ;;  %v7122_v26 = vld [vmem:[%s10098_s2] sm:$0xf]  ;;  %s10319_s29 = smov 112  }
  0x2f   : > { %v7095_v8 = vld [vmem:[%s372_s30] sm:$0xff]  ;;  %385 = vperm.xlu0 %6682, %v382_v4   ;;  %438 = vperm.xlu1 %6684, %v382_v4   ;;  %v682_v22 = vrot.slane %v673_v20, %v7093_v7  ;;  %v10135_v24 = vmov 3   ;;  %v10129_v28 = vmov 10   ;;  %v905_v29 = vld [vmem:[#allocation3 + $0x2] ss:$8 sm:$0x3] }
  0x30   : > { %489 = vst [vmem:[#allocation2 + $0x4] sm:$0xff] %v7095_v8  ;;  %v508_v16 = vcombine.low %v503_v13, %v507_v14  ;;  %v693_v27 = vld [vmem:[%s10098_s2] sm:$0xf]  ;;  %v10127_v30 = vmov 19   ;;  %v910_v31 = vrot.slane %v905_v29, %v7090_v6  ;;  %v914_v32 = vrot.slane %v905_v29, %v7093_v7  ;;  %s10298_s12 = smov 113   ;;  %s10296_s18 = smov 127  }
  0x31   : > { %v683_v25 = vcombine.low %v678_v21, %v682_v22  ;;  %v10121_v33 = vmov 28   ;;  %v10119_v35 = vmov 11   ;;  %v1137_v36 = vld [vmem:[#allocation3 + $0x3] ss:$8 sm:$0x3]  ;;  %v10117_v37 = vmov 20  }
  0x32   : > { %v915_v34 = vcombine.low %v910_v31, %v914_v32  ;;  %v1142_v38 = vrot.slane %v1137_v36, %v7090_v6  ;;  %v1146_v39 = vrot.slane %v1137_v36, %v7093_v7  ;;  %v10115_v40 = vmov 29   ;;  %s10293_s20 = smov 126   ;;  %s10295_s25 = smov 1  }
  0x33   : > { %521 = vperm.xlu0 %6682, %v518_v11   ;;  %6685 = vset.pattern.permute.xlu1 %v10141_v1  ;;  %v10113_v42 = vmov 12   ;;  %v10111_v43 = vmov 21   ;;  %v10109_v44 = vmov 30   ;;  %v10145_v45 = vmov 4   ;;  %s10245_s28 = smov 110   ;;  %s10199_s30 = smov 15  }
  0x34   : > { %493 = vperm.xlu1 %6685, %v490_v15   ;;  %v1147_v41 = vcombine.low %v1142_v38, %v1146_v39  ;;  %v10131_v58 = vmov 13   ;;  %vm687_vm0 = vcmask 916480   ;;  %v392_v15 = vrot.slane %v7095_v8, %v7090_v6  ;;  %s10219_s27 = smov 96   ;;  %s10217_s11 = smov 16  }
  0x35   : > { %v7202_v22 = vsub.s32 5, %v7078_v3  ;;  %vm919_vm1 = vcmask 924672   ;;  %vm740_vm2 = vcmask 1039360   ;;  %vm1457_vm3 = vcmask 7168   ;;  %s10247_s26 = smov 17   ;;  %s10658_s1 = smov 113  }
  0x36   : > { %vm1689_vm4 = vcmask 121856   ;;  %vm1921_vm5 = vcmask 130048   ;;  %vm2153_vm6 = vcmask 138240   ;;  %vm512_vm7 = vcmask 908288   ;;  %s10664_s0 = smov 127  }
  0x37   : > { %6688 = vset.pattern.permute.xlu0 %v10137_v17  ;;  %v7187_v12 = vld [vmem:[#allocation2] sm:$0xff]  ;;  %10338 = vst [vmem:[#allocation14_spill] sm:$0xff] %v7202_v22  ;;  %vm972_vm8 = vcmask 1031168   ;;  %vm1510_vm9 = vcmask 900096   ;;  %vm1742_vm10 = vcmask 785408   ;;  %vm1974_vm11 = vcmask 777216  }
  0x38   : > { %634 = vperm.xlu0 %6688, %v518_v11   ;;  %509 = vrot.lane.b32.xlu1 %v508_v16, %s10249_s21  ;;  %vm2206_vm12 = vcmask 769024   ;;  %vm2522_vm13 = vcmask 1043456  }
  0x39   : > { %6686 = vset.pattern.permute.xlu1 %v10107_v18 }
  0x3c   : > { %6693 = vset.pattern.permute.xlu0 %v10147_v10  ;;  %560 = vperm.xlu1 %6686, %v518_v11  }
  0x3d   : > { %928 = vperm.xlu0 %6693, %v925_v19  }
  0x40   : > { %6687 = vset.pattern.permute.xlu1 %v10139_v23 }
  0x41   : > { %6694 = vset.pattern.permute.xlu0 %v10135_v24  ;;  %597 = vperm.xlu1 %6687, %v518_v11   ;;  %v7185_v11 = vsub.s32 4, %v7078_v3 }
  0x42   : > { %464 = vperm.xlu0 %6694, %v382_v4   ;;  %v671_v4 = vld [vmem:[#allocation2 + $0x8] sm:$0xf] }
  0x43   : > { %10337 = vst [vmem:[#allocation13_spill] sm:$0xff] %v7185_v11  ;;  %v396_v16 = vrot.slane %v7095_v8, %v7185_v11 }
  0x45   : > { %684 = vrot.lane.b32.xlu1 %v683_v25, %s10319_s29  ;;  %v7210_v29 = vrot.slane %v396_v16, %v7090_v6 }
  0x46   : > { %1159 = vperm.xlu0 %6694, %v7122_v26   ;;  %6689 = vset.pattern.permute.xlu1 %v10133_v0 }
  0x47   : > { %10341 = vst [vmem:[#allocation17_spill] sm:$0xff] %v7210_v29 }
  0x49   : > { %696 = vperm.xlu1 %6689, %v693_v27  }
  0x4a   : > { %6702 = vset.pattern.permute.xlu0 %v10131_v58 }
  0x4d   : > { %6690 = vset.pattern.permute.xlu1 %v10129_v28 }
  0x4e   : > { %750 = vperm.xlu1 %6690, %v693_v27  }
  0x52   : > { %6691 = vset.pattern.permute.xlu1 %v10127_v30 }
  0x53   : > { %801 = vperm.xlu1 %6691, %v693_v27  }
  0x57   : > { %6692 = vset.pattern.permute.xlu1 %v10121_v33 }
  0x58   : > { %852 = vperm.xlu1 %6692, %v693_v27   ;;  %v7207_v27 = vrot.slane %v392_v15, %v7090_v6 }
  0x5a   : > { %10340 = vst [vmem:[#allocation16_spill] sm:$0xff] %v7207_v27 }
  0x5c   : > { %916 = vrot.lane.b32.xlu1 %v915_v34, %s10298_s12 }
  0x5d   : > { %6695 = vset.pattern.permute.xlu1 %v10119_v35 }
  0x60   : > { %982 = vperm.xlu1 %6695, %v925_v19  }
  0x64   : > { %6696 = vset.pattern.permute.xlu1 %v10117_v37  ;;  %v1135_v37 = vld [vmem:[#allocation2 + $0x8] sm:$0xf] }
  0x65   : > { %1033 = vperm.xlu1 %6696, %v925_v19  }
  0x69   : > { %6697 = vset.pattern.permute.xlu1 %v10115_v40 }
  0x6a   : > { %1084 = vperm.xlu1 %6697, %v925_v19  }
  0x6e   : > { %1148 = vrot.lane.b32.xlu1 %v1147_v41, %s10296_s18 }
  0x6f   : > { %6698 = vset.pattern.permute.xlu1 %v10113_v42 }
  0x72   : > { %1212 = vperm.xlu1 %6698, %v7122_v26  }
  0x76   : > { %6699 = vset.pattern.permute.xlu1 %v10111_v43 }
  0x77   : > { %1263 = vperm.xlu1 %6699, %v7122_v26  }
  0x7b   : > { %6700 = vset.pattern.permute.xlu1 %v10109_v44 }
  0x7c   : > { %1314 = vperm.xlu1 %6700, %v7122_v26  }
  0x80   : > { %6701 = vset.pattern.permute.xlu1 %v10145_v45 }
  0x81   : > { %1365 = vperm.xlu1 %6701, %v7122_v26  }
  0xa5   : > { %v7150_v46 = vpop.permute.xlu1 %412 }
  0xa6   : > { %10335 = vst [vmem:[#allocation11_spill] sm:$0xff] %v7150_v46  ;;  %v7204_v25 = vpop.permute.xlu0 %379 }
  0xa7   : > { %10339 = vst [vmem:[#allocation15_spill] sm:$0xff] %v7204_v25 }
  0xaa   : > { %v7152_v47 = vpop.permute.xlu1 %438 }
  0xab   : > { %10336 = vst [vmem:[#allocation12_spill] sm:$0xff] %v7152_v47 }
  0xaf   : > { %v7154_v48 = vpop.permute.xlu1 %493 }
  0xb3   : > { %v7156_v49 = vpop.permute.xlu1 %509 }
  0xb7   : > { %v7158_v50 = vpop.permute.xlu1 %560 }
  0xbc   : > { %v7160_v51 = vpop.permute.xlu1 %597 }
  0xc0   : > { %v685_v52 = vpop.permute.xlu1 %684 }
  0xc1   : > { %v686_v2 = vrot.slane %v685_v52, 4 }
  0xc3   : > { %v688_v5 = vsel %vm687_vm0, %v686_v2, %v685_v52  ;;  %v692_v14 = vmul.f32 %v686_v2, %v671_v4  ;;  %v7221_v2 = vpop.permute.xlu0 %385  ;;  %v7224_v4 = vsub.s32 2, %v7078_v3 }
  0xc4   : > { %v7162_v53 = vpop.permute.xlu1 %696  ;;  %v7190_v13 = vmul.f32 %v688_v5, %v7187_v12  ;;  %10342 = vst [vmem:[#allocation18_spill] sm:$0xff] %v7221_v2  ;;  %v7227_v5 = vsub.s32 6, %v7078_v3 }
  0xc5   : > { %v712_v20 = vrot.slane %v692_v14, %v7090_v6  ;;  %v764_v32 = vrot.slane %v692_v14, %v7093_v7 }
  0xc6   : > { %v708_v21 = vrot.slane %v7190_v13, %v7185_v11  ;;  %v760_v34 = vrot.slane %v7190_v13, %v7202_v22  ;;  %10343 = vst [vmem:[#allocation19_spill] sm:$0xff] %v7227_v5  ;;  %v811_v18 = vrot.slane %v7190_v13, %v7227_v5 }
  0xc7   : > { %v727_v39 = vrot.slane %v712_v20, %v7090_v6  ;;  %v779_v20 = vrot.slane %v764_v32, %v7093_v7  ;;  %v7239_v44 = vpop.permute.xlu0 %521  ;;  %v7245_v32 = vsub.s32 7, %v7078_v3 }
  0xc8   : > { %v723_v41 = vrot.slane %v708_v21, %v7090_v6  ;;  %v775_v21 = vrot.slane %v760_v34, %v7093_v7  ;;  %v826_v42 = vrot.slane %v811_v18, %v7224_v4 }
  0xc9   : > { %v7164_v54 = vpop.permute.xlu1 %750  ;;  %v730_v15 = vmul.f32 %v727_v39, %v7162_v53  ;;  %v7242_v39 = vsub.s32 3, %v7078_v3  ;;  %v862_v3 = vrot.slane %v7190_v13, %v7245_v32  ;;  %v474_v24 = vrot.slane %v7095_v8, %v7245_v32 }
  0xca   : > { %v729_v16 = vmul.f32 %v723_v41, %v7162_v53  ;;  %v782_v41 = vmul.f32 %v779_v20, %v7164_v54 }
  0xcb   : > { %v877_v18 = vrot.slane %v862_v3, %v7242_v39  ;;  %v470_v0 = vrot.slane %v7095_v8, %v7242_v39  ;;  %v7497_v17 = vrot.slane %v474_v24, %v7242_v39 }
  0xcd   : > { %10353 = vst [vmem:[#allocation29_spill] sm:$0xff] %v7497_v17 }
  0xce   : > { %v7166_v55 = vpop.permute.xlu1 %801 }
  0xd3   : > { %v7168_v56 = vpop.permute.xlu1 %852 }
  0xd7   : > { %v917_v57 = vpop.permute.xlu1 %916 }
  0xd8   : > { %v918_v52 = vrot.slane %v917_v57, 4 }
  0xdb   : > { %v7171_v59 = vpop.permute.xlu1 %982 }
  0xe0   : > { %v7173_v60 = vpop.permute.xlu1 %1033 }
  0xe5   : > { %v7175_v61 = vpop.permute.xlu1 %1084 }
  0xe9   : > { %v7177_v62 = vpop.permute.xlu1 %1148 }
  0xed   : > { %v7179_v63 = vpop.permute.xlu1 %1212 }
  0xf2   : > { %v7182_v9 = vpop.permute.xlu1 %1263 }
  0xf7   : > { %v7196_v19 = vpop.permute.xlu1 %1314 }
  0xfc   : > { %v1366_v31 = vpop.permute.xlu1 %1365 }
  0xfd   : > { %v1368_v36 = vmul.f32 %v1366_v31, %v7207_v27  ;;  %v1369_v38 = vmul.f32 %v1366_v31, %v7210_v29  ;;  %v903_v31 = vld [vmem:[#allocation2 + $0x8] sm:$0xf]  ;;  %v1441_v29 = vld [vmem:[#allocation2 + $0xc] sm:$0xf] }
  0xff   : > { %1374 = vrot.lane.b32.xlu1 %v1369_v38, %s10249_s21  ;;  %1372 = vrot.lane.b32.xlu0 %v1368_v36, %s10249_s21  ;;  %v920_v38 = vsel %vm919_vm1, %v918_v52, %v917_v57  ;;  %v815_v36 = vrot.slane %v692_v14, %v7224_v4  ;;  %v924_v57 = vmul.f32 %v918_v52, %v903_v31 }
 0x100   : > { %v7248_v34 = vmul.f32 %v920_v38, %v7187_v12  ;;  %v832_v52 = vmul.f32 %v826_v42, %v7166_v55  ;;  %v883_v42 = vmul.f32 %v877_v18, %v7168_v56 }
 0x101   : > { %v830_v43 = vrot.slane %v815_v36, %v7224_v4  ;;  %v944_v20 = vrot.slane %v924_v57, %v7090_v6 }
 0x102   : > { %v940_v40 = vrot.slane %v7248_v34, %v7185_v11 }
 0x103   : > { %738 = vrot.lane.b32.xlu0 %v730_v15, %s10296_s18  ;;  %736 = vrot.lane.b32.xlu1 %v729_v16, %s10296_s18  ;;  %v781_v15 = vmul.f32 %v775_v21, %v7164_v54  ;;  %v866_v16 = vrot.slane %v692_v14, %v7242_v39  ;;  %v833_v38 = vmul.f32 %v830_v43, %v7166_v55  ;;  %v7264_v21 = vpop.permute.xlu0 %634 }
 0x104   : > { %v936_v14 = vrot.slane %v7248_v34, %v7090_v6  ;;  %v996_v43 = vrot.slane %v924_v57, %v7093_v7 }
 0x105   : > { %v881_v31 = vrot.slane %v866_v16, %v7242_v39 }
 0x106   : > { %v1011_v3 = vrot.slane %v996_v43, %v7093_v7  ;;  %v1043_v43 = vrot.slane %v7248_v34, %v7227_v5 }
 0x107   : > { %790 = vrot.lane.b32.xlu0 %v782_v41, %s10296_s18  ;;  %788 = vrot.lane.b32.xlu1 %v781_v15, %s10296_s18  ;;  %v884_v36 = vmul.f32 %v881_v31, %v7168_v56  ;;  %v959_v41 = vrot.slane %v944_v20, %v7090_v6  ;;  %v951_v15 = vrot.slane %v936_v14, %v7090_v6  ;;  %v929_v16 = vpop.permute.xlu0 %928  ;;  %v1150_v31 = vrot.slane %v7177_v62, 4 }
 0x108   : > { %v955_v14 = vrot.slane %v940_v40, %v7090_v6  ;;  %v1014_v35 = vmul.f32 %v1011_v3, %v7171_v59 }
 0x109   : > { %v962_v20 = vmul.f32 %v959_v41, %v929_v16  ;;  %v960_v18 = vmul.f32 %v951_v15, %v929_v16  ;;  %v1151_v40 = vsel %vm740_vm2, %v1150_v31, %v7177_v62  ;;  %v1098_v15 = vrot.slane %v924_v57, %v7242_v39 }
 0x10a   : > { %v961_v33 = vmul.f32 %v955_v14, %v929_v16 }
 0x10b   : > { %841 = vrot.lane.b32.xlu0 %v833_v38, %s10296_s18  ;;  %839 = vrot.lane.b32.xlu1 %v832_v52, %s10296_s18  ;;  %v1047_v38 = vrot.slane %v924_v57, %v7224_v4  ;;  %v992_v52 = vrot.slane %v7248_v34, %v7202_v22 }
 0x10d   : > { %v1007_v41 = vrot.slane %v992_v52, %v7093_v7  ;;  %v7304_v52 = vpop.permute.xlu0 %464 }
 0x10e   : > { %10344 = vst [vmem:[#allocation20_spill] sm:$0xff] %v7304_v52 }
 0x10f   : > { %892 = vrot.lane.b32.xlu0 %v884_v36, %s10296_s18  ;;  %890 = vrot.lane.b32.xlu1 %v883_v42, %s10296_s18  ;;  %v1062_v36 = vrot.slane %v1047_v38, %v7224_v4  ;;  %v1155_v42 = vmul.f32 %v1150_v31, %v1135_v37  ;;  %v1058_v38 = vrot.slane %v1043_v43, %v7224_v4 }
 0x110   : > { %v1013_v16 = vmul.f32 %v1007_v41, %v7171_v59 }
 0x111   : > { %v1065_v37 = vmul.f32 %v1062_v36, %v7173_v60  ;;  %v1175_v3 = vrot.slane %v1155_v42, %v7090_v6  ;;  %v1064_v62 = vmul.f32 %v1058_v38, %v7173_v60  ;;  %v1226_v31 = vrot.slane %v1155_v42, %v7093_v7  ;;  %v1160_v14 = vpop.permute.xlu0 %1159 }
 0x112   : > { %v1277_v41 = vrot.slane %v1155_v42, %v7224_v4 }
 0x113   : > { %970 = vrot.lane.b32.xlu0 %v962_v20, %s10293_s20  ;;  %966 = vrot.lane.b32.xlu1 %v960_v18, %s10293_s20  ;;  %v7299_v20 = vmul.f32 %v1151_v40, %v7187_v12  ;;  %v1190_v57 = vrot.slane %v1175_v3, %v7090_v6 }
 0x115   : > { %v1167_v18 = vrot.slane %v7299_v20, %v7090_v6  ;;  %v1193_v40 = vmul.f32 %v1190_v57, %v1160_v14  ;;  %v704_v57 = vrot.slane %v7190_v13, %v7090_v6 }
 0x117   : > { %1022 = vrot.lane.b32.xlu0 %v1014_v35, %s10293_s20  ;;  %968 = vrot.lane.b32.xlu1 %v961_v33, %s10293_s20  ;;  %v1094_v35 = vrot.slane %v7248_v34, %v7245_v32  ;;  %v1113_v33 = vrot.slane %v1098_v15, %v7242_v39  ;;  %v1241_v15 = vrot.slane %v1226_v31, %v7093_v7 }
 0x118   : > { %v1182_v38 = vrot.slane %v1167_v18, %v7090_v6 }
 0x119   : > { %v1116_v12 = vmul.f32 %v1113_v33, %v7175_v61  ;;  %v1109_v36 = vrot.slane %v1094_v35, %v7242_v39  ;;  %v1244_v3 = vmul.f32 %v1241_v15, %v7179_v63  ;;  %v1292_v33 = vrot.slane %v1277_v41, %v7224_v4 }
 0x11a   : > { %v1191_v35 = vmul.f32 %v1182_v38, %v1160_v14  ;;  %v719_v38 = vrot.slane %v704_v57, %v7090_v6 }
 0x11b   : > { %1073 = vrot.lane.b32.xlu0 %v1065_v37, %s10293_s20  ;;  %1020 = vrot.lane.b32.xlu1 %v1013_v16, %s10293_s20  ;;  %v1115_v43 = vmul.f32 %v1109_v36, %v7175_v61  ;;  %v1171_v37 = vrot.slane %v7299_v20, %v7185_v11  ;;  %v1222_v16 = vrot.slane %v7299_v20, %v7202_v22 }
 0x11c   : > { %v1295_v31 = vmul.f32 %v1292_v33, %v7182_v9 }
 0x11d   : > { %v1237_v36 = vrot.slane %v1222_v16, %v7093_v7 }
 0x11f   : > { %1124 = vrot.lane.b32.xlu0 %v1116_v12, %s10293_s20  ;;  %1071 = vrot.lane.b32.xlu1 %v1064_v62, %s10293_s20  ;;  %v1186_v62 = vrot.slane %v1171_v37, %v7090_v6  ;;  %v1328_v12 = vrot.slane %v1155_v42, %v7242_v39  ;;  %v756_v42 = vrot.slane %v7190_v13, %v7093_v7 }
 0x120   : > { %v1243_v15 = vmul.f32 %v1237_v36, %v7179_v63  ;;  %v1324_v37 = vrot.slane %v7299_v20, %v7245_v32  ;;  %v988_v36 = vrot.slane %v7248_v34, %v7093_v7 }
 0x121   : > { %v1192_v18 = vmul.f32 %v1186_v62, %v1160_v14  ;;  %v1343_v41 = vrot.slane %v1328_v12, %v7242_v39  ;;  %v807_v62 = vrot.slane %v7190_v13, %v7224_v4 }
 0x122   : > { %v1339_v33 = vrot.slane %v1324_v37, %v7242_v39  ;;  %v1269_v37 = vrot.slane %v7299_v20, %v7224_v4 }
 0x123   : > { %1201 = vrot.lane.b32.xlu0 %v1193_v40, %s10319_s29  ;;  %1122 = vrot.lane.b32.xlu1 %v1115_v43, %s10293_s20  ;;  %v1273_v43 = vrot.slane %v7299_v20, %v7227_v5  ;;  %v1346_v40 = vmul.f32 %v1343_v41, %v7196_v19  ;;  %v1003_v41 = vrot.slane %v988_v36, %v7093_v7 }
 0x124   : > { %v1345_v12 = vmul.f32 %v1339_v33, %v7196_v19  ;;  %v10123_v33 = vmov 31  }
 0x125   : > { %v1288_v14 = vrot.slane %v1273_v43, %v7224_v4 }
 0x127   : > { %1252 = vrot.lane.b32.xlu0 %v1244_v3, %s10319_s29  ;;  %1197 = vrot.lane.b32.xlu1 %v1191_v35, %s10319_s29  ;;  %v1294_v16 = vmul.f32 %v1288_v14, %v7182_v9  ;;  %v728_v3 = vmul.f32 %v719_v38, %v7162_v53  ;;  %v771_v35 = vrot.slane %v756_v42, %v7093_v7 }
 0x128   : > { %v822_v53 = vrot.slane %v807_v62, %v7224_v4  ;;  %v1039_v42 = vrot.slane %v7248_v34, %v7224_v4 }
 0x129   : > { %v780_v57 = vmul.f32 %v771_v35, %v7164_v54 }
 0x12b   : > { %1303 = vrot.lane.b32.xlu0 %v1295_v31, %s10319_s29  ;;  %1199 = vrot.lane.b32.xlu1 %v1192_v18, %s10319_s29  ;;  %v858_v31 = vrot.slane %v7190_v13, %v7242_v39  ;;  %v831_v18 = vmul.f32 %v822_v53, %v7166_v55  ;;  %v1012_v13 = vmul.f32 %v1003_v41, %v7171_v59 }
 0x12c   : > { %v1054_v55 = vrot.slane %v1039_v42, %v7224_v4 }
 0x12d   : > { %v873_v43 = vrot.slane %v858_v31, %v7242_v39 }
 0x12f   : > { %1354 = vrot.lane.b32.xlu0 %v1346_v40, %s10319_s29  ;;  %1250 = vrot.lane.b32.xlu1 %v1243_v15, %s10319_s29  ;;  %v882_v54 = vmul.f32 %v873_v43, %v7168_v56  ;;  %v1090_v40 = vrot.slane %v7248_v34, %v7242_v39  ;;  %v1063_v15 = vmul.f32 %v1054_v55, %v7173_v60 }
 0x130   : > { %v1218_v56 = vrot.slane %v7299_v20, %v7093_v7  ;;  %v1284_v60 = vrot.slane %v1269_v37, %v7224_v4 }
 0x131   : > { %v1105_v14 = vrot.slane %v1090_v40, %v7242_v39 }
 0x132   : > { %v1233_v59 = vrot.slane %v1218_v56, %v7093_v7 }
 0x133   : > { %1301 = vrot.lane.b32.xlu1 %v1294_v16, %s10319_s29  ;;  %734 = vrot.lane.b32.xlu0 %v728_v3, %s10296_s18  ;;  %v1114_v38 = vmul.f32 %v1105_v14, %v7175_v61  ;;  %v1320_v16 = vrot.slane %v7299_v20, %v7242_v39  ;;  %v1293_v3 = vmul.f32 %v1284_v60, %v7182_v9  ;;  %v1443_v9 = vld [vmem:[#allocation3 + $0x5] ss:$8 sm:$0x3] }
 0x134   : > { %v1242_v34 = vmul.f32 %v1233_v59, %v7179_v63  ;;  %v10125_v63 = vmov 22   ;;  %v1448_v20 = vrot.slane %v1443_v9, %v7090_v6  ;;  %v1452_v62 = vrot.slane %v1443_v9, %v7093_v7 }
 0x135   : > { %v1335_v61 = vrot.slane %v1320_v16, %v7242_v39 }
 0x137   : > { %1352 = vrot.lane.b32.xlu1 %v1345_v12, %s10319_s29  ;;  %786 = vrot.lane.b32.xlu0 %v780_v57, %s10296_s18  ;;  %v1344_v35 = vmul.f32 %v1335_v61, %v7196_v19  ;;  %v10143_v19 = vmov 5   ;;  %v1453_v12 = vcombine.low %v1448_v20, %v1452_v62  ;;  %v444_v62 = vrot.slane %v7095_v8, %v7224_v4 }
 0x138   : > { %6705 = vset.pattern.permute.xlu1 %v10143_v19 }
 0x13b   : > { %837 = vrot.lane.b32.xlu0 %v831_v18, %s10296_s18 }
 0x13f   : > { %888 = vrot.lane.b32.xlu0 %v882_v54, %s10296_s18 }
 0x143   : > { %1018 = vrot.lane.b32.xlu0 %v1012_v13, %s10293_s20 }
 0x147   : > { %1069 = vrot.lane.b32.xlu0 %v1063_v15, %s10293_s20 }
 0x14b   : > { %1120 = vrot.lane.b32.xlu0 %v1114_v38, %s10293_s20 }
 0x14f   : > { %1248 = vrot.lane.b32.xlu0 %v1242_v34, %s10319_s29 }
 0x153   : > { %1299 = vrot.lane.b32.xlu0 %v1293_v3, %s10319_s29  ;;  %v418_v3 = vrot.slane %v7095_v8, %v7093_v7 }
 0x155   : > { %v7465_v9 = vrot.slane %v418_v3, %v7093_v7  ;;  %v448_v3 = vrot.slane %v7095_v8, %v7227_v5 }
 0x157   : > { %1350 = vrot.lane.b32.xlu0 %v1344_v35, %s10319_s29  ;;  %v422_v35 = vrot.slane %v7095_v8, %v7202_v22  ;;  %10348 = vst [vmem:[#allocation24_spill] sm:$0xff] %v7465_v9 }
 0x15b   : > { %1384 = vperm.xlu0 %6702, %v7122_v26  }
 0x15f   : > { %6703 = vset.pattern.permute.xlu0 %v10125_v63  ;;  %v7475_v63 = vrot.slane %v444_v62, %v7224_v4 }
 0x160   : > { %1403 = vperm.xlu0 %6703, %v7122_v26  }
 0x161   : > { %10350 = vst [vmem:[#allocation26_spill] sm:$0xff] %v7475_v63 }
 0x164   : > { %6704 = vset.pattern.permute.xlu0 %v10123_v33  ;;  %v7471_v33 = vrot.slane %v422_v35, %v7093_v7  ;;  %v7485_v35 = vrot.slane %v448_v3, %v7224_v4  ;;  %v10149_v3 = vmov 14  }
 0x165   : > { %1422 = vperm.xlu0 %6704, %v7122_v26  }
 0x166   : > { %10349 = vst [vmem:[#allocation25_spill] sm:$0xff] %v7471_v33  ;;  %10351 = vst [vmem:[#allocation27_spill] sm:$0xff] %v7485_v35 }
 0x169   : > { %1454 = vrot.lane.b32.xlu0 %v1453_v12, %s10295_s25 }
 0x171   : > { %v7413_v57 = vpop.permute.xlu0 %1372 }
 0x172   : > { %10345 = vst [vmem:[#allocation21_spill] sm:$0xff] %v7413_v57 }
 0x175   : > { %v7416_v53 = vpop.permute.xlu0 %738 }
 0x179   : > { %v7418_v31 = vpop.permute.xlu0 %790 }
 0x17d   : > { %v7420_v18 = vpop.permute.xlu0 %841 }
 0x181   : > { %v7422_v26 = vpop.permute.xlu0 %892 }
 0x185   : > { %v7424_v36 = vpop.permute.xlu0 %970 }
 0x189   : > { %v7426_v43 = vpop.permute.xlu0 %1022 }
 0x18d   : > { %v7428_v54 = vpop.permute.xlu0 %1073 }
 0x191   : > { %v7430_v41 = vpop.permute.xlu0 %1124 }
 0x195   : > { %v7432_v42 = vpop.permute.xlu0 %1201 }
 0x199   : > { %v7434_v13 = vpop.permute.xlu0 %1252 }
 0x19d   : > { %v7436_v55 = vpop.permute.xlu0 %1303 }
 0x1a1   : > { %v7438_v40 = vpop.permute.xlu0 %1354 }
 0x1a2   : > { %10346 = vst [vmem:[#allocation22_spill] sm:$0xff] %v7438_v40 }
 0x1a5   : > { %v7440_v15 = vpop.permute.xlu0 %734 }
 0x1a9   : > { %v7442_v56 = vpop.permute.xlu0 %786 }
 0x1ad   : > { %v7444_v14 = vpop.permute.xlu0 %837 }
 0x1b1   : > { %v7446_v38 = vpop.permute.xlu0 %888 }
 0x1b5   : > { %v7448_v59 = vpop.permute.xlu0 %1018 }
 0x1b9   : > { %v7450_v37 = vpop.permute.xlu0 %1069 }
 0x1bd   : > { %v7452_v34 = vpop.permute.xlu0 %1120 }
 0x1c1   : > { %v7454_v60 = vpop.permute.xlu0 %1248 }
 0x1c5   : > { %v7456_v16 = vpop.permute.xlu0 %1299 }
 0x1c9   : > { %v7460_v61 = vpop.permute.xlu0 %1350 }
 0x1ca   : > { %10347 = vst [vmem:[#allocation23_spill] sm:$0xff] %v7460_v61 }
 0x1d6   : > { %v1385_v20 = vpop.permute.xlu0 %1384 }
 0x1d7   : > { %v1387_v12 = vmul.f32 %v1385_v20, %v7465_v9  ;;  %v1388_v30 = vmul.f32 %v1385_v20, %v7471_v33 }
 0x1d9   : > { %1391 = vrot.lane.b32.xlu1 %v1387_v12, %s10249_s21  ;;  %v7489_v12 = vrot.slane %v470_v0, %v7242_v39  ;;  %v7505_v0 = vld [vmem:[%s10098_s2] sm:$0xf] }
 0x1db   : > { %v1404_v28 = vpop.permute.xlu0 %1403  ;;  %10352 = vst [vmem:[#allocation28_spill] sm:$0xff] %v7489_v12 }
 0x1dc   : > { %v1406_v58 = vmul.f32 %v1404_v28, %v7475_v63  ;;  %v1407_v20 = vmul.f32 %v1404_v28, %v7485_v35  ;;  %v7508_v28 = vpop.permute.xlu1 %1374 }
 0x1dd   : > { %1393 = vrot.lane.b32.xlu1 %v1388_v30, %s10249_s21  ;;  %10354 = vst [vmem:[#allocation30_spill] sm:$0xff] %v7508_v28 }
 0x1e0   : > { %v1423_v62 = vpop.permute.xlu0 %1422  ;;  %v7511_v24 = vpop.permute.xlu1 %736 }
 0x1e1   : > { %1410 = vrot.lane.b32.xlu1 %v1406_v58, %s10249_s21  ;;  %v1425_v30 = vmul.f32 %v1423_v62, %v7489_v12  ;;  %v1426_v58 = vmul.f32 %v1423_v62, %v7497_v17 }
 0x1e4   : > { %v1455_v9 = vpop.permute.xlu0 %1454 }
 0x1e5   : > { %1412 = vrot.lane.b32.xlu1 %v1407_v20, %s10249_s21  ;;  %v7513_v20 = vpop.permute.xlu1 %788  ;;  %v1456_v46 = vrot.slane %v1455_v9, 4 }
 0x1e7   : > { %v1458_v25 = vsel %vm1457_vm3, %v1456_v46, %v1455_v9  ;;  %v7551_v57 = vmul.f32 %v1456_v46, %v1441_v29 }
 0x1e8   : > { %v1461_v2 = vmul.f32 %v1458_v25, %v7095_v8  ;;  %v10172_v25 = vmov 23  }
 0x1e9   : > { %1429 = vrot.lane.b32.xlu1 %v1425_v30, %s10249_s21  ;;  %v7515_v30 = vpop.permute.xlu1 %839 }
 0x1ea   : > { %v1530_v29 = vrot.slane %v1461_v2, %v7202_v22 }
 0x1ed   : > { %1431 = vrot.lane.b32.xlu1 %v1426_v58, %s10249_s21  ;;  %v7517_v62 = vpop.permute.xlu1 %890 }
 0x1f1   : > { %1466 = vperm.xlu1 %6705, %v7505_v0   ;;  %v7519_v58 = vpop.permute.xlu1 %966 }
 0x1f5   : > { %6706 = vset.pattern.permute.xlu1 %v10149_v3  ;;  %v7521_v23 = vpop.permute.xlu1 %968 }
 0x1f9   : > { %v7523_v1 = vpop.permute.xlu1 %1020 }
 0x1fd   : > { %v7525_v19 = vpop.permute.xlu1 %1071 }
 0x201   : > { %v7527_v45 = vpop.permute.xlu1 %1122 }
 0x205   : > { %v7529_v10 = vpop.permute.xlu1 %1197 }
 0x209   : > { %v7531_v3 = vpop.permute.xlu1 %1199 }
 0x20d   : > { %v7533_v12 = vpop.permute.xlu1 %1250 }
 0x211   : > { %v7535_v63 = vpop.permute.xlu1 %1301 }
 0x215   : > { %v7537_v17 = vpop.permute.xlu1 %1352 }
 0x216   : > { %10355 = vst [vmem:[#allocation31_spill] sm:$0xff] %v7537_v17 }
 0x24b   : > { %v7539_v52 = vpop.permute.xlu1 %1391 }
 0x24c   : > { %10356 = vst [vmem:[#allocation32_spill] sm:$0xff] %v7539_v52  ;;  %v1478_v52 = vrot.slane %v1461_v2, %v7185_v11 }
 0x24f   : > { %v7541_v35 = vpop.permute.xlu1 %1393 }
 0x250   : > { %10357 = vst [vmem:[#allocation33_spill] sm:$0xff] %v7541_v35  ;;  %v1474_v35 = vrot.slane %v1461_v2, %v7090_v6 }
 0x252   : > { %v1489_v9 = vrot.slane %v1474_v35, %v7090_v6 }
 0x253   : > { %v7543_v47 = vpop.permute.xlu1 %1410 }
 0x254   : > { %10358 = vst [vmem:[#allocation34_spill] sm:$0xff] %v7543_v47  ;;  %v1482_v47 = vrot.slane %v7551_v57, %v7090_v6 }
 0x256   : > { %v1497_v8 = vrot.slane %v1482_v47, %v7090_v6  ;;  %v1545_v47 = vrot.slane %v1530_v29, %v7093_v7  ;;  %v10174_v29 = vmov 32  }
 0x257   : > { %v7545_v33 = vpop.permute.xlu1 %1412 }
 0x258   : > { %10359 = vst [vmem:[#allocation35_spill] sm:$0xff] %v7545_v33  ;;  %v1493_v33 = vrot.slane %v1478_v52, %v7090_v6  ;;  %v1526_v52 = vrot.slane %v1461_v2, %v7093_v7 }
 0x25b   : > { %v7548_v27 = vpop.permute.xlu1 %1429 }
 0x25c   : > { %10360 = vst [vmem:[#allocation36_spill] sm:$0xff] %v7548_v27 }
 0x25f   : > { %v7555_v28 = vpop.permute.xlu1 %1431 }
 0x260   : > { %10361 = vst [vmem:[#allocation37_spill] sm:$0xff] %v7555_v28 }
 0x26c   : > { %v1467_v40 = vpop.permute.xlu1 %1466 }
 0x26d   : > { %v1499_v27 = vmul.f32 %v1493_v33, %v1467_v40  ;;  %v1498_v61 = vmul.f32 %v1489_v9, %v1467_v40  ;;  %v1500_v46 = vmul.f32 %v1497_v8, %v1467_v40  ;;  %v1534_v40 = vrot.slane %v7551_v57, %v7093_v7 }
 0x26f   : > { %1506 = vrot.lane.b32.xlu1 %v1499_v27, %s10245_s28  ;;  %1504 = vrot.lane.b32.xlu0 %v1498_v61, %s10245_s28  ;;  %v1541_v27 = vrot.slane %v1526_v52, %v7093_v7  ;;  %v1549_v8 = vrot.slane %v1534_v40, %v7093_v7  ;;  %v1581_v52 = vrot.slane %v1461_v2, %v7227_v5 }
 0x270   : > { %v1585_v40 = vrot.slane %v7551_v57, %v7224_v4 }
 0x273   : > { %1520 = vperm.xlu1 %6706, %v7505_v0   ;;  %1508 = vrot.lane.b32.xlu0 %v1500_v46, %s10245_s28 }
 0x277   : > { %6707 = vset.pattern.permute.xlu1 %v10172_v25  ;;  %v1577_v25 = vrot.slane %v1461_v2, %v7224_v4 }
 0x2e1   : > { %v7569_v33 = vpop.permute.xlu1 %1506 }
 0x2e2   : > { %10362 = vst [vmem:[#allocation38_spill] sm:$0xff] %v7569_v33 }
 0x2ee   : > { %v1521_v61 = vpop.permute.xlu1 %1520 }
 0x2ef   : > { %v1551_v35 = vmul.f32 %v1545_v47, %v1521_v61  ;;  %v1550_v9 = vmul.f32 %v1541_v27, %v1521_v61  ;;  %v1552_v46 = vmul.f32 %v1549_v8, %v1521_v61  ;;  %v1596_v27 = vrot.slane %v1581_v52, %v7224_v4 }
 0x2f0   : > { %v10177_v52 = vmov 6  }
 0x2f1   : > { %1558 = vrot.lane.b32.xlu1 %v1551_v35, %s10245_s28  ;;  %1556 = vrot.lane.b32.xlu0 %v1550_v9, %s10245_s28  ;;  %v1592_v35 = vrot.slane %v1577_v25, %v7224_v4  ;;  %v1632_v25 = vrot.slane %v1461_v2, %v7245_v32 }
 0x2f2   : > { %6709 = vset.pattern.permute.xlu0 %v10177_v52 }
 0x2f5   : > { %1571 = vperm.xlu1 %6707, %v7505_v0   ;;  %1560 = vrot.lane.b32.xlu0 %v1552_v46, %s10245_s28  ;;  %v1600_v46 = vrot.slane %v1585_v40, %v7224_v4  ;;  %v1647_v40 = vrot.slane %v1632_v25, %v7242_v39 }
 0x2f9   : > { %6708 = vset.pattern.permute.xlu1 %v10174_v29 }
 0x363   : > { %v7583_v47 = vpop.permute.xlu1 %1558 }
 0x364   : > { %10363 = vst [vmem:[#allocation39_spill] sm:$0xff] %v7583_v47  ;;  %v1628_v47 = vrot.slane %v1461_v2, %v7242_v39 }
 0x370   : > { %v1572_v61 = vpop.permute.xlu1 %1571 }
 0x371   : > { %v1602_v9 = vmul.f32 %v1596_v27, %v1572_v61  ;;  %v1601_v8 = vmul.f32 %v1592_v35, %v1572_v61  ;;  %v1603_v29 = vmul.f32 %v1600_v46, %v1572_v61  ;;  %v1675_v35 = vld [vmem:[#allocation3 + $0x6] ss:$8 sm:$0x3]  ;;  %v1643_v61 = vrot.slane %v1628_v47, %v7242_v39 }
 0x372   : > { %v10181_v47 = vmov 15  }
 0x373   : > { %1609 = vrot.lane.b32.xlu1 %v1602_v9, %s10245_s28  ;;  %1607 = vrot.lane.b32.xlu0 %v1601_v8, %s10245_s28  ;;  %v1636_v9 = vrot.slane %v7551_v57, %v7242_v39  ;;  %v7613_v57 = vld [vmem:[%s10098_s2] sm:$0xf] }
 0x375   : > { %v1651_v2 = vrot.slane %v1636_v9, %v7242_v39 }
 0x377   : > { %1622 = vperm.xlu1 %6708, %v7505_v0   ;;  %1611 = vrot.lane.b32.xlu0 %v1603_v29, %s10245_s28  ;;  %v1680_v0 = vrot.slane %v1675_v35, %v7090_v6  ;;  %v1684_v29 = vrot.slane %v1675_v35, %v7093_v7 }
 0x37b   : > { %6710 = vset.pattern.permute.xlu1 %v10181_v47 }
 0x3e5   : > { %v7597_v27 = vpop.permute.xlu1 %1609 }
 0x3e6   : > { %10364 = vst [vmem:[#allocation40_spill] sm:$0xff] %v7597_v27  ;;  %v1685_v27 = vcombine.low %v1680_v0, %v1684_v29  ;;  %v7631_v29 = vld [vmem:[#allocation2 + $0x4] sm:$0xff] }
 0x3f2   : > { %v1623_v8 = vpop.permute.xlu1 %1622 }
 0x3f3   : > { %v1653_v46 = vmul.f32 %v1647_v40, %v1623_v8  ;;  %v1652_v52 = vmul.f32 %v1643_v61, %v1623_v8  ;;  %v1654_v33 = vmul.f32 %v1651_v2, %v1623_v8  ;;  %v1673_v61 = vld [vmem:[#allocation2 + $0xc] sm:$0xf] }
 0x3f5   : > { %1660 = vrot.lane.b32.xlu1 %v1653_v46, %s10245_s28  ;;  %1658 = vrot.lane.b32.xlu0 %v1652_v52, %s10245_s28  ;;  %v7617_v52 = vpop.permute.xlu0 %1504 }
 0x3f6   : > { %10365 = vst [vmem:[#allocation41_spill] sm:$0xff] %v7617_v52 }
 0x3f9   : > { %1662 = vrot.lane.b32.xlu0 %v1654_v33, %s10245_s28  ;;  %1686 = vrot.lane.b32.xlu1 %v1685_v27, %s10199_s30  ;;  %v7619_v25 = vpop.permute.xlu0 %1508  ;;  %s10233_s30 = smov 95   ;;  %s10557_s28 = smov 95  }
 0x3fa   : > { %10366 = vst [vmem:[#allocation42_spill] sm:$0xff] %v7619_v25 }
 0x3fd   : > { %1698 = vperm.xlu0 %6709, %v7613_v57   ;;  %v7621_v35 = vpop.permute.xlu0 %1556 }
 0x3fe   : > { %10367 = vst [vmem:[#allocation43_spill] sm:$0xff] %v7621_v35 }
 0x401   : > { %v7623_v33 = vpop.permute.xlu0 %1560 }
 0x402   : > { %10368 = vst [vmem:[#allocation44_spill] sm:$0xff] %v7623_v33 }
 0x405   : > { %v7625_v9 = vpop.permute.xlu0 %1607 }
 0x406   : > { %10369 = vst [vmem:[#allocation45_spill] sm:$0xff] %v7625_v9 }
 0x409   : > { %v7629_v40 = vpop.permute.xlu0 %1611 }
 0x40a   : > { %10371 = vst [vmem:[#allocation47_spill] sm:$0xff] %v7629_v40 }
 0x467   : > { %v7627_v27 = vpop.permute.xlu1 %1660  ;;  %v7633_v46 = vpop.permute.xlu0 %1658 }
 0x468   : > { %10370 = vst [vmem:[#allocation46_spill] sm:$0xff] %v7627_v27  ;;  %10372 = vst [vmem:[#allocation48_spill] sm:$0xff] %v7633_v46 }
 0x46b   : > { %v1687_v0 = vpop.permute.xlu1 %1686  ;;  %v7642_v40 = vpop.permute.xlu0 %1662 }
 0x46c   : > { %v1688_v8 = vrot.slane %v1687_v0, 4  ;;  %10373 = vst [vmem:[#allocation49_spill] sm:$0xff] %v7642_v40 }
 0x46e   : > { %v1690_v2 = vsel %vm1689_vm4, %v1688_v8, %v1687_v0  ;;  %v7636_v47 = vmul.f32 %v1688_v8, %v1673_v61 }
 0x46f   : > { %v1693_v33 = vmul.f32 %v1690_v2, %v7631_v29 }
 0x470   : > { %v1714_v9 = vrot.slane %v7636_v47, %v7090_v6 }
 0x471   : > { %v1706_v27 = vrot.slane %v1693_v33, %v7090_v6  ;;  %v1710_v35 = vrot.slane %v1693_v33, %v7185_v11 }
 0x472   : > { %v1729_v25 = vrot.slane %v1714_v9, %v7090_v6  ;;  %v10189_v9 = vmov 24  }
 0x473   : > { %v1721_v52 = vrot.slane %v1706_v27, %v7090_v6  ;;  %v1725_v61 = vrot.slane %v1710_v35, %v7090_v6 }
 0x478   : > { %v1699_v46 = vpop.permute.xlu0 %1698 }
 0x479   : > { %v1730_v28 = vmul.f32 %v1721_v52, %v1699_v46  ;;  %v1732_v0 = vmul.f32 %v1729_v25, %v1699_v46  ;;  %v1731_v8 = vmul.f32 %v1725_v61, %v1699_v46  ;;  %v1762_v52 = vrot.slane %v1693_v33, %v7202_v22 }
 0x47a   : > { %v1758_v25 = vrot.slane %v1693_v33, %v7093_v7  ;;  %v1766_v46 = vrot.slane %v7636_v47, %v7093_v7 }
 0x47b   : > { %1740 = vrot.lane.b32.xlu0 %v1732_v0, %s10219_s27  ;;  %1736 = vrot.lane.b32.xlu1 %v1730_v28, %s10219_s27  ;;  %v1777_v27 = vrot.slane %v1762_v52, %v7093_v7  ;;  %v10192_v52 = vmov 33  }
 0x47c   : > { %v1773_v28 = vrot.slane %v1758_v25, %v7093_v7  ;;  %v1813_v25 = vrot.slane %v1693_v33, %v7227_v5 }
 0x47f   : > { %1738 = vrot.lane.b32.xlu1 %v1731_v8, %s10219_s27 }
 0x483   : > { %1752 = vperm.xlu1 %6710, %v7613_v57  }
 0x487   : > { %6711 = vset.pattern.permute.xlu1 %v10189_v9  ;;  %v1781_v9 = vrot.slane %v1766_v46, %v7093_v7 }
 0x4ed   : > { %v7653_v2 = vpop.permute.xlu1 %1736 }
 0x4ee   : > { %10374 = vst [vmem:[#allocation50_spill] sm:$0xff] %v7653_v2  ;;  %v1809_v2 = vrot.slane %v1693_v33, %v7224_v4 }
 0x4f1   : > { %v7657_v35 = vpop.permute.xlu1 %1738 }
 0x4f2   : > { %10375 = vst [vmem:[#allocation51_spill] sm:$0xff] %v7657_v35 }
 0x4fe   : > { %v1753_v0 = vpop.permute.xlu1 %1752 }
 0x4ff   : > { %v1783_v61 = vmul.f32 %v1777_v27, %v1753_v0  ;;  %v1782_v8 = vmul.f32 %v1773_v28, %v1753_v0  ;;  %v1784_v40 = vmul.f32 %v1781_v9, %v1753_v0  ;;  %v1828_v28 = vrot.slane %v1813_v25, %v7224_v4 }
 0x500   : > { %v1817_v9 = vrot.slane %v7636_v47, %v7224_v4  ;;  %v10195_v25 = vmov 7  }
 0x501   : > { %1790 = vrot.lane.b32.xlu1 %v1783_v61, %s10219_s27  ;;  %1788 = vrot.lane.b32.xlu0 %v1782_v8, %s10219_s27  ;;  %v1824_v61 = vrot.slane %v1809_v2, %v7224_v4  ;;  %v1864_v2 = vrot.slane %v1693_v33, %v7245_v32 }
 0x502   : > { %6713 = vset.pattern.permute.xlu0 %v10195_v25 }
 0x505   : > { %1803 = vperm.xlu1 %6711, %v7613_v57   ;;  %1792 = vrot.lane.b32.xlu0 %v1784_v40, %s10219_s27  ;;  %v1832_v40 = vrot.slane %v1817_v9, %v7224_v4  ;;  %v1879_v9 = vrot.slane %v1864_v2, %v7242_v39  ;;  %v7705_v2 = vpop.permute.xlu0 %1740 }
 0x506   : > { %10378 = vst [vmem:[#allocation54_spill] sm:$0xff] %v7705_v2 }
 0x509   : > { %6712 = vset.pattern.permute.xlu1 %v10192_v52 }
 0x573   : > { %v7671_v27 = vpop.permute.xlu1 %1790 }
 0x574   : > { %10376 = vst [vmem:[#allocation52_spill] sm:$0xff] %v7671_v27  ;;  %v1860_v27 = vrot.slane %v1693_v33, %v7242_v39 }
 0x580   : > { %v1804_v46 = vpop.permute.xlu1 %1803 }
 0x581   : > { %v1834_v0 = vmul.f32 %v1828_v28, %v1804_v46  ;;  %v1833_v8 = vmul.f32 %v1824_v61, %v1804_v46  ;;  %v1835_v52 = vmul.f32 %v1832_v40, %v1804_v46  ;;  %v1907_v61 = vld [vmem:[#allocation3 + $0x7] ss:$8 sm:$0x3]  ;;  %v1875_v46 = vrot.slane %v1860_v27, %v7242_v39 }
 0x582   : > { %v10201_v27 = vmov 16  }
 0x583   : > { %1841 = vrot.lane.b32.xlu1 %v1834_v0, %s10219_s27  ;;  %1839 = vrot.lane.b32.xlu0 %v1833_v8, %s10219_s27  ;;  %v1868_v0 = vrot.slane %v7636_v47, %v7242_v39  ;;  %v7701_v47 = vld [vmem:[%s10098_s2] sm:$0xf] }
 0x585   : > { %v1883_v35 = vrot.slane %v1868_v0, %v7242_v39 }
 0x587   : > { %1854 = vperm.xlu1 %6712, %v7613_v57   ;;  %1843 = vrot.lane.b32.xlu0 %v1835_v52, %s10219_s27  ;;  %v1912_v57 = vrot.slane %v1907_v61, %v7090_v6  ;;  %v1916_v52 = vrot.slane %v1907_v61, %v7093_v7 }
 0x589   : > { %v1917_v33 = vcombine.low %v1912_v57, %v1916_v52 }
 0x58b   : > { %6714 = vset.pattern.permute.xlu1 %v10201_v27 }
 0x5f5   : > { %v7685_v28 = vpop.permute.xlu1 %1841 }
 0x5f6   : > { %10377 = vst [vmem:[#allocation53_spill] sm:$0xff] %v7685_v28 }
 0x602   : > { %v1855_v8 = vpop.permute.xlu1 %1854 }
 0x603   : > { %v1885_v40 = vmul.f32 %v1879_v9, %v1855_v8  ;;  %v1884_v25 = vmul.f32 %v1875_v46, %v1855_v8  ;;  %v1886_v28 = vmul.f32 %v1883_v35, %v1855_v8  ;;  %v1905_v9 = vld [vmem:[#allocation2 + $0xc] sm:$0xf] }
 0x605   : > { %1892 = vrot.lane.b32.xlu1 %v1885_v40, %s10219_s27  ;;  %1890 = vrot.lane.b32.xlu0 %v1884_v25, %s10219_s27  ;;  %v7707_v25 = vpop.permute.xlu0 %1788 }
 0x606   : > { %10379 = vst [vmem:[#allocation55_spill] sm:$0xff] %v7707_v25 }
 0x609   : > { %1894 = vrot.lane.b32.xlu0 %v1886_v28, %s10219_s27  ;;  %1918 = vrot.lane.b32.xlu1 %v1917_v33, %s10217_s11  ;;  %v7709_v35 = vpop.permute.xlu0 %1792  ;;  %s10243_s27 = smov 94   ;;  %s10528_s11 = smov 15  }
 0x60a   : > { %10380 = vst [vmem:[#allocation56_spill] sm:$0xff] %v7709_v35 }
 0x60d   : > { %1930 = vperm.xlu0 %6713, %v7701_v47   ;;  %v7711_v28 = vpop.permute.xlu0 %1839 }
 0x60e   : > { %10381 = vst [vmem:[#allocation57_spill] sm:$0xff] %v7711_v28 }
 0x611   : > { %v7715_v0 = vpop.permute.xlu0 %1843 }
 0x612   : > { %10383 = vst [vmem:[#allocation59_spill] sm:$0xff] %v7715_v0 }
 0x677   : > { %v7713_v61 = vpop.permute.xlu1 %1892  ;;  %v7717_v52 = vpop.permute.xlu0 %1890 }
 0x678   : > { %10382 = vst [vmem:[#allocation58_spill] sm:$0xff] %v7713_v61  ;;  %10384 = vst [vmem:[#allocation60_spill] sm:$0xff] %v7717_v52 }
 0x67b   : > { %v1919_v46 = vpop.permute.xlu1 %1918  ;;  %v7726_v61 = vpop.permute.xlu0 %1894 }
 0x67c   : > { %v1920_v57 = vrot.slane %v1919_v46, 4  ;;  %10385 = vst [vmem:[#allocation61_spill] sm:$0xff] %v7726_v61 }
 0x67e   : > { %v1922_v8 = vsel %vm1921_vm5, %v1920_v57, %v1919_v46  ;;  %v7720_v40 = vmul.f32 %v1920_v57, %v1905_v9 }
 0x67f   : > { %v1925_v33 = vmul.f32 %v1922_v8, %v7631_v29 }
 0x680   : > { %v1946_v27 = vrot.slane %v7720_v40, %v7090_v6 }
 0x681   : > { %v1938_v35 = vrot.slane %v1925_v33, %v7090_v6  ;;  %v1942_v28 = vrot.slane %v1925_v33, %v7185_v11 }
 0x682   : > { %v1961_v0 = vrot.slane %v1946_v27, %v7090_v6  ;;  %v10207_v27 = vmov 25  }
 0x683   : > { %v1953_v2 = vrot.slane %v1938_v35, %v7090_v6  ;;  %v1957_v9 = vrot.slane %v1942_v28, %v7090_v6  ;;  %v1994_v35 = vrot.slane %v1925_v33, %v7202_v22 }
 0x688   : > { %v1931_v52 = vpop.permute.xlu0 %1930 }
 0x689   : > { %v1962_v25 = vmul.f32 %v1953_v2, %v1931_v52  ;;  %v1964_v46 = vmul.f32 %v1961_v0, %v1931_v52  ;;  %v1963_v57 = vmul.f32 %v1957_v9, %v1931_v52  ;;  %v1990_v2 = vrot.slane %v1925_v33, %v7093_v7 }
 0x68a   : > { %v1998_v0 = vrot.slane %v7720_v40, %v7093_v7  ;;  %v2009_v52 = vrot.slane %v1994_v35, %v7093_v7  ;;  %v2045_v35 = vrot.slane %v1925_v33, %v7227_v5 }
 0x68b   : > { %1972 = vrot.lane.b32.xlu0 %v1964_v46, %s10233_s30  ;;  %1968 = vrot.lane.b32.xlu1 %v1962_v25, %s10233_s30  ;;  %v2005_v25 = vrot.slane %v1990_v2, %v7093_v7  ;;  %v2041_v2 = vrot.slane %v1925_v33, %v7224_v4 }
 0x68f   : > { %1970 = vrot.lane.b32.xlu1 %v1963_v57, %s10233_s30 }
 0x693   : > { %1984 = vperm.xlu1 %6714, %v7701_v47  }
 0x697   : > { %6715 = vset.pattern.permute.xlu1 %v10207_v27  ;;  %v2013_v27 = vrot.slane %v1998_v0, %v7093_v7  ;;  %v2049_v0 = vrot.slane %v7720_v40, %v7224_v4 }
 0x6fd   : > { %v7737_v8 = vpop.permute.xlu1 %1968 }
 0x6fe   : > { %10386 = vst [vmem:[#allocation62_spill] sm:$0xff] %v7737_v8  ;;  %v10210_v8 = vmov 34  }
 0x701   : > { %v7741_v28 = vpop.permute.xlu1 %1970 }
 0x702   : > { %10387 = vst [vmem:[#allocation63_spill] sm:$0xff] %v7741_v28 }
 0x70e   : > { %v1985_v46 = vpop.permute.xlu1 %1984 }
 0x70f   : > { %v2014_v9 = vmul.f32 %v2005_v25, %v1985_v46  ;;  %v2015_v57 = vmul.f32 %v2009_v52, %v1985_v46  ;;  %v2016_v61 = vmul.f32 %v2013_v27, %v1985_v46  ;;  %v2056_v52 = vrot.slane %v2041_v2, %v7224_v4 }
 0x710   : > { %v2060_v27 = vrot.slane %v2045_v35, %v7224_v4  ;;  %v2092_v2 = vrot.slane %v1925_v33, %v7242_v39  ;;  %v2096_v35 = vrot.slane %v1925_v33, %v7245_v32 }
 0x711   : > { %2022 = vrot.lane.b32.xlu1 %v2015_v57, %s10233_s30  ;;  %2020 = vrot.lane.b32.xlu0 %v2014_v9, %s10233_s30 }
 0x715   : > { %2035 = vperm.xlu1 %6715, %v7701_v47   ;;  %2024 = vrot.lane.b32.xlu0 %v2016_v61, %s10233_s30  ;;  %v2064_v61 = vrot.slane %v2049_v0, %v7224_v4  ;;  %v2100_v0 = vrot.slane %v7720_v40, %v7242_v39  ;;  %v7785_v40 = vld [vmem:[%s10098_s2] sm:$0xf] }
 0x717   : > { %v2115_v28 = vrot.slane %v2100_v0, %v7242_v39 }
 0x719   : > { %6716 = vset.pattern.permute.xlu1 %v10210_v8 }
 0x783   : > { %v7755_v25 = vpop.permute.xlu1 %2022 }
 0x784   : > { %10388 = vst [vmem:[#allocation64_spill] sm:$0xff] %v7755_v25  ;;  %v10213_v25 = vmov 8  }
 0x785   : > { %6717 = vset.pattern.permute.xlu0 %v10213_v25 }
 0x790   : > { %v2036_v46 = vpop.permute.xlu1 %2035 }
 0x791   : > { %v2065_v9 = vmul.f32 %v2056_v52, %v2036_v46  ;;  %v2066_v57 = vmul.f32 %v2060_v27, %v2036_v46  ;;  %v2067_v8 = vmul.f32 %v2064_v61, %v2036_v46  ;;  %v2139_v27 = vld [vmem:[#allocation3 + $0x10] ss:$8 sm:$0x3]  ;;  %v2111_v46 = vrot.slane %v2096_v35, %v7242_v39  ;;  %v7790_v35 = vpop.permute.xlu0 %1972 }
 0x792   : > { %10391 = vst [vmem:[#allocation66_spill] sm:$0xff] %v7790_v35 }
 0x793   : > { %2073 = vrot.lane.b32.xlu1 %v2066_v57, %s10233_s30  ;;  %2071 = vrot.lane.b32.xlu0 %v2065_v9, %s10233_s30  ;;  %v2107_v9 = vrot.slane %v2092_v2, %v7242_v39  ;;  %v10221_v2 = vmov 17  }
 0x797   : > { %2086 = vperm.xlu1 %6716, %v7701_v47   ;;  %2075 = vrot.lane.b32.xlu0 %v2067_v8, %s10233_s30  ;;  %v2144_v47 = vrot.slane %v2139_v27, %v7090_v6  ;;  %v2148_v8 = vrot.slane %v2139_v27, %v7093_v7 }
 0x799   : > { %v2149_v33 = vcombine.low %v2144_v47, %v2148_v8 }
 0x79b   : > { %6718 = vset.pattern.permute.xlu1 %v10221_v2 }
 0x805   : > { %v7769_v52 = vpop.permute.xlu1 %2073 }
 0x806   : > { %10389 = vst [vmem:[#allocation65_spill] sm:$0xff] %v7769_v52 }
 0x812   : > { %v2087_v57 = vpop.permute.xlu1 %2086 }
 0x813   : > { %v2116_v61 = vmul.f32 %v2107_v9, %v2087_v57  ;;  %v2117_v25 = vmul.f32 %v2111_v46, %v2087_v57  ;;  %v2118_v52 = vmul.f32 %v2115_v28, %v2087_v57  ;;  %v7792_v28 = vpop.permute.xlu0 %2020  ;;  %v2137_v46 = vld [vmem:[#allocation2 + $0xc] sm:$0xf] }
 0x814   : > { %10392 = vst [vmem:[#allocation67_spill] sm:$0xff] %v7792_v28 }
 0x815   : > { %2124 = vrot.lane.b32.xlu1 %v2117_v25, %s10233_s30  ;;  %2122 = vrot.lane.b32.xlu0 %v2116_v61, %s10233_s30  ;;  %v10390_v25 = vmov 2  }
 0x819   : > { %2126 = vrot.lane.b32.xlu0 %v2118_v52, %s10233_s30  ;;  %2150 = vrot.lane.b32.xlu1 %v2149_v33, %s10247_s26  ;;  %v7794_v52 = vpop.permute.xlu0 %2024  ;;  %s10521_s30 = smov 110  }
 0x81a   : > { %10393 = vst [vmem:[#allocation68_spill] sm:$0xff] %v7794_v52 }
 0x81d   : > { %2162 = vperm.xlu0 %6717, %v7785_v40   ;;  %v7796_v27 = vpop.permute.xlu0 %2071 }
 0x81e   : > { %10394 = vst [vmem:[#allocation69_spill] sm:$0xff] %v7796_v27 }
 0x821   : > { %6732 = vset.pattern.permute.xlu0 %v10390_v25  ;;  %v7800_v9 = vpop.permute.xlu0 %2075 }
 0x822   : > { %10396 = vst [vmem:[#allocation71_spill] sm:$0xff] %v7800_v9 }
 0x887   : > { %v7798_v0 = vpop.permute.xlu1 %2124  ;;  %v7802_v57 = vpop.permute.xlu0 %2122 }
 0x888   : > { %10395 = vst [vmem:[#allocation70_spill] sm:$0xff] %v7798_v0  ;;  %10397 = vst [vmem:[#allocation72_spill] sm:$0xff] %v7802_v57 }
 0x88b   : > { %v2151_v47 = vpop.permute.xlu1 %2150  ;;  %v7811_v0 = vpop.permute.xlu0 %2126 }
 0x88c   : > { %v2152_v8 = vrot.slane %v2151_v47, 4  ;;  %10398 = vst [vmem:[#allocation73_spill] sm:$0xff] %v7811_v0  ;;  %v10229_v0 = vmov 35  }
 0x88e   : > { %v2154_v61 = vsel %vm2153_vm6, %v2152_v8, %v2151_v47  ;;  %v7805_v33 = vmul.f32 %v2152_v8, %v2137_v46 }
 0x88f   : > { %v2157_v2 = vmul.f32 %v2154_v61, %v7631_v29 }
 0x890   : > { %v2178_v25 = vrot.slane %v7805_v33, %v7090_v6 }
 0x891   : > { %v2170_v52 = vrot.slane %v2157_v2, %v7090_v6  ;;  %v2174_v27 = vrot.slane %v2157_v2, %v7185_v11 }
 0x892   : > { %v2193_v9 = vrot.slane %v2178_v25, %v7090_v6  ;;  %v10227_v25 = vmov 26  }
 0x893   : > { %v2185_v35 = vrot.slane %v2170_v52, %v7090_v6  ;;  %v2189_v46 = vrot.slane %v2174_v27, %v7090_v6  ;;  %v2226_v52 = vrot.slane %v2157_v2, %v7202_v22 }
 0x898   : > { %v2163_v57 = vpop.permute.xlu0 %2162 }
 0x899   : > { %v2194_v28 = vmul.f32 %v2185_v35, %v2163_v57  ;;  %v2196_v47 = vmul.f32 %v2193_v9, %v2163_v57  ;;  %v2195_v29 = vmul.f32 %v2189_v46, %v2163_v57  ;;  %v2222_v35 = vrot.slane %v2157_v2, %v7093_v7 }
 0x89a   : > { %v2230_v9 = vrot.slane %v7805_v33, %v7093_v7  ;;  %v2241_v57 = vrot.slane %v2226_v52, %v7093_v7  ;;  %v2277_v52 = vrot.slane %v2157_v2, %v7227_v5 }
 0x89b   : > { %2204 = vrot.lane.b32.xlu0 %v2196_v47, %s10243_s27  ;;  %2200 = vrot.lane.b32.xlu1 %v2194_v28, %s10243_s27  ;;  %v2237_v28 = vrot.slane %v2222_v35, %v7093_v7  ;;  %v2273_v35 = vrot.slane %v2157_v2, %v7224_v4 }
 0x89f   : > { %2202 = vrot.lane.b32.xlu1 %v2195_v29, %s10243_s27  ;;  %v2245_v29 = vrot.slane %v2230_v9, %v7093_v7  ;;  %v2281_v9 = vrot.slane %v7805_v33, %v7224_v4 }
 0x8a3   : > { %2216 = vperm.xlu1 %6718, %v7785_v40  }
 0x8a7   : > { %6719 = vset.pattern.permute.xlu1 %v10227_v25 }
 0x90d   : > { %v7822_v8 = vpop.permute.xlu1 %2200 }
 0x90e   : > { %10399 = vst [vmem:[#allocation74_spill] sm:$0xff] %v7822_v8 }
 0x911   : > { %v7826_v27 = vpop.permute.xlu1 %2202 }
 0x912   : > { %10400 = vst [vmem:[#allocation75_spill] sm:$0xff] %v7826_v27 }
 0x91e   : > { %v2217_v61 = vpop.permute.xlu1 %2216 }
 0x91f   : > { %v2246_v47 = vmul.f32 %v2237_v28, %v2217_v61  ;;  %v2247_v46 = vmul.f32 %v2241_v57, %v2217_v61  ;;  %v2248_v25 = vmul.f32 %v2245_v29, %v2217_v61  ;;  %v2288_v57 = vrot.slane %v2273_v35, %v7224_v4 }
 0x920   : > { %v2292_v61 = vrot.slane %v2277_v52, %v7224_v4  ;;  %v2324_v35 = vrot.slane %v2157_v2, %v7242_v39  ;;  %v2328_v52 = vrot.slane %v2157_v2, %v7245_v32  ;;  %v7866_v2 = vld [vmem:[%s10104_s8] sm:$0xf] }
 0x921   : > { %2254 = vrot.lane.b32.xlu1 %v2247_v46, %s10243_s27  ;;  %2252 = vrot.lane.b32.xlu0 %v2246_v47, %s10243_s27  ;;  %10404 = vst [vmem:[#allocation78_spill] sm:$0xff] %v7866_v2 }
 0x925   : > { %2267 = vperm.xlu1 %6719, %v7785_v40   ;;  %2256 = vrot.lane.b32.xlu0 %v2248_v25, %s10243_s27  ;;  %v2296_v25 = vrot.slane %v2281_v9, %v7224_v4  ;;  %v2332_v9 = vrot.slane %v7805_v33, %v7242_v39  ;;  %v511_v33 = vrot.slane %v7156_v49, 4 }
 0x929   : > { %6720 = vset.pattern.permute.xlu1 %v10229_v0 }
 0x993   : > { %v7840_v28 = vpop.permute.xlu1 %2254 }
 0x994   : > { %10401 = vst [vmem:[#allocation76_spill] sm:$0xff] %v7840_v28  ;;  %v10402_v28 = vmov 4  }
 0x9a0   : > { %v2268_v47 = vpop.permute.xlu1 %2267 }
 0x9a1   : > { %v2297_v46 = vmul.f32 %v2288_v57, %v2268_v47  ;;  %v2298_v29 = vmul.f32 %v2292_v61, %v2268_v47  ;;  %v2299_v0 = vmul.f32 %v2296_v25, %v2268_v47  ;;  %v2339_v57 = vrot.slane %v2324_v35, %v7242_v39 }
 0x9a2   : > { %v2343_v61 = vrot.slane %v2328_v52, %v7242_v39  ;;  %v10405_v25 = vmov 5   ;;  %v513_v35 = vsel %vm512_vm7, %v511_v33, %v7156_v49  ;;  %v6804_v52 = vld [vmem:[#allocation2] sm:$0xff] }
 0x9a3   : > { %2305 = vrot.lane.b32.xlu1 %v2298_v29, %s10243_s27  ;;  %2303 = vrot.lane.b32.xlu0 %v2297_v46, %s10243_s27 }
 0x9a7   : > { %2318 = vperm.xlu1 %6720, %v7785_v40   ;;  %2307 = vrot.lane.b32.xlu0 %v2299_v0, %s10243_s27  ;;  %v2347_v0 = vrot.slane %v2332_v9, %v7242_v39  ;;  %v516_v9 = vmul.f32 %v6804_v52, %v513_v35 }
 0x9a9   : > { %v533_v49 = vrot.slane %v516_v9, %v7185_v11  ;;  %v603_v52 = vrot.slane %v516_v9, %v7224_v4  ;;  %v607_v17 = vrot.slane %v516_v9, %v7227_v5 }
 0x9ab   : > { %6721 = vset.pattern.permute.xlu1 %v10402_v28 }
 0xa15   : > { %v7854_v8 = vpop.permute.xlu1 %2305 }
 0xa16   : > { %10403 = vst [vmem:[#allocation77_spill] sm:$0xff] %v7854_v8  ;;  %v618_v8 = vrot.slane %v603_v52, %v7224_v4 }
 0xa22   : > { %v2319_v47 = vpop.permute.xlu1 %2318 }
 0xa23   : > { %v2348_v46 = vmul.f32 %v2339_v57, %v2319_v47  ;;  %v2349_v40 = vmul.f32 %v2343_v61, %v2319_v47  ;;  %v2350_v29 = vmul.f32 %v2347_v0, %v2319_v47  ;;  %v10406_v57 = vmov 6  }
 0xa24   : > { %v529_v61 = vrot.slane %v516_v9, %v7090_v6  ;;  %v10407_v47 = vmov 7   ;;  %v566_v0 = vrot.slane %v516_v9, %v7093_v7 }
 0xa25   : > { %2356 = vrot.lane.b32.xlu1 %v2349_v40, %s10243_s27  ;;  %2354 = vrot.lane.b32.xlu0 %v2348_v46, %s10243_s27  ;;  %v497_v40 = vld [vmem:[#allocation2 + $0x8] sm:$0xf] }
 0xa26   : > { %v544_v46 = vrot.slane %v529_v61, %v7090_v6  ;;  %v581_v35 = vrot.slane %v566_v0, %v7093_v7  ;;  %v640_v61 = vrot.slane %v516_v9, %v7242_v39 }
 0xa28   : > { %v655_v11 = vrot.slane %v640_v61, %v7242_v39  ;;  %v622_v61 = vrot.slane %v607_v17, %v7224_v4 }
 0xa29   : > { %2377 = vperm.xlu1 %6721, %v7866_v2   ;;  %2358 = vrot.lane.b32.xlu0 %v2350_v29, %s10243_s27  ;;  %v553_v29 = vmul.f32 %v544_v46, %v7239_v44  ;;  %s10565_s27 = smov 17  }
 0xa2d   : > { %6722 = vset.pattern.permute.xlu1 %v10405_v25  ;;  %v517_v25 = vmul.f32 %v511_v33, %v497_v40  ;;  %v570_v33 = vrot.slane %v516_v9, %v7202_v22 }
 0xa2e   : > { %2411 = vperm.xlu1 %6722, %v7866_v2  }
 0xa2f   : > { %v537_v28 = vrot.slane %v517_v25, %v7090_v6  ;;  %v574_v27 = vrot.slane %v517_v25, %v7093_v7 }
 0xa31   : > { %v552_v40 = vrot.slane %v537_v28, %v7090_v6  ;;  %v664_v28 = vmul.f32 %v655_v11, %v7264_v21  ;;  %v792_v11 = vsel %vm740_vm2, %v7442_v56, %v7513_v20  ;;  %v894_v56 = vsel %vm740_vm2, %v7446_v38, %v7517_v62 }
 0xa32   : > { %6723 = vset.pattern.permute.xlu1 %v10406_v57  ;;  %v556_v57 = vadd.f32 %v553_v29, %v7154_v48  ;;  %v627_v29 = vmul.f32 %v618_v8, %v7160_v51 }
 0xa33   : > { %2445 = vperm.xlu1 %6723, %v7866_v2   ;;  %v590_v2 = vmul.f32 %v581_v35, %v7158_v50  ;;  %v555_v52 = vmul.f32 %v552_v40, %v7239_v44 }
 0xa35   : > { %v593_v46 = vadd.f32 %v590_v2, %v556_v57  ;;  %v644_v2 = vrot.slane %v516_v9, %v7245_v32  ;;  %v611_v57 = vrot.slane %v517_v25, %v7224_v4  ;;  %v648_v9 = vrot.slane %v517_v25, %v7242_v39 }
 0xa37   : > { %6724 = vset.pattern.permute.xlu1 %v10407_v47  ;;  %v548_v47 = vrot.slane %v533_v49, %v7090_v6  ;;  %v585_v49 = vrot.slane %v570_v33, %v7093_v7  ;;  %v630_v35 = vadd.f32 %v627_v29, %v593_v46  ;;  %v741_v33 = vsel %vm740_vm2, %v7440_v15, %v7511_v24 }
 0xa38   : > { %v626_v17 = vrot.slane %v611_v57, %v7224_v4 }
 0xa39   : > { %v554_v0 = vmul.f32 %v548_v47, %v7239_v44  ;;  %v589_v47 = vrot.slane %v574_v27, %v7093_v7  ;;  %v591_v8 = vmul.f32 %v585_v49, %v7158_v50  ;;  %v667_v46 = vadd.f32 %v664_v28, %v630_v35 }
 0xa3a   : > { %v558_v44 = vadd.f32 %v555_v52, %v7154_v48  ;;  %v659_v27 = vrot.slane %v644_v2, %v7242_v39  ;;  %v628_v49 = vmul.f32 %v622_v61, %v7160_v51  ;;  %v663_v52 = vrot.slane %v648_v9, %v7242_v39 }
 0xa3b   : > { %v557_v22 = vadd.f32 %v554_v0, %v7154_v48  ;;  %v746_v0 = vadd.f32 %v741_v33, %v667_v46  ;;  %v592_v29 = vmul.f32 %v589_v47, %v7158_v50  ;;  %v843_v48 = vsel %vm740_vm2, %v7444_v14, %v7515_v30 }
 0xa3c   : > { %v665_v50 = vmul.f32 %v659_v27, %v7264_v21  ;;  %v629_v2 = vmul.f32 %v626_v17, %v7160_v51  ;;  %v742_v28 = vsel %vm740_vm2, %v7511_v24, %v7416_v53  ;;  %v666_v38 = vmul.f32 %v663_v52, %v7264_v21 }
 0xa3d   : > { %v594_v40 = vadd.f32 %v591_v8, %v557_v22  ;;  %v797_v22 = vadd.f32 %v792_v11, %v746_v0  ;;  %v595_v15 = vadd.f32 %v592_v29, %v558_v44  ;;  %v793_v8 = vsel %vm740_vm2, %v7513_v20, %v7418_v31 }
 0xa3e   : > { %v973_v33 = vsel %vm972_vm8, %v7519_v58, %v7521_v23  ;;  %v844_v51 = vsel %vm740_vm2, %v7515_v30, %v7420_v18  ;;  %v895_v21 = vsel %vm740_vm2, %v7517_v62, %v7422_v26  ;;  %v1075_v58 = vsel %vm972_vm8, %v7450_v37, %v7525_v19 }
 0xa3f   : > { %v631_v35 = vadd.f32 %v628_v49, %v594_v40  ;;  %v848_v25 = vadd.f32 %v843_v48, %v797_v22  ;;  %v632_v47 = vadd.f32 %v629_v2, %v595_v15  ;;  %v1024_v40 = vsel %vm972_vm8, %v7448_v59, %v7523_v1 }
 0xa40   : > { %v974_v30 = vsel %vm972_vm8, %v7521_v23, %v7424_v36  ;;  %v1126_v59 = vsel %vm972_vm8, %v7452_v34, %v7527_v45  ;;  %v1076_v23 = vsel %vm972_vm8, %v7525_v19, %v7428_v54  ;;  %v1127_v34 = vsel %vm972_vm8, %v7527_v45, %v7430_v41 }
 0xa41   : > { %v899_v14 = vadd.f32 %v894_v56, %v848_v25  ;;  %v668_v57 = vadd.f32 %v665_v50, %v631_v35  ;;  %v669_v46 = vadd.f32 %v666_v38, %v632_v47  ;;  %v1254_v35 = vsel %vm687_vm0, %v7454_v60, %v7533_v12  ;;  %v10408_v60 = vld [vmem:[#allocation31_spill] sm:$0xff]  ;;  %v10412_v38 = vld [vmem:[#allocation21_spill] sm:$0xff] }
 0xa42   : > { %v1255_v45 = vsel %vm687_vm0, %v7533_v12, %v7434_v13  ;;  %v10409_v50 = vld [vmem:[#allocation23_spill] sm:$0xff]  ;;  %v10410_v12 = vld [vmem:[#allocation22_spill] sm:$0xff] }
 0xa43   : > { %v747_v61 = vadd.f32 %v742_v28, %v668_v57  ;;  %v978_v24 = vadd.f32 %v973_v33, %v899_v14  ;;  %v748_v20 = vadd.f32 %v7416_v53, %v669_v46  ;;  %v1025_v53 = vsel %vm972_vm8, %v7523_v1, %v7426_v43 }
 0xa44   : > { %v1203_v1 = vsel %vm687_vm0, %v7529_v10, %v7531_v3  ;;  %v1305_v10 = vsel %vm687_vm0, %v7456_v16, %v7535_v63  ;;  %v1356_v2 = vsel %vm687_vm0, %v10409_v50, %v10408_v60 }
 0xa45   : > { %v798_v44 = vadd.f32 %v793_v8, %v747_v61  ;;  %v1029_v9 = vadd.f32 %v1024_v40, %v978_v24  ;;  %v799_v27 = vadd.f32 %v7418_v31, %v748_v20  ;;  %v10414_v24 = vld [vmem:[#allocation32_spill] sm:$0xff] }
 0xa47   : > { %v849_v11 = vadd.f32 %v844_v51, %v798_v44  ;;  %v1080_v62 = vadd.f32 %v1075_v58, %v1029_v9  ;;  %v850_v29 = vadd.f32 %v7420_v18, %v799_v27  ;;  %v1204_v18 = vsel %vm687_vm0, %v7531_v3, %v7432_v42  ;;  %v10413_v51 = vld [vmem:[#allocation33_spill] sm:$0xff] }
 0xa48   : > { %v1395_v46 = vsel %vm512_vm7, %v10414_v24, %v10413_v51  ;;  %v10417_v58 = vld [vmem:[#allocation37_spill] sm:$0xff] }
 0xa49   : > { %v900_v0 = vadd.f32 %v895_v21, %v849_v11  ;;  %v1131_v17 = vadd.f32 %v1126_v59, %v1080_v62  ;;  %v901_v31 = vadd.f32 %v7422_v26, %v850_v29  ;;  %v10415_v21 = vld [vmem:[#allocation35_spill] sm:$0xff]  ;;  %v10420_v62 = vld [vmem:[#allocation41_spill] sm:$0xff] }
 0xa4b   : > { %v979_v37 = vadd.f32 %v974_v30, %v900_v0  ;;  %v980_v48 = vadd.f32 %v7424_v36, %v901_v31  ;;  %v1208_v19 = vadd.f32 %v1203_v1, %v1131_v17  ;;  %v10418_v30 = vld [vmem:[#allocation36_spill] sm:$0xff]  ;;  %v10421_v31 = vld [vmem:[#allocation39_spill] sm:$0xff]  ;;  %v10423_v1 = vld [vmem:[#allocation42_spill] sm:$0xff] }
 0xa4c   : > { %v1433_v9 = vsel %vm512_vm7, %v10418_v30, %v10417_v58 }
 0xa4d   : > { %v1030_v49 = vadd.f32 %v1025_v53, %v979_v37  ;;  %v1031_v15 = vadd.f32 %v7426_v43, %v980_v48  ;;  %v1306_v43 = vsel %vm687_vm0, %v7535_v63, %v7436_v55  ;;  %v1259_v3 = vadd.f32 %v1254_v35, %v1208_v19  ;;  %v10419_v53 = vld [vmem:[#allocation38_spill] sm:$0xff] }
 0xa4e   : > { %v1511_v29 = vsel %vm1510_vm9, %v10420_v62, %v10419_v53 }
 0xa4f   : > { %v1081_v22 = vadd.f32 %v1076_v23, %v1030_v49  ;;  %v1082_v36 = vadd.f32 %v7428_v54, %v1031_v15  ;;  %v1357_v54 = vsel %vm687_vm0, %v10408_v60, %v10410_v12  ;;  %v1310_v28 = vadd.f32 %v1305_v10, %v1259_v3  ;;  %v10422_v49 = vld [vmem:[#allocation43_spill] sm:$0xff]  ;;  %v10424_v15 = vld [vmem:[#allocation40_spill] sm:$0xff]  ;;  %v10427_v3 = vld [vmem:[#allocation46_spill] sm:$0xff] }
 0xa51   : > { %v1132_v26 = vadd.f32 %v1127_v34, %v1081_v22  ;;  %v1133_v25 = vadd.f32 %v7430_v41, %v1082_v36  ;;  %v1361_v57 = vadd.f32 %v1356_v2, %v1310_v28  ;;  %v10411_v41 = vld [vmem:[#allocation30_spill] sm:$0xff]  ;;  %v1562_v34 = vsel %vm1510_vm9, %v10422_v49, %v10421_v31  ;;  %v2205_v2 = vpop.permute.xlu0 %2204 }
 0xa52   : > { %v1376_v61 = vsel %vm512_vm7, %v10412_v38, %v10411_v41 }
 0xa53   : > { %v1209_v56 = vadd.f32 %v1204_v18, %v1132_v26  ;;  %v1210_v14 = vadd.f32 %v7432_v42, %v1133_v25  ;;  %v1380_v33 = vadd.f32 %v10412_v38, %v1361_v57  ;;  %v1512_v18 = vsel %vm1510_vm9, %v10419_v53, %v10423_v1  ;;  %v10425_v26 = vld [vmem:[#allocation45_spill] sm:$0xff]  ;;  %v10428_v25 = vld [vmem:[#allocation48_spill] sm:$0xff] }
 0xa54   : > { %v1613_v35 = vsel %vm1510_vm9, %v10425_v26, %v10424_v15 }
 0xa55   : > { %v1260_v52 = vadd.f32 %v1255_v45, %v1209_v56  ;;  %v1261_v47 = vadd.f32 %v7434_v13, %v1210_v14  ;;  %v1399_v40 = vadd.f32 %v10414_v24, %v1380_v33  ;;  %v10416_v13 = vld [vmem:[#allocation34_spill] sm:$0xff]  ;;  %v10426_v56 = vld [vmem:[#allocation44_spill] sm:$0xff]  ;;  %v10430_v14 = vld [vmem:[#allocation51_spill] sm:$0xff] }
 0xa56   : > { %v1414_v20 = vsel %vm512_vm7, %v10416_v13, %v10415_v21  ;;  %v1563_v10 = vsel %vm1510_vm9, %v10421_v31, %v10426_v56  ;;  %v10434_v33 = vld [vmem:[#allocation55_spill] sm:$0xff] }
 0xa57   : > { %v1311_v16 = vadd.f32 %v1306_v43, %v1260_v52  ;;  %v1312_v8 = vadd.f32 %v7436_v55, %v1261_v47  ;;  %v1418_v11 = vadd.f32 %v10416_v13, %v1399_v40  ;;  %v1664_v52 = vsel %vm1510_vm9, %v10428_v25, %v10427_v3  ;;  %v10436_v13 = vld [vmem:[#allocation53_spill] sm:$0xff]  ;;  %v10442_v31 = vld [vmem:[#allocation63_spill] sm:$0xff] }
 0xa59   : > { %v1362_v63 = vadd.f32 %v1357_v54, %v1311_v16  ;;  %v1363_v44 = vadd.f32 %v10410_v12, %v1312_v8  ;;  %v1437_v59 = vadd.f32 %v10418_v30, %v1418_v11  ;;  %v10429_v12 = vld [vmem:[#allocation47_spill] sm:$0xff]  ;;  %v10431_v16 = vld [vmem:[#allocation50_spill] sm:$0xff]  ;;  %v10432_v8 = vld [vmem:[#allocation49_spill] sm:$0xff] }
 0xa5a   : > { %v1614_v54 = vsel %vm1510_vm9, %v10424_v15, %v10429_v12  ;;  %v1743_v57 = vsel %vm1742_vm10, %v10431_v16, %v10430_v14  ;;  %v10438_v30 = vld [vmem:[#allocation56_spill] sm:$0xff] }
 0xa5b   : > { %v1381_v42 = vadd.f32 %v1376_v61, %v1362_v63  ;;  %v1382_v27 = vadd.f32 %v10411_v41, %v1363_v44  ;;  %v1516_v17 = vadd.f32 %v10420_v62, %v1437_v59  ;;  %v1665_v41 = vsel %vm1510_vm9, %v10427_v3, %v10432_v8  ;;  %v10433_v61 = vld [vmem:[#allocation52_spill] sm:$0xff]  ;;  %v2253_v44 = vpop.permute.xlu0 %2252 }
 0xa5c   : > { %v10440_v59 = vld [vmem:[#allocation60_spill] sm:$0xff] }
 0xa5d   : > { %v1400_v55 = vadd.f32 %v1395_v46, %v1381_v42  ;;  %v1401_v37 = vadd.f32 %v10413_v51, %v1382_v27  ;;  %v1567_v19 = vadd.f32 %v10422_v49, %v1516_v17  ;;  %v1794_v51 = vsel %vm1742_vm10, %v10434_v33, %v10433_v61  ;;  %v10435_v42 = vld [vmem:[#allocation54_spill] sm:$0xff] }
 0xa5e   : > { %v1744_v40 = vsel %vm1742_vm10, %v10430_v14, %v10435_v42  ;;  %v10443_v49 = vld [vmem:[#allocation62_spill] sm:$0xff] }
 0xa5f   : > { %v1419_v0 = vadd.f32 %v1414_v20, %v1400_v55  ;;  %v1420_v48 = vadd.f32 %v10415_v21, %v1401_v37  ;;  %v1618_v43 = vadd.f32 %v10425_v26, %v1567_v19  ;;  %v10437_v20 = vld [vmem:[#allocation57_spill] sm:$0xff]  ;;  %v10441_v37 = vld [vmem:[#allocation59_spill] sm:$0xff]  ;;  %v2257_v1 = vpop.permute.xlu0 %2256  ;;  %v10445_v26 = vld [vmem:[#allocation64_spill] sm:$0xff] }
 0xa60   : > { %v1845_v55 = vsel %vm1742_vm10, %v10437_v20, %v10436_v13 }
 0xa61   : > { %v1438_v23 = vadd.f32 %v1433_v9, %v1419_v0  ;;  %v1439_v45 = vadd.f32 %v10417_v58, %v1420_v48  ;;  %v1669_v28 = vadd.f32 %v10428_v25, %v1618_v43  ;;  %v1795_v9 = vsel %vm1742_vm10, %v10433_v61, %v10438_v30  ;;  %v10439_v0 = vld [vmem:[#allocation58_spill] sm:$0xff]  ;;  %v10448_v25 = vld [vmem:[#allocation65_spill] sm:$0xff] }
 0xa62   : > { %v1896_v53 = vsel %vm1742_vm10, %v10440_v59, %v10439_v0 }
 0xa63   : > { %v1517_v22 = vadd.f32 %v1511_v29, %v1438_v23  ;;  %v1518_v60 = vadd.f32 %v1512_v18, %v1439_v45  ;;  %v1748_v38 = vadd.f32 %v10431_v16, %v1669_v28  ;;  %v1846_v23 = vsel %vm1742_vm10, %v10436_v13, %v10441_v37  ;;  %v10444_v18 = vld [vmem:[#allocation61_spill] sm:$0xff]  ;;  %v10450_v28 = vld [vmem:[#allocation68_spill] sm:$0xff] }
 0xa64   : > { %v1897_v19 = vsel %vm1742_vm10, %v10439_v0, %v10444_v18  ;;  %v2027_v14 = vsel %vm1974_vm11, %v10445_v26, %v10450_v28 }
 0xa65   : > { %v1568_v36 = vadd.f32 %v1562_v34, %v1517_v22  ;;  %v1569_v47 = vadd.f32 %v1563_v10, %v1518_v60  ;;  %v1799_v21 = vadd.f32 %v10434_v33, %v1748_v38  ;;  %v1975_v34 = vsel %vm1974_vm11, %v10443_v49, %v10442_v31  ;;  %v10447_v10 = vld [vmem:[#allocation66_spill] sm:$0xff]  ;;  %v10453_v38 = vld [vmem:[#allocation71_spill] sm:$0xff] }
 0xa66   : > { %v1976_v43 = vsel %vm1974_vm11, %v10442_v31, %v10447_v10  ;;  %v2078_v61 = vsel %vm1974_vm11, %v10448_v25, %v10453_v38 }
 0xa67   : > { %v1619_v50 = vadd.f32 %v1613_v35, %v1568_v36  ;;  %v1620_v24 = vadd.f32 %v1614_v54, %v1569_v47  ;;  %v1850_v27 = vadd.f32 %v10437_v20, %v1799_v21  ;;  %v10446_v35 = vld [vmem:[#allocation67_spill] sm:$0xff]  ;;  %v2304_v54 = vpop.permute.xlu0 %2303  ;;  %v10452_v47 = vld [vmem:[#allocation72_spill] sm:$0xff]  ;;  %v10456_v21 = vld [vmem:[#allocation73_spill] sm:$0xff] }
 0xa68   : > { %v2026_v45 = vsel %vm1974_vm11, %v10446_v35, %v10445_v26 }
 0xa69   : > { %v1670_v63 = vadd.f32 %v1664_v52, %v1619_v50  ;;  %v1671_v11 = vadd.f32 %v1665_v41, %v1620_v24  ;;  %v1901_v17 = vadd.f32 %v10440_v59, %v1850_v27  ;;  %v10449_v52 = vld [vmem:[#allocation69_spill] sm:$0xff]  ;;  %v10455_v24 = vld [vmem:[#allocation74_spill] sm:$0xff] }
 0xa6a   : > { %v2077_v60 = vsel %vm1974_vm11, %v10449_v52, %v10448_v25  ;;  %v10458_v59 = vld [vmem:[#allocation77_spill] sm:$0xff] }
 0xa6b   : > { %v1749_v46 = vadd.f32 %v1743_v57, %v1670_v63  ;;  %v1750_v62 = vadd.f32 %v1744_v40, %v1671_v11  ;;  %v1980_v15 = vadd.f32 %v10443_v49, %v1901_v17  ;;  %v10451_v57 = vld [vmem:[#allocation70_spill] sm:$0xff] }
 0xa6c   : > { %v2128_v63 = vsel %vm1974_vm11, %v10452_v47, %v10451_v57  ;;  %v2129_v13 = vsel %vm1974_vm11, %v10451_v57, %v10456_v21 }
 0xa6d   : > { %v1800_v58 = vadd.f32 %v1794_v51, %v1749_v46  ;;  %v1801_v48 = vadd.f32 %v1795_v9, %v1750_v62  ;;  %v2031_v3 = vadd.f32 %v10446_v35, %v1980_v15  ;;  %v10454_v51 = vld [vmem:[#allocation75_spill] sm:$0xff]  ;;  %v2308_v9 = vpop.permute.xlu0 %2307 }
 0xa6e   : > { %v2207_v46 = vsel %vm2206_vm12, %v10455_v24, %v10454_v51  ;;  %v2208_v27 = vsel %vm2206_vm12, %v10454_v51, %v2205_v2 }
 0xa6f   : > { %v1851_v29 = vadd.f32 %v1845_v55, %v1800_v58  ;;  %v1852_v36 = vadd.f32 %v1846_v23, %v1801_v48  ;;  %v2082_v16 = vadd.f32 %v10449_v52, %v2031_v3  ;;  %v10457_v55 = vld [vmem:[#allocation76_spill] sm:$0xff]  ;;  %v2310_v48 = vsel %vm2206_vm12, %v10458_v59, %v2308_v9 }
 0xa70   : > { %v2258_v11 = vsel %vm2206_vm12, %v2253_v44, %v10457_v55  ;;  %v2259_v37 = vsel %vm2206_vm12, %v10457_v55, %v2257_v1 }
 0xa71   : > { %v1902_v22 = vadd.f32 %v1896_v53, %v1851_v29  ;;  %v1903_v50 = vadd.f32 %v1897_v19, %v1852_v36  ;;  %v2133_v33 = vadd.f32 %v10452_v47, %v2082_v16  ;;  %v2309_v53 = vsel %vm2206_vm12, %v2304_v54, %v10458_v59  ;;  %v2535_v59 = vld [vmem:[#allocation3] ss:$8 sm:$0x3] }
 0xa73   : > { %v1981_v56 = vadd.f32 %v1975_v34, %v1902_v22  ;;  %v1982_v8 = vadd.f32 %v1976_v43, %v1903_v50  ;;  %v2212_v20 = vadd.f32 %v10455_v24, %v2133_v33  ;;  %v10467_v24 = vld [vmem:[#allocation78_spill] sm:$0xff] }
 0xa75   : > { %v2032_v12 = vadd.f32 %v2026_v45, %v1981_v56  ;;  %v2033_v42 = vadd.f32 %v2027_v14, %v1982_v8  ;;  %v2263_v0 = vadd.f32 %v2253_v44, %v2212_v20 }
 0xa77   : > { %v2083_v41 = vadd.f32 %v2077_v60, %v2032_v12  ;;  %v2084_v58 = vadd.f32 %v2078_v61, %v2033_v42  ;;  %v2314_v23 = vadd.f32 %v2304_v54, %v2263_v0 }
 0xa79   : > { %v2134_v40 = vadd.f32 %v2128_v63, %v2083_v41  ;;  %v2135_v62 = vadd.f32 %v2129_v13, %v2084_v58 }
 0xa7b   : > { %v2213_v30 = vadd.f32 %v2207_v46, %v2134_v40  ;;  %v2214_v17 = vadd.f32 %v2208_v27, %v2135_v62  ;;  %v10469_v40 = vmov 0   ;;  %v2540_v62 = vrot.slane %v2535_v59, %v7090_v6 }
 0xa7d   : > { %v2264_v29 = vadd.f32 %v2258_v11, %v2213_v30  ;;  %v2265_v44 = vadd.f32 %v2259_v37, %v2214_v17  ;;  %v2527_v37 = vld [vmem:[%s10101_s5] sm:$0xf] }
 0xa7f   : > { %v2315_v31 = vadd.f32 %v2309_v53, %v2264_v29  ;;  %v2316_v15 = vadd.f32 %v2310_v48, %v2265_v44  ;;  %v2544_v29 = vrot.slane %v2535_v59, %v7093_v7  ;;  %v10477_v44 = vmov 27  }
 0xa81   : > { %v2545_v17 = vcombine.low %v2540_v62, %v2544_v29 }
 0xa97   : > { %v2357_v49 = vpop.permute.xlu1 %2356  ;;  %v2355_v34 = vpop.permute.xlu0 %2354 }
 0xa98   : > { %v2360_v22 = vsel %vm2206_vm12, %v2355_v34, %v2357_v49  ;;  %v2365_v2 = vadd.f32 %v2355_v34, %v2314_v23  ;;  %v2708_v23 = vld [vmem:[#allocation3 + $0x1] ss:$8 sm:$0x3]  ;;  %v2554_v34 = vld [vmem:[%s10100_s4] sm:$0xf] }
 0xa99   : > { %v2366_v18 = vadd.f32 %v2360_v22, %v2315_v31  ;;  %v2713_v31 = vrot.slane %v2708_v23, %v7090_v6  ;;  %v10476_v22 = vmov 18  }
 0xa9a   : > { %v2368_v19 = vmul.f32 0.2, %v2365_v2 }
 0xa9b   : > { %v2369_v26 = vmul.f32 0.2, %v2366_v18  ;;  %v2359_v35 = vpop.permute.xlu0 %2358 }
 0xa9c   : > { %v2371_v45 = vmax.f32 %v2365_v2, %v2368_v19  ;;  %v2361_v1 = vsel %vm2206_vm12, %v2357_v49, %v2359_v35  ;;  %v2717_v49 = vrot.slane %v2708_v23, %v7093_v7  ;;  %v2956_v2 = vld [vmem:[%s10100_s4] sm:$0xf]  ;;  %v10480_v35 = vmov 13  }
 0xa9d   : > { %v2372_v36 = vmax.f32 %v2366_v18, %v2369_v26  ;;  %v2367_v56 = vadd.f32 %v2361_v1, %v2316_v15  ;;  %v2727_v18 = vld [vmem:[%s10100_s4] sm:$0xf]  ;;  %v10478_v15 = vmov 3   ;;  %v10479_v26 = vmov 1  }
 0xa9e   : > { %v8140_v47 = vrot.slane %v2371_v45, %v7090_v6  ;;  %v8150_v61 = vrot.slane %v2371_v45, %v7093_v7  ;;  %v8156_v51 = vrot.slane %v2371_v45, %v7224_v4  ;;  %v8178_v58 = vrot.slane %v2371_v45, %v7242_v39  ;;  %v8214_v19 = vld [vmem:[%s10100_s4] sm:$0xf]  ;;  %v2937_v1 = vld [vmem:[#allocation3 + $0x2] ss:$8 sm:$0x3] }
 0xa9f   : > { %v2370_v10 = vmul.f32 0.2, %v2367_v56  ;;  %v2515_v43 = vcombine.low %v2371_v45, %v2372_v36  ;;  %v8122_v25 = vrot.slane %v2372_v36, %v7090_v6  ;;  %v8132_v54 = vrot.slane %v2372_v36, %v7093_v7 }
 0xaa0   : > { %10463 = vst [vmem:[#allocation21_spill] sm:$0xff] %v8140_v47  ;;  %v8145_v63 = vrot.slane %v2372_v36, %v7224_v4  ;;  %10465 = vst [vmem:[#allocation32_spill] sm:$0xff] %v8150_v61  ;;  %v8175_v11 = vrot.slane %v2372_v36, %v7242_v39  ;;  %v2718_v48 = vcombine.low %v2713_v31, %v2717_v49  ;;  %v10481_v45 = vmov 10  }
 0xaa1   : > { %v2373_v3 = vmax.f32 %v2367_v56, %v2370_v10  ;;  %10459 = vst [vmem:[#allocation31_spill] sm:$0xff] %v8122_v25  ;;  %10461 = vst [vmem:[#allocation22_spill] sm:$0xff] %v8132_v54  ;;  %v10482_v36 = vmov 19   ;;  %v2942_v56 = vrot.slane %v2937_v1, %v7090_v6  ;;  %v2946_v10 = vrot.slane %v2937_v1, %v7093_v7 }
 0xaa2   : > { %10464 = vst [vmem:[#allocation33_spill] sm:$0xff] %v8145_v63  ;;  %10466 = vst [vmem:[#allocation35_spill] sm:$0xff] %v8156_v51 }
 0xaa3   : > { %v8125_v52 = vrot.slane %v2373_v3, %v7090_v6  ;;  %v8135_v28 = vrot.slane %v2373_v3, %v7093_v7  ;;  %v8162_v42 = vrot.slane %v2373_v3, %v7224_v4  ;;  %10473 = vst [vmem:[#allocation41_spill] sm:$0xff] %v8175_v11  ;;  %10474 = vst [vmem:[#allocation39_spill] sm:$0xff] %v8178_v58 }
 0xaa4   : > { %v2378_v60 = vpop.permute.xlu1 %2377  ;;  %v8183_v0 = vrot.slane %v2373_v3, %v7242_v39 }
 0xaa5   : > { %10460 = vst [vmem:[#allocation23_spill] sm:$0xff] %v8125_v52  ;;  %v2393_v50 = vmul.f32 %v8122_v25, %v2378_v60  ;;  %v2394_v12 = vmul.f32 %v8125_v52, %v2378_v60  ;;  %10462 = vst [vmem:[#allocation30_spill] sm:$0xff] %v8135_v28  ;;  %v2392_v8 = vmul.f32 %v8140_v47, %v2378_v60  ;;  %v10484_v60 = vmov 11  }
 0xaa6   : > { %10468 = vst [vmem:[#allocation34_spill] sm:$0xff] %v8162_v42  ;;  %10475 = vst [vmem:[#allocation43_spill] sm:$0xff] %v8183_v0 }
 0xaa7   : > { %2402 = vrot.lane.b32.xlu0 %v2394_v12, %s10247_s26  ;;  %2400 = vrot.lane.b32.xlu1 %v2393_v50, %s10247_s26  ;;  %v3166_v50 = vld [vmem:[#allocation3 + $0x3] ss:$8 sm:$0x3]  ;;  %v10485_v12 = vmov 20  }
 0xaa9   : > { %v2412_v14 = vpop.permute.xlu1 %2411 }
 0xaaa   : > { %v2427_v16 = vmul.f32 %v8132_v54, %v2412_v14  ;;  %v2428_v57 = vmul.f32 %v8135_v28, %v2412_v14  ;;  %v2426_v33 = vmul.f32 %v8150_v61, %v2412_v14  ;;  %v3171_v14 = vrot.slane %v3166_v50, %v7090_v6 }
 0xaac   : > { %2436 = vrot.lane.b32.xlu0 %v2428_v57, %s10247_s26  ;;  %2434 = vrot.lane.b32.xlu1 %v2427_v16, %s10247_s26  ;;  %v3175_v16 = vrot.slane %v3166_v50, %v7093_v7  ;;  %v10486_v57 = vmov 29  }
 0xaae   : > { %v2446_v41 = vpop.permute.xlu1 %2445 }
 0xaaf   : > { %v2461_v38 = vmul.f32 %v8145_v63, %v2446_v41  ;;  %v2460_v46 = vmul.f32 %v8156_v51, %v2446_v41  ;;  %v2462_v21 = vmul.f32 %v8162_v42, %v2446_v41  ;;  %v10487_v41 = vmov 12   ;;  %v3434_v63 = vld [vmem:[#allocation2 + $0xc] sm:$0xf] }
 0xab0   : > { %2398 = vrot.lane.b32.xlu0 %v2392_v8, %s10247_s26  ;;  %v3176_v8 = vcombine.low %v3171_v14, %v3175_v16 }
 0xab1   : > { %2468 = vrot.lane.b32.xlu1 %v2461_v38, %s10247_s26  ;;  %v10488_v38 = vmov 21  }
 0xab4   : > { %2432 = vrot.lane.b32.xlu0 %v2426_v33, %s10247_s26  ;;  %v10489_v33 = vmov 30  }
 0xab5   : > { %2479 = vperm.xlu1 %6724, %v10467_v24  }
 0xab8   : > { %2466 = vrot.lane.b32.xlu0 %v2460_v46, %s10247_s26  ;;  %v10491_v46 = vmov 4  }
 0xab9   : > { %6725 = vset.pattern.permute.xlu1 %v10469_v40 }
 0xabc   : > { %2470 = vrot.lane.b32.xlu0 %v2462_v21, %s10247_s26 }
 0xb19   : > { %v8168_v13 = vpop.permute.xlu1 %2400  ;;  %v8238_v24 = vpop.permute.xlu0 %2402 }
 0xb1a   : > { %10470 = vst [vmem:[#allocation37_spill] sm:$0xff] %v8168_v13  ;;  %10490 = vst [vmem:[#allocation42_spill] sm:$0xff] %v8238_v24 }
 0xb1e   : > { %v8170_v20 = vpop.permute.xlu1 %2434  ;;  %v8241_v21 = vpop.permute.xlu0 %2436 }
 0xb1f   : > { %10471 = vst [vmem:[#allocation36_spill] sm:$0xff] %v8170_v20  ;;  %10492 = vst [vmem:[#allocation40_spill] sm:$0xff] %v8241_v21 }
 0xb23   : > { %v8172_v55 = vpop.permute.xlu1 %2468 }
 0xb24   : > { %10472 = vst [vmem:[#allocation38_spill] sm:$0xff] %v8172_v55 }
 0xb30   : > { %v2480_v30 = vpop.permute.xlu1 %2479 }
 0xb31   : > { %v2494_v9 = vmul.f32 %v8178_v58, %v2480_v30  ;;  %v2495_v27 = vmul.f32 %v8175_v11, %v2480_v30  ;;  %v2496_v53 = vmul.f32 %v8183_v0, %v2480_v30  ;;  %v8243_v30 = vpop.permute.xlu0 %2398 }
 0xb32   : > { %10493 = vst [vmem:[#allocation45_spill] sm:$0xff] %v8243_v30 }
 0xb33   : > { %2502 = vrot.lane.b32.xlu1 %v2495_v27, %s10247_s26  ;;  %2500 = vrot.lane.b32.xlu0 %v2494_v9, %s10247_s26 }
 0xb35   : > { %v8245_v9 = vpop.permute.xlu0 %2432 }
 0xb36   : > { %10494 = vst [vmem:[#allocation44_spill] sm:$0xff] %v8245_v9 }
 0xb37   : > { %2516 = vrot.lane.b32.xlu1 %v2515_v43, %s10247_s26  ;;  %2504 = vrot.lane.b32.xlu0 %v2496_v53, %s10247_s26  ;;  %v10483_v43 = vmov 28  }
 0xb39   : > { %v8247_v27 = vpop.permute.xlu0 %2466 }
 0xb3a   : > { %10495 = vst [vmem:[#allocation46_spill] sm:$0xff] %v8247_v27 }
 0xb3b   : > { %2530 = vperm.xlu1 %6725, %v2527_v37   ;;  %2518 = vrot.lane.b32.xlu0 %v2373_v3, %s10247_s26  ;;  %v2947_v3 = vcombine.low %v2942_v56, %v2946_v10  ;;  %s10547_s26 = smov 16  }
 0xb3d   : > { %v8249_v59 = vpop.permute.xlu0 %2470 }
 0xb3e   : > { %10496 = vst [vmem:[#allocation48_spill] sm:$0xff] %v8249_v59 }
 0xb3f   : > { %2557 = vperm.xlu1 %6725, %v2554_v34   ;;  %2546 = vrot.lane.b32.xlu0 %v2545_v17, %s10249_s21  ;;  %s10539_s21 = smov 96  }
 0xb43   : > { %6726 = vset.pattern.permute.xlu1 %v10476_v22  ;;  %2719 = vrot.lane.b32.xlu0 %v2718_v48, %s10319_s29 }
 0xb44   : > { %2633 = vperm.xlu1 %6726, %v2554_v34  }
 0xb47   : > { %2959 = vperm.xlu0 %6732, %v2956_v2  }
 0xb48   : > { %6727 = vset.pattern.permute.xlu1 %v10477_v44 }
 0xb49   : > { %2670 = vperm.xlu1 %6727, %v2554_v34  }
 0xb4b   : > { %6736 = vset.pattern.permute.xlu0 %v10478_v15 }
 0xb4c   : > { %3188 = vperm.xlu0 %6736, %v8214_v19  }
 0xb4d   : > { %6728 = vset.pattern.permute.xlu1 %v10479_v26 }
 0xb4e   : > { %2730 = vperm.xlu1 %6728, %v2727_v18  }
 0xb50   : > { %6741 = vset.pattern.permute.xlu0 %v10480_v35 }
 0xb52   : > { %6729 = vset.pattern.permute.xlu1 %v10481_v45 }
 0xb53   : > { %2783 = vperm.xlu1 %6729, %v2727_v18  }
 0xb57   : > { %6730 = vset.pattern.permute.xlu1 %v10482_v36 }
 0xb58   : > { %2834 = vperm.xlu1 %6730, %v2727_v18  }
 0xb5c   : > { %6731 = vset.pattern.permute.xlu1 %v10483_v43 }
 0xb5d   : > { %2885 = vperm.xlu1 %6731, %v2727_v18  }
 0xb61   : > { %2948 = vrot.lane.b32.xlu1 %v2947_v3, %s10298_s12  ;;  %s10575_s12 = smov 94  }
 0xb62   : > { %6733 = vset.pattern.permute.xlu1 %v10484_v60 }
 0xb65   : > { %3012 = vperm.xlu1 %6733, %v2956_v2  }
 0xb69   : > { %6734 = vset.pattern.permute.xlu1 %v10485_v12 }
 0xb6a   : > { %3063 = vperm.xlu1 %6734, %v2956_v2  }
 0xb6e   : > { %6735 = vset.pattern.permute.xlu1 %v10486_v57 }
 0xb6f   : > { %3114 = vperm.xlu1 %6735, %v2956_v2  }
 0xb73   : > { %3177 = vrot.lane.b32.xlu1 %v3176_v8, %s10296_s18 }
 0xb74   : > { %6737 = vset.pattern.permute.xlu1 %v10487_v41 }
 0xb77   : > { %3241 = vperm.xlu1 %6737, %v8214_v19  }
 0xb7b   : > { %6738 = vset.pattern.permute.xlu1 %v10488_v38 }
 0xb7c   : > { %3292 = vperm.xlu1 %6738, %v8214_v19  }
 0xb80   : > { %6739 = vset.pattern.permute.xlu1 %v10489_v33 }
 0xb81   : > { %3343 = vperm.xlu1 %6739, %v8214_v19  }
 0xb85   : > { %6740 = vset.pattern.permute.xlu1 %v10491_v46 }
 0xba5   : > { %v8251_v53 = vpop.permute.xlu1 %2502  ;;  %v8253_v62 = vpop.permute.xlu0 %2500 }
 0xba6   : > { %10497 = vst [vmem:[#allocation47_spill] sm:$0xff] %v8251_v53  ;;  %10498 = vst [vmem:[#allocation51_spill] sm:$0xff] %v8253_v62 }
 0xba9   : > { %v8255_v29 = vpop.permute.xlu0 %2504  ;;  %v2517_v37 = vpop.permute.xlu1 %2516 }
 0xbaa   : > { %10499 = vst [vmem:[#allocation50_spill] sm:$0xff] %v8255_v29  ;;  %v2520_v17 = vrot.slane %v2517_v37, 4 }
 0xbad   : > { %v2519_v23 = vpop.permute.xlu0 %2518 }
 0xbae   : > { %v2521_v31 = vrot.slane %v2519_v23, 4 }
 0xbb0   : > { %v2523_v49 = vsel %vm2522_vm13, %v2520_v17, %v2521_v31  ;;  %v10500_v17 = vld [vmem:[#allocation13_spill] sm:$0xff] }
 0xbb1   : > { %v8259_v34 = vsel %vm2153_vm6, %v2517_v37, %v2523_v49  ;;  %v8261_v48 = vpop.permute.xlu0 %2546 }
 0xbb2   : > { %2526 = vst [vmem:[#allocation2 + $0x4] sm:$0xff] %v8259_v34 }
 0xbb5   : > { %v2720_v18 = vpop.permute.xlu0 %2719 }
 0xbb6   : > { %v8264_v2 = vpop.permute.xlu1 %2530  ;;  %v2721_v1 = vrot.slane %v2720_v18, 4 }
 0xbb8   : > { %v2722_v3 = vsel %vm687_vm0, %v2721_v1, %v2720_v18  ;;  %v10501_v18 = vld [vmem:[#allocation14_spill] sm:$0xff] }
 0xbb9   : > { %v8268_v10 = vld [vmem:[#allocation2] sm:$0xff]  ;;  %v2707_v16 = vld [vmem:[#allocation2 + $0x8] sm:$0xf] }
 0xbba   : > { %v8266_v56 = vpop.permute.xlu1 %2557  ;;  %v2725_v14 = vmul.f32 %v2722_v3, %v8268_v10  ;;  %v2726_v8 = vmul.f32 %v2721_v1, %v2707_v16 }
 0xbbc   : > { %v2738_v23 = vrot.slane %v2725_v14, %v7090_v6  ;;  %v2742_v31 = vrot.slane %v2725_v14, %v10500_v17  ;;  %v2746_v49 = vrot.slane %v2726_v8, %v7090_v6  ;;  %v2793_v27 = vrot.slane %v2725_v14, %v10501_v18 }
 0xbbd   : > { %v2789_v1 = vrot.slane %v2725_v14, %v7093_v7  ;;  %v2797_v20 = vrot.slane %v2726_v8, %v7093_v7 }
 0xbbe   : > { %v2753_v62 = vrot.slane %v2738_v23, %v7090_v6  ;;  %v2757_v53 = vrot.slane %v2742_v31, %v7090_v6  ;;  %v2761_v3 = vrot.slane %v2746_v49, %v7090_v6  ;;  %v2808_v16 = vrot.slane %v2793_v27, %v7093_v7 }
 0xbbf   : > { %v8271_v50 = vpop.permute.xlu1 %2633  ;;  %v2844_v23 = vrot.slane %v2725_v14, %v7227_v5  ;;  %v2895_v49 = vrot.slane %v2725_v14, %v7245_v32  ;;  %v2812_v27 = vrot.slane %v2797_v20, %v7093_v7 }
 0xbc4   : > { %v8274_v37 = vpop.permute.xlu1 %2670 }
 0xbc9   : > { %v2731_v29 = vpop.permute.xlu1 %2730 }
 0xbca   : > { %v2762_v55 = vmul.f32 %v2753_v62, %v2731_v29  ;;  %v2763_v59 = vmul.f32 %v2757_v53, %v2731_v29  ;;  %v2764_v9 = vmul.f32 %v2761_v3, %v2731_v29  ;;  %v2804_v62 = vrot.slane %v2789_v1, %v7093_v7 }
 0xbcb   : > { %v2840_v29 = vrot.slane %v2725_v14, %v7224_v4  ;;  %v2848_v1 = vrot.slane %v2726_v8, %v7224_v4 }
 0xbcc   : > { %2770 = vrot.lane.b32.xlu1 %v2763_v59, %s10296_s18  ;;  %2768 = vrot.lane.b32.xlu0 %v2762_v55, %s10296_s18  ;;  %v2859_v55 = vrot.slane %v2844_v23, %v7224_v4 }
 0xbcd   : > { %v2863_v20 = vrot.slane %v2848_v1, %v7224_v4 }
 0xbce   : > { %v2784_v30 = vpop.permute.xlu1 %2783 }
 0xbcf   : > { %v2814_v31 = vmul.f32 %v2808_v16, %v2784_v30  ;;  %v2813_v59 = vmul.f32 %v2804_v62, %v2784_v30  ;;  %v2815_v16 = vmul.f32 %v2812_v27, %v2784_v30  ;;  %v2936_v27 = vld [vmem:[#allocation2 + $0x8] sm:$0xf] }
 0xbd0   : > { %2772 = vrot.lane.b32.xlu0 %v2764_v9, %s10296_s18  ;;  %v2910_v9 = vrot.slane %v2895_v49, %v7242_v39 }
 0xbd1   : > { %2821 = vrot.lane.b32.xlu1 %v2814_v31, %s10296_s18  ;;  %v2855_v31 = vrot.slane %v2840_v29, %v7224_v4 }
 0xbd3   : > { %v2835_v53 = vpop.permute.xlu1 %2834 }
 0xbd4   : > { %v2865_v3 = vmul.f32 %v2859_v55, %v2835_v53  ;;  %2819 = vrot.lane.b32.xlu0 %v2813_v59, %s10296_s18  ;;  %v2864_v21 = vmul.f32 %v2855_v31, %v2835_v53  ;;  %v2891_v59 = vrot.slane %v2725_v14, %v7242_v39  ;;  %v2866_v49 = vmul.f32 %v2863_v20, %v2835_v53 }
 0xbd6   : > { %2872 = vrot.lane.b32.xlu1 %v2865_v3, %s10296_s18  ;;  %v2899_v3 = vrot.slane %v2726_v8, %v7242_v39 }
 0xbd8   : > { %v2886_v23 = vpop.permute.xlu1 %2885  ;;  %2823 = vrot.lane.b32.xlu0 %v2815_v16, %s10296_s18  ;;  %v2906_v16 = vrot.slane %v2891_v59, %v7242_v39  ;;  %v2914_v31 = vrot.slane %v2899_v3, %v7242_v39 }
 0xbd9   : > { %v2916_v62 = vmul.f32 %v2910_v9, %v2886_v23 }
 0xbda   : > { %v2915_v1 = vmul.f32 %v2906_v16, %v2886_v23  ;;  %v2917_v59 = vmul.f32 %v2914_v31, %v2886_v23 }
 0xbdb   : > { %2923 = vrot.lane.b32.xlu1 %v2916_v62, %s10296_s18  ;;  %v2960_v62 = vpop.permute.xlu0 %2959 }
 0xbdc   : > { %v2949_v30 = vpop.permute.xlu1 %2948  ;;  %2870 = vrot.lane.b32.xlu0 %v2864_v21, %s10296_s18 }
 0xbdd   : > { %v2950_v55 = vrot.slane %v2949_v30, 4 }
 0xbdf   : > { %v2951_v29 = vsel %vm919_vm1, %v2950_v55, %v2949_v30  ;;  %v8308_v13 = vmul.f32 %v2950_v55, %v2936_v27 }
 0xbe0   : > { %v8312_v9 = vmul.f32 %v2951_v29, %v8268_v10  ;;  %2874 = vrot.lane.b32.xlu0 %v2866_v49, %s10296_s18  ;;  %v3013_v14 = vpop.permute.xlu1 %3012 }
 0xbe1   : > { %v2975_v8 = vrot.slane %v8308_v13, %v7090_v6  ;;  %v3026_v3 = vrot.slane %v8308_v13, %v7093_v7 }
 0xbe2   : > { %v2967_v21 = vrot.slane %v8312_v9, %v7090_v6  ;;  %v2971_v53 = vrot.slane %v8312_v9, %v10500_v17  ;;  %v3018_v30 = vrot.slane %v8312_v9, %v7093_v7  ;;  %v3022_v49 = vrot.slane %v8312_v9, %v10501_v18 }
 0xbe3   : > { %v2990_v29 = vrot.slane %v2975_v8, %v7090_v6  ;;  %v3073_v23 = vrot.slane %v8312_v9, %v7227_v5  ;;  %v3041_v8 = vrot.slane %v3026_v3, %v7093_v7 }
 0xbe4   : > { %2921 = vrot.lane.b32.xlu0 %v2915_v1, %s10296_s18  ;;  %v2982_v20 = vrot.slane %v2967_v21, %v7090_v6  ;;  %v2986_v27 = vrot.slane %v2971_v53, %v7090_v6  ;;  %v3033_v1 = vrot.slane %v3018_v30, %v7093_v7  ;;  %v3037_v21 = vrot.slane %v3022_v49, %v7093_v7 }
 0xbe5   : > { %v3064_v55 = vpop.permute.xlu1 %3063  ;;  %v2993_v24 = vmul.f32 %v2990_v29, %v2960_v62  ;;  %v3088_v35 = vrot.slane %v3073_v23, %v7224_v4 }
 0xbe6   : > { %v2991_v16 = vmul.f32 %v2982_v20, %v2960_v62  ;;  %v2992_v31 = vmul.f32 %v2986_v27, %v2960_v62  ;;  %v3042_v20 = vmul.f32 %v3033_v1, %v3013_v14  ;;  %v3124_v62 = vrot.slane %v8312_v9, %v7245_v32 }
 0xbe7   : > { %v3044_v27 = vmul.f32 %v3041_v8, %v3013_v14  ;;  %v3094_v3 = vmul.f32 %v3088_v35, %v3064_v55  ;;  %v3189_v8 = vpop.permute.xlu0 %3188 }
 0xbe8   : > { %2925 = vrot.lane.b32.xlu0 %v2917_v59, %s10296_s18  ;;  %2997 = vrot.lane.b32.xlu1 %v2991_v16, %s10293_s20  ;;  %v3043_v59 = vmul.f32 %v3037_v21, %v3013_v14  ;;  %v3069_v16 = vrot.slane %v8312_v9, %v7224_v4  ;;  %v3139_v21 = vrot.slane %v3124_v62, %v7242_v39  ;;  %s10652_s18 = smov 111  }
 0xbea   : > { %v3115_v53 = vpop.permute.xlu1 %3114  ;;  %v3084_v29 = vrot.slane %v3069_v16, %v7224_v4 }
 0xbec   : > { %3001 = vrot.lane.b32.xlu0 %v2993_v24, %s10293_s20  ;;  %2999 = vrot.lane.b32.xlu1 %v2992_v31, %s10293_s20  ;;  %v3077_v24 = vrot.slane %v8308_v13, %v7224_v4 }
 0xbee   : > { %v3178_v46 = vpop.permute.xlu1 %3177  ;;  %v3092_v31 = vrot.slane %v3077_v24, %v7224_v4 }
 0xbef   : > { %v3179_v30 = vrot.slane %v3178_v46, 4 }
 0xbf0   : > { %3048 = vrot.lane.b32.xlu0 %v3042_v20, %s10293_s20  ;;  %3050 = vrot.lane.b32.xlu1 %v3043_v59, %s10293_s20  ;;  %v3093_v20 = vmul.f32 %v3084_v29, %v3064_v55  ;;  %v3165_v59 = vld [vmem:[#allocation2 + $0x8] sm:$0xf]  ;;  %v3095_v16 = vmul.f32 %v3092_v31, %v3064_v55  ;;  %v3128_v29 = vrot.slane %v8308_v13, %v7242_v39 }
 0xbf1   : > { %v3180_v49 = vsel %vm740_vm2, %v3179_v30, %v3178_v46  ;;  %v3145_v46 = vmul.f32 %v3139_v21, %v3115_v53  ;;  %v3184_v62 = vmul.f32 %v3179_v30, %v3165_v59 }
 0xbf2   : > { %v8353_v23 = vmul.f32 %v3180_v49, %v8268_v10  ;;  %v3120_v10 = vrot.slane %v8312_v9, %v7242_v39  ;;  %v3242_v9 = vpop.permute.xlu1 %3241 }
 0xbf3   : > { %v3204_v55 = vrot.slane %v3184_v62, %v7090_v6 }
 0xbf4   : > { %3052 = vrot.lane.b32.xlu0 %v3044_v27, %s10293_s20  ;;  %3101 = vrot.lane.b32.xlu1 %v3094_v3, %s10293_s20  ;;  %v3196_v1 = vrot.slane %v8353_v23, %v7090_v6  ;;  %v3200_v14 = vrot.slane %v8353_v23, %v10500_v17  ;;  %v3251_v24 = vrot.slane %v8353_v23, %v10501_v18 }
 0xbf5   : > { %v3135_v3 = vrot.slane %v3120_v10, %v7242_v39  ;;  %v3302_v31 = vrot.slane %v8353_v23, %v7227_v5 }
 0xbf6   : > { %v3211_v35 = vrot.slane %v3196_v1, %v7090_v6  ;;  %v3215_v49 = vrot.slane %v3200_v14, %v7090_v6  ;;  %v3266_v30 = vrot.slane %v3251_v24, %v7093_v7  ;;  %v3219_v14 = vrot.slane %v3204_v55, %v7090_v6 }
 0xbf7   : > { %v3144_v1 = vmul.f32 %v3135_v3, %v3115_v53  ;;  %v3317_v59 = vrot.slane %v3302_v31, %v7224_v4  ;;  %v3255_v24 = vrot.slane %v3184_v62, %v7093_v7  ;;  %v3306_v31 = vrot.slane %v3184_v62, %v7224_v4 }
 0xbf8   : > { %3099 = vrot.lane.b32.xlu0 %v3093_v20, %s10293_s20  ;;  %3152 = vrot.lane.b32.xlu1 %v3145_v46, %s10293_s20  ;;  %v3220_v27 = vmul.f32 %v3211_v35, %v3189_v8  ;;  %v3221_v21 = vmul.f32 %v3215_v49, %v3189_v8  ;;  %v3143_v20 = vrot.slane %v3128_v29, %v7242_v39  ;;  %v3293_v35 = vpop.permute.xlu1 %3292 }
 0xbf9   : > { %v3247_v46 = vrot.slane %v8353_v23, %v7093_v7  ;;  %v3272_v10 = vmul.f32 %v3266_v30, %v3242_v9  ;;  %v3222_v49 = vmul.f32 %v3219_v14, %v3189_v8  ;;  %v3298_v30 = vrot.slane %v8353_v23, %v7224_v4 }
 0xbfa   : > { %v3146_v13 = vmul.f32 %v3143_v20, %v3115_v53  ;;  %v3349_v14 = vrot.slane %v8353_v23, %v7242_v39 }
 0xbfb   : > { %v3262_v53 = vrot.slane %v3247_v46, %v7093_v7  ;;  %v3313_v20 = vrot.slane %v3298_v30, %v7224_v4  ;;  %v10505_v30 = vmov 14  }
 0xbfc   : > { %3103 = vrot.lane.b32.xlu0 %v3095_v16, %s10293_s20  ;;  %3226 = vrot.lane.b32.xlu1 %v3220_v27, %s10319_s29  ;;  %v3353_v16 = vrot.slane %v8353_v23, %v7245_v32  ;;  %v3323_v27 = vmul.f32 %v3317_v59, %v3293_v35  ;;  %v3344_v29 = vpop.permute.xlu1 %3343 }
 0xbfd   : > { %v3271_v55 = vmul.f32 %v3262_v53, %v3242_v9  ;;  %v3322_v46 = vmul.f32 %v3313_v20, %v3293_v35  ;;  %v10503_v53 = vmov 31  }
 0xbfe   : > { %v3368_v3 = vrot.slane %v3353_v16, %v7242_v39  ;;  %v3364_v16 = vrot.slane %v3349_v14, %v7242_v39 }
 0xc00   : > { %3150 = vrot.lane.b32.xlu0 %v3144_v1, %s10293_s20  ;;  %3228 = vrot.lane.b32.xlu1 %v3221_v21, %s10319_s29  ;;  %v3270_v1 = vrot.slane %v3255_v24, %v7093_v7  ;;  %v3374_v21 = vmul.f32 %v3368_v3, %v3344_v29  ;;  %v3373_v24 = vmul.f32 %v3364_v16, %v3344_v29 }
 0xc02   : > { %v3273_v8 = vmul.f32 %v3270_v1, %v3242_v9  ;;  %v3357_v9 = vrot.slane %v3184_v62, %v7242_v39 }
 0xc04   : > { %3154 = vrot.lane.b32.xlu0 %v3146_v13, %s10293_s20  ;;  %3279 = vrot.lane.b32.xlu1 %v3272_v10, %s10319_s29  ;;  %v3321_v13 = vrot.slane %v3306_v31, %v7224_v4  ;;  %v10502_v10 = vmov 22   ;;  %v3372_v23 = vrot.slane %v3357_v9, %v7242_v39  ;;  %s10654_s20 = smov 112  }
 0xc06   : > { %v3324_v59 = vmul.f32 %v3321_v13, %v3293_v35  ;;  %v8421_v35 = vld [vmem:[%s10100_s4] sm:$0xf]  ;;  %v3375_v62 = vmul.f32 %v3372_v23, %v3344_v29 }
 0xc08   : > { %3230 = vrot.lane.b32.xlu0 %v3222_v49, %s10319_s29  ;;  %3330 = vrot.lane.b32.xlu1 %v3323_v27, %s10319_s29  ;;  %v3435_v49 = vld [vmem:[#allocation3 + $0x5] ss:$8 sm:$0x3]  ;;  %v10504_v27 = vmov 5  }
 0xc09   : > { %v3440_v3 = vrot.slane %v3435_v49, %v7090_v6  ;;  %v3444_v1 = vrot.slane %v3435_v49, %v7093_v7 }
 0xc0c   : > { %3277 = vrot.lane.b32.xlu0 %v3271_v55, %s10319_s29  ;;  %3381 = vrot.lane.b32.xlu1 %v3374_v21, %s10319_s29  ;;  %v3445_v55 = vcombine.low %v3440_v3, %v3444_v1  ;;  %v10506_v21 = vmov 6  }
 0xc10   : > { %3281 = vrot.lane.b32.xlu0 %v3273_v8, %s10319_s29  ;;  %3394 = vperm.xlu1 %6740, %v8214_v19  }
 0xc14   : > { %3328 = vrot.lane.b32.xlu0 %v3322_v46, %s10319_s29  ;;  %6742 = vset.pattern.permute.xlu1 %v10502_v10 }
 0xc15   : > { %3414 = vperm.xlu1 %6742, %v8214_v19  }
 0xc18   : > { %3332 = vrot.lane.b32.xlu0 %v3324_v59, %s10319_s29 }
 0xc19   : > { %6743 = vset.pattern.permute.xlu1 %v10503_v53 }
 0xc1a   : > { %3424 = vperm.xlu1 %6743, %v8214_v19  }
 0xc1c   : > { %3379 = vrot.lane.b32.xlu0 %v3373_v24, %s10319_s29 }
 0xc1e   : > { %6744 = vset.pattern.permute.xlu1 %v10504_v27 }
 0xc1f   : > { %3457 = vperm.xlu1 %6744, %v8421_v35  }
 0xc20   : > { %3383 = vrot.lane.b32.xlu0 %v3375_v62, %s10319_s29 }
 0xc23   : > { %6745 = vset.pattern.permute.xlu1 %v10505_v30 }
 0xc24   : > { %3404 = vperm.xlu0 %6741, %v8214_v19  }
 0xc28   : > { %3446 = vrot.lane.b32.xlu0 %v3445_v55, %s10295_s25 }
 0xc29   : > { %6748 = vset.pattern.permute.xlu0 %v10506_v21 }
 0xc3e   : > { %v8432_v29 = vpop.permute.xlu0 %2768  ;;  %v8438_v20 = vpop.permute.xlu1 %2770 }
 0xc42   : > { %v8434_v8 = vpop.permute.xlu0 %2772 }
 0xc43   : > { %v8444_v19 = vpop.permute.xlu1 %2821 }
 0xc46   : > { %v8436_v31 = vpop.permute.xlu0 %2819 }
 0xc48   : > { %v8448_v59 = vpop.permute.xlu1 %2872 }
 0xc4a   : > { %v8440_v13 = vpop.permute.xlu0 %2823 }
 0xc4d   : > { %v8454_v24 = vpop.permute.xlu1 %2923 }
 0xc4e   : > { %v8442_v46 = vpop.permute.xlu0 %2870 }
 0xc52   : > { %v8446_v14 = vpop.permute.xlu0 %2874 }
 0xc56   : > { %v8450_v9 = vpop.permute.xlu0 %2921 }
 0xc5a   : > { %v8452_v16 = vpop.permute.xlu0 %2925  ;;  %v8458_v49 = vpop.permute.xlu1 %2997 }
 0xc5e   : > { %v8456_v23 = vpop.permute.xlu0 %3001  ;;  %v8462_v3 = vpop.permute.xlu1 %2999 }
 0xc62   : > { %v8460_v62 = vpop.permute.xlu0 %3048  ;;  %v8468_v53 = vpop.permute.xlu1 %3050 }
 0xc66   : > { %v8464_v1 = vpop.permute.xlu0 %3052  ;;  %v8472_v21 = vpop.permute.xlu1 %3101 }
 0xc6a   : > { %v8466_v55 = vpop.permute.xlu0 %3099  ;;  %v8478_v41 = vpop.permute.xlu1 %3152 }
 0xc6e   : > { %v8470_v10 = vpop.permute.xlu0 %3103  ;;  %v8482_v30 = vpop.permute.xlu1 %3226 }
 0xc72   : > { %v8474_v27 = vpop.permute.xlu0 %3150  ;;  %v8488_v15 = vpop.permute.xlu1 %3228 }
 0xc76   : > { %v8476_v33 = vpop.permute.xlu0 %3154  ;;  %v8492_v36 = vpop.permute.xlu1 %3279 }
 0xc77   : > { %10511 = vst [vmem:[#allocation53_spill] sm:$0xff] %v8492_v36 }
 0xc7a   : > { %v8480_v57 = vpop.permute.xlu0 %3230  ;;  %v8496_v44 = vpop.permute.xlu1 %3330 }
 0xc7b   : > { %10507 = vst [vmem:[#allocation49_spill] sm:$0xff] %v8480_v57  ;;  %10513 = vst [vmem:[#allocation56_spill] sm:$0xff] %v8496_v44 }
 0xc7e   : > { %v8484_v12 = vpop.permute.xlu0 %3277  ;;  %v8500_v0 = vpop.permute.xlu1 %3381 }
 0xc7f   : > { %10508 = vst [vmem:[#allocation52_spill] sm:$0xff] %v8484_v12  ;;  %10515 = vst [vmem:[#allocation60_spill] sm:$0xff] %v8500_v0 }
 0xc82   : > { %v8486_v38 = vpop.permute.xlu0 %3281 }
 0xc83   : > { %10509 = vst [vmem:[#allocation55_spill] sm:$0xff] %v8486_v38 }
 0xc86   : > { %v8490_v43 = vpop.permute.xlu0 %3328 }
 0xc87   : > { %10510 = vst [vmem:[#allocation54_spill] sm:$0xff] %v8490_v43 }
 0xc8a   : > { %v8494_v26 = vpop.permute.xlu0 %3332 }
 0xc8b   : > { %10512 = vst [vmem:[#allocation57_spill] sm:$0xff] %v8494_v26  ;;  %v8502_v11 = vpop.permute.xlu1 %3394 }
 0xc8c   : > { %10516 = vst [vmem:[#allocation59_spill] sm:$0xff] %v8502_v11 }
 0xc8e   : > { %v8498_v22 = vpop.permute.xlu0 %3379 }
 0xc8f   : > { %10514 = vst [vmem:[#allocation58_spill] sm:$0xff] %v8498_v22 }
 0xc90   : > { %v8508_v28 = vpop.permute.xlu1 %3414 }
 0xc91   : > { %10519 = vst [vmem:[#allocation61_spill] sm:$0xff] %v8508_v28 }
 0xc92   : > { %v8504_v42 = vpop.permute.xlu0 %3383 }
 0xc93   : > { %10517 = vst [vmem:[#allocation63_spill] sm:$0xff] %v8504_v42 }
 0xc95   : > { %v8510_v52 = vpop.permute.xlu1 %3424 }
 0xc96   : > { %10520 = vst [vmem:[#allocation64_spill] sm:$0xff] %v8510_v52 }
 0xc9a   : > { %v3458_v0 = vpop.permute.xlu1 %3457 }
 0xc9f   : > { %v8506_v58 = vpop.permute.xlu0 %3404 }
 0xca0   : > { %10518 = vst [vmem:[#allocation62_spill] sm:$0xff] %v8506_v58 }
 0xca3   : > { %v3447_v51 = vpop.permute.xlu0 %3446 }
 0xca4   : > { %v3448_v54 = vrot.slane %v3447_v51, 4 }
 0xca6   : > { %v3449_v61 = vsel %vm1457_vm3, %v3448_v54, %v3447_v51  ;;  %v3453_v25 = vmul.f32 %v3448_v54, %v3434_v63  ;;  %v10522_v63 = vmov 23  }
 0xca7   : > { %v3452_v47 = vmul.f32 %v3449_v61, %v8259_v34 }
 0xca8   : > { %v3473_v42 = vrot.slane %v3453_v25, %v7090_v6 }
 0xca9   : > { %v3465_v22 = vrot.slane %v3452_v47, %v7090_v6  ;;  %v3469_v11 = vrot.slane %v3452_v47, %v10500_v17  ;;  %v3516_v61 = vrot.slane %v3452_v47, %v7093_v7  ;;  %v3520_v51 = vrot.slane %v3452_v47, %v10501_v18 }
 0xcaa   : > { %v3488_v26 = vrot.slane %v3473_v42, %v7090_v6  ;;  %v3524_v42 = vrot.slane %v3453_v25, %v7093_v7 }
 0xcab   : > { %v3480_v58 = vrot.slane %v3465_v22, %v7090_v6  ;;  %v3484_v28 = vrot.slane %v3469_v11, %v7090_v6 }
 0xcac   : > { %v3491_v54 = vmul.f32 %v3488_v26, %v3458_v0  ;;  %v3539_v26 = vrot.slane %v3524_v42, %v7093_v7 }
 0xcad   : > { %v3489_v43 = vmul.f32 %v3480_v58, %v3458_v0  ;;  %v3490_v52 = vmul.f32 %v3484_v28, %v3458_v0  ;;  %v3531_v28 = vrot.slane %v3516_v61, %v7093_v7  ;;  %v3567_v61 = vrot.slane %v3452_v47, %v7224_v4 }
 0xcaf   : > { %3497 = vrot.lane.b32.xlu1 %v3490_v52, %s10521_s30  ;;  %3495 = vrot.lane.b32.xlu0 %v3489_v43, %s10521_s30  ;;  %v3535_v52 = vrot.slane %v3520_v51, %v7093_v7  ;;  %v3571_v51 = vrot.slane %v3452_v47, %v7227_v5  ;;  %v3582_v42 = vrot.slane %v3567_v61, %v7224_v4 }
 0xcb0   : > { %v3618_v61 = vrot.slane %v3452_v47, %v7242_v39 }
 0xcb3   : > { %3510 = vperm.xlu1 %6745, %v8421_v35   ;;  %3499 = vrot.lane.b32.xlu0 %v3491_v54, %s10521_s30  ;;  %v10524_v54 = vmov 32  }
 0xcb7   : > { %6746 = vset.pattern.permute.xlu1 %v10522_v63 }
 0xd21   : > { %v8527_v11 = vpop.permute.xlu1 %3497 }
 0xd22   : > { %10523 = vst [vmem:[#allocation67_spill] sm:$0xff] %v8527_v11 }
 0xd2e   : > { %v3511_v58 = vpop.permute.xlu1 %3510 }
 0xd2f   : > { %v3540_v0 = vmul.f32 %v3531_v28, %v3511_v58  ;;  %v3541_v22 = vmul.f32 %v3535_v52, %v3511_v58  ;;  %v3542_v43 = vmul.f32 %v3539_v26, %v3511_v58  ;;  %v3575_v28 = vrot.slane %v3453_v25, %v7224_v4 }
 0xd30   : > { %v3586_v52 = vrot.slane %v3571_v51, %v7224_v4  ;;  %v3622_v51 = vrot.slane %v3452_v47, %v7245_v32 }
 0xd31   : > { %3548 = vrot.lane.b32.xlu1 %v3541_v22, %s10521_s30  ;;  %3546 = vrot.lane.b32.xlu0 %v3540_v0, %s10521_s30  ;;  %v3590_v26 = vrot.slane %v3575_v28, %v7224_v4  ;;  %v3626_v28 = vrot.slane %v3453_v25, %v7242_v39  ;;  %v8568_v25 = vld [vmem:[%s10100_s4] sm:$0xf] }
 0xd35   : > { %3561 = vperm.xlu1 %6746, %v8421_v35   ;;  %3550 = vrot.lane.b32.xlu0 %v3542_v43, %s10521_s30 }
 0xd39   : > { %6747 = vset.pattern.permute.xlu1 %v10524_v54  ;;  %v10526_v54 = vmov 15  }
 0xda3   : > { %v8540_v63 = vpop.permute.xlu1 %3548 }
 0xda4   : > { %10525 = vst [vmem:[#allocation66_spill] sm:$0xff] %v8540_v63 }
 0xdb0   : > { %v3562_v0 = vpop.permute.xlu1 %3561 }
 0xdb1   : > { %v3591_v58 = vmul.f32 %v3582_v42, %v3562_v0  ;;  %v3592_v22 = vmul.f32 %v3586_v52, %v3562_v0  ;;  %v3593_v43 = vmul.f32 %v3590_v26, %v3562_v0  ;;  %v3664_v42 = vld [vmem:[#allocation3 + $0x6] ss:$8 sm:$0x3]  ;;  %v3633_v52 = vrot.slane %v3618_v61, %v7242_v39 }
 0xdb2   : > { %v3669_v0 = vrot.slane %v3664_v42, %v7090_v6  ;;  %v10529_v61 = vmov 7  }
 0xdb3   : > { %3599 = vrot.lane.b32.xlu1 %v3592_v22, %s10521_s30  ;;  %3597 = vrot.lane.b32.xlu0 %v3591_v58, %s10521_s30  ;;  %v3637_v58 = vrot.slane %v3622_v51, %v7242_v39  ;;  %v8572_v51 = vpop.permute.xlu0 %3495 }
 0xdb4   : > { %10530 = vst [vmem:[#allocation69_spill] sm:$0xff] %v8572_v51 }
 0xdb7   : > { %3612 = vperm.xlu1 %6747, %v8421_v35   ;;  %3601 = vrot.lane.b32.xlu0 %v3593_v43, %s10521_s30  ;;  %v3673_v35 = vrot.slane %v3664_v42, %v7093_v7  ;;  %v8574_v42 = vpop.permute.xlu0 %3499 }
 0xdb8   : > { %10531 = vst [vmem:[#allocation68_spill] sm:$0xff] %v8574_v42 }
 0xdb9   : > { %v3674_v47 = vcombine.low %v3669_v0, %v3673_v35  ;;  %v3663_v0 = vld [vmem:[#allocation2 + $0xc] sm:$0xf] }
 0xdbb   : > { %6749 = vset.pattern.permute.xlu1 %v10526_v54  ;;  %v3641_v54 = vrot.slane %v3626_v28, %v7242_v39  ;;  %v8576_v28 = vpop.permute.xlu0 %3546 }
 0xdbc   : > { %10532 = vst [vmem:[#allocation70_spill] sm:$0xff] %v8576_v28 }
 0xe25   : > { %v8553_v63 = vpop.permute.xlu1 %3599 }
 0xe26   : > { %10527 = vst [vmem:[#allocation65_spill] sm:$0xff] %v8553_v63 }
 0xe32   : > { %v3613_v22 = vpop.permute.xlu1 %3612 }
 0xe33   : > { %v3642_v26 = vmul.f32 %v3633_v52, %v3613_v22  ;;  %v3643_v43 = vmul.f32 %v3637_v58, %v3613_v22  ;;  %v3644_v63 = vmul.f32 %v3641_v54, %v3613_v22  ;;  %v8578_v54 = vpop.permute.xlu0 %3550 }
 0xe34   : > { %10533 = vst [vmem:[#allocation72_spill] sm:$0xff] %v8578_v54 }
 0xe35   : > { %3650 = vrot.lane.b32.xlu1 %v3643_v43, %s10521_s30  ;;  %3648 = vrot.lane.b32.xlu0 %v3642_v26, %s10521_s30 }
 0xe37   : > { %v8580_v52 = vpop.permute.xlu0 %3597 }
 0xe38   : > { %10534 = vst [vmem:[#allocation71_spill] sm:$0xff] %v8580_v52 }
 0xe39   : > { %3675 = vrot.lane.b32.xlu1 %v3674_v47, %s10528_s11  ;;  %3652 = vrot.lane.b32.xlu0 %v3644_v63, %s10521_s30 }
 0xe3b   : > { %v8584_v58 = vpop.permute.xlu0 %3601 }
 0xe3c   : > { %10536 = vst [vmem:[#allocation74_spill] sm:$0xff] %v8584_v58 }
 0xe3d   : > { %3686 = vperm.xlu0 %6748, %v8568_v25  }
 0xe41   : > { %6752 = vset.pattern.permute.xlu0 %v10529_v61 }
 0xea7   : > { %v8582_v63 = vpop.permute.xlu1 %3650  ;;  %v8586_v26 = vpop.permute.xlu0 %3648 }
 0xea8   : > { %10535 = vst [vmem:[#allocation75_spill] sm:$0xff] %v8582_v63  ;;  %10537 = vst [vmem:[#allocation73_spill] sm:$0xff] %v8586_v26 }
 0xeab   : > { %v3676_v35 = vpop.permute.xlu1 %3675  ;;  %v8595_v28 = vpop.permute.xlu0 %3652 }
 0xeac   : > { %v3677_v22 = vrot.slane %v3676_v35, 4  ;;  %10538 = vst [vmem:[#allocation76_spill] sm:$0xff] %v8595_v28 }
 0xeae   : > { %v3678_v43 = vsel %vm1689_vm4, %v3677_v22, %v3676_v35  ;;  %v8589_v47 = vmul.f32 %v3677_v22, %v3663_v0 }
 0xeaf   : > { %v3681_v61 = vmul.f32 %v3678_v43, %v8259_v34  ;;  %v10540_v43 = vmov 24  }
 0xeb0   : > { %v3702_v54 = vrot.slane %v8589_v47, %v7090_v6 }
 0xeb1   : > { %v3694_v52 = vrot.slane %v3681_v61, %v7090_v6  ;;  %v3698_v58 = vrot.slane %v3681_v61, %v10500_v17 }
 0xeb2   : > { %v3717_v63 = vrot.slane %v3702_v54, %v7090_v6 }
 0xeb3   : > { %v3709_v42 = vrot.slane %v3694_v52, %v7090_v6  ;;  %v3713_v0 = vrot.slane %v3698_v58, %v7090_v6  ;;  %v3745_v52 = vrot.slane %v3681_v61, %v7093_v7  ;;  %v3753_v58 = vrot.slane %v8589_v47, %v7093_v7 }
 0xeb8   : > { %v3687_v26 = vpop.permute.xlu0 %3686 }
 0xeb9   : > { %v3718_v51 = vmul.f32 %v3709_v42, %v3687_v26  ;;  %v3720_v35 = vmul.f32 %v3717_v63, %v3687_v26  ;;  %v3719_v22 = vmul.f32 %v3713_v0, %v3687_v26  ;;  %v3749_v42 = vrot.slane %v3681_v61, %v10501_v18 }
 0xebb   : > { %3728 = vrot.lane.b32.xlu0 %v3720_v35, %s10539_s21  ;;  %3724 = vrot.lane.b32.xlu1 %v3718_v51, %s10539_s21  ;;  %v3760_v51 = vrot.slane %v3745_v52, %v7093_v7  ;;  %v3764_v26 = vrot.slane %v3749_v42, %v7093_v7  ;;  %v3796_v52 = vrot.slane %v3681_v61, %v7224_v4 }
 0xebc   : > { %v3800_v42 = vrot.slane %v3681_v61, %v7227_v5 }
 0xebf   : > { %3726 = vrot.lane.b32.xlu1 %v3719_v22, %s10539_s21 }
 0xec3   : > { %3739 = vperm.xlu1 %6749, %v8568_v25  }
 0xec7   : > { %6750 = vset.pattern.permute.xlu1 %v10540_v43  ;;  %v3768_v43 = vrot.slane %v3753_v58, %v7093_v7  ;;  %v3804_v58 = vrot.slane %v8589_v47, %v7224_v4 }
 0xf2d   : > { %v8606_v54 = vpop.permute.xlu1 %3724 }
 0xf2e   : > { %10541 = vst [vmem:[#allocation77_spill] sm:$0xff] %v8606_v54 }
 0xf31   : > { %v8610_v63 = vpop.permute.xlu1 %3726 }
 0xf32   : > { %10542 = vst [vmem:[#allocation78_spill] sm:$0xff] %v8610_v63  ;;  %v10543_v63 = vmov 33  }
 0xf3e   : > { %v3740_v35 = vpop.permute.xlu1 %3739 }
 0xf3f   : > { %v3769_v0 = vmul.f32 %v3760_v51, %v3740_v35  ;;  %v3770_v22 = vmul.f32 %v3764_v26, %v3740_v35  ;;  %v3771_v54 = vmul.f32 %v3768_v43, %v3740_v35  ;;  %v3811_v51 = vrot.slane %v3796_v52, %v7224_v4 }
 0xf40   : > { %v3815_v26 = vrot.slane %v3800_v42, %v7224_v4  ;;  %v3847_v52 = vrot.slane %v3681_v61, %v7242_v39  ;;  %v3851_v42 = vrot.slane %v3681_v61, %v7245_v32 }
 0xf41   : > { %3777 = vrot.lane.b32.xlu1 %v3770_v22, %s10539_s21  ;;  %3775 = vrot.lane.b32.xlu0 %v3769_v0, %s10539_s21 }
 0xf45   : > { %3790 = vperm.xlu1 %6750, %v8568_v25   ;;  %3779 = vrot.lane.b32.xlu0 %v3771_v54, %s10539_s21  ;;  %v3819_v54 = vrot.slane %v3804_v58, %v7224_v4  ;;  %v3855_v58 = vrot.slane %v8589_v47, %v7242_v39  ;;  %v3912_v47 = vld [vmem:[%s10100_s4] sm:$0xf] }
 0xf49   : > { %6751 = vset.pattern.permute.xlu1 %v10543_v63  ;;  %v10545_v63 = vmov 16  }
 0xfb3   : > { %v8624_v28 = vpop.permute.xlu1 %3777 }
 0xfb4   : > { %10544 = vst [vmem:[#allocation79_spill] sm:$0xff] %v8624_v28 }
 0xfc0   : > { %v3791_v43 = vpop.permute.xlu1 %3790 }
 0xfc1   : > { %v3820_v35 = vmul.f32 %v3811_v51, %v3791_v43  ;;  %v3821_v0 = vmul.f32 %v3815_v26, %v3791_v43  ;;  %v3822_v22 = vmul.f32 %v3819_v54, %v3791_v43  ;;  %v3893_v51 = vld [vmem:[#allocation3 + $0x7] ss:$8 sm:$0x3]  ;;  %v3862_v26 = vrot.slane %v3847_v52, %v7242_v39 }
 0xfc2   : > { %v3866_v43 = vrot.slane %v3851_v42, %v7242_v39  ;;  %v10548_v52 = vmov 8   ;;  %v8655_v42 = vpop.permute.xlu0 %3728 }
 0xfc3   : > { %3828 = vrot.lane.b32.xlu1 %v3821_v0, %s10539_s21  ;;  %3826 = vrot.lane.b32.xlu0 %v3820_v35, %s10539_s21  ;;  %v3902_v35 = vrot.slane %v3893_v51, %v7093_v7  ;;  %10549 = vst [vmem:[#allocation81_spill] sm:$0xff] %v8655_v42 }
 0xfc7   : > { %3841 = vperm.xlu1 %6751, %v8568_v25   ;;  %3830 = vrot.lane.b32.xlu0 %v3822_v22, %s10539_s21  ;;  %v3898_v25 = vrot.slane %v3893_v51, %v7090_v6  ;;  %v8657_v51 = vpop.permute.xlu0 %3775 }
 0xfc8   : > { %10550 = vst [vmem:[#allocation82_spill] sm:$0xff] %v8657_v51 }
 0xfc9   : > { %v3903_v61 = vcombine.low %v3898_v25, %v3902_v35 }
 0xfcb   : > { %6753 = vset.pattern.permute.xlu1 %v10545_v63  ;;  %v3870_v63 = vrot.slane %v3855_v58, %v7242_v39  ;;  %v8659_v58 = vpop.permute.xlu0 %3779 }
 0xfcc   : > { %10551 = vst [vmem:[#allocation83_spill] sm:$0xff] %v8659_v58 }
0x1035   : > { %v8638_v28 = vpop.permute.xlu1 %3828 }
0x1036   : > { %10546 = vst [vmem:[#allocation80_spill] sm:$0xff] %v8638_v28 }
0x1042   : > { %v3842_v0 = vpop.permute.xlu1 %3841 }
0x1043   : > { %v3871_v54 = vmul.f32 %v3862_v26, %v3842_v0  ;;  %v3872_v22 = vmul.f32 %v3866_v43, %v3842_v0  ;;  %v3873_v28 = vmul.f32 %v3870_v63, %v3842_v0  ;;  %v8661_v26 = vpop.permute.xlu0 %3826 }
0x1044   : > { %10552 = vst [vmem:[#allocation84_spill] sm:$0xff] %v8661_v26 }
0x1045   : > { %3879 = vrot.lane.b32.xlu1 %v3872_v22, %s10539_s21  ;;  %3877 = vrot.lane.b32.xlu0 %v3871_v54, %s10539_s21 }
0x1047   : > { %v8665_v43 = vpop.permute.xlu0 %3830 }
0x1048   : > { %10554 = vst [vmem:[#allocation86_spill] sm:$0xff] %v8665_v43 }
0x1049   : > { %3904 = vrot.lane.b32.xlu1 %v3903_v61, %s10547_s26  ;;  %3881 = vrot.lane.b32.xlu0 %v3873_v28, %s10539_s21  ;;  %v3892_v28 = vld [vmem:[#allocation2 + $0xc] sm:$0xf] }
0x104d   : > { %3915 = vperm.xlu0 %6752, %v3912_v47  }
0x1051   : > { %6756 = vset.pattern.permute.xlu0 %v10548_v52 }
0x10b7   : > { %v8663_v63 = vpop.permute.xlu1 %3879  ;;  %v8667_v0 = vpop.permute.xlu0 %3877 }
0x10b8   : > { %10553 = vst [vmem:[#allocation85_spill] sm:$0xff] %v8663_v63  ;;  %10555 = vst [vmem:[#allocation87_spill] sm:$0xff] %v8667_v0 }
0x10bb   : > { %v3905_v25 = vpop.permute.xlu1 %3904  ;;  %v8676_v51 = vpop.permute.xlu0 %3881 }
0x10bc   : > { %v3906_v35 = vrot.slane %v3905_v25, 4  ;;  %10556 = vst [vmem:[#allocation88_spill] sm:$0xff] %v8676_v51 }
0x10be   : > { %v3907_v54 = vsel %vm1921_vm5, %v3906_v35, %v3905_v25  ;;  %v8670_v22 = vmul.f32 %v3906_v35, %v3892_v28  ;;  %v10558_v35 = vmov 25  }
0x10bf   : > { %v3910_v61 = vmul.f32 %v3907_v54, %v8259_v34 }
0x10c0   : > { %v3931_v58 = vrot.slane %v8670_v22, %v7090_v6 }
0x10c1   : > { %v3923_v26 = vrot.slane %v3910_v61, %v7090_v6  ;;  %v3927_v43 = vrot.slane %v3910_v61, %v10500_v17  ;;  %v3974_v54 = vrot.slane %v3910_v61, %v7093_v7 }
0x10c2   : > { %v3946_v63 = vrot.slane %v3931_v58, %v7090_v6 }
0x10c3   : > { %v3938_v42 = vrot.slane %v3923_v26, %v7090_v6  ;;  %v3942_v28 = vrot.slane %v3927_v43, %v7090_v6  ;;  %v3978_v26 = vrot.slane %v3910_v61, %v10501_v18  ;;  %v3989_v43 = vrot.slane %v3974_v54, %v7093_v7 }
0x10c4   : > { %v4029_v54 = vrot.slane %v3910_v61, %v7227_v5 }
0x10c8   : > { %v3916_v0 = vpop.permute.xlu0 %3915 }
0x10c9   : > { %v3947_v11 = vmul.f32 %v3938_v42, %v3916_v0  ;;  %v3949_v25 = vmul.f32 %v3946_v63, %v3916_v0  ;;  %v3948_v34 = vmul.f32 %v3942_v28, %v3916_v0  ;;  %v3982_v63 = vrot.slane %v8670_v22, %v7093_v7 }
0x10cb   : > { %3957 = vrot.lane.b32.xlu0 %v3949_v25, %s10557_s28  ;;  %3953 = vrot.lane.b32.xlu1 %v3947_v11, %s10557_s28  ;;  %v3993_v11 = vrot.slane %v3978_v26, %v7093_v7 }
0x10cf   : > { %3955 = vrot.lane.b32.xlu1 %v3948_v34, %s10557_s28  ;;  %v3997_v34 = vrot.slane %v3982_v63, %v7093_v7 }
0x10d3   : > { %3968 = vperm.xlu1 %6753, %v3912_v47  }
0x10d7   : > { %6754 = vset.pattern.permute.xlu1 %v10558_v35 }
0x113d   : > { %v8686_v58 = vpop.permute.xlu1 %3953 }
0x113e   : > { %10559 = vst [vmem:[#allocation89_spill] sm:$0xff] %v8686_v58  ;;  %v10561_v58 = vmov 34  }
0x1141   : > { %v8690_v42 = vpop.permute.xlu1 %3955 }
0x1142   : > { %10560 = vst [vmem:[#allocation90_spill] sm:$0xff] %v8690_v42  ;;  %v4025_v42 = vrot.slane %v3910_v61, %v7224_v4 }
0x1144   : > { %v4040_v63 = vrot.slane %v4025_v42, %v7224_v4  ;;  %v4080_v42 = vrot.slane %v3910_v61, %v7245_v32 }
0x114e   : > { %v3969_v0 = vpop.permute.xlu1 %3968 }
0x114f   : > { %v3998_v25 = vmul.f32 %v3989_v43, %v3969_v0  ;;  %v3999_v28 = vmul.f32 %v3993_v11, %v3969_v0  ;;  %v4000_v35 = vmul.f32 %v3997_v34, %v3969_v0  ;;  %v4033_v43 = vrot.slane %v8670_v22, %v7224_v4 }
0x1150   : > { %v4044_v11 = vrot.slane %v4029_v54, %v7224_v4 }
0x1151   : > { %4006 = vrot.lane.b32.xlu1 %v3999_v28, %s10557_s28  ;;  %4004 = vrot.lane.b32.xlu0 %v3998_v25, %s10557_s28 }
0x1155   : > { %4019 = vperm.xlu1 %6754, %v3912_v47   ;;  %4008 = vrot.lane.b32.xlu0 %v4000_v35, %s10557_s28  ;;  %v4048_v35 = vrot.slane %v4033_v43, %v7224_v4  ;;  %v4084_v43 = vrot.slane %v8670_v22, %v7242_v39  ;;  %v8732_v22 = vld [vmem:[%s10100_s4] sm:$0xf] }
0x1159   : > { %6755 = vset.pattern.permute.xlu1 %v10561_v58  ;;  %v10563_v58 = vmov 17  }
0x11c3   : > { %v8703_v26 = vpop.permute.xlu1 %4006 }
0x11c4   : > { %10562 = vst [vmem:[#allocation91_spill] sm:$0xff] %v8703_v26  ;;  %v4076_v26 = vrot.slane %v3910_v61, %v7242_v39 }
0x11d0   : > { %v4020_v25 = vpop.permute.xlu1 %4019 }
0x11d1   : > { %v4049_v0 = vmul.f32 %v4040_v63, %v4020_v25  ;;  %v4050_v28 = vmul.f32 %v4044_v11, %v4020_v25  ;;  %v4051_v34 = vmul.f32 %v4048_v35, %v4020_v25  ;;  %v4122_v63 = vld [vmem:[#allocation3 + $0x10] ss:$8 sm:$0x3]  ;;  %v4091_v11 = vrot.slane %v4076_v26, %v7242_v39 }
0x11d2   : > { %v4131_v25 = vrot.slane %v4122_v63, %v7093_v7  ;;  %v10566_v26 = vmov 9  }
0x11d3   : > { %4057 = vrot.lane.b32.xlu1 %v4050_v28, %s10557_s28  ;;  %4055 = vrot.lane.b32.xlu0 %v4049_v0, %s10557_s28  ;;  %v4095_v0 = vrot.slane %v4080_v42, %v7242_v39  ;;  %v6805_v42 = vld [vmem:[%s10100_s4] sm:$0xf] }
0x11d7   : > { %4070 = vperm.xlu1 %6755, %v3912_v47   ;;  %4059 = vrot.lane.b32.xlu0 %v4051_v34, %s10557_s28  ;;  %v4127_v47 = vrot.slane %v4122_v63, %v7090_v6  ;;  %v8739_v63 = vpop.permute.xlu0 %3957 }
0x11d8   : > { %10567 = vst [vmem:[#allocation93_spill] sm:$0xff] %v8739_v63 }
0x11d9   : > { %v4132_v61 = vcombine.low %v4127_v47, %v4131_v25  ;;  %v4121_v47 = vld [vmem:[#allocation2 + $0xc] sm:$0xf] }
0x11db   : > { %6758 = vset.pattern.permute.xlu1 %v10563_v58  ;;  %v4099_v58 = vrot.slane %v4084_v43, %v7242_v39 }
0x1245   : > { %v8716_v54 = vpop.permute.xlu1 %4057 }
0x1246   : > { %10564 = vst [vmem:[#allocation92_spill] sm:$0xff] %v8716_v54 }
0x1252   : > { %v4071_v28 = vpop.permute.xlu1 %4070 }
0x1253   : > { %v4100_v35 = vmul.f32 %v4091_v11, %v4071_v28  ;;  %v4101_v34 = vmul.f32 %v4095_v0, %v4071_v28  ;;  %v4102_v54 = vmul.f32 %v4099_v58, %v4071_v28  ;;  %v8741_v58 = vpop.permute.xlu0 %4004 }
0x1254   : > { %10568 = vst [vmem:[#allocation94_spill] sm:$0xff] %v8741_v58 }
0x1255   : > { %4108 = vrot.lane.b32.xlu1 %v4101_v34, %s10557_s28  ;;  %4106 = vrot.lane.b32.xlu0 %v4100_v35, %s10557_s28  ;;  %v4120_v34 = vld [vmem:[#allocation2 + $0x4] sm:$0xff] }
0x1257   : > { %v8743_v43 = vpop.permute.xlu0 %4008 }
0x1258   : > { %10569 = vst [vmem:[#allocation95_spill] sm:$0xff] %v8743_v43 }
0x1259   : > { %4133 = vrot.lane.b32.xlu1 %v4132_v61, %s10565_s27  ;;  %4110 = vrot.lane.b32.xlu0 %v4102_v54, %s10557_s28 }
0x125b   : > { %v8745_v54 = vpop.permute.xlu0 %4055 }
0x125c   : > { %10570 = vst [vmem:[#allocation96_spill] sm:$0xff] %v8745_v54 }
0x125d   : > { %4144 = vperm.xlu0 %6756, %v8732_v22  }
0x125f   : > { %v8749_v0 = vpop.permute.xlu0 %4059 }
0x1260   : > { %10572 = vst [vmem:[#allocation98_spill] sm:$0xff] %v8749_v0 }
0x1261   : > { %6757 = vset.pattern.permute.xlu0 %v10566_v26 }
0x1262   : > { %2596 = vperm.xlu0 %6757, %v6805_v42  }
0x12c7   : > { %v8747_v11 = vpop.permute.xlu1 %4108  ;;  %v8751_v35 = vpop.permute.xlu0 %4106 }
0x12c8   : > { %10571 = vst [vmem:[#allocation97_spill] sm:$0xff] %v8747_v11  ;;  %10573 = vst [vmem:[#allocation99_spill] sm:$0xff] %v8751_v35 }
0x12cb   : > { %v4134_v25 = vpop.permute.xlu1 %4133  ;;  %v8762_v54 = vpop.permute.xlu0 %4110 }
0x12cc   : > { %v4135_v28 = vrot.slane %v4134_v25, 4  ;;  %10574 = vst [vmem:[#allocation100_spill] sm:$0xff] %v8762_v54 }
0x12ce   : > { %v4136_v61 = vsel %vm2153_vm6, %v4135_v28, %v4134_v25  ;;  %v8754_v42 = vmul.f32 %v4135_v28, %v4121_v47 }
0x12cf   : > { %v8756_v63 = vmul.f32 %v4136_v61, %v4120_v34 }
0x12d0   : > { %v4160_v43 = vrot.slane %v8754_v42, %v7090_v6 }
0x12d1   : > { %v4152_v11 = vrot.slane %v8756_v63, %v7090_v6  ;;  %v4156_v35 = vrot.slane %v8756_v63, %v10500_v17 }
0x12d2   : > { %v4175_v0 = vrot.slane %v4160_v43, %v7090_v6  ;;  %v10576_v43 = vmov 26  }
0x12d3   : > { %v4167_v58 = vrot.slane %v4152_v11, %v7090_v6  ;;  %v4171_v34 = vrot.slane %v4156_v35, %v7090_v6  ;;  %v4203_v11 = vrot.slane %v8756_v63, %v7093_v7  ;;  %v4211_v35 = vrot.slane %v8754_v42, %v7093_v7 }
0x12d8   : > { %v4145_v25 = vpop.permute.xlu0 %4144 }
0x12d9   : > { %v4176_v47 = vmul.f32 %v4167_v58, %v4145_v25  ;;  %v4178_v28 = vmul.f32 %v4175_v0, %v4145_v25  ;;  %v4177_v61 = vmul.f32 %v4171_v34, %v4145_v25  ;;  %v4207_v58 = vrot.slane %v8756_v63, %v10501_v18 }
0x12da   : > { %v4218_v25 = vrot.slane %v4203_v11, %v7093_v7  ;;  %v4254_v11 = vrot.slane %v8756_v63, %v7224_v4 }
0x12db   : > { %4186 = vrot.lane.b32.xlu0 %v4178_v28, %s10575_s12  ;;  %4182 = vrot.lane.b32.xlu1 %v4176_v47, %s10575_s12  ;;  %v4222_v47 = vrot.slane %v4207_v58, %v7093_v7  ;;  %v4258_v58 = vrot.slane %v8756_v63, %v7227_v5 }
0x12dd   : > { %v2597_v51 = vpop.permute.xlu0 %2596 }
0x12df   : > { %4184 = vrot.lane.b32.xlu1 %v4177_v61, %s10575_s12 }
0x12e3   : > { %4197 = vperm.xlu1 %6758, %v8732_v22  }
0x12e7   : > { %6759 = vset.pattern.permute.xlu1 %v10576_v43  ;;  %v4226_v43 = vrot.slane %v4211_v35, %v7093_v7  ;;  %v4262_v35 = vrot.slane %v8754_v42, %v7224_v4 }
0x134d   : > { %v8774_v54 = vpop.permute.xlu1 %4182 }
0x134e   : > { %10577 = vst [vmem:[#allocation101_spill] sm:$0xff] %v8774_v54 }
0x1351   : > { %v8780_v0 = vpop.permute.xlu1 %4184 }
0x1352   : > { %10578 = vst [vmem:[#allocation102_spill] sm:$0xff] %v8780_v0  ;;  %v10579_v0 = vmov 35  }
0x135e   : > { %v4198_v28 = vpop.permute.xlu1 %4197 }
0x135f   : > { %v4227_v34 = vmul.f32 %v4218_v25, %v4198_v28  ;;  %v4228_v61 = vmul.f32 %v4222_v47, %v4198_v28  ;;  %v4229_v54 = vmul.f32 %v4226_v43, %v4198_v28  ;;  %v4269_v47 = vrot.slane %v4254_v11, %v7224_v4 }
0x1360   : > { %v4273_v43 = vrot.slane %v4258_v58, %v7224_v4  ;;  %v2548_v11 = vrot.slane %v8261_v48, 4 }
0x1361   : > { %4235 = vrot.lane.b32.xlu1 %v4228_v61, %s10575_s12  ;;  %4233 = vrot.lane.b32.xlu0 %v4227_v34, %s10575_s12  ;;  %v4277_v61 = vrot.slane %v4262_v35, %v7224_v4 }
0x1362   : > { %v2549_v58 = vsel %vm512_vm7, %v2548_v11, %v8261_v48 }
0x1365   : > { %4248 = vperm.xlu1 %6759, %v8732_v22   ;;  %4237 = vrot.lane.b32.xlu0 %v4229_v54, %s10575_s12 }
0x1369   : > { %6760 = vset.pattern.permute.xlu1 %v10579_v0 }
0x13d3   : > { %v8796_v25 = vpop.permute.xlu1 %4235 }
0x13d4   : > { %10580 = vst [vmem:[#allocation103_spill] sm:$0xff] %v8796_v25  ;;  %v2534_v25 = vld [vmem:[#allocation2 + $0x8] sm:$0xf] }
0x13e0   : > { %v4249_v28 = vpop.permute.xlu1 %4248 }
0x13e1   : > { %v4278_v34 = vmul.f32 %v4269_v47, %v4249_v28  ;;  %v4279_v54 = vmul.f32 %v4273_v43, %v4249_v28  ;;  %v4280_v0 = vmul.f32 %v4277_v61, %v4249_v28  ;;  %v6806_v47 = vld [vmem:[#allocation2] sm:$0xff] }
0x13e2   : > { %v2552_v43 = vmul.f32 %v6806_v47, %v2549_v58 }
0x13e3   : > { %4286 = vrot.lane.b32.xlu1 %v4279_v54, %s10575_s12  ;;  %4284 = vrot.lane.b32.xlu0 %v4278_v34, %s10575_s12  ;;  %v2553_v54 = vmul.f32 %v2548_v11, %v2534_v25 }
0x13e4   : > { %v2565_v35 = vrot.slane %v2552_v43, %v7090_v6  ;;  %v2569_v34 = vrot.slane %v2552_v43, %v10500_v17  ;;  %v2639_v58 = vrot.slane %v2552_v43, %v7224_v4  ;;  %v2643_v47 = vrot.slane %v2552_v43, %v7227_v5 }
0x13e5   : > { %v2610_v17 = vrot.slane %v2553_v54, %v7093_v7 }
0x13e6   : > { %v2580_v28 = vrot.slane %v2565_v35, %v7090_v6  ;;  %v2584_v61 = vrot.slane %v2569_v34, %v7090_v6  ;;  %v2654_v12 = vrot.slane %v2639_v58, %v7224_v4 }
0x13e7   : > { %4299 = vperm.xlu1 %6760, %v8732_v22   ;;  %4288 = vrot.lane.b32.xlu0 %v4280_v0, %s10575_s12  ;;  %v2602_v22 = vrot.slane %v2552_v43, %v7093_v7  ;;  %v2573_v0 = vrot.slane %v2553_v54, %v7090_v6 }
0x13e8   : > { %v2589_v48 = vmul.f32 %v2580_v28, %v8266_v56  ;;  %v2590_v35 = vmul.f32 %v2584_v61, %v8266_v56  ;;  %v2647_v28 = vrot.slane %v2553_v54, %v7224_v4  ;;  %v2625_v61 = vrot.slane %v2610_v17, %v7093_v7 }
0x13e9   : > { %v2617_v25 = vrot.slane %v2602_v22, %v7093_v7  ;;  %v2588_v11 = vrot.slane %v2573_v0, %v7090_v6  ;;  %v2658_v0 = vrot.slane %v2643_v47, %v7224_v4  ;;  %v2676_v6 = vrot.slane %v2552_v43, %v7242_v39 }
0x13ea   : > { %v2593_v22 = vadd.f32 %v2590_v35, %v8264_v2  ;;  %v2662_v58 = vrot.slane %v2647_v28, %v7224_v4 }
0x13eb   : > { %6761 = vset.pattern.permute.xlu1 %v10548_v52  ;;  %v2606_v52 = vrot.slane %v2552_v43, %v10501_v18  ;;  %v2626_v34 = vmul.f32 %v2617_v25, %v2597_v51  ;;  %v2592_v18 = vadd.f32 %v2589_v48, %v8264_v2  ;;  %v2591_v5 = vmul.f32 %v2588_v11, %v8266_v56 }
0x13ec   : > { %v2663_v48 = vmul.f32 %v2654_v12, %v8271_v50  ;;  %v2664_v56 = vmul.f32 %v2658_v0, %v8271_v50  ;;  %v2684_v11 = vrot.slane %v2553_v54, %v7242_v39  ;;  %v2691_v47 = vrot.slane %v2676_v6, %v7242_v39 }
0x13ed   : > { %v2621_v44 = vrot.slane %v2606_v52, %v7093_v7  ;;  %v2680_v52 = vrot.slane %v2552_v43, %v7245_v32  ;;  %v2629_v25 = vadd.f32 %v2626_v34, %v2592_v18  ;;  %v2594_v57 = vadd.f32 %v2591_v5, %v8264_v2 }
0x13ee   : > { %v4309_v12 = vrot.slane %v8756_v63, %v7245_v32  ;;  %v2700_v5 = vmul.f32 %v2691_v47, %v8274_v37  ;;  %v2665_v18 = vmul.f32 %v2662_v58, %v8271_v50  ;;  %v2699_v6 = vrot.slane %v2684_v11, %v7242_v39 }
0x13ef   : > { %v2627_v38 = vmul.f32 %v2621_v44, %v2597_v51  ;;  %v2628_v44 = vmul.f32 %v2625_v61, %v2597_v51  ;;  %v2695_v17 = vrot.slane %v2680_v52, %v7242_v39  ;;  %v2666_v35 = vadd.f32 %v2663_v48, %v2629_v25 }
0x13f0   : > { %v2702_v0 = vmul.f32 %v2699_v6, %v8274_v37  ;;  %v2774_v50 = vsel %vm740_vm2, %v8432_v29, %v8438_v20  ;;  %v2775_v25 = vsel %vm740_vm2, %v8438_v20, %v8434_v8  ;;  %v2825_v29 = vsel %vm740_vm2, %v8436_v31, %v8444_v19 }
0x13f1   : > { %v2630_v36 = vadd.f32 %v2627_v38, %v2593_v22  ;;  %v2631_v7 = vadd.f32 %v2628_v44, %v2594_v57  ;;  %v4305_v38 = vrot.slane %v8756_v63, %v7242_v39  ;;  %v2701_v51 = vmul.f32 %v2695_v17, %v8274_v37  ;;  %v4355_v37 = vld [vmem:[%s10104_s8] sm:$0xf] }
0x13f2   : > { %v2703_v54 = vadd.f32 %v2700_v5, %v2666_v35  ;;  %v4324_v63 = vrot.slane %v4309_v12, %v7242_v39  ;;  %v2826_v20 = vsel %vm740_vm2, %v8444_v19, %v8440_v13  ;;  %v2876_v17 = vsel %vm740_vm2, %v8442_v46, %v8448_v59 }
0x13f3   : > { %v2667_v43 = vadd.f32 %v2664_v56, %v2630_v36  ;;  %v4313_v36 = vrot.slane %v8754_v42, %v7242_v39  ;;  %v2668_v57 = vadd.f32 %v2665_v18, %v2631_v7  ;;  %v4320_v28 = vrot.slane %v4305_v38, %v7242_v39 }
0x13f4   : > { %v2779_v42 = vadd.f32 %v2774_v50, %v2703_v54  ;;  %v2877_v31 = vsel %vm740_vm2, %v8448_v59, %v8446_v14  ;;  %v2928_v19 = vsel %vm740_vm2, %v8454_v24, %v8452_v16  ;;  %v3004_v59 = vsel %vm972_vm8, %v8462_v3, %v8456_v23  ;;  %v10584_v50 = vld [vmem:[#allocation55_spill] sm:$0xff] }
0x13f5   : > { %v2704_v34 = vadd.f32 %v2701_v51, %v2667_v43  ;;  %v2705_v7 = vadd.f32 %v2702_v0, %v2668_v57  ;;  %v4328_v48 = vrot.slane %v4313_v36, %v7242_v39  ;;  %v10583_v0 = vld [vmem:[#allocation52_spill] sm:$0xff] }
0x13f6   : > { %v2830_v56 = vadd.f32 %v2825_v29, %v2779_v42  ;;  %v10586_v42 = vld [vmem:[#allocation54_spill] sm:$0xff]  ;;  %v10588_v29 = vld [vmem:[#allocation60_spill] sm:$0xff] }
0x13f7   : > { %v2780_v44 = vadd.f32 %v2775_v25, %v2704_v34  ;;  %v2781_v11 = vadd.f32 %v8434_v8, %v2705_v7  ;;  %v2927_v8 = vsel %vm740_vm2, %v8450_v9, %v8454_v24  ;;  %v3055_v24 = vsel %vm972_vm8, %v8468_v53, %v8464_v1  ;;  %v10585_v25 = vld [vmem:[#allocation56_spill] sm:$0xff]  ;;  %v10587_v7 = vld [vmem:[#allocation57_spill] sm:$0xff] }
0x13f8   : > { %v2881_v35 = vadd.f32 %v2876_v17, %v2830_v56  ;;  %v10590_v56 = vld [vmem:[#allocation63_spill] sm:$0xff] }
0x13f9   : > { %v2831_v47 = vadd.f32 %v2826_v20, %v2780_v44  ;;  %v2832_v43 = vadd.f32 %v8440_v13, %v2781_v11  ;;  %v3003_v13 = vsel %vm972_vm8, %v8458_v49, %v8462_v3  ;;  %v3106_v3 = vsel %vm972_vm8, %v8472_v21, %v8470_v10 }
0x13fa   : > { %v2932_v46 = vadd.f32 %v2927_v8, %v2881_v35  ;;  %v3386_v11 = vsel %vm687_vm0, %v10588_v29, %v10590_v56  ;;  %v10591_v35 = vld [vmem:[#allocation21_spill] sm:$0xff]  ;;  %v10593_v8 = vld [vmem:[#allocation31_spill] sm:$0xff] }
0x13fb   : > { %v2882_v38 = vadd.f32 %v2877_v31, %v2831_v47  ;;  %v2883_v12 = vadd.f32 %v8446_v14, %v2832_v43  ;;  %v3054_v14 = vsel %vm972_vm8, %v8460_v62, %v8468_v53  ;;  %v3156_v53 = vsel %vm972_vm8, %v8474_v27, %v8478_v41  ;;  %v10592_v43 = vld [vmem:[#allocation59_spill] sm:$0xff] }
0x13fc   : > { %v3008_v9 = vadd.f32 %v3003_v13, %v2932_v46  ;;  %v10594_v13 = vld [vmem:[#allocation32_spill] sm:$0xff] }
0x13fd   : > { %v2933_v5 = vadd.f32 %v2928_v19, %v2882_v38  ;;  %v3397_v38 = vmul.f32 %v10592_v43, %v10591_v35  ;;  %v3398_v19 = vmul.f32 %v10592_v43, %v10593_v8 }
0x13fe   : > { %v3059_v49 = vadd.f32 %v3054_v14, %v3008_v9  ;;  %v10597_v14 = vld [vmem:[#allocation22_spill] sm:$0xff] }
0x13ff   : > { %v3009_v18 = vadd.f32 %v3004_v59, %v2933_v5  ;;  %v10595_v59 = vld [vmem:[#allocation62_spill] sm:$0xff] }
0x1400   : > { %v3407_v9 = vmul.f32 %v10595_v59, %v10594_v13 }
0x1401   : > { %v3060_v6 = vadd.f32 %v3055_v24, %v3009_v18  ;;  %v3408_v24 = vmul.f32 %v10595_v59, %v10597_v14 }
0x1403   : > { %v3111_v36 = vadd.f32 %v3106_v3, %v3060_v6  ;;  %v10599_v3 = vld [vmem:[#allocation61_spill] sm:$0xff] }
0x1455   : > { %v8847_v2 = vpop.permute.xlu1 %4286 }
0x1462   : > { %v4300_v22 = vpop.permute.xlu1 %4299 }
0x1463   : > { %v4329_v61 = vmul.f32 %v4320_v28, %v4300_v22  ;;  %v4330_v52 = vmul.f32 %v4324_v63, %v4300_v22  ;;  %v4331_v58 = vmul.f32 %v4328_v48, %v4300_v22  ;;  %v10582_v22 = vld [vmem:[#allocation53_spill] sm:$0xff] }
0x1465   : > { %4337 = vrot.lane.b32.xlu1 %v4330_v52, %s10575_s12  ;;  %4335 = vrot.lane.b32.xlu0 %v4329_v61, %s10575_s12 }
0x1469   : > { %4358 = vperm.xlu1 %6761, %v4355_v37   ;;  %4339 = vrot.lane.b32.xlu0 %v4331_v58, %s10575_s12  ;;  %v10589_v58 = vld [vmem:[#allocation58_spill] sm:$0xff] }
0x146a   : > { %v3385_v20 = vsel %vm687_vm0, %v10589_v58, %v10588_v29 }
0x146d   : > { %6762 = vset.pattern.permute.xlu1 %v10566_v26  ;;  %v2934_v26 = vadd.f32 %v8452_v16, %v2883_v12  ;;  %v3105_v16 = vsel %vm972_vm8, %v8466_v55, %v8472_v21  ;;  %v3232_v21 = vsel %vm687_vm0, %v8482_v30, %v8488_v15 }
0x146e   : > { %4392 = vperm.xlu1 %6762, %v4355_v37   ;;  %v3110_v62 = vadd.f32 %v3105_v16, %v3059_v49  ;;  %v10598_v16 = vld [vmem:[#allocation35_spill] sm:$0xff] }
0x146f   : > { %v3010_v51 = vadd.f32 %v8456_v23, %v2934_v26  ;;  %v3157_v23 = vsel %vm972_vm8, %v8478_v41, %v8476_v33  ;;  %v3283_v41 = vsel %vm687_vm0, %v10583_v0, %v10582_v22  ;;  %v10596_v26 = vld [vmem:[#allocation23_spill] sm:$0xff] }
0x1470   : > { %v3161_v57 = vadd.f32 %v3156_v53, %v3110_v62  ;;  %v3162_v34 = vadd.f32 %v3157_v23, %v3111_v36  ;;  %v3399_v18 = vmul.f32 %v10592_v43, %v10596_v26  ;;  %v3417_v62 = vmul.f32 %v10599_v3, %v10598_v16  ;;  %v10601_v53 = vld [vmem:[#allocation30_spill] sm:$0xff] }
0x1471   : > { %v3061_v54 = vadd.f32 %v8464_v1, %v3010_v51  ;;  %v3409_v23 = vmul.f32 %v10595_v59, %v10601_v53  ;;  %v10623_v53 = vld [vmem:[#allocation82_spill] sm:$0xff] }
0x1472   : > { %6763 = vset.pattern.permute.xlu1 %v10481_v45  ;;  %v3237_v28 = vadd.f32 %v3232_v21, %v3161_v57  ;;  %v10602_v21 = vld [vmem:[#allocation39_spill] sm:$0xff] }
0x1473   : > { %4426 = vperm.xlu1 %6763, %v4355_v37   ;;  %v3112_v55 = vadd.f32 %v8470_v10, %v3061_v54  ;;  %v3284_v10 = vsel %vm687_vm0, %v10582_v22, %v10584_v50  ;;  %v10600_v54 = vld [vmem:[#allocation33_spill] sm:$0xff] }
0x1474   : > { %v3288_v61 = vadd.f32 %v3283_v41, %v3237_v28  ;;  %v3418_v36 = vmul.f32 %v10599_v3, %v10600_v54  ;;  %v10604_v28 = vld [vmem:[#allocation34_spill] sm:$0xff] }
0x1475   : > { %v3163_v63 = vadd.f32 %v8476_v33, %v3112_v55  ;;  %v3335_v33 = vsel %vm687_vm0, %v10585_v25, %v10587_v7 }
0x1477   : > { %6764 = vset.pattern.permute.xlu1 %v10484_v60 }
0x1478   : > { %4460 = vperm.xlu1 %6764, %v4355_v37  }
0x147c   : > { %6765 = vset.pattern.permute.xlu1 %v10469_v40  ;;  %v10581_v40 = vld [vmem:[#allocation49_spill] sm:$0xff] }
0x147d   : > { %v3233_v1 = vsel %vm687_vm0, %v8488_v15, %v10581_v40  ;;  %v3239_v52 = vadd.f32 %v10581_v40, %v3163_v63  ;;  %v3334_v15 = vsel %vm687_vm0, %v10586_v42, %v10585_v25  ;;  %v10603_v40 = vld [vmem:[#allocation64_spill] sm:$0xff]  ;;  %v3419_v63 = vmul.f32 %v10599_v3, %v10604_v28 }
0x147e   : > { %v3238_v27 = vadd.f32 %v3233_v1, %v3162_v34  ;;  %v3339_v44 = vadd.f32 %v3334_v15, %v3288_v61  ;;  %v3427_v1 = vmul.f32 %v10603_v40, %v10602_v21  ;;  %v10624_v21 = vld [vmem:[#allocation83_spill] sm:$0xff]  ;;  %v10626_v28 = vld [vmem:[#allocation84_spill] sm:$0xff] }
0x147f   : > { %v3290_v48 = vadd.f32 %v10584_v50, %v3239_v52  ;;  %v10607_v52 = vld [vmem:[#allocation67_spill] sm:$0xff] }
0x1480   : > { %v3289_v30 = vadd.f32 %v3284_v10, %v3238_v27  ;;  %v3390_v47 = vadd.f32 %v3385_v20, %v3339_v44  ;;  %v10605_v27 = vld [vmem:[#allocation41_spill] sm:$0xff]  ;;  %v10606_v10 = vld [vmem:[#allocation43_spill] sm:$0xff] }
0x1481   : > { %v3341_v17 = vadd.f32 %v10587_v7, %v3290_v48  ;;  %v3428_v22 = vmul.f32 %v10603_v40, %v10605_v27  ;;  %v3429_v61 = vmul.f32 %v10603_v40, %v10606_v10  ;;  %v10610_v48 = vld [vmem:[#allocation66_spill] sm:$0xff] }
0x1482   : > { %v3340_v37 = vadd.f32 %v3335_v33, %v3289_v30  ;;  %v3400_v46 = vadd.f32 %v3397_v38, %v3390_v47  ;;  %v10608_v30 = vld [vmem:[#allocation69_spill] sm:$0xff]  ;;  %v10609_v33 = vld [vmem:[#allocation68_spill] sm:$0xff] }
0x1483   : > { %v3392_v12 = vadd.f32 %v10590_v56, %v3341_v17  ;;  %v3501_v25 = vsel %vm1510_vm9, %v10608_v30, %v10607_v52  ;;  %v3502_v44 = vsel %vm1510_vm9, %v10607_v52, %v10609_v33  ;;  %v10613_v17 = vld [vmem:[#allocation65_spill] sm:$0xff]  ;;  %v10629_v52 = vld [vmem:[#allocation87_spill] sm:$0xff]  ;;  %v10630_v33 = vld [vmem:[#allocation88_spill] sm:$0xff] }
0x1484   : > { %v3391_v31 = vadd.f32 %v3386_v11, %v3340_v37  ;;  %v3410_v49 = vadd.f32 %v3407_v9, %v3400_v46  ;;  %v10611_v37 = vld [vmem:[#allocation70_spill] sm:$0xff]  ;;  %v10612_v11 = vld [vmem:[#allocation72_spill] sm:$0xff] }
0x1485   : > { %v3402_v51 = vadd.f32 %v3399_v18, %v3392_v12  ;;  %v3552_v29 = vsel %vm1510_vm9, %v10611_v37, %v10610_v48  ;;  %v3553_v47 = vsel %vm1510_vm9, %v10610_v48, %v10612_v11  ;;  %v10616_v12 = vld [vmem:[#allocation75_spill] sm:$0xff]  ;;  %v10618_v18 = vld [vmem:[#allocation76_spill] sm:$0xff]  ;;  %v10631_v48 = vld [vmem:[#allocation90_spill] sm:$0xff] }
0x1486   : > { %v3401_v5 = vadd.f32 %v3398_v19, %v3391_v31  ;;  %v3420_v57 = vadd.f32 %v3417_v62, %v3410_v49  ;;  %v10614_v31 = vld [vmem:[#allocation71_spill] sm:$0xff]  ;;  %v10615_v19 = vld [vmem:[#allocation74_spill] sm:$0xff]  ;;  %v3655_v14 = vsel %vm1510_vm9, %v10616_v12, %v10618_v18  ;;  %v10620_v49 = vld [vmem:[#allocation77_spill] sm:$0xff] }
0x1487   : > { %v3412_v55 = vadd.f32 %v3409_v23, %v3402_v51  ;;  %v3603_v35 = vsel %vm1510_vm9, %v10614_v31, %v10613_v17  ;;  %v3604_v46 = vsel %vm1510_vm9, %v10613_v17, %v10615_v19  ;;  %v10621_v62 = vld [vmem:[#allocation81_spill] sm:$0xff]  ;;  %v10634_v17 = vld [vmem:[#allocation91_spill] sm:$0xff] }
0x1488   : > { %v3411_v6 = vadd.f32 %v3408_v24, %v3401_v5  ;;  %v3430_v0 = vadd.f32 %v3427_v1, %v3420_v57  ;;  %v10617_v5 = vld [vmem:[#allocation73_spill] sm:$0xff]  ;;  %v10619_v24 = vld [vmem:[#allocation78_spill] sm:$0xff]  ;;  %v10625_v1 = vld [vmem:[#allocation80_spill] sm:$0xff] }
0x1489   : > { %v3422_v41 = vadd.f32 %v3419_v63, %v3412_v55  ;;  %v3654_v13 = vsel %vm1510_vm9, %v10617_v5, %v10616_v12  ;;  %v3730_v51 = vsel %vm1742_vm10, %v10620_v49, %v10619_v24  ;;  %v3731_v54 = vsel %vm1742_vm10, %v10619_v24, %v10621_v62  ;;  %v10633_v11 = vld [vmem:[#allocation93_spill] sm:$0xff]  ;;  %v10639_v24 = vld [vmem:[#allocation98_spill] sm:$0xff] }
0x148a   : > { %v3421_v34 = vadd.f32 %v3418_v36, %v3411_v6  ;;  %v3506_v42 = vadd.f32 %v10608_v30, %v3430_v0  ;;  %v10622_v36 = vld [vmem:[#allocation79_spill] sm:$0xff]  ;;  %v3832_v63 = vsel %vm1742_vm10, %v10626_v28, %v10625_v1  ;;  %v10642_v62 = vld [vmem:[#allocation102_spill] sm:$0xff] }
0x148b   : > { %v3432_v15 = vadd.f32 %v3429_v61, %v3422_v41  ;;  %v3781_v23 = vsel %vm1742_vm10, %v10623_v53, %v10622_v36  ;;  %v3782_v40 = vsel %vm1742_vm10, %v10622_v36, %v10624_v21  ;;  %v4187_v41 = vpop.permute.xlu0 %4186  ;;  %v10628_v61 = vld [vmem:[#allocation85_spill] sm:$0xff] }
0x148c   : > { %v3431_v50 = vadd.f32 %v3428_v22, %v3421_v34  ;;  %v3557_v58 = vadd.f32 %v10611_v37, %v3506_v42  ;;  %v3883_v30 = vsel %vm1742_vm10, %v10629_v52, %v10628_v61  ;;  %v10632_v37 = vld [vmem:[#allocation89_spill] sm:$0xff] }
0x148d   : > { %v3508_v20 = vadd.f32 %v3502_v44, %v3432_v15  ;;  %v3884_v44 = vsel %vm1742_vm10, %v10628_v61, %v10630_v33 }
0x148e   : > { %v3507_v7 = vadd.f32 %v3501_v25, %v3431_v50  ;;  %v3608_v43 = vadd.f32 %v10614_v31, %v3557_v58  ;;  %v10627_v50 = vld [vmem:[#allocation86_spill] sm:$0xff] }
0x148f   : > { %v3559_v38 = vadd.f32 %v3553_v47, %v3508_v20  ;;  %v3833_v10 = vsel %vm1742_vm10, %v10625_v1, %v10627_v50  ;;  %v3960_v47 = vsel %vm1974_vm11, %v10631_v48, %v10633_v11  ;;  %v10635_v31 = vld [vmem:[#allocation94_spill] sm:$0xff]  ;;  %v10645_v1 = vld [vmem:[#allocation100_spill] sm:$0xff] }
0x1490   : > { %v3558_v56 = vadd.f32 %v3552_v29, %v3507_v7  ;;  %v3659_v59 = vadd.f32 %v10617_v5, %v3608_v43  ;;  %v4234_v7 = vpop.permute.xlu0 %4233  ;;  %v3959_v29 = vsel %vm1974_vm11, %v10632_v37, %v10631_v48  ;;  %v10637_v5 = vld [vmem:[#allocation92_spill] sm:$0xff] }
0x1491   : > { %v3610_v9 = vadd.f32 %v3604_v46, %v3559_v38  ;;  %v10636_v46 = vld [vmem:[#allocation95_spill] sm:$0xff] }
0x1492   : > { %v3609_v8 = vadd.f32 %v3603_v35, %v3558_v56  ;;  %v3735_v6 = vadd.f32 %v10620_v49, %v3659_v59  ;;  %v4010_v35 = vsel %vm1974_vm11, %v10635_v31, %v10634_v17  ;;  %v4011_v12 = vsel %vm1974_vm11, %v10634_v17, %v10636_v46 }
0x1493   : > { %v3661_v16 = vadd.f32 %v3655_v14, %v3610_v9  ;;  %v4062_v49 = vsel %vm1974_vm11, %v10637_v5, %v10639_v24 }
0x1494   : > { %v3660_v26 = vadd.f32 %v3654_v13, %v3609_v8  ;;  %v3786_v57 = vadd.f32 %v10623_v53, %v3735_v6  ;;  %v4238_v19 = vpop.permute.xlu0 %4237  ;;  %v10638_v13 = vld [vmem:[#allocation96_spill] sm:$0xff]  ;;  %v10641_v6 = vld [vmem:[#allocation99_spill] sm:$0xff] }
0x1495   : > { %v3737_v55 = vadd.f32 %v3731_v54, %v3661_v16  ;;  %v4061_v59 = vsel %vm1974_vm11, %v10638_v13, %v10637_v5  ;;  %v10643_v54 = vld [vmem:[#allocation101_spill] sm:$0xff] }
0x1496   : > { %v3736_v3 = vadd.f32 %v3730_v51, %v3660_v26  ;;  %v3837_v27 = vadd.f32 %v10626_v28, %v3786_v57  ;;  %v10640_v51 = vld [vmem:[#allocation97_spill] sm:$0xff]  ;;  %v4188_v36 = vsel %vm2206_vm12, %v10643_v54, %v10642_v62 }
0x1497   : > { %v3788_v22 = vadd.f32 %v3782_v40, %v3737_v55  ;;  %v4112_v16 = vsel %vm1974_vm11, %v10641_v6, %v10640_v51  ;;  %v10644_v55 = vld [vmem:[#allocation103_spill] sm:$0xff]  ;;  %v4113_v28 = vsel %vm1974_vm11, %v10640_v51, %v10645_v1 }
0x1498   : > { %v3787_v34 = vadd.f32 %v3781_v23, %v3736_v3  ;;  %v3888_v25 = vadd.f32 %v10629_v52, %v3837_v27  ;;  %v4285_v14 = vpop.permute.xlu0 %4284 }
0x1499   : > { %v3839_v42 = vadd.f32 %v3833_v10, %v3788_v22  ;;  %v4290_v22 = vsel %vm2206_vm12, %v4285_v14, %v8847_v2  ;;  %v4240_v10 = vsel %vm2206_vm12, %v10644_v55, %v4238_v19 }
0x149a   : > { %v3838_v0 = vadd.f32 %v3832_v63, %v3787_v34  ;;  %v3964_v58 = vadd.f32 %v10632_v37, %v3888_v25  ;;  %v4239_v34 = vsel %vm2206_vm12, %v4234_v7, %v10644_v55  ;;  %v4189_v63 = vsel %vm2206_vm12, %v10642_v62, %v4187_v41  ;;  %v4534_v55 = vld [vmem:[%s10102_s6] sm:$0xf] }
0x149b   : > { %v3890_v20 = vadd.f32 %v3884_v44, %v3839_v42 }
0x149c   : > { %v3889_v15 = vadd.f32 %v3883_v30, %v3838_v0  ;;  %v4015_v43 = vadd.f32 %v10635_v31, %v3964_v58  ;;  %v4289_v40 = vpop.permute.xlu0 %4288 }
0x149d   : > { %v3966_v38 = vadd.f32 %v3960_v47, %v3890_v20 }
0x149e   : > { %v3965_v56 = vadd.f32 %v3959_v29, %v3889_v15  ;;  %v4066_v9 = vadd.f32 %v10638_v13, %v4015_v43  ;;  %v4291_v15 = vsel %vm2206_vm12, %v8847_v2, %v4289_v40  ;;  %v10646_v2 = vld [vmem:[#allocation9_spill] sm:$0xff] }
0x149f   : > { %v4017_v26 = vadd.f32 %v4011_v12, %v3966_v38  ;;  %v10647_v12 = vld [vmem:[#allocation10_spill] sm:$0xff] }
0x14a0   : > { %v4016_v8 = vadd.f32 %v4010_v35, %v3965_v56  ;;  %v4117_v3 = vadd.f32 %v10641_v6, %v4066_v9 }
0x14a1   : > { %v4068_v53 = vadd.f32 %v4062_v49, %v4017_v26 }
0x14a2   : > { %v4067_v18 = vadd.f32 %v4061_v59, %v4016_v8  ;;  %v4193_v57 = vadd.f32 %v10643_v54, %v4117_v3 }
0x14a3   : > { %v4119_v0 = vadd.f32 %v4113_v28, %v4068_v53  ;;  %v4507_v53 = vld [vmem:[%s10103_s7] sm:$0xf]  ;;  %v10649_v28 = vmov 18  }
0x14a4   : > { %v4118_v23 = vadd.f32 %v4112_v16, %v4067_v18  ;;  %v4244_v27 = vadd.f32 %v4234_v7, %v4193_v57 }
0x14a5   : > { %v4195_v52 = vadd.f32 %v4189_v63, %v4119_v0  ;;  %v4515_v63 = vld [vmem:[#allocation3] ss:$8 sm:$0x3] }
0x14a6   : > { %v4194_v21 = vadd.f32 %v4188_v36, %v4118_v23  ;;  %v4295_v61 = vadd.f32 %v4285_v14, %v4244_v27  ;;  %v4524_v0 = vrot.slane %v4515_v63, %v10647_v12 }
0x14a7   : > { %v4246_v7 = vadd.f32 %v4240_v10, %v4195_v52  ;;  %v4707_v10 = vld [vmem:[%s10102_s6] sm:$0xf]  ;;  %v4688_v52 = vld [vmem:[#allocation3 + $0x1] ss:$8 sm:$0x3] }
0x14a8   : > { %v4245_v50 = vadd.f32 %v4239_v34, %v4194_v21 }
0x14a9   : > { %v4297_v37 = vadd.f32 %v4291_v15, %v4246_v7  ;;  %v10655_v7 = vmov 2  }
0x14aa   : > { %v4296_v30 = vadd.f32 %v4290_v22, %v4245_v50  ;;  %v4520_v22 = vrot.slane %v4515_v63, %v10646_v2  ;;  %v10650_v50 = vmov 27   ;;  %v10672_v63 = vmov 15  }
0x14d7   : > { %v4338_v25 = vpop.permute.xlu1 %4337  ;;  %v4336_v42 = vpop.permute.xlu0 %4335 }
0x14d8   : > { %v4341_v33 = vsel %vm2206_vm12, %v4336_v42, %v4338_v25  ;;  %v4346_v41 = vadd.f32 %v4336_v42, %v4295_v61  ;;  %v4525_v61 = vcombine.low %v4520_v22, %v4524_v0  ;;  %v4697_v42 = vrot.slane %v4688_v52, %v10647_v12 }
0x14d9   : > { %v4347_v44 = vadd.f32 %v4341_v33, %v4296_v30  ;;  %v10651_v30 = vmov 1   ;;  %v4917_v33 = vld [vmem:[#allocation3 + $0x2] ss:$8 sm:$0x3]  ;;  %v10674_v22 = vmov 33  }
0x14da   : > { %v4349_v48 = vmul.f32 0.2, %v4346_v41 }
0x14db   : > { %v4350_v29 = vmul.f32 0.2, %v4347_v44  ;;  %v4340_v58 = vpop.permute.xlu0 %4339 }
0x14dc   : > { %v4352_v20 = vmax.f32 %v4346_v41, %v4349_v48  ;;  %v4342_v56 = vsel %vm2206_vm12, %v4338_v25, %v4340_v58  ;;  %v4693_v25 = vrot.slane %v4688_v52, %v10646_v2  ;;  %v10653_v41 = vmov 19   ;;  %v9168_v58 = vld [vmem:[%s10102_s6] sm:$0xf] }
0x14dd   : > { %v4353_v11 = vmax.f32 %v4347_v44, %v4350_v29  ;;  %v4348_v47 = vadd.f32 %v4342_v56, %v4297_v37  ;;  %v4922_v44 = vrot.slane %v4917_v33, %v10646_v2  ;;  %v4926_v48 = vrot.slane %v4917_v33, %v10647_v12  ;;  %v4936_v37 = vld [vmem:[%s10102_s6] sm:$0xf] }
0x14de   : > { %v9116_v36 = vrot.slane %v4352_v20, %v10646_v2  ;;  %v9125_v57 = vrot.slane %v4352_v20, %v10647_v12  ;;  %v9133_v21 = vrot.slane %v4352_v20, %v7224_v4  ;;  %v9138_v1 = vrot.slane %v4352_v20, %v7242_v39 }
0x14df   : > { %v4351_v17 = vmul.f32 0.2, %v4348_v47  ;;  %v4496_v31 = vcombine.low %v4352_v20, %v4353_v11  ;;  %v9078_v43 = vrot.slane %v4353_v11, %v10646_v2  ;;  %v9088_v5 = vrot.slane %v4353_v11, %v10647_v12 }
0x14e0   : > { %v9098_v18 = vrot.slane %v4353_v11, %v7224_v4  ;;  %v9108_v6 = vrot.slane %v4353_v11, %v7242_v39  ;;  %v4698_v15 = vcombine.low %v4693_v25, %v4697_v42  ;;  %v4927_v29 = vcombine.low %v4922_v44, %v4926_v48  ;;  %v5434_v11 = vld [vmem:[%s10102_s6] sm:$0xf] }
0x14e1   : > { %v4354_v35 = vmax.f32 %v4348_v47, %v4351_v17  ;;  %4497 = vrot.lane.b32.xlu1 %v4496_v31, %s10565_s27  ;;  %v10657_v20 = vmov 3   ;;  %v10659_v56 = vmov 21   ;;  %v5146_v47 = vld [vmem:[#allocation3 + $0x3] ss:$8 sm:$0x3]  ;;  %v10660_v17 = vmov 20  }
0x14e2   : > { %v10661_v31 = vmov 14  }
0x14e3   : > { %v9081_v38 = vrot.slane %v4354_v35, %v10646_v2  ;;  %v9091_v13 = vrot.slane %v4354_v35, %v10647_v12  ;;  %v9101_v14 = vrot.slane %v4354_v35, %v7224_v4  ;;  %v9111_v16 = vrot.slane %v4354_v35, %v7242_v39 }
0x14e4   : > { %v4359_v8 = vpop.permute.xlu1 %4358 }
0x14e5   : > { %v4374_v19 = vmul.f32 %v9078_v43, %v4359_v8  ;;  %v4375_v46 = vmul.f32 %v9081_v38, %v4359_v8  ;;  %10648 = vst [vmem:[#allocation49_spill] sm:$0xff] %v9111_v16  ;;  %v4373_v23 = vmul.f32 %v9116_v36, %v4359_v8  ;;  %v10662_v8 = vmov 29  }
0x14e7   : > { %4381 = vrot.lane.b32.xlu1 %v4374_v19, %s10565_s27  ;;  %4383 = vrot.lane.b32.xlu0 %v4375_v46, %s10565_s27  ;;  %v10663_v19 = vmov 32  }
0x14e9   : > { %v4393_v59 = vpop.permute.xlu1 %4392 }
0x14ea   : > { %v4408_v9 = vmul.f32 %v9088_v5, %v4393_v59  ;;  %v4409_v26 = vmul.f32 %v9091_v13, %v4393_v59  ;;  %v4407_v34 = vmul.f32 %v9125_v57, %v4393_v59  ;;  %v10665_v59 = vmov 24  }
0x14ec   : > { %4415 = vrot.lane.b32.xlu1 %v4408_v9, %s10565_s27  ;;  %4417 = vrot.lane.b32.xlu0 %v4409_v26, %s10565_s27  ;;  %v10666_v9 = vmov 12   ;;  %v5415_v26 = vld [vmem:[#allocation3 + $0x5] ss:$8 sm:$0x3] }
0x14ee   : > { %v4427_v24 = vpop.permute.xlu1 %4426 }
0x14ef   : > { %v4442_v49 = vmul.f32 %v9098_v18, %v4427_v24  ;;  %v4443_v51 = vmul.f32 %v9101_v14, %v4427_v24  ;;  %v4441_v40 = vmul.f32 %v9133_v21, %v4427_v24  ;;  %v5420_v24 = vrot.slane %v5415_v26, %v10646_v2 }
0x14f1   : > { %4449 = vrot.lane.b32.xlu1 %v4442_v49, %s10565_s27  ;;  %4451 = vrot.lane.b32.xlu0 %v4443_v51, %s10565_s27  ;;  %v5424_v49 = vrot.slane %v5415_v26, %v10647_v12  ;;  %v10667_v51 = vmov 30  }
0x14f3   : > { %v4461_v3 = vpop.permute.xlu1 %4460 }
0x14f4   : > { %v4476_v62 = vmul.f32 %v9108_v6, %v4461_v3  ;;  %v4477_v54 = vmul.f32 %v9111_v16, %v4461_v3  ;;  %v4475_v27 = vmul.f32 %v9138_v1, %v4461_v3  ;;  %v5425_v3 = vcombine.low %v5420_v24, %v5424_v49 }
0x14f6   : > { %4483 = vrot.lane.b32.xlu1 %v4476_v62, %s10565_s27  ;;  %4485 = vrot.lane.b32.xlu0 %v4477_v54, %s10565_s27  ;;  %v10669_v62 = vmov 5   ;;  %v5644_v54 = vld [vmem:[#allocation3 + $0x6] ss:$8 sm:$0x3] }
0x14fa   : > { %4510 = vperm.xlu1 %6765, %v4507_v53   ;;  %4379 = vrot.lane.b32.xlu0 %v4373_v23, %s10565_s27  ;;  %v5649_v53 = vrot.slane %v5644_v54, %v10646_v2  ;;  %v5653_v23 = vrot.slane %v5644_v54, %v10647_v12  ;;  %v10686_v54 = vld [vmem:[#allocation13_spill] sm:$0xff] }
0x14fe   : > { %4537 = vperm.xlu1 %6765, %v4534_v55   ;;  %4413 = vrot.lane.b32.xlu0 %v4407_v34, %s10565_s27  ;;  %v5654_v34 = vcombine.low %v5649_v53, %v5653_v23 }
0x1502   : > { %6766 = vset.pattern.permute.xlu1 %v10649_v28  ;;  %4447 = vrot.lane.b32.xlu0 %v4441_v40, %s10565_s27  ;;  %v10671_v40 = vmov 6   ;;  %v9203_v28 = vld [vmem:[%s10102_s6] sm:$0xf] }
0x1503   : > { %4613 = vperm.xlu1 %6766, %v4534_v55  }
0x1506   : > { %4481 = vrot.lane.b32.xlu0 %v4475_v27, %s10565_s27 }
0x1507   : > { %6767 = vset.pattern.permute.xlu1 %v10650_v50 }
0x1508   : > { %4650 = vperm.xlu1 %6767, %v4534_v55  }
0x150a   : > { %4499 = vrot.lane.b32.xlu0 %v4354_v35, %s10565_s27  ;;  %v5151_v35 = vrot.slane %v5146_v47, %v10646_v2 }
0x150c   : > { %6768 = vset.pattern.permute.xlu1 %v10651_v30 }
0x150d   : > { %4710 = vperm.xlu1 %6768, %v4707_v10  }
0x150e   : > { %4526 = vrot.lane.b32.xlu0 %v4525_v61, %s10652_s18 }
0x1511   : > { %6769 = vset.pattern.permute.xlu1 %v10481_v45  ;;  %v10656_v45 = vmov 28  }
0x1512   : > { %4763 = vperm.xlu1 %6769, %v4707_v10   ;;  %4576 = vperm.xlu0 %6757, %v4534_v55   ;;  %v10670_v55 = vmov 23  }
0x1516   : > { %6770 = vset.pattern.permute.xlu1 %v10653_v41  ;;  %4699 = vrot.lane.b32.xlu0 %v4698_v15, %s10654_s20 }
0x1517   : > { %4814 = vperm.xlu1 %6770, %v4707_v10   ;;  %6772 = vset.pattern.permute.xlu0 %v10655_v7 }
0x151a   : > { %4939 = vperm.xlu0 %6772, %v4936_v37  }
0x151b   : > { %6771 = vset.pattern.permute.xlu1 %v10656_v45 }
0x151c   : > { %4865 = vperm.xlu1 %6771, %v4707_v10  }
0x151e   : > { %6776 = vset.pattern.permute.xlu0 %v10657_v20 }
0x151f   : > { %5168 = vperm.xlu0 %6776, %v9168_v58  }
0x1520   : > { %4928 = vrot.lane.b32.xlu1 %v4927_v29, %s10658_s1  ;;  %s10668_s1 = smov 1  }
0x1521   : > { %6773 = vset.pattern.permute.xlu1 %v10484_v60  ;;  %v5155_v60 = vrot.slane %v5146_v47, %v10647_v12 }
0x1523   : > { %6778 = vset.pattern.permute.xlu0 %v10659_v56  ;;  %v5156_v46 = vcombine.low %v5151_v35, %v5155_v60 }
0x1524   : > { %4992 = vperm.xlu1 %6773, %v4936_v37   ;;  %5272 = vperm.xlu0 %6778, %v9168_v58  }
0x1528   : > { %6774 = vset.pattern.permute.xlu1 %v10660_v17  ;;  %6781 = vset.pattern.permute.xlu0 %v10661_v31 }
0x1529   : > { %5043 = vperm.xlu1 %6774, %v4936_v37   ;;  %5490 = vperm.xlu0 %6781, %v5434_v11  }
0x152d   : > { %6775 = vset.pattern.permute.xlu1 %v10662_v8  ;;  %6783 = vset.pattern.permute.xlu0 %v10663_v19 }
0x152e   : > { %5094 = vperm.xlu1 %6775, %v4936_v37   ;;  %5592 = vperm.xlu0 %6783, %v5434_v11  }
0x1532   : > { %5157 = vrot.lane.b32.xlu1 %v5156_v46, %s10664_s0  ;;  %6786 = vset.pattern.permute.xlu0 %v10665_v59 }
0x1533   : > { %6777 = vset.pattern.permute.xlu1 %v10666_v9 }
0x1536   : > { %5221 = vperm.xlu1 %6777, %v9168_v58  }
0x153a   : > { %6779 = vset.pattern.permute.xlu1 %v10667_v51 }
0x153b   : > { %5323 = vperm.xlu1 %6779, %v9168_v58  }
0x153f   : > { %5426 = vrot.lane.b32.xlu1 %v5425_v3, %s10668_s1  ;;  %s6952_s1 = smov [#allocation6]  }
0x1540   : > { %6780 = vset.pattern.permute.xlu1 %v10669_v62 }
0x1543   : > { %5437 = vperm.xlu1 %6780, %v5434_v11  }
0x1547   : > { %6782 = vset.pattern.permute.xlu1 %v10670_v55 }
0x1548   : > { %5541 = vperm.xlu1 %6782, %v5434_v11  }
0x154c   : > { %5655 = vrot.lane.b32.xlu1 %v5654_v34, %s10528_s11  ;;  %s10689_s11 = smov 126  }
0x154d   : > { %6784 = vset.pattern.permute.xlu1 %v10671_v40 }
0x1550   : > { %5666 = vperm.xlu1 %6784, %v9203_v28  }
0x1553   : > { %v4498_v0 = vpop.permute.xlu1 %4497 }
0x1554   : > { %6785 = vset.pattern.permute.xlu1 %v10672_v63  ;;  %v4501_v45 = vrot.slane %v4498_v0, 4 }
0x1555   : > { %5719 = vperm.xlu1 %6785, %v9203_v28  }
0x1559   : > { %v9208_v27 = vpop.permute.xlu0 %4383  ;;  %6787 = vset.pattern.permute.xlu1 %v10674_v22  ;;  %v9213_v10 = vpop.permute.xlu1 %4381 }
0x155a   : > { %10673 = vst [vmem:[#allocation53_spill] sm:$0xff] %v9208_v27  ;;  %10676 = vst [vmem:[#allocation55_spill] sm:$0xff] %v9213_v10 }
0x155e   : > { %v9211_v50 = vpop.permute.xlu0 %4417  ;;  %v9217_v52 = vpop.permute.xlu1 %4415 }
0x155f   : > { %10675 = vst [vmem:[#allocation52_spill] sm:$0xff] %v9211_v50  ;;  %10678 = vst [vmem:[#allocation54_spill] sm:$0xff] %v9217_v52 }
0x1563   : > { %v9215_v61 = vpop.permute.xlu0 %4451  ;;  %v9221_v25 = vpop.permute.xlu1 %4449 }
0x1564   : > { %10677 = vst [vmem:[#allocation56_spill] sm:$0xff] %v9215_v61  ;;  %10680 = vst [vmem:[#allocation60_spill] sm:$0xff] %v9221_v25 }
0x1568   : > { %v9219_v30 = vpop.permute.xlu0 %4485  ;;  %v9227_v33 = vpop.permute.xlu1 %4483 }
0x1569   : > { %10679 = vst [vmem:[#allocation57_spill] sm:$0xff] %v9219_v30  ;;  %10683 = vst [vmem:[#allocation21_spill] sm:$0xff] %v9227_v33 }
0x156c   : > { %v9223_v42 = vpop.permute.xlu0 %4379 }
0x156d   : > { %10681 = vst [vmem:[#allocation58_spill] sm:$0xff] %v9223_v42 }
0x1570   : > { %v9225_v15 = vpop.permute.xlu0 %4413 }
0x1571   : > { %10682 = vst [vmem:[#allocation63_spill] sm:$0xff] %v9225_v15 }
0x1574   : > { %v9229_v41 = vpop.permute.xlu0 %4447 }
0x1575   : > { %10684 = vst [vmem:[#allocation59_spill] sm:$0xff] %v9229_v41  ;;  %v9231_v7 = vpop.permute.xlu1 %4510 }
0x1578   : > { %v9233_v44 = vpop.permute.xlu0 %4481 }
0x1579   : > { %10685 = vst [vmem:[#allocation31_spill] sm:$0xff] %v9233_v44  ;;  %v9235_v48 = vpop.permute.xlu1 %4537 }
0x157c   : > { %v4500_v37 = vpop.permute.xlu0 %4499 }
0x157d   : > { %v4502_v29 = vrot.slane %v4500_v37, 4  ;;  %v10687_v37 = vld [vmem:[#allocation19_spill] sm:$0xff] }
0x157e   : > { %v9237_v20 = vpop.permute.xlu1 %4613 }
0x157f   : > { %v4503_v56 = vsel %vm2522_vm13, %v4501_v45, %v4502_v29 }
0x1580   : > { %v9241_v11 = vsel %vm2153_vm6, %v4498_v0, %v4503_v56  ;;  %v9246_v35 = vpop.permute.xlu0 %4526  ;;  %v10688_v56 = vld [vmem:[#allocation14_spill] sm:$0xff] }
0x1581   : > { %4506 = vst [vmem:[#allocation2 + $0x4] sm:$0xff] %v9241_v11 }
0x1583   : > { %v9244_v47 = vpop.permute.xlu1 %4650 }
0x1588   : > { %v4711_v17 = vpop.permute.xlu1 %4710  ;;  %v9252_v26 = vld [vmem:[#allocation2] sm:$0xff]  ;;  %v4687_v49 = vld [vmem:[#allocation2 + $0x8] sm:$0xf] }
0x158d   : > { %v9248_v60 = vpop.permute.xlu0 %4576  ;;  %v4764_v8 = vpop.permute.xlu1 %4763 }
0x1591   : > { %v4700_v19 = vpop.permute.xlu0 %4699 }
0x1592   : > { %v4701_v46 = vrot.slane %v4700_v19, 4  ;;  %v9250_v59 = vpop.permute.xlu1 %4814 }
0x1594   : > { %v4702_v24 = vsel %vm687_vm0, %v4701_v46, %v4700_v19  ;;  %v9258_v3 = vmul.f32 %v4701_v46, %v4687_v49 }
0x1595   : > { %v9256_v51 = vmul.f32 %v4702_v24, %v9252_v26  ;;  %v4940_v30 = vpop.permute.xlu0 %4939 }
0x1596   : > { %v4726_v55 = vrot.slane %v9258_v3, %v10646_v2 }
0x1597   : > { %v9260_v62 = vpop.permute.xlu1 %4865  ;;  %v4722_v53 = vrot.slane %v9256_v51, %v10686_v54  ;;  %v4718_v23 = vrot.slane %v9256_v51, %v10646_v2  ;;  %v4824_v45 = vrot.slane %v9256_v51, %v10687_v37  ;;  %v4773_v19 = vrot.slane %v9256_v51, %v10688_v56 }
0x1598   : > { %v4741_v49 = vrot.slane %v4726_v55, %v10646_v2  ;;  %v4769_v44 = vrot.slane %v9256_v51, %v10647_v12  ;;  %v4875_v41 = vrot.slane %v9256_v51, %v7245_v32 }
0x1599   : > { %v4737_v40 = vrot.slane %v4722_v53, %v10646_v2  ;;  %v4733_v0 = vrot.slane %v4718_v23, %v10646_v2  ;;  %v4788_v23 = vrot.slane %v4773_v19, %v10647_v12  ;;  %v4777_v19 = vrot.slane %v9258_v3, %v10647_v12 }
0x159a   : > { %v4784_v33 = vrot.slane %v4769_v44, %v10647_v12 }
0x159b   : > { %v4929_v34 = vpop.permute.xlu1 %4928  ;;  %v4743_v29 = vmul.f32 %v4737_v40, %v4711_v17  ;;  %v4742_v24 = vmul.f32 %v4733_v0, %v4711_v17  ;;  %v4839_v40 = vrot.slane %v4824_v45, %v7224_v4  ;;  %v4794_v55 = vmul.f32 %v4788_v23, %v4764_v8 }
0x159c   : > { %v4930_v22 = vrot.slane %v4929_v34, 4  ;;  %v4744_v0 = vmul.f32 %v4741_v49, %v4711_v17  ;;  %v4820_v17 = vrot.slane %v9256_v51, %v7224_v4  ;;  %v4793_v44 = vmul.f32 %v4784_v33, %v4764_v8 }
0x159d   : > { %4750 = vrot.lane.b32.xlu1 %v4743_v29, %s10664_s0  ;;  %4748 = vrot.lane.b32.xlu0 %v4742_v24, %s10664_s0  ;;  %v4845_v45 = vmul.f32 %v4839_v40, %v9250_v59  ;;  %v4890_v24 = vrot.slane %v4875_v41, %v7242_v39  ;;  %v4792_v49 = vrot.slane %v4777_v19, %v10647_v12 }
0x159e   : > { %v4931_v46 = vsel %vm919_vm1, %v4930_v22, %v4929_v34  ;;  %v4835_v33 = vrot.slane %v4820_v17, %v7224_v4  ;;  %v4871_v17 = vrot.slane %v9256_v51, %v7242_v39 }
0x159f   : > { %v9279_v53 = vpop.permute.xlu1 %4992  ;;  %v9287_v34 = vmul.f32 %v4931_v46, %v9252_v26  ;;  %v4896_v23 = vmul.f32 %v4890_v24, %v9260_v62 }
0x15a0   : > { %v4844_v25 = vmul.f32 %v4835_v33, %v9250_v59  ;;  %v4886_v51 = vrot.slane %v4871_v17, %v7242_v39 }
0x15a1   : > { %4801 = vrot.lane.b32.xlu1 %v4794_v55, %s10664_s0  ;;  %4752 = vrot.lane.b32.xlu0 %v4744_v0, %s10664_s0  ;;  %v4947_v46 = vrot.slane %v9287_v34, %v10646_v2  ;;  %v4951_v40 = vrot.slane %v9287_v34, %v10686_v54  ;;  %v4828_v0 = vrot.slane %v9258_v3, %v7224_v4 }
0x15a2   : > { %v5002_v19 = vrot.slane %v9287_v34, %v10688_v56 }
0x15a3   : > { %v4962_v41 = vrot.slane %v4947_v46, %v10646_v2  ;;  %v4966_v24 = vrot.slane %v4951_v40, %v10646_v2  ;;  %v4843_v15 = vrot.slane %v4828_v0, %v7224_v4  ;;  %v5053_v0 = vrot.slane %v9287_v34, %v10687_v37 }
0x15a4   : > { %v9292_v29 = vpop.permute.xlu1 %5043  ;;  %v5017_v40 = vrot.slane %v5002_v19, %v10647_v12 }
0x15a5   : > { %4852 = vrot.lane.b32.xlu1 %v4845_v45, %s10664_s0  ;;  %4799 = vrot.lane.b32.xlu0 %v4793_v44, %s10664_s0  ;;  %v4795_v45 = vmul.f32 %v4792_v49, %v4764_v8  ;;  %v4971_v44 = vmul.f32 %v4962_v41, %v4940_v30  ;;  %v4879_v49 = vrot.slane %v9258_v3, %v7242_v39 }
0x15a6   : > { %v4972_v41 = vmul.f32 %v4966_v24, %v4940_v30  ;;  %v4846_v33 = vmul.f32 %v4843_v15, %v9250_v59  ;;  %v5023_v3 = vmul.f32 %v5017_v40, %v9279_v53  ;;  %v5068_v19 = vrot.slane %v5053_v0, %v7224_v4 }
0x15a7   : > { %v4894_v15 = vrot.slane %v4879_v49, %v7242_v39  ;;  %v4895_v59 = vmul.f32 %v4886_v51, %v9260_v62  ;;  %v4998_v49 = vrot.slane %v9287_v34, %v10647_v12 }
0x15a8   : > { %v5074_v17 = vmul.f32 %v5068_v19, %v9292_v29 }
0x15a9   : > { %v9309_v55 = vpop.permute.xlu1 %5094  ;;  %4903 = vrot.lane.b32.xlu1 %v4896_v23, %s10664_s0  ;;  %4803 = vrot.lane.b32.xlu0 %v4795_v45, %s10664_s0  ;;  %v4916_v23 = vld [vmem:[#allocation2 + $0x8] sm:$0xf]  ;;  %v4897_v40 = vmul.f32 %v4894_v15, %v9260_v62  ;;  %v5169_v15 = vpop.permute.xlu0 %5168 }
0x15aa   : > { %v9335_v45 = vmul.f32 %v4930_v22, %v4916_v23 }
0x15ac   : > { %v4955_v22 = vrot.slane %v9335_v45, %v10646_v2  ;;  %v5006_v62 = vrot.slane %v9335_v45, %v10647_v12 }
0x15ad   : > { %v9319_v46 = vpop.permute.xlu1 %5157  ;;  %4977 = vrot.lane.b32.xlu1 %v4971_v44, %s10689_s11  ;;  %4850 = vrot.lane.b32.xlu0 %v4844_v25, %s10664_s0  ;;  %v5104_v44 = vrot.slane %v9287_v34, %v7245_v32 }
0x15ae   : > { %v5159_v8 = vrot.slane %v9319_v46, 4 }
0x15af   : > { %v5119_v0 = vrot.slane %v5104_v44, %v7242_v39 }
0x15b0   : > { %v5160_v25 = vsel %vm740_vm2, %v5159_v8, %v9319_v46  ;;  %v5892_v46 = vld [vmem:[%s10102_s6] sm:$0xf] }
0x15b1   : > { %4979 = vrot.lane.b32.xlu1 %v4972_v41, %s10689_s11  ;;  %4854 = vrot.lane.b32.xlu0 %v4846_v33, %s10664_s0  ;;  %v9346_v24 = vmul.f32 %v5160_v25, %v9252_v26  ;;  %v4970_v41 = vrot.slane %v4955_v22, %v10646_v2  ;;  %v5125_v33 = vmul.f32 %v5119_v0, %v9309_v55 }
0x15b3   : > { %v5176_v23 = vrot.slane %v9346_v24, %v10646_v2  ;;  %v5180_v51 = vrot.slane %v9346_v24, %v10686_v54  ;;  %v4973_v19 = vmul.f32 %v4970_v41, %v4940_v30  ;;  %v5231_v44 = vrot.slane %v9346_v24, %v10688_v56  ;;  %v5873_v30 = vld [vmem:[#allocation3 + $0x7] ss:$8 sm:$0x3] }
0x15b5   : > { %5030 = vrot.lane.b32.xlu1 %v5023_v3, %s10689_s11  ;;  %4901 = vrot.lane.b32.xlu0 %v4895_v59, %s10664_s0  ;;  %v5191_v25 = vrot.slane %v5176_v23, %v10646_v2  ;;  %v5013_v3 = vrot.slane %v4998_v49, %v10647_v12  ;;  %v5195_v59 = vrot.slane %v5180_v51, %v10646_v2 }
0x15b6   : > { %v5246_v41 = vrot.slane %v5231_v44, %v10647_v12  ;;  %v5100_v44 = vrot.slane %v9287_v34, %v7242_v39 }
0x15b7   : > { %v5200_v22 = vmul.f32 %v5191_v25, %v5169_v15  ;;  %v5022_v23 = vmul.f32 %v5013_v3, %v9279_v53  ;;  %v5201_v49 = vmul.f32 %v5195_v59, %v5169_v15  ;;  %v5878_v25 = vrot.slane %v5873_v30, %v10646_v2  ;;  %v5222_v3 = vpop.permute.xlu1 %5221 }
0x15b9   : > { %5081 = vrot.lane.b32.xlu1 %v5074_v17, %s10689_s11  ;;  %4905 = vrot.lane.b32.xlu0 %v4897_v40, %s10664_s0  ;;  %v5021_v17 = vrot.slane %v5006_v62, %v10647_v12  ;;  %v5049_v40 = vrot.slane %v9287_v34, %v7224_v4  ;;  %v5882_v62 = vrot.slane %v5873_v30, %v10647_v12 }
0x15ba   : > { %v5108_v30 = vrot.slane %v9335_v45, %v7242_v39 }
0x15bb   : > { %v5024_v0 = vmul.f32 %v5021_v17, %v9279_v53  ;;  %v5064_v51 = vrot.slane %v5049_v40, %v7224_v4  ;;  %v5883_v53 = vcombine.low %v5878_v25, %v5882_v62  ;;  %v5145_v17 = vld [vmem:[#allocation2 + $0x8] sm:$0xf] }
0x15bc   : > { %v9402_v40 = vmul.f32 %v5159_v8, %v5145_v17  ;;  %v6102_v17 = vld [vmem:[#allocation3 + $0x10] ss:$8 sm:$0x3] }
0x15bd   : > { %5132 = vrot.lane.b32.xlu1 %v5125_v33, %s10689_s11  ;;  %4981 = vrot.lane.b32.xlu0 %v4973_v19, %s10689_s11  ;;  %v5057_v33 = vrot.slane %v9335_v45, %v7224_v4  ;;  %v5252_v19 = vmul.f32 %v5246_v41, %v5222_v3 }
0x15be   : > { %v5184_v41 = vrot.slane %v9402_v40, %v10646_v2  ;;  %v5235_v25 = vrot.slane %v9402_v40, %v10647_v12 }
0x15bf   : > { %v5072_v59 = vrot.slane %v5057_v33, %v7224_v4  ;;  %v10690_v33 = vmov 16  }
0x15c0   : > { %v5199_v45 = vrot.slane %v5184_v41, %v10646_v2  ;;  %v10695_v41 = vmov 7  }
0x15c1   : > { %5206 = vrot.lane.b32.xlu1 %v5200_v22, %s10654_s20  ;;  %5028 = vrot.lane.b32.xlu0 %v5022_v23, %s10689_s11  ;;  %v5073_v22 = vmul.f32 %v5064_v51, %v9292_v29  ;;  %v5075_v23 = vmul.f32 %v5072_v59, %v9292_v29  ;;  %v5123_v29 = vrot.slane %v5108_v30, %v7242_v39 }
0x15c2   : > { %v5202_v51 = vmul.f32 %v5199_v45, %v5169_v15  ;;  %v6121_v15 = vld [vmem:[%s10102_s6] sm:$0xf]  ;;  %v6107_v30 = vrot.slane %v6102_v17, %v10646_v2 }
0x15c3   : > { %v5126_v8 = vmul.f32 %v5123_v29, %v9309_v55 }
0x15c5   : > { %5208 = vrot.lane.b32.xlu1 %v5201_v49, %s10654_s20  ;;  %5032 = vrot.lane.b32.xlu0 %v5024_v0, %s10689_s11  ;;  %v5115_v49 = vrot.slane %v5100_v44, %v7242_v39  ;;  %v5227_v0 = vrot.slane %v9346_v24, %v10647_v12  ;;  %v10693_v44 = vmov 17  }
0x15c7   : > { %v5124_v34 = vmul.f32 %v5115_v49, %v9309_v55  ;;  %v5242_v62 = vrot.slane %v5227_v0, %v10647_v12  ;;  %v5250_v55 = vrot.slane %v5235_v25, %v10647_v12  ;;  %v6111_v49 = vrot.slane %v6102_v17, %v10647_v12  ;;  %v5273_v0 = vpop.permute.xlu0 %5272 }
0x15c9   : > { %5259 = vrot.lane.b32.xlu1 %v5252_v19, %s10654_s20  ;;  %5079 = vrot.lane.b32.xlu0 %v5073_v22, %s10689_s11  ;;  %v10691_v19 = vmov 25   ;;  %v5251_v59 = vmul.f32 %v5242_v62, %v5222_v3  ;;  %v10692_v22 = vmov 34   ;;  %v6112_v29 = vcombine.low %v6107_v30, %v6111_v49 }
0x15cd   : > { %5884 = vrot.lane.b32.xlu1 %v5883_v53, %s10547_s26  ;;  %5083 = vrot.lane.b32.xlu0 %v5075_v23, %s10689_s11  ;;  %v5253_v53 = vmul.f32 %v5250_v55, %v5222_v3  ;;  %v5324_v23 = vpop.permute.xlu1 %5323  ;;  %v5278_v3 = vrot.slane %v9346_v24, %v7224_v4 }
0x15d1   : > { %5821 = vperm.xlu1 %6787, %v9203_v28   ;;  %5130 = vrot.lane.b32.xlu0 %v5124_v34, %s10689_s11  ;;  %v10694_v34 = vmov 26   ;;  %v5427_v45 = vpop.permute.xlu1 %5426 }
0x15d2   : > { %v5428_v55 = vrot.slane %v5427_v45, 4 }
0x15d4   : > { %v5429_v49 = vsel %vm1457_vm3, %v5428_v55, %v5427_v45 }
0x15d5   : > { %6789 = vset.pattern.permute.xlu1 %v10690_v33  ;;  %5134 = vrot.lane.b32.xlu0 %v5126_v8, %s10689_s11  ;;  %v5286_v8 = vrot.slane %v9402_v40, %v7224_v4  ;;  %v10696_v33 = vmov 4  }
0x15d6   : > { %5948 = vperm.xlu1 %6789, %v5892_v46  }
0x15d7   : > { %v5301_v25 = vrot.slane %v5286_v8, %v7224_v4  ;;  %v9467_v8 = vmul.f32 %v5429_v49, %v9241_v11  ;;  %v10701_v49 = vmov 31  }
0x15d9   : > { %5210 = vrot.lane.b32.xlu0 %v5202_v51, %s10654_s20  ;;  %v10697_v51 = vmov 8  }
0x15da   : > { %6790 = vset.pattern.permute.xlu1 %v10691_v19  ;;  %v5282_v19 = vrot.slane %v9346_v24, %v10687_v37 }
0x15db   : > { %5999 = vperm.xlu1 %6790, %v5892_v46  }
0x15dc   : > { %v5297_v30 = vrot.slane %v5282_v19, %v7224_v4 }
0x15dd   : > { %5257 = vrot.lane.b32.xlu0 %v5251_v59, %s10654_s20  ;;  %v5438_v59 = vpop.permute.xlu1 %5437 }
0x15df   : > { %6791 = vset.pattern.permute.xlu1 %v10692_v22  ;;  %v10698_v22 = vmov 22  }
0x15e0   : > { %6050 = vperm.xlu1 %6791, %v5892_v46  }
0x15e1   : > { %5261 = vrot.lane.b32.xlu0 %v5253_v53, %s10654_s20  ;;  %v5304_v53 = vmul.f32 %v5301_v25, %v5273_v0  ;;  %v10700_v25 = vmov 13  }
0x15e4   : > { %6793 = vset.pattern.permute.xlu1 %v10693_v44  ;;  %v5333_v44 = vrot.slane %v9346_v24, %v7245_v32 }
0x15e5   : > { %6177 = vperm.xlu1 %6793, %v6121_v15   ;;  %5770 = vperm.xlu0 %6786, %v9203_v28   ;;  %v5293_v28 = vrot.slane %v5278_v3, %v7224_v4  ;;  %v10699_v3 = vmov 35  }
0x15e7   : > { %v5302_v62 = vmul.f32 %v5293_v28, %v5273_v0  ;;  %v9469_v28 = vpop.permute.xlu1 %5541 }
0x15e9   : > { %6794 = vset.pattern.permute.xlu1 %v10694_v34  ;;  %6788 = vset.pattern.permute.xlu0 %v10695_v41  ;;  %v5348_v34 = vrot.slane %v5333_v44, %v7242_v39 }
0x15ea   : > { %6228 = vperm.xlu1 %6794, %v6121_v15   ;;  %5895 = vperm.xlu0 %6788, %v5892_v46   ;;  %v5329_v46 = vrot.slane %v9346_v24, %v7242_v39  ;;  %v5303_v24 = vmul.f32 %v5297_v30, %v5273_v0  ;;  %v5449_v0 = vrot.slane %v9467_v8, %v10686_v54 }
0x15ec   : > { %v5344_v17 = vrot.slane %v5329_v46, %v7242_v39  ;;  %v9481_v46 = vpop.permute.xlu1 %5655 }
0x15ee   : > { %6796 = vset.pattern.permute.xlu1 %v10696_v33  ;;  %6113 = vrot.lane.b32.xlu0 %v6112_v29, %s10565_s27  ;;  %v5353_v41 = vmul.f32 %v5344_v17, %v5324_v23  ;;  %v5414_v29 = vld [vmem:[#allocation2 + $0xc] sm:$0xf]  ;;  %v5337_v33 = vrot.slane %v9402_v40, %v7242_v39  ;;  %v5496_v17 = vrot.slane %v9467_v8, %v10647_v12 }
0x15ef   : > { %5374 = vperm.xlu1 %6796, %v9168_v58   ;;  %6792 = vset.pattern.permute.xlu0 %v10697_v51  ;;  %v9474_v45 = vmul.f32 %v5428_v55, %v5414_v29  ;;  %v5445_v51 = vrot.slane %v9467_v8, %v10646_v2 }
0x15f0   : > { %v9496_v30 = vpop.permute.xlu1 %5666 }
0x15f1   : > { %v5453_v40 = vrot.slane %v9474_v45, %v10646_v2  ;;  %v5460_v19 = vrot.slane %v5445_v51, %v10646_v2  ;;  %v5547_v51 = vrot.slane %v9467_v8, %v7224_v4 }
0x15f2   : > { %6124 = vperm.xlu0 %6792, %v6121_v15  }
0x15f3   : > { %5308 = vrot.lane.b32.xlu1 %v5302_v62, %s10654_s20  ;;  %v5352_v62 = vrot.slane %v5337_v33, %v7242_v39  ;;  %v5469_v44 = vmul.f32 %v5460_v19, %v5438_v59  ;;  %v5511_v33 = vrot.slane %v5496_v17, %v10647_v12 }
0x15f4   : > { %6798 = vset.pattern.permute.xlu1 %v10698_v22  ;;  %v5468_v22 = vrot.slane %v5453_v40, %v10646_v2  ;;  %v9515_v19 = vpop.permute.xlu1 %5719 }
0x15f5   : > { %v5355_v55 = vmul.f32 %v5352_v62, %v5324_v23 }
0x15f6   : > { %6795 = vset.pattern.permute.xlu0 %v10699_v3  ;;  %v5500_v3 = vrot.slane %v9467_v8, %v10688_v56  ;;  %v5471_v29 = vmul.f32 %v5468_v22, %v5438_v59  ;;  %v4514_v22 = vld [vmem:[#allocation2 + $0x8] sm:$0xf] }
0x15f7   : > { %5312 = vrot.lane.b32.xlu1 %v5304_v53, %s10654_s20  ;;  %6279 = vperm.xlu0 %6795, %v6121_v15   ;;  %v5354_v15 = vmul.f32 %v5348_v34, %v5324_v23  ;;  %v5464_v53 = vrot.slane %v5449_v0, %v10646_v2  ;;  %v5491_v23 = vpop.permute.xlu0 %5490  ;;  %v4528_v34 = vrot.slane %v9246_v35, 4  ;;  %v5657_v0 = vrot.slane %v9481_v46, 4 }
0x15f9   : > { %v4529_v62 = vsel %vm512_vm7, %v4528_v34, %v9246_v35  ;;  %v5551_v35 = vrot.slane %v9467_v8, %v10687_v37 }
0x15fb   : > { %5359 = vrot.lane.b32.xlu1 %v5353_v41, %s10654_s20  ;;  %5310 = vrot.lane.b32.xlu0 %v5303_v24, %s10654_s20  ;;  %v5504_v41 = vrot.slane %v9474_v45, %v10647_v12  ;;  %v5470_v24 = vmul.f32 %v5464_v53, %v5438_v59  ;;  %v5555_v59 = vrot.slane %v9474_v45, %v7224_v4 }
0x15fc   : > { %6797 = vset.pattern.permute.xlu0 %v10700_v25 }
0x15fd   : > { %v5519_v40 = vrot.slane %v5504_v41, %v10647_v12 }
0x15ff   : > { %5361 = vrot.lane.b32.xlu1 %v5354_v15, %s10654_s20  ;;  %5384 = vperm.xlu0 %6797, %v9168_v58   ;;  %v5515_v15 = vrot.slane %v5500_v3, %v10647_v12  ;;  %v5522_v17 = vmul.f32 %v5519_v40, %v5491_v23 }
0x1601   : > { %v5521_v53 = vmul.f32 %v5515_v15, %v5491_v23 }
0x1603   : > { %5394 = vperm.xlu1 %6798, %v9168_v58   ;;  %5363 = vrot.lane.b32.xlu0 %v5355_v55, %s10654_s20  ;;  %v5520_v55 = vmul.f32 %v5511_v33, %v5491_v23  ;;  %v9543_v23 = vmul.f32 %v4528_v34, %v4514_v22  ;;  %v5643_v33 = vld [vmem:[#allocation2 + $0xc] sm:$0xf] }
0x1604   : > { %6799 = vset.pattern.permute.xlu0 %v10701_v49 }
0x1607   : > { %5475 = vrot.lane.b32.xlu1 %v5469_v44, %s10521_s30  ;;  %5404 = vperm.xlu0 %6799, %v9168_v58   ;;  %v9519_v58 = vmul.f32 %v4529_v62, %v9252_v26  ;;  %v5562_v44 = vrot.slane %v5547_v51, %v7224_v4  ;;  %v5658_v26 = vsel %vm1689_vm4, %v5657_v0, %v9481_v46 }
0x1608   : > { %6801 = vset.pattern.permute.xlu1 %v10700_v25  ;;  %v9523_v25 = vpop.permute.xlu0 %5592  ;;  %v5566_v46 = vrot.slane %v5551_v35, %v7224_v4  ;;  %v5602_v51 = vrot.slane %v9467_v8, %v7245_v32  ;;  %v9552_v62 = vmul.f32 %v5658_v26, %v9241_v11  ;;  %v9560_v35 = vmul.f32 %v5657_v0, %v5643_v33 }
0x1609   : > { %v4545_v3 = vrot.slane %v9519_v58, %v10646_v2  ;;  %v4549_v41 = vrot.slane %v9519_v58, %v10686_v54  ;;  %v5571_v15 = vmul.f32 %v5562_v44, %v9469_v28  ;;  %v5606_v44 = vrot.slane %v9474_v45, %v7242_v39 }
0x160a   : > { %v4582_v26 = vrot.slane %v9519_v58, %v10647_v12  ;;  %v4586_v0 = vrot.slane %v9519_v58, %v10688_v56  ;;  %v4623_v45 = vrot.slane %v9519_v58, %v10687_v37  ;;  %v5682_v33 = vrot.slane %v9560_v35, %v10646_v2 }
0x160b   : > { %5477 = vrot.lane.b32.xlu1 %v5470_v24, %s10521_s30  ;;  %5479 = vrot.lane.b32.xlu0 %v5471_v29, %s10521_s30  ;;  %v5598_v24 = vrot.slane %v9467_v8, %v7242_v39  ;;  %v4560_v34 = vrot.slane %v4545_v3, %v10646_v2  ;;  %v4553_v8 = vrot.slane %v9543_v23, %v10646_v2 }
0x160c   : > { %6800 = vset.pattern.permute.xlu0 %v10666_v9  ;;  %v5570_v9 = vrot.slane %v5555_v59, %v7224_v4  ;;  %v4564_v59 = vrot.slane %v4549_v41, %v10646_v2  ;;  %v5617_v3 = vrot.slane %v5602_v51, %v7242_v39  ;;  %v5674_v41 = vrot.slane %v9552_v62, %v10646_v2 }
0x160d   : > { %v4568_v51 = vrot.slane %v4553_v8, %v10646_v2  ;;  %v5621_v61 = vrot.slane %v5606_v44, %v7242_v39  ;;  %v5678_v42 = vrot.slane %v9552_v62, %v10686_v54  ;;  %v4656_v8 = vrot.slane %v9519_v58, %v7242_v39 }
0x160e   : > { %v5623_v52 = vmul.f32 %v5617_v3, %v9523_v25  ;;  %v5689_v50 = vrot.slane %v5674_v41, %v10646_v2  ;;  %v4660_v44 = vrot.slane %v9519_v58, %v7245_v32  ;;  %v5697_v41 = vrot.slane %v5682_v33, %v10646_v2 }
0x160f   : > { %v9532_v49 = vpop.permute.xlu1 %4750  ;;  %5526 = vrot.lane.b32.xlu1 %v5520_v55, %s10521_s30  ;;  %5528 = vrot.lane.b32.xlu0 %v5521_v53, %s10521_s30  ;;  %v9541_v29 = vpop.permute.xlu0 %4748  ;;  %v5573_v55 = vmul.f32 %v5570_v9, %v9469_v28  ;;  %v5572_v53 = vmul.f32 %v5566_v46, %v9469_v28  ;;  %v4619_v9 = vrot.slane %v9519_v58, %v7224_v4 }
0x1610   : > { %v4569_v46 = vmul.f32 %v4560_v34, %v9235_v48  ;;  %v4597_v34 = vrot.slane %v4582_v26, %v10647_v12  ;;  %v4638_v26 = vrot.slane %v4623_v45, %v7224_v4  ;;  %v4571_v58 = vmul.f32 %v4568_v51, %v9235_v48 }
0x1611   : > { %v5624_v27 = vmul.f32 %v5621_v61, %v9523_v25  ;;  %v5693_v16 = vrot.slane %v5678_v42, %v10646_v2  ;;  %v4627_v33 = vrot.slane %v9543_v23, %v7224_v4  ;;  %v4671_v42 = vrot.slane %v4656_v8, %v7242_v39 }
0x1612   : > { %v4606_v45 = vmul.f32 %v4597_v34, %v9248_v60  ;;  %v5700_v34 = vmul.f32 %v5697_v41, %v9496_v30  ;;  %v4644_v8 = vmul.f32 %v4638_v26, %v9237_v20 }
0x1613   : > { %v9554_v40 = vpop.permute.xlu1 %4801  ;;  %5530 = vrot.lane.b32.xlu1 %v5522_v17, %s10521_s30  ;;  %5577 = vrot.lane.b32.xlu0 %v5571_v15, %s10521_s30  ;;  %v9563_v22 = vpop.permute.xlu0 %4752  ;;  %v5613_v17 = vrot.slane %v5598_v24, %v7242_v39  ;;  %v4570_v24 = vmul.f32 %v4564_v59, %v9235_v48  ;;  %v4601_v59 = vrot.slane %v4586_v0, %v10647_v12 }
0x1614   : > { %v4572_v0 = vadd.f32 %v4569_v46, %v9231_v7  ;;  %v5699_v63 = vmul.f32 %v5693_v16, %v9496_v30  ;;  %v4642_v41 = vrot.slane %v4627_v33, %v7224_v4  ;;  %v4755_v33 = vsel %vm740_vm2, %v9532_v49, %v9563_v22 }
0x1615   : > { %v4573_v3 = vadd.f32 %v4570_v24, %v9231_v7  ;;  %v4607_v46 = vmul.f32 %v4601_v59, %v9248_v60  ;;  %v5698_v24 = vmul.f32 %v5689_v50, %v9496_v30  ;;  %v4574_v59 = vadd.f32 %v4571_v58, %v9231_v7 }
0x1616   : > { %v4664_v7 = vrot.slane %v9543_v23, %v7242_v39 }
0x1617   : > { %v9580_v28 = vpop.permute.xlu1 %4852  ;;  %5579 = vrot.lane.b32.xlu1 %v5572_v53, %s10521_s30  ;;  %5581 = vrot.lane.b32.xlu0 %v5573_v55, %s10521_s30  ;;  %v9590_v15 = vpop.permute.xlu0 %4799  ;;  %v5622_v53 = vmul.f32 %v5613_v17, %v9523_v25  ;;  %v4634_v55 = vrot.slane %v4619_v9, %v7224_v4  ;;  %v4590_v17 = vrot.slane %v9543_v23, %v10647_v12 }
0x1618   : > { %v4609_v25 = vadd.f32 %v4606_v45, %v4572_v0  ;;  %v4610_v51 = vadd.f32 %v4607_v46, %v4573_v3  ;;  %v4675_v0 = vrot.slane %v4660_v44, %v7242_v39  ;;  %v4680_v46 = vmul.f32 %v4671_v42, %v9244_v47 }
0x1619   : > { %v4605_v48 = vrot.slane %v4590_v17, %v10647_v12  ;;  %v5733_v17 = vrot.slane %v9560_v35, %v10647_v12 }
0x161b   : > { %v9608_v10 = vpop.permute.xlu1 %4903  ;;  %5628 = vrot.lane.b32.xlu1 %v5622_v53, %s10521_s30  ;;  %5630 = vrot.lane.b32.xlu0 %v5623_v52, %s10521_s30  ;;  %v9616_v9 = vpop.permute.xlu0 %4803  ;;  %v5725_v53 = vrot.slane %v9552_v62, %v10647_v12  ;;  %v5729_v52 = vrot.slane %v9552_v62, %v10688_v56  ;;  %v4608_v16 = vmul.f32 %v4605_v48, %v9248_v60 }
0x161c   : > { %v5748_v44 = vrot.slane %v5733_v17, %v10647_v12  ;;  %v4645_v60 = vmul.f32 %v4642_v41, %v9237_v20 }
0x161d   : > { %v5740_v31 = vrot.slane %v5725_v53, %v10647_v12  ;;  %v5744_v3 = vrot.slane %v5729_v52, %v10647_v12  ;;  %v4647_v53 = vadd.f32 %v4644_v8, %v4610_v51  ;;  %v4611_v26 = vadd.f32 %v4608_v16, %v4574_v59 }
0x161e   : > { %v4754_v52 = vsel %vm740_vm2, %v9541_v29, %v9532_v49  ;;  %v4806_v29 = vsel %vm740_vm2, %v9554_v40, %v9616_v9 }
0x161f   : > { %v9631_v61 = vpop.permute.xlu1 %4977  ;;  %5632 = vrot.lane.b32.xlu1 %v5624_v27, %s10521_s30  ;;  %5704 = vrot.lane.b32.xlu0 %v5698_v24, %s10539_s21  ;;  %v4851_v50 = vpop.permute.xlu0 %4850  ;;  %v4643_v27 = vmul.f32 %v4634_v55, %v9237_v20  ;;  %v5749_v45 = vmul.f32 %v5740_v31, %v9515_v19  ;;  %v4681_v24 = vmul.f32 %v4675_v0, %v9244_v47  ;;  %s6837_s30 = sshll.u32 %s6952_s1, 4  ;;  %s6838_s30 = int_to_ptr.vmem [resolvable:$false] %s6837_s30 }
0x1620   : > { %v5750_v23 = vmul.f32 %v5744_v3, %v9515_v19  ;;  %v5751_v20 = vmul.f32 %v5748_v44, %v9515_v19  ;;  %v4648_v51 = vadd.f32 %v4645_v60, %v4611_v26 }
0x1621   : > { %v4646_v58 = vadd.f32 %v4643_v27, %v4609_v25  ;;  %v4684_v42 = vadd.f32 %v4681_v24, %v4647_v53  ;;  %v4856_v27 = vsel %vm740_vm2, %v4851_v50, %v9580_v28 }
0x1623   : > { %v4980_v30 = vpop.permute.xlu1 %4979  ;;  %5706 = vrot.lane.b32.xlu1 %v5699_v63, %s10539_s21  ;;  %5708 = vrot.lane.b32.xlu0 %v5700_v34, %s10539_s21  ;;  %v4855_v55 = vpop.permute.xlu0 %4854  ;;  %v4679_v63 = vrot.slane %v4664_v7, %v7242_v39  ;;  %v4683_v31 = vadd.f32 %v4680_v46, %v4646_v58  ;;  %v4805_v34 = vsel %vm740_vm2, %v9590_v15, %v9554_v40 }
0x1624   : > { %v4760_v59 = vadd.f32 %v4755_v33, %v4684_v42  ;;  %v4857_v8 = vsel %vm740_vm2, %v9580_v28, %v4855_v55  ;;  %v4983_v24 = vsel %vm972_vm8, %v9631_v61, %v4980_v30 }
0x1625   : > { %v4759_v49 = vadd.f32 %v4754_v52, %v4683_v31  ;;  %v4682_v17 = vmul.f32 %v4679_v63, %v9244_v47 }
0x1626   : > { %v4811_v3 = vadd.f32 %v4806_v29, %v4760_v59 }
0x1627   : > { %v5031_v48 = vpop.permute.xlu1 %5030  ;;  %5755 = vrot.lane.b32.xlu1 %v5749_v45, %s10539_s21  ;;  %5757 = vrot.lane.b32.xlu0 %v5750_v23, %s10539_s21  ;;  %v4902_v25 = vpop.permute.xlu0 %4901  ;;  %v4810_v0 = vadd.f32 %v4805_v34, %v4759_v49  ;;  %v4685_v41 = vadd.f32 %v4682_v17, %v4648_v51 }
0x1628   : > { %v4907_v40 = vsel %vm740_vm2, %v4902_v25, %v9608_v10  ;;  %v4862_v16 = vadd.f32 %v4857_v8, %v4811_v3 }
0x1629   : > { %v4861_v47 = vadd.f32 %v4856_v27, %v4810_v0  ;;  %v4761_v50 = vadd.f32 %v9563_v22, %v4685_v41 }
0x162b   : > { %v5082_v19 = vpop.permute.xlu1 %5081  ;;  %5759 = vrot.lane.b32.xlu1 %v5751_v20, %s10539_s21  ;;  %v4906_v15 = vpop.permute.xlu0 %4905  ;;  %v4912_v58 = vadd.f32 %v4907_v40, %v4861_v47  ;;  %v4812_v44 = vadd.f32 %v9616_v9, %v4761_v50 }
0x162c   : > { %v4908_v7 = vsel %vm740_vm2, %v9608_v10, %v4906_v15 }
0x162d   : > { %v4913_v53 = vadd.f32 %v4908_v7, %v4862_v16  ;;  %v4863_v23 = vadd.f32 %v4855_v55, %v4812_v44  ;;  %v4988_v60 = vadd.f32 %v4983_v24, %v4912_v58 }
0x162f   : > { %v5133_v28 = vpop.permute.xlu1 %5132  ;;  %v4982_v26 = vpop.permute.xlu0 %4981  ;;  %v4914_v10 = vadd.f32 %v4906_v15, %v4863_v23 }
0x1630   : > { %v4984_v45 = vsel %vm972_vm8, %v4980_v30, %v4982_v26 }
0x1631   : > { %v4989_v46 = vadd.f32 %v4984_v45, %v4913_v53  ;;  %v4990_v31 = vadd.f32 %v4982_v26, %v4914_v10 }
0x1633   : > { %v5029_v63 = vpop.permute.xlu0 %5028  ;;  %v5207_v33 = vpop.permute.xlu1 %5206 }
0x1634   : > { %v5034_v52 = vsel %vm972_vm8, %v5029_v63, %v5031_v48 }
0x1635   : > { %v5039_v22 = vadd.f32 %v5034_v52, %v4988_v60  ;;  %v5776_v52 = vrot.slane %v9552_v62, %v7224_v4 }
0x1637   : > { %v5033_v42 = vpop.permute.xlu0 %5032  ;;  %v5209_v51 = vpop.permute.xlu1 %5208 }
0x1638   : > { %v5035_v25 = vsel %vm972_vm8, %v5031_v48, %v5033_v42  ;;  %v5041_v20 = vadd.f32 %v5033_v42, %v4990_v31  ;;  %v5212_v3 = vsel %vm687_vm0, %v5207_v33, %v5209_v51  ;;  %v5780_v33 = vrot.slane %v9552_v62, %v10687_v37 }
0x1639   : > { %v5040_v9 = vadd.f32 %v5035_v25, %v4989_v46  ;;  %v5827_v31 = vrot.slane %v9552_v62, %v7242_v39  ;;  %v5784_v42 = vrot.slane %v9560_v35, %v7224_v4  ;;  %v5791_v25 = vrot.slane %v5776_v52, %v7224_v4 }
0x163b   : > { %v5080_v34 = vpop.permute.xlu0 %5079  ;;  %v5260_v59 = vpop.permute.xlu1 %5259 }
0x163c   : > { %v5085_v29 = vsel %vm972_vm8, %v5080_v34, %v5082_v19 }
0x163d   : > { %v5090_v49 = vadd.f32 %v5085_v29, %v5039_v22 }
0x163f   : > { %v5084_v61 = vpop.permute.xlu0 %5083  ;;  %v5885_v48 = vpop.permute.xlu1 %5884 }
0x1640   : > { %v5086_v30 = vsel %vm972_vm8, %v5082_v19, %v5084_v61  ;;  %v5092_v55 = vadd.f32 %v5084_v61, %v5041_v20  ;;  %v5886_v22 = vrot.slane %v5885_v48, 4  ;;  %v5795_v20 = vrot.slane %v5780_v33, %v7224_v4 }
0x1641   : > { %v5091_v17 = vadd.f32 %v5086_v30, %v5040_v9  ;;  %v5831_v61 = vrot.slane %v9552_v62, %v7245_v32  ;;  %v5835_v30 = vrot.slane %v9560_v35, %v7242_v39 }
0x1643   : > { %v5131_v27 = vpop.permute.xlu0 %5130  ;;  %v5850_v35 = vrot.slane %v5835_v30, %v7242_v39 }
0x1644   : > { %v5136_v8 = vsel %vm972_vm8, %v5131_v27, %v5133_v28 }
0x1645   : > { %v5141_v0 = vadd.f32 %v5136_v8, %v5090_v49  ;;  %v5872_v8 = vld [vmem:[#allocation2 + $0xc] sm:$0xf] }
0x1647   : > { %v5135_v15 = vpop.permute.xlu0 %5134  ;;  %v5217_v41 = vadd.f32 %v5212_v3, %v5141_v0 }
0x1648   : > { %v5137_v40 = vsel %vm972_vm8, %v5133_v28, %v5135_v15  ;;  %v5143_v7 = vadd.f32 %v5135_v15, %v5092_v55 }
0x1649   : > { %v5142_v47 = vadd.f32 %v5137_v40, %v5091_v17  ;;  %v5799_v17 = vrot.slane %v5784_v42, %v7224_v4 }
0x164b   : > { %v5211_v16 = vpop.permute.xlu0 %5210 }
0x164c   : > { %v5822_v50 = vpop.permute.xlu1 %5821  ;;  %v5213_v19 = vsel %vm687_vm0, %v5209_v51, %v5211_v16  ;;  %v5219_v58 = vadd.f32 %v5211_v16, %v5143_v7  ;;  %v5887_v51 = vsel %vm1921_vm5, %v5886_v22, %v5885_v48  ;;  %v5846_v48 = vrot.slane %v5831_v61, %v7242_v39 }
0x164d   : > { %v5218_v53 = vadd.f32 %v5213_v19, %v5142_v47  ;;  %v9727_v55 = vmul.f32 %v5887_v51, %v9241_v11  ;;  %v5853_v7 = vmul.f32 %v5850_v35, %v5822_v50 }
0x164e   : > { %v5852_v40 = vmul.f32 %v5846_v48, %v5822_v50 }
0x164f   : > { %v5258_v26 = vpop.permute.xlu0 %5257  ;;  %v5903_v11 = vrot.slane %v9727_v55, %v10646_v2  ;;  %v5907_v15 = vrot.slane %v9727_v55, %v10686_v54  ;;  %v5954_v19 = vrot.slane %v9727_v55, %v10647_v12  ;;  %v6009_v30 = vrot.slane %v9727_v55, %v10687_v37 }
0x1650   : > { %v5263_v44 = vsel %vm687_vm0, %v5258_v26, %v5260_v59 }
0x1651   : > { %v9698_v45 = vpop.permute.xlu1 %5948  ;;  %v9700_v46 = vadd.f32 %v5263_v44, %v5217_v41  ;;  %v5891_v41 = vmul.f32 %v5886_v22, %v5872_v8  ;;  %v5969_v33 = vrot.slane %v5954_v19, %v10647_v12  ;;  %v5958_v22 = vrot.slane %v9727_v55, %v10688_v56 }
0x1653   : > { %v5262_v24 = vpop.permute.xlu0 %5261  ;;  %v5911_v26 = vrot.slane %v5891_v41, %v10646_v2  ;;  %v5962_v44 = vrot.slane %v5891_v41, %v10647_v12  ;;  %v6064_v48 = vrot.slane %v5891_v41, %v7242_v39 }
0x1654   : > { %v5264_v23 = vsel %vm687_vm0, %v5260_v59, %v5262_v24  ;;  %v5270_v60 = vadd.f32 %v5262_v24, %v5219_v58  ;;  %v5842_v59 = vrot.slane %v5827_v31, %v7242_v39  ;;  %v5918_v58 = vrot.slane %v5903_v11, %v10646_v2 }
0x1655   : > { %v9703_v28 = vadd.f32 %v5264_v23, %v5218_v53  ;;  %v5922_v53 = vrot.slane %v5907_v15, %v10646_v2  ;;  %v5926_v31 = vrot.slane %v5911_v26, %v10646_v2  ;;  %v5977_v42 = vrot.slane %v5962_v44, %v10647_v12  ;;  %v6101_v26 = vld [vmem:[#allocation2 + $0xc] sm:$0xf] }
0x1656   : > { %v9705_v63 = vpop.permute.xlu1 %5999  ;;  %v5851_v0 = vmul.f32 %v5842_v59, %v5822_v50  ;;  %v5973_v59 = vrot.slane %v5958_v22, %v10647_v12  ;;  %v6024_v11 = vrot.slane %v6009_v30, %v7224_v4  ;;  %v6056_v15 = vrot.slane %v9727_v55, %v7242_v39 }
0x1658   : > { %v6071_v22 = vrot.slane %v6056_v15, %v7242_v39 }
0x165b   : > { %v9707_v10 = vpop.permute.xlu1 %6050 }
0x1660   : > { %v9719_v9 = vpop.permute.xlu1 %6177  ;;  %v5771_v34 = vpop.permute.xlu0 %5770 }
0x1661   : > { %v5800_v29 = vmul.f32 %v5791_v25, %v5771_v34  ;;  %v5801_v49 = vmul.f32 %v5795_v20, %v5771_v34  ;;  %v5802_v3 = vmul.f32 %v5799_v17, %v5771_v34  ;;  %v5978_v25 = vmul.f32 %v5969_v33, %v9698_v45 }
0x1662   : > { %v6005_v34 = vrot.slane %v9727_v55, %v7224_v4  ;;  %v5980_v17 = vmul.f32 %v5977_v42, %v9698_v45 }
0x1663   : > { %5808 = vrot.lane.b32.xlu1 %v5801_v49, %s10539_s21  ;;  %5806 = vrot.lane.b32.xlu0 %v5800_v29, %s10539_s21 }
0x1665   : > { %v9733_v27 = vpop.permute.xlu1 %6228  ;;  %v5896_v62 = vpop.permute.xlu0 %5895 }
0x1666   : > { %v5927_v50 = vmul.f32 %v5918_v58, %v5896_v62  ;;  %v5928_v24 = vmul.f32 %v5922_v53, %v5896_v62  ;;  %v5929_v29 = vmul.f32 %v5926_v31, %v5896_v62  ;;  %v6020_v62 = vrot.slane %v6005_v34, %v7224_v4 }
0x1667   : > { %5857 = vrot.lane.b32.xlu1 %v5851_v0, %s10539_s21  ;;  %5810 = vrot.lane.b32.xlu0 %v5802_v3, %s10539_s21  ;;  %v5979_v3 = vmul.f32 %v5973_v59, %v9698_v45  ;;  %v6060_v45 = vrot.slane %v9727_v55, %v7245_v32  ;;  %v6030_v53 = vmul.f32 %v6024_v11, %v9705_v63 }
0x1669   : > { %v9743_v47 = vpop.permute.xlu0 %6113  ;;  %v6075_v31 = vrot.slane %v6060_v45, %v7242_v39 }
0x166a   : > { %v9745_v16 = vpop.permute.xlu1 %5374  ;;  %v6115_v20 = vrot.slane %v9743_v47, 4 }
0x166b   : > { %5861 = vrot.lane.b32.xlu1 %v5853_v7, %s10539_s21  ;;  %5859 = vrot.lane.b32.xlu0 %v5852_v40, %s10539_s21  ;;  %v6100_v40 = vld [vmem:[#allocation2 + $0x4] sm:$0xff]  ;;  %v6081_v11 = vmul.f32 %v6075_v31, %v9707_v10 }
0x166c   : > { %v6116_v8 = vsel %vm2153_vm6, %v6115_v20, %v9743_v47  ;;  %v9805_v42 = vmul.f32 %v6115_v20, %v6101_v26  ;;  %v5378_v20 = vmul.f32 %v9745_v16, %v9078_v43 }
0x166d   : > { %v9755_v52 = vpop.permute.xlu0 %6124  ;;  %v9790_v19 = vmul.f32 %v6116_v8, %v6100_v40 }
0x166e   : > { %v5309_v23 = vpop.permute.xlu1 %5308 }
0x166f   : > { %5935 = vrot.lane.b32.xlu1 %v5928_v24, %s10557_s28  ;;  %5933 = vrot.lane.b32.xlu0 %v5927_v50, %s10557_s28  ;;  %v6029_v24 = vmul.f32 %v6020_v62, %v9705_v63  ;;  %v6136_v34 = vrot.slane %v9790_v19, %v10686_v54  ;;  %v6183_v43 = vrot.slane %v9790_v19, %v10647_v12 }
0x1672   : > { %v5313_v51 = vpop.permute.xlu1 %5312  ;;  %v9768_v61 = vpop.permute.xlu0 %6279 }
0x1673   : > { %v5321_v49 = vadd.f32 %v5313_v51, %v5270_v60  ;;  %5984 = vrot.lane.b32.xlu1 %v5978_v25, %s10557_s28  ;;  %5937 = vrot.lane.b32.xlu0 %v5929_v29, %s10557_s28  ;;  %v6013_v60 = vrot.slane %v5891_v41, %v7224_v4  ;;  %v6132_v25 = vrot.slane %v9790_v19, %v10646_v2 }
0x1675   : > { %v6028_v50 = vrot.slane %v6013_v60, %v7224_v4 }
0x1676   : > { %v5360_v0 = vpop.permute.xlu1 %5359  ;;  %v5311_v35 = vpop.permute.xlu0 %5310 }
0x1677   : > { %v5314_v7 = vsel %vm687_vm0, %v5309_v23, %v5311_v35  ;;  %v5315_v47 = vsel %vm687_vm0, %v5311_v35, %v5313_v51  ;;  %5988 = vrot.lane.b32.xlu1 %v5980_v17, %s10557_s28  ;;  %5986 = vrot.lane.b32.xlu0 %v5979_v3, %s10557_s28  ;;  %v6079_v23 = vrot.slane %v6064_v48, %v7242_v39 }
0x1678   : > { %v5319_v41 = vadd.f32 %v5314_v7, %v9700_v46  ;;  %v5320_v58 = vadd.f32 %v5315_v47, %v9703_v28  ;;  %v5377_v46 = vmul.f32 %v9745_v16, %v9116_v36  ;;  %v6080_v51 = vmul.f32 %v6071_v22, %v9707_v10 }
0x1679   : > { %v6031_v59 = vmul.f32 %v6028_v50, %v9705_v63  ;;  %v6082_v17 = vmul.f32 %v6079_v23, %v9707_v10  ;;  %v5379_v3 = vmul.f32 %v9745_v16, %v9081_v38  ;;  %v6147_v63 = vrot.slane %v6132_v25, %v10646_v2 }
0x167a   : > { %v5362_v44 = vpop.permute.xlu1 %5361  ;;  %v5385_v33 = vpop.permute.xlu0 %5384 }
0x167b   : > { %v5365_v55 = vsel %vm687_vm0, %v5360_v0, %v5362_v44  ;;  %6037 = vrot.lane.b32.xlu1 %v6030_v53, %s10557_s28  ;;  %6035 = vrot.lane.b32.xlu0 %v6029_v24, %s10557_s28  ;;  %v5387_v36 = vmul.f32 %v5385_v33, %v9125_v57  ;;  %v6140_v57 = vrot.slane %v9805_v42, %v10646_v2 }
0x167c   : > { %v5370_v28 = vadd.f32 %v5365_v55, %v5319_v41  ;;  %v5389_v38 = vmul.f32 %v5385_v33, %v9091_v13  ;;  %v5388_v15 = vmul.f32 %v5385_v33, %v9088_v5  ;;  %v6191_v13 = vrot.slane %v9805_v42, %v10647_v12 }
0x167d   : > { %v6198_v5 = vrot.slane %v6183_v43, %v10647_v12  ;;  %v6187_v33 = vrot.slane %v9790_v19, %v10688_v56 }
0x167e   : > { %v5380_v29 = vadd.f32 %v5377_v46, %v5370_v28  ;;  %v5395_v30 = vpop.permute.xlu1 %5394  ;;  %v5364_v0 = vpop.permute.xlu0 %5363  ;;  %v6206_v25 = vrot.slane %v6191_v13, %v10647_v12 }
0x167f   : > { %v5397_v8 = vmul.f32 %v5395_v30, %v9133_v21  ;;  %v5366_v54 = vsel %vm687_vm0, %v5362_v44, %v5364_v0  ;;  %v5372_v62 = vadd.f32 %v5364_v0, %v5321_v49  ;;  %6086 = vrot.lane.b32.xlu1 %v6080_v51, %s10557_s28  ;;  %6039 = vrot.lane.b32.xlu0 %v6031_v59, %s10557_s28 }
0x1680   : > { %v5390_v60 = vadd.f32 %v5387_v36, %v5380_v29  ;;  %v5371_v48 = vadd.f32 %v5366_v54, %v5320_v58  ;;  %v6151_v21 = vrot.slane %v6136_v34, %v10646_v2  ;;  %v5399_v47 = vmul.f32 %v5395_v30, %v9101_v14 }
0x1681   : > { %v5382_v35 = vadd.f32 %v5379_v3, %v5372_v62  ;;  %v6155_v58 = vrot.slane %v6140_v57, %v10646_v2  ;;  %v5398_v10 = vmul.f32 %v5395_v30, %v9098_v18  ;;  %v6156_v14 = vmul.f32 %v6147_v63, %v9755_v52 }
0x1682   : > { %v5400_v16 = vadd.f32 %v5397_v8, %v5390_v60  ;;  %v5476_v49 = vpop.permute.xlu1 %5475  ;;  %v5381_v40 = vadd.f32 %v5378_v20, %v5371_v48  ;;  %v9833_v7 = vpop.permute.xlu0 %5404  ;;  %v6157_v26 = vmul.f32 %v6151_v21, %v9755_v52  ;;  %v6238_v51 = vrot.slane %v9790_v19, %v10687_v37 }
0x1683   : > { %v5392_v45 = vadd.f32 %v5389_v38, %v5382_v35  ;;  %v5407_v41 = vmul.f32 %v9833_v7, %v9138_v1  ;;  %6090 = vrot.lane.b32.xlu1 %v6082_v17, %s10557_s28  ;;  %6088 = vrot.lane.b32.xlu0 %v6081_v11, %s10557_s28  ;;  %v5408_v24 = vmul.f32 %v9833_v7, %v9108_v6  ;;  %v6335_v38 = vld [vmem:[%s10104_s8] sm:$0xf]  ;;  %s365_s28 = sand.u32 1, %s6889_s14  }
0x1684   : > { %v5391_v53 = vadd.f32 %v5388_v15, %v5381_v40  ;;  %v6158_v28 = vmul.f32 %v6155_v58, %v9755_v52  ;;  %v6207_v6 = vmul.f32 %v6198_v5, %v9719_v9  ;;  %v6202_v36 = vrot.slane %v6187_v33, %v10647_v12  ;;  %s6479_s26 = scalar_lea.sflag [#allocation5], %s365_s28 }
0x1685   : > { %v5410_v44 = vadd.f32 %v5407_v41, %v5400_v16  ;;  %v9849_v50 = vadd.f32 %v5399_v47, %v5392_v45  ;;  %v6234_v30 = vrot.slane %v9790_v19, %v7224_v4  ;;  %v6285_v37 = vrot.slane %v9790_v19, %v7242_v39 }
0x1686   : > { %v9847_v1 = vpop.permute.xlu1 %5477  ;;  %v5401_v23 = vadd.f32 %v5398_v10, %v5391_v53  ;;  %v9855_v55 = vpop.permute.xlu0 %5479  ;;  %v6209_v17 = vmul.f32 %v6206_v25, %v9719_v9  ;;  %v6253_v20 = vrot.slane %v6238_v51, %v7224_v4  ;;  %v6208_v8 = vmul.f32 %v6202_v36, %v9719_v9 }
0x1687   : > { %v5481_v18 = vsel %vm1510_vm9, %v5476_v49, %v9847_v1  ;;  %6164 = vrot.lane.b32.xlu1 %v6157_v26, %s10575_s12  ;;  %v5486_v22 = vadd.f32 %v5476_v49, %v5410_v44  ;;  %6162 = vrot.lane.b32.xlu0 %v6156_v14, %s10575_s12  ;;  %v6249_v0 = vrot.slane %v6234_v30, %v7224_v4  ;;  %v10702_v16 = vmov 14  }
0x1688   : > { %v5411_v46 = vadd.f32 %v5408_v24, %v5401_v23  ;;  %v6242_v3 = vrot.slane %v9805_v42, %v7224_v4  ;;  %v6293_v60 = vrot.slane %v9805_v42, %v7242_v39  ;;  %v6300_v54 = vrot.slane %v6285_v37, %v7242_v39 }
0x1689   : > { %v6259_v62 = vmul.f32 %v6253_v20, %v9733_v27  ;;  %v6289_v57 = vrot.slane %v9790_v19, %v7245_v32  ;;  %v6258_v9 = vmul.f32 %v6249_v0, %v9733_v27  ;;  %v5482_v30 = vsel %vm1510_vm9, %v9847_v1, %v9855_v55 }
0x168a   : > { %v5527_v31 = vpop.permute.xlu1 %5526  ;;  %v5487_v34 = vadd.f32 %v5481_v18, %v5411_v46  ;;  %v9868_v56 = vpop.permute.xlu0 %5528  ;;  %v6257_v63 = vrot.slane %v6242_v3, %v7224_v4  ;;  %v6308_v48 = vrot.slane %v6293_v60, %v7242_v39  ;;  %v6309_v43 = vmul.f32 %v6300_v54, %v9768_v61 }
0x168b   : > { %v9866_v29 = vadd.f32 %v5527_v31, %v5486_v22  ;;  %v5532_v52 = vsel %vm1510_vm9, %v5527_v31, %v9868_v56  ;;  %6213 = vrot.lane.b32.xlu1 %v6207_v6, %s10575_s12  ;;  %6166 = vrot.lane.b32.xlu0 %v6158_v28, %s10575_s12  ;;  %v6304_v42 = vrot.slane %v6289_v57, %v7242_v39  ;;  %v10704_v6 = vld [vmem:[#allocation49_spill] sm:$0xff] }
0x168c   : > { %v9876_v59 = vadd.f32 %v5532_v52, %v5487_v34  ;;  %v6260_v21 = vmul.f32 %v6257_v63, %v9733_v27  ;;  %v6311_v32 = vmul.f32 %v6308_v48, %v9768_v61  ;;  %v10703_v27 = vmov 15  }
0x168d   : > { %v6310_v19 = vmul.f32 %v6304_v42, %v9768_v61  ;;  %v5409_v25 = vmul.f32 %v9833_v7, %v10704_v6 }
0x168e   : > { %v5531_v35 = vpop.permute.xlu1 %5530  ;;  %v5578_v49 = vpop.permute.xlu0 %5577 }
0x168f   : > { %6217 = vrot.lane.b32.xlu1 %v6209_v17, %s10575_s12  ;;  %6215 = vrot.lane.b32.xlu0 %v6208_v8, %s10575_s12  ;;  %v5412_v34 = vadd.f32 %v5409_v25, %v9849_v50  ;;  %v5533_v52 = vsel %vm1510_vm9, %v9868_v56, %v5531_v35  ;;  %v5588_v54 = vadd.f32 %v5578_v49, %v9866_v29 }
0x1691   : > { %v5488_v17 = vadd.f32 %v5482_v30, %v5412_v34 }
0x1692   : > { %v5580_v11 = vpop.permute.xlu1 %5579  ;;  %v5582_v61 = vpop.permute.xlu0 %5581 }
0x1693   : > { %6266 = vrot.lane.b32.xlu1 %v6259_v62, %s10575_s12  ;;  %6264 = vrot.lane.b32.xlu0 %v6258_v9, %s10575_s12  ;;  %v5584_v8 = vsel %vm1510_vm9, %v5580_v11, %v5582_v61  ;;  %v5539_v0 = vadd.f32 %v5533_v52, %v5488_v17  ;;  %v5583_v1 = vsel %vm1510_vm9, %v5578_v49, %v5580_v11 }
0x1694   : > { %v5589_v42 = vadd.f32 %v5583_v1, %v9876_v59 }
0x1695   : > { %v5590_v60 = vadd.f32 %v5584_v8, %v5539_v0 }
0x1696   : > { %v5629_v15 = vpop.permute.xlu1 %5628  ;;  %v5631_v40 = vpop.permute.xlu0 %5630 }
0x1697   : > { %6315 = vrot.lane.b32.xlu1 %v6309_v43, %s10575_s12  ;;  %6268 = vrot.lane.b32.xlu0 %v6260_v21, %s10575_s12  ;;  %v5639_v56 = vadd.f32 %v5629_v15, %v5588_v54  ;;  %v5634_v63 = vsel %vm1510_vm9, %v5629_v15, %v5631_v40 }
0x169a   : > { %v5633_v47 = vpop.permute.xlu1 %5632  ;;  %v5705_v45 = vpop.permute.xlu0 %5704 }
0x169b   : > { %6319 = vrot.lane.b32.xlu1 %v6311_v32, %s10575_s12  ;;  %6317 = vrot.lane.b32.xlu0 %v6310_v19, %s10575_s12  ;;  %v5635_v7 = vsel %vm1510_vm9, %v5631_v40, %v5633_v47  ;;  %v5715_v21 = vadd.f32 %v5705_v45, %v5639_v56  ;;  %s6579_s12 = sshll.u32 %s7029_s17, 7  ;;  %s6839_s17 = scalar_lea.vmem %s6838_s30, 256 }
0x169c   : > { %v5641_v55 = vadd.f32 %v5635_v7, %v5590_v60  ;;  %s6491_s25 = scalar_lea.hbm %s10106_s10, %s6579_s12 }
0x169e   : > { %v5707_v41 = vpop.permute.xlu1 %5706  ;;  %v5709_v13 = vpop.permute.xlu0 %5708 }
0x169f   : > { %6372 = vperm.xlu1 %6801, %v6335_v38   ;;  %6338 = vperm.xlu0 %6800, %v6335_v38   ;;  %v5711_v62 = vsel %vm1742_vm10, %v5707_v41, %v5709_v13  ;;  %v5710_v29 = vsel %vm1742_vm10, %v5705_v45, %v5707_v41 }
0x16a0   : > { %v5717_v48 = vadd.f32 %v5711_v62, %v5641_v55 }
0x16a2   : > { %v5756_v58 = vpop.permute.xlu1 %5755  ;;  %v5758_v10 = vpop.permute.xlu0 %5757 }
0x16a3   : > { %6802 = vset.pattern.permute.xlu1 %v10702_v16  ;;  %6803 = vset.pattern.permute.xlu0 %v10703_v27  ;;  %v5766_v16 = vadd.f32 %v5756_v58, %v5715_v21  ;;  %v5761_v49 = vsel %vm1742_vm10, %v5756_v58, %v5758_v10 }
0x16a4   : > { %6406 = vperm.xlu1 %6802, %v6335_v38   ;;  %6440 = vperm.xlu0 %6803, %v6335_v38   ;;  %v5640_v38 = vadd.f32 %v5634_v63, %v5589_v42 }
0x16a6   : > { %v5760_v53 = vpop.permute.xlu1 %5759  ;;  %v5716_v15 = vadd.f32 %v5710_v29, %v5640_v38 }
0x16a7   : > { %v5762_v57 = vsel %vm1742_vm10, %v5758_v10, %v5760_v53 }
0x16a8   : > { %v5768_v19 = vadd.f32 %v5762_v57, %v5717_v48  ;;  %v5767_v53 = vadd.f32 %v5761_v49, %v5716_v15 }
0x16d5   : > { %v5809_v5 = vpop.permute.xlu1 %5808  ;;  %v5807_v14 = vpop.permute.xlu0 %5806 }
0x16d6   : > { %v5817_v40 = vadd.f32 %v5807_v14, %v5766_v16  ;;  %v5812_v59 = vsel %vm1742_vm10, %v5807_v14, %v5809_v5 }
0x16d7   : > { %v5818_v34 = vadd.f32 %v5812_v59, %v5767_v53 }
0x16d9   : > { %v5858_v26 = vpop.permute.xlu1 %5857  ;;  %v5811_v44 = vpop.permute.xlu0 %5810 }
0x16da   : > { %v5813_v32 = vsel %vm1742_vm10, %v5809_v5, %v5811_v44  ;;  %v5868_v44 = vadd.f32 %v5858_v26, %v5817_v40 }
0x16db   : > { %v5819_v11 = vadd.f32 %v5813_v32, %v5768_v19 }
0x16dd   : > { %v5862_v24 = vpop.permute.xlu1 %5861  ;;  %v5860_v23 = vpop.permute.xlu0 %5859 }
0x16de   : > { %v5864_v27 = vsel %vm1742_vm10, %v5860_v23, %v5862_v24  ;;  %v5863_v6 = vsel %vm1742_vm10, %v5858_v26, %v5860_v23 }
0x16df   : > { %v5870_v13 = vadd.f32 %v5864_v27, %v5819_v11  ;;  %v5869_v52 = vadd.f32 %v5863_v6, %v5818_v34 }
0x16e1   : > { %v5936_v18 = vpop.permute.xlu1 %5935  ;;  %v5934_v33 = vpop.permute.xlu0 %5933 }
0x16e2   : > { %v5944_v58 = vadd.f32 %v5934_v33, %v5868_v44  ;;  %v5939_v30 = vsel %vm1974_vm11, %v5934_v33, %v5936_v18 }
0x16e3   : > { %v5945_v8 = vadd.f32 %v5939_v30, %v5869_v52 }
0x16e5   : > { %v9914_v22 = vpop.permute.xlu1 %5984  ;;  %v5938_v46 = vpop.permute.xlu0 %5937 }
0x16e6   : > { %v5940_v47 = vsel %vm1974_vm11, %v5936_v18, %v5938_v46  ;;  %v5995_v5 = vadd.f32 %v9914_v22, %v5944_v58 }
0x16e7   : > { %v5946_v24 = vadd.f32 %v5940_v47, %v5870_v13 }
0x16e9   : > { %v5989_v28 = vpop.permute.xlu1 %5988  ;;  %v5987_v31 = vpop.permute.xlu0 %5986 }
0x16ea   : > { %v5991_v45 = vsel %vm1974_vm11, %v5987_v31, %v5989_v28  ;;  %v5990_v28 = vsel %vm1974_vm11, %v9914_v22, %v5987_v31 }
0x16eb   : > { %v5997_v46 = vadd.f32 %v5991_v45, %v5946_v24  ;;  %v5996_v33 = vadd.f32 %v5990_v28, %v5945_v8 }
0x16ed   : > { %v9918_v51 = vpop.permute.xlu1 %6037  ;;  %v6036_v36 = vpop.permute.xlu0 %6035 }
0x16ee   : > { %v6046_v0 = vadd.f32 %v6036_v36, %v5995_v5 }
0x16f1   : > { %v9926_v37 = vpop.permute.xlu1 %6086  ;;  %v6040_v20 = vpop.permute.xlu0 %6039 }
0x16f2   : > { %v6042_v10 = vsel %vm1974_vm11, %v9918_v51, %v6040_v20  ;;  %v6041_v20 = vsel %vm1974_vm11, %v6036_v36, %v9918_v51  ;;  %v6097_v60 = vadd.f32 %v9926_v37, %v6046_v0 }
0x16f3   : > { %v6048_v26 = vadd.f32 %v6042_v10, %v5997_v46  ;;  %v6047_v1 = vadd.f32 %v6041_v20, %v5996_v33  ;;  %v10706_v33 = vld [vmem:[#allocation17_spill] sm:$0xff] }
0x16f5   : > { %v6091_v3 = vpop.permute.xlu1 %6090  ;;  %v6089_v50 = vpop.permute.xlu0 %6088 }
0x16f6   : > { %v6093_v14 = vsel %vm1974_vm11, %v6089_v50, %v6091_v3  ;;  %v6092_v62 = vsel %vm1974_vm11, %v9926_v37, %v6089_v50 }
0x16f7   : > { %v6099_v18 = vadd.f32 %v6093_v14, %v6048_v26  ;;  %v6098_v51 = vadd.f32 %v6092_v62, %v6047_v1  ;;  %v10708_v62 = vld [vmem:[#allocation15_spill] sm:$0xff]  ;;  %v10710_v1 = vld [vmem:[#allocation25_spill] sm:$0xff] }
0x16f9   : > { %v6165_v9 = vpop.permute.xlu1 %6164  ;;  %v6163_v43 = vpop.permute.xlu0 %6162 }
0x16fa   : > { %v6173_v55 = vadd.f32 %v6163_v43, %v6097_v60  ;;  %v6168_v57 = vsel %vm2206_vm12, %v6163_v43, %v6165_v9 }
0x16fb   : > { %v6174_v29 = vadd.f32 %v6168_v57, %v6098_v51 }
0x16fd   : > { %v6214_v35 = vpop.permute.xlu1 %6213  ;;  %v6167_v61 = vpop.permute.xlu0 %6166 }
0x16fe   : > { %v6169_v7 = vsel %vm2206_vm12, %v6165_v9, %v6167_v61  ;;  %v6224_v36 = vadd.f32 %v6214_v35, %v6173_v55 }
0x16ff   : > { %v6175_v22 = vadd.f32 %v6169_v7, %v6099_v18  ;;  %v10705_v18 = vld [vmem:[#allocation18_spill] sm:$0xff] }
0x1700   : > { %v408_v60 = vmul.f32 %v10706_v33, %v10705_v18  ;;  %v10733_v33 = vld [vmem:[#allocation54_spill] sm:$0xff] }
0x1701   : > { %v6218_v41 = vpop.permute.xlu1 %6217  ;;  %v6216_v25 = vpop.permute.xlu0 %6215 }
0x1702   : > { %v6220_v54 = vsel %vm2206_vm12, %v6216_v25, %v6218_v41  ;;  %v6219_v42 = vsel %vm2206_vm12, %v6214_v35, %v6216_v25 }
0x1703   : > { %v6226_v63 = vadd.f32 %v6220_v54, %v6175_v22  ;;  %v6225_v16 = vadd.f32 %v6219_v42, %v6174_v29  ;;  %v10707_v54 = vld [vmem:[#allocation16_spill] sm:$0xff]  ;;  %v410_v22 = vadd.f32 %v408_v60, %v10708_v62 }
0x1705   : > { %v6267_v17 = vpop.permute.xlu1 %6266  ;;  %v6265_v23 = vpop.permute.xlu0 %6264 }
0x1706   : > { %v6275_v19 = vadd.f32 %v6265_v23, %v6224_v36  ;;  %v6270_v50 = vsel %vm2206_vm12, %v6265_v23, %v6267_v17  ;;  %v10712_v36 = vld [vmem:[#allocation12_spill] sm:$0xff] }
0x1707   : > { %v6276_v43 = vadd.f32 %v6270_v50, %v6225_v16 }
0x1709   : > { %v6316_v3 = vpop.permute.xlu1 %6315  ;;  %v6269_v31 = vpop.permute.xlu0 %6268 }
0x170a   : > { %v6271_v56 = vsel %vm2206_vm12, %v6267_v17, %v6269_v31  ;;  %v6326_v27 = vadd.f32 %v6316_v3, %v6275_v19  ;;  %v10709_v31 = vld [vmem:[#allocation11_spill] sm:$0xff]  ;;  %v10716_v19 = vld [vmem:[#allocation26_spill] sm:$0xff] }
0x170b   : > { %v6277_v21 = vadd.f32 %v6271_v56, %v6226_v63  ;;  %v434_v55 = vmul.f32 %v10710_v1, %v10709_v31  ;;  %v10735_v1 = vld [vmem:[#allocation56_spill] sm:$0xff] }
0x170c   : > { %v6329_v11 = vmul.f32 0.2, %v6326_v27 }
0x170d   : > { %v6320_v48 = vpop.permute.xlu1 %6319  ;;  %v6318_v32 = vpop.permute.xlu0 %6317  ;;  %v436_v63 = vadd.f32 %v434_v55, %v410_v22  ;;  %v10736_v55 = vld [vmem:[#allocation60_spill] sm:$0xff] }
0x170e   : > { %v6322_v37 = vsel %vm2206_vm12, %v6318_v32, %v6320_v48  ;;  %v6321_v49 = vsel %vm2206_vm12, %v6316_v3, %v6318_v32  ;;  %v6332_v40 = vmax.f32 %v6326_v27, %v6329_v11  ;;  %v407_v3 = vmul.f32 %v10707_v54, %v10705_v18  ;;  %v10713_v48 = vld [vmem:[#allocation27_spill] sm:$0xff]  ;;  %v10715_v32 = vld [vmem:[#allocation29_spill] sm:$0xff]  ;;  %v10718_v27 = vld [vmem:[#allocation42_spill] sm:$0xff] }
0x170f   : > { %v6328_v38 = vadd.f32 %v6322_v37, %v6277_v21  ;;  %v6327_v61 = vadd.f32 %v6321_v49, %v6276_v43  ;;  %v460_v42 = vmul.f32 %v10713_v48, %v10712_v36  ;;  %v10714_v21 = vld [vmem:[#allocation20_spill] sm:$0xff]  ;;  %v459_v37 = vmul.f32 %v10716_v19, %v10712_v36  ;;  %v10719_v49 = vld [vmem:[#allocation37_spill] sm:$0xff]  ;;  %v10734_v54 = vld [vmem:[#allocation58_spill] sm:$0xff] }
0x1710   : > { %v6344_v6 = vrot.slane %v6332_v40, %v10646_v2  ;;  %v6378_v5 = vrot.slane %v6332_v40, %v10647_v12  ;;  %v6412_v14 = vrot.slane %v6332_v40, %v7224_v4  ;;  %v409_v56 = vadd.f32 %v407_v3, %v10708_v62  ;;  %v10732_v18 = vld [vmem:[#allocation52_spill] sm:$0xff]  ;;  %v10738_v48 = vld [vmem:[#allocation57_spill] sm:$0xff] }
0x1711   : > { %v6331_v9 = vmul.f32 0.2, %v6328_v38  ;;  %v6330_v35 = vmul.f32 0.2, %v6327_v61  ;;  %v486_v29 = vmul.f32 %v10715_v32, %v10714_v21  ;;  %v462_v50 = vadd.f32 %v460_v42, %v436_v63  ;;  %v10739_v42 = vld [vmem:[#allocation21_spill] sm:$0xff]  ;;  %v10740_v32 = vld [vmem:[#allocation59_spill] sm:$0xff] }
0x1712   : > { %v4420_v60 = vsel %vm2153_vm6, %v10733_v33, %v10732_v18 }
0x1713   : > { %v6334_v15 = vmax.f32 %v6328_v38, %v6331_v9  ;;  %v6333_v41 = vmax.f32 %v6327_v61, %v6330_v35  ;;  %v10717_v38 = vld [vmem:[#allocation28_spill] sm:$0xff]  ;;  %v2405_v9 = vsel %vm2153_vm6, %v10719_v49, %v10718_v27  ;;  %v488_v11 = vadd.f32 %v486_v29, %v462_v50  ;;  %v10741_v50 = vld [vmem:[#allocation31_spill] sm:$0xff] }
0x1714   : > { %v485_v16 = vmul.f32 %v10717_v38, %v10714_v21  ;;  %v4488_v21 = vsel %vm2153_vm6, %v10739_v42, %v10738_v48  ;;  %v4453_v29 = vsel %vm2153_vm6, %v10740_v32, %v10736_v55  ;;  %v4487_v38 = vsel %vm2153_vm6, %v10741_v50, %v10739_v42 }
0x1715   : > { %v6386_v47 = vrot.slane %v6334_v15, %v10647_v12  ;;  %v6352_v13 = vrot.slane %v6334_v15, %v10646_v2  ;;  %v6420_v24 = vrot.slane %v6334_v15, %v7224_v4  ;;  %v6348_v10 = vrot.slane %v6333_v41, %v10646_v2 }
0x1716   : > { %v6382_v30 = vrot.slane %v6333_v41, %v10647_v12  ;;  %v6416_v2 = vrot.slane %v6333_v41, %v7224_v4  ;;  %v6450_v23 = vrot.slane %v6333_v41, %v7242_v39  ;;  %v6446_v12 = vrot.slane %v6332_v40, %v7242_v39  ;;  %v10721_v40 = vld [vmem:[#allocation36_spill] sm:$0xff] }
0x1717   : > { %v6454_v20 = vrot.slane %v6334_v15, %v7242_v39  ;;  %v10711_v39 = vld [vmem:[#allocation24_spill] sm:$0xff] }
0x1718   : > { %v433_v57 = vmul.f32 %v10711_v39, %v10709_v31  ;;  %v10720_v15 = vld [vmem:[#allocation40_spill] sm:$0xff]  ;;  %v10737_v39 = vld [vmem:[#allocation63_spill] sm:$0xff] }
0x1719   : > { %v2439_v35 = vsel %vm2153_vm6, %v10721_v40, %v10720_v15 }
0x171a   : > { %v6373_v59 = vpop.permute.xlu1 %6372  ;;  %v6339_v44 = vpop.permute.xlu0 %6338  ;;  %v435_v51 = vadd.f32 %v433_v57, %v409_v56  ;;  %v4454_v56 = vsel %vm2153_vm6, %v10736_v55, %v10735_v1  ;;  %v4419_v57 = vsel %vm2153_vm6, %v10737_v39, %v10733_v33 }
0x171b   : > { %v6389_v53 = vmul.f32 %v6386_v47, %v6373_v59  ;;  %v6355_v45 = vmul.f32 %v6352_v13, %v6339_v44  ;;  %v6353_v25 = vmul.f32 %v6344_v6, %v6339_v44  ;;  %v6354_v46 = vmul.f32 %v6348_v10, %v6339_v44  ;;  %v10722_v47 = vld [vmem:[#allocation45_spill] sm:$0xff]  ;;  %v10724_v6 = vld [vmem:[#allocation48_spill] sm:$0xff] }
0x171c   : > { %v6388_v52 = vmul.f32 %v6382_v30, %v6373_v59  ;;  %v6387_v17 = vmul.f32 %v6378_v5, %v6373_v59  ;;  %v461_v43 = vadd.f32 %v459_v37, %v435_v51  ;;  %v2404_v59 = vsel %vm2153_vm6, %v10722_v47, %v10719_v49  ;;  %v10726_v30 = vld [vmem:[#allocation46_spill] sm:$0xff]  ;;  %v10728_v5 = vld [vmem:[#allocation47_spill] sm:$0xff] }
0x171d   : > { %6397 = vrot.lane.b32.xlu1 %v6389_v53, %s10565_s27  ;;  %6363 = vrot.lane.b32.xlu0 %v6355_v45, %s10565_s27  ;;  %v2409_v53 = vadd.f32 %v2405_v9, %v488_v11  ;;  %v10723_v45 = vld [vmem:[#allocation44_spill] sm:$0xff] }
0x171e   : > { %v487_v44 = vadd.f32 %v485_v16, %v461_v43  ;;  %v2438_v41 = vsel %vm2153_vm6, %v10723_v45, %v10721_v40 }
0x171f   : > { %v6407_v34 = vpop.permute.xlu1 %6406  ;;  %v6441_v26 = vpop.permute.xlu0 %6440 }
0x1720   : > { %v6423_v58 = vmul.f32 %v6420_v24, %v6407_v34  ;;  %v6421_v28 = vmul.f32 %v6412_v14, %v6407_v34  ;;  %v6422_v8 = vmul.f32 %v6416_v2, %v6407_v34  ;;  %v6456_v0 = vmul.f32 %v6450_v23, %v6441_v26  ;;  %v10725_v24 = vld [vmem:[#allocation38_spill] sm:$0xff] }
0x1721   : > { %6359 = vrot.lane.b32.xlu1 %v6353_v25, %s10565_s27  ;;  %v6455_v7 = vmul.f32 %v6446_v12, %v6441_v26  ;;  %v6457_v4 = vmul.f32 %v6454_v20, %v6441_v26  ;;  %v2473_v25 = vsel %vm2153_vm6, %v10725_v24, %v10724_v6  ;;  %v2443_v34 = vadd.f32 %v2439_v35, %v2409_v53  ;;  %v10729_v26 = vld [vmem:[#allocation51_spill] sm:$0xff] }
0x1722   : > { %6431 = vrot.lane.b32.xlu0 %v6423_v58, %s10565_s27  ;;  %v2408_v58 = vadd.f32 %v2404_v59, %v487_v44  ;;  %v2506_v23 = vsel %vm2153_vm6, %v10729_v26, %v10728_v5 }
0x1723   : > { %v2477_v2 = vadd.f32 %v2473_v25, %v2443_v34 }
0x1725   : > { %6361 = vrot.lane.b32.xlu1 %v6354_v46, %s10565_s27  ;;  %v2472_v46 = vsel %vm2153_vm6, %v10726_v30, %v10725_v24 }
0x1726   : > { %6395 = vrot.lane.b32.xlu0 %v6388_v52, %s10565_s27  ;;  %v10727_v52 = vld [vmem:[#allocation50_spill] sm:$0xff] }
0x1727   : > { %v2507_v14 = vsel %vm2153_vm6, %v10728_v5, %v10727_v52 }
0x1728   : > { %v2511_v20 = vadd.f32 %v2507_v14, %v2477_v2 }
0x1729   : > { %6393 = vrot.lane.b32.xlu1 %v6387_v17, %s10565_s27 }
0x172a   : > { %6427 = vrot.lane.b32.xlu0 %v6421_v28, %s10565_s27  ;;  %v2442_v28 = vadd.f32 %v2438_v41, %v2408_v58 }
0x172d   : > { %6429 = vrot.lane.b32.xlu1 %v6422_v8, %s10565_s27  ;;  %v10730_v8 = vld [vmem:[#allocation53_spill] sm:$0xff] }
0x172e   : > { %6463 = vrot.lane.b32.xlu0 %v6456_v0, %s10565_s27  ;;  %v10731_v0 = vld [vmem:[#allocation55_spill] sm:$0xff] }
0x172f   : > { %v4386_v12 = vsel %vm2153_vm6, %v10731_v0, %v10730_v8  ;;  %v4385_v3 = vsel %vm2153_vm6, %v10734_v54, %v10731_v0 }
0x1730   : > { %v4390_v22 = vadd.f32 %v4386_v12, %v2511_v20 }
0x1731   : > { %6461 = vrot.lane.b32.xlu1 %v6455_v7, %s10565_s27  ;;  %v2476_v7 = vadd.f32 %v2472_v46, %v2442_v28 }
0x1732   : > { %v4424_v63 = vadd.f32 %v4420_v60, %v4390_v22 }
0x1733   : > { %v2510_v62 = vadd.f32 %v2506_v23, %v2476_v7 }
0x1734   : > { %v4458_v19 = vadd.f32 %v4454_v56, %v4424_v63 }
0x1735   : > { %6465 = vrot.lane.b32.xlu1 %v6457_v4, %s10565_s27  ;;  %v4389_v51 = vadd.f32 %v4385_v3, %v2510_v62  ;;  %s6570_s27 = sshll.u32 %s365_s28, 3 }
0x1736   : > { %v4492_v27 = vadd.f32 %v4488_v21, %v4458_v19  ;;  %s367_s20 = scalar_lea.vmem [#allocation6], %s6570_s27 }
0x1737   : > { %v4423_v37 = vadd.f32 %v4419_v57, %v4389_v51  ;;  %s6493_s18 = sshll.u32 %s367_s20, 4  ;;  %s6494_s18 = int_to_ptr.vmem [resolvable:$true] %s6493_s18 }
0x1738   : > { %s6833_s0 = scalar_lea.vmem %s6494_s18, 128  ;;  %p6840_p11 = scmp.lt.s32.totalorder %s6494_s18, %s6838_s30 }
0x1739   : > { %v4457_v49 = vadd.f32 %v4453_v29, %v4423_v37  ;;  %p6834_p8 = scmp.ne.s32.totalorder %s6494_s18, %s6833_s0  ;;  %p6841_p12 = scmp.lt.s32.totalorder %s6839_s17, %s6833_s0 }
0x173b   : > { %v4491_v15 = vadd.f32 %v4487_v38, %v4457_v49  ;;  %p6835_p9 = pnand %p6834_p8, %p7046_p5  ;;  %p6842_p13 = por %p6841_p12, %p6840_p11 }
0x173d   : > { %p6836_p10 = pneg %p6835_p9 }
0x173f   : > { %p6843_p0 = pnand %p6842_p13, %p6836_p10 }
0x178f   : > { %v6398_v61 = vpop.permute.xlu1 %6397  ;;  %v6364_v13 = vpop.permute.xlu0 %6363 }
0x1793   : > { %v6360_v10 = vpop.permute.xlu1 %6359 }
0x1794   : > { %v6432_v17 = vpop.permute.xlu0 %6431 }
0x1797   : > { %v6362_v4 = vpop.permute.xlu1 %6361 }
0x1798   : > { %v6396_v31 = vpop.permute.xlu0 %6395  ;;  %v6366_v16 = vsel %vm2153_vm6, %v6362_v4, %v6364_v13  ;;  %v6365_v11 = vsel %vm2153_vm6, %v6360_v10, %v6362_v4 }
0x1799   : > { %v6370_v40 = vadd.f32 %v6366_v16, %v4492_v27  ;;  %v6400_v35 = vsel %vm2153_vm6, %v6396_v31, %v6398_v61  ;;  %v6369_v59 = vadd.f32 %v6365_v11, %v4491_v15 }
0x179b   : > { %v6394_v36 = vpop.permute.xlu1 %6393  ;;  %v6404_v45 = vadd.f32 %v6400_v35, %v6370_v40 }
0x179c   : > { %v6428_v9 = vpop.permute.xlu0 %6427  ;;  %v6399_v47 = vsel %vm2153_vm6, %v6394_v36, %v6396_v31 }
0x179d   : > { %v6403_v41 = vadd.f32 %v6399_v47, %v6369_v59 }
0x179f   : > { %v6430_v43 = vpop.permute.xlu1 %6429 }
0x17a0   : > { %v6433_v44 = vsel %vm2153_vm6, %v6428_v9, %v6430_v43  ;;  %v6434_v13 = vsel %vm2153_vm6, %v6430_v43, %v6432_v17  ;;  %v6464_v6 = vpop.permute.xlu0 %6463 }
0x17a1   : > { %v6437_v25 = vadd.f32 %v6433_v44, %v6403_v41  ;;  %v6438_v34 = vadd.f32 %v6434_v13, %v6404_v45 }
0x17a3   : > { %v6462_v53 = vpop.permute.xlu1 %6461 }
0x17a4   : > { %v6467_v24 = vsel %vm2153_vm6, %v6462_v53, %v6464_v6 }
0x17a5   : > { %v6471_v10 = vadd.f32 %v6467_v24, %v6437_v25 }
0x17a7   : > { %v6466_v58 = vpop.permute.xlu1 %6465 }
0x17a8   : > { %v6468_v61 = vsel %vm2153_vm6, %v6464_v6, %v6466_v58 }
0x17a9   : > { %v6472_v30 = vadd.f32 %v6468_v61, %v6438_v34 }
0x17ab   : > { %v6475_v46 = vcombine.low %v6471_v10, %v6472_v30 }
0x17ad   : > { %6477 = vst [vmem:[%s367_s20] sm:$0xff] %v6475_v46 }
0x17ae   : > { %6846 = shalt.err (!%p6843_p0)
}
0x17af   : > { %s6847_s21 = scalar_lea.hbm %s6491_s25, 128  ;;  %s6851_s12 = scalar_lea.hbm %s10106_s10, 256 }
0x17b0   : > { %p6848_p1 = scmp.ne.s32.totalorder %s6491_s25, %s6847_s21  ;;  %p6852_p4 = scmp.lt.s32.totalorder %s6491_s25, %s10106_s10 }
0x17b1   : > { %p6853_p7 = scmp.lt.s32.totalorder %s6851_s12, %s6847_s21 }
0x17b2   : > { %p6849_p2 = pnand %p6848_p1, %p7046_p5 }
0x17b3   : > { %p6854_p6 = por %p6853_p7, %p6852_p4 }
0x17b4   : > { %p6850_p3 = pneg %p6849_p2 }
0x17b6   : > { %p6855_p8 = pnand %p6854_p6, %p6850_p3 }
0x17b8   : > { %6858 = shalt.err (!%p6855_p8)
}
0x17b9   : > { %6584 = dma.vmem_to_hbm [thread:$0]  (%p7046_p5), %s6494_s18, 128, %s6491_s25, %s6479_s26  }
0x17ba PF: > { %p6596_p9 = scmp.ge.s32.totalorder %s6897_s16, 2  ;;  %s6505_s11 = sand.u32 1, %s6885_s13  }
0x17bb   : > { %p10742_p10 = scmp.ne.s32.totalorder %s10329_s24, 0  ;;  %s6506_s0 = scalar_lea.sflag [#allocation5], %s6505_s11 }
0x17bd   : > { %p6591_p11 = pnand %p6596_p9, %p10742_p10 }
0x17bf   : > { %p6592_p12 = pneg %p6591_p11 }
0x17c1   : > { %6880 = dma.done.wait (%p6592_p12), %s6506_s0, 128  }
0x17c2   : > { %6882 = vsyncadd (%p6592_p12), %s6506_s0, 4294967168  ;;  %p21_p13 = scmp.ge.s32.totalorder %s7033_s19, 4   ;;  %s10743_s13 = smov %s6889_s14 }
0x17c3   : > { %s10744_s14 = smov %s6893_s15  ;;  %s10745_s15 = smov %s7044_s22 }
0x17c4   : > { %s10746_s16 = smov %s7033_s19  ;;  %23 = sbr.rel (!%p21_p13) target bundleno = 7 (0x7), region = 107 }
0x17c9   :  { %6511 = vsyncpa [#allocation4], 1 }
0x17ca   :  { %6513 = vsyncpa [#allocation4 + $0x1], 1 }
0x17cb   :  { %6514 = vsyncpa [#allocation5], 1 }
0x17cc   :  { %6516 = vsyncpa [#allocation5 + $0x1], 1 }

</bundles_post_ra>
